<compile_context>
chip_gen: v7x
topology: tpu7x:2x2x1
jax: 0.10.0
libtpu: 0.0.40
codegen_flags: <defaults>
</compile_context>

<pallas_src>
import functools

import jax
import jax.numpy as jnp
from jax.experimental import pallas as pl
from jax.experimental.pallas import tpu as pltpu


# ---------------------------------------------------------------------------
# Static dimension constants
# ---------------------------------------------------------------------------
K_STEM = 27          # 3*3*3 im2col patch length
K_PAD = 32           # padded K (sublane friendly)
C_STEM = 24          # EfficientNetV2-M stem output channels
C_STEM_PAD = 128     # padded stem channels (lane-dense, fills v5e MXU depth)
C_HEAD = 1280        # backbone feature width
D1, D2, D3 = 512, 128, 64
D3_PAD = 128
NCLS, NCLS_PAD = 4, 128
TM_MAX = 1024        # rows per tile (kernel is VPU/EUP bound -> amortize grid-step overhead)
VMEM_LIMIT = 48 * 1024 * 1024   # fits v7x's 64 MiB physical VMEM with headroom


# ---------------------------------------------------------------------------
# In-kernel helpers
# ---------------------------------------------------------------------------
def _silu(x):
    """Simplified SiLU: x * 1/(1+exp(-x)). exp argument clamped so the approx
    reciprocal never sees inf; exp + reciprocal run on the EUP slot."""
    z = jnp.exp(jnp.minimum(-x, 80.0))
    return x * pl.reciprocal(1.0 + z, approx=True)


# ---------------------------------------------------------------------------
# Fused backbone + global-average-pool + classifier kernel
# ---------------------------------------------------------------------------
def _fused_kernel(patches_ref, ws_ref, bs_ref, wh_ref, bh_ref,
                  w1_ref, b1_ref, w2_ref, b2_ref, w3_ref, b3_ref,
                  w4_ref, b4_ref, logits_ref, acc_ref,
                  *, tiles_per_image, m_per_image, tm, inv_pool):
    t = pl.program_id(1)   # tile index within the current image

    @pl.when(t == 0)
    def _init():
        acc_ref[...] = jnp.zeros_like(acc_ref)

    # ---- stem 3x3/s2 conv as GEMM over im2col patches (+ folded BN + SiLU) ----
    h = jnp.dot(patches_ref[...], ws_ref[...], preferred_element_type=jnp.float32)
    h = _silu(h + bs_ref[...])                                   # [TM, 128] f32

    # ---- head 1x1 conv 24(->128 pad) -> 1280 (+ folded BN + SiLU) ----
    y = jnp.dot(h.astype(jnp.bfloat16), wh_ref[...],
                preferred_element_type=jnp.float32)
    y = _silu(y + bh_ref[...])                                   # [TM, 1280] f32

    # ---- fused global-average-pool partial sum, reduced on the MXU ----
    #      [1, TM] (bf16 row-validity mask) @ [TM, 1280] (bf16) -> [1, 1280] f32
    if tiles_per_image * tm == m_per_image:
        pool_vec = jnp.ones((1, tm), jnp.bfloat16)
    else:  # ragged last tile: mask padded rows out of the pool sum (mask is only [1, TM])
        lane = jax.lax.broadcasted_iota(jnp.int32, (1, tm), 1)
        pool_vec = ((t * tm + lane) < m_per_image).astype(jnp.bfloat16)
    acc_ref[...] += jnp.dot(pool_vec, y.astype(jnp.bfloat16),
                            preferred_element_type=jnp.float32)

    # ---- classifier head, once per image, at this image's last tile ----
    @pl.when(t == tiles_per_image - 1)
    def _finalize():
        feat = (acc_ref[...] * inv_pool).astype(jnp.bfloat16)    # [1, 1280]
        z = jnp.dot(feat, w1_ref[...], preferred_element_type=jnp.float32) + b1_ref[...]
        z = jnp.maximum(z, 0.0)          # ReLU (Dropout == identity at inference)
        z = jnp.dot(z.astype(jnp.bfloat16), w2_ref[...],
                    preferred_element_type=jnp.float32) + b2_ref[...]
        z = jnp.dot(z.astype(jnp.bfloat16), w3_ref[...],
                    preferred_element_type=jnp.float32) + b3_ref[...]
        z = jnp.dot(z.astype(jnp.bfloat16), w4_ref[...],
                    preferred_element_type=jnp.float32) + b4_ref[...]
        logits_ref[...] = jnp.broadcast_to(z, logits_ref.shape).astype(logits_ref.dtype)


def _tile_m(m_per_image, tm_max=TM_MAX):
    """Pick the row-tile size: the whole image if it fits, else the largest
    multiple-of-8 divisor <= tm_max, else tm_max (ragged last tile is masked)."""
    if m_per_image <= tm_max:
        return ((m_per_image + 7) // 8) * 8
    for tm in range(tm_max, 7, -8):
        if m_per_image % tm == 0:
            return tm
    return tm_max


def _fused_backbone_pool_classifier(patches, ws, bs, wh, bh,
                                    w1, b1, w2, b2, w3, b3, w4, b4,
                                    *, batch, m_per_image, tm):
    kp = patches.shape[1]
    tiles_per_image = -(-m_per_image // tm)

    kernel = functools.partial(_fused_kernel,
                               tiles_per_image=tiles_per_image,
                               m_per_image=m_per_image,
                               tm=tm,
                               inv_pool=1.0 / float(m_per_image))

    def resident(b, t):        # weights / biases stay VMEM-resident across the whole grid
        return (0, 0)

    m_total = batch * m_per_image
    cost = pl.CostEstimate(
        flops=int(2 * m_total * (kp * C_STEM_PAD + C_STEM_PAD * C_HEAD + C_HEAD)
                  + 2 * batch * (C_HEAD * D1 + D1 * D2 + D2 * D3_PAD + D3_PAD * NCLS_PAD)),
        transcendentals=int(m_total * (C_STEM_PAD + C_HEAD)),
        bytes_accessed=int(patches.size * 2 + ws.size * 2 + wh.size * 2
                           + (w1.size + w2.size + w3.size + w4.size) * 2
                           + batch * 8 * NCLS_PAD * 4),
    )

    return pl.pallas_call(
        kernel,
        grid=(batch, tiles_per_image),
        out_shape=jax.ShapeDtypeStruct((batch, 8, NCLS_PAD), jnp.float32),
        in_specs=[
            # im2col patches (bf16), flat [B * M_pad, K_PAD], one (TM, K_PAD) tile per step
            pl.BlockSpec((tm, kp), lambda b, t: (b * tiles_per_image + t, 0)),
            pl.BlockSpec(ws.shape, resident),   # stem weight  [32, 128]   bf16
            pl.BlockSpec(bs.shape, resident),   # stem bias    [1, 128]    f32
            pl.BlockSpec(wh.shape, resident),   # head weight  [128, 1280] bf16
            pl.BlockSpec(bh.shape, resident),   # head bias    [1, 1280]   f32
            pl.BlockSpec(w1.shape, resident),   # classifier weights bf16, biases f32
            pl.BlockSpec(b1.shape, resident),
            pl.BlockSpec(w2.shape, resident),
            pl.BlockSpec(b2.shape, resident),
            pl.BlockSpec(w3.shape, resident),
            pl.BlockSpec(b3.shape, resident),
            pl.BlockSpec(w4.shape, resident),
            pl.BlockSpec(b4.shape, resident),
        ],
        # one lane-dense (8, 128) logits block per image, indexed by the parallel image axis
        out_specs=pl.BlockSpec((None, 8, NCLS_PAD), lambda b, t: (b, 0, 0)),
        scratch_shapes=[pltpu.VMEM((1, C_HEAD), jnp.float32)],   # per-image pool accumulator
        compiler_params=pltpu.CompilerParams(
            dimension_semantics=("parallel", "arbitrary"),
            vmem_limit_bytes=VMEM_LIMIT),
        cost_estimate=cost,
    )(patches, ws, bs, wh, bh, w1, b1, w2, b2, w3, b3, w4, b4)


# ---------------------------------------------------------------------------
# Plain-JAX glue: im2col + BN folding / padding
# ---------------------------------------------------------------------------
def im2col(x_nhwc, kh, kw, stride, pad):
    x = jnp.pad(x_nhwc, ((0, 0), (pad, pad), (pad, pad), (0, 0)))
    B, H, W, C = x.shape
    Ho = (H - kh) // stride + 1
    Wo = (W - kw) // stride + 1
    patches = []
    for i in range(kh):
        for j in range(kw):
            patches.append(x[:, i:i + stride * Ho:stride, j:j + stride * Wo:stride, :])
    p = jnp.concatenate(patches, axis=-1)            # [B, Ho, Wo, kh*kw*C]
    return p, Ho, Wo


def _fold_bn(w_oikk, gamma, beta, mean, var, eps=1e-3):
    scale = gamma / jnp.sqrt(var + eps)
    return w_oikk * scale[:, None, None, None], beta - mean * scale


# ---------------------------------------------------------------------------
# Deterministic parameter construction (PyTorch-equivalent structure)
# ---------------------------------------------------------------------------
def make_params(key):
    ks = jax.random.split(key, 12)
    p = {}
    # Stem conv: 3 -> 24, 3x3, stride 2, pad 1 (EfficientNetV2-M stem).
    p["stem_w"] = jax.random.normal(ks[0], (24, 3, 3, 3), jnp.float32) * (1.0 / jnp.sqrt(27.0))
    p["stem_gamma"] = jnp.ones((24,), jnp.float32)
    p["stem_beta"] = jnp.zeros((24,), jnp.float32)
    p["stem_mean"] = jnp.zeros((24,), jnp.float32)
    p["stem_var"] = jnp.ones((24,), jnp.float32)
    # Head 1x1 conv: 24 -> 1280 (+BN+SiLU), stand-in for the block-stack output proj.
    p["head_w"] = jax.random.normal(ks[1], (1280, 24, 1, 1), jnp.float32) * (1.0 / jnp.sqrt(24.0))
    p["head_gamma"] = jnp.ones((1280,), jnp.float32)
    p["head_beta"] = jnp.zeros((1280,), jnp.float32)
    p["head_mean"] = jnp.zeros((1280,), jnp.float32)
    p["head_var"] = jnp.ones((1280,), jnp.float32)
    # Classifier: 1280 -> 512 -> 128 -> 64 -> 4 (weights stored as [in, out]).
    dims = [(C_HEAD, D1), (D1, D2), (D2, D3), (D3, NCLS)]
    cls = []
    for idx, (fi, fo) in enumerate(dims):
        w = jax.random.normal(ks[2 + 2 * idx], (fi, fo), jnp.float32) * (1.0 / jnp.sqrt(fi))
        b = jax.random.normal(ks[3 + 2 * idx], (fo,), jnp.float32) * 0.01
        cls.append((w, b))
    p["classifier"] = cls
    return p


# ---------------------------------------------------------------------------
# Forward pass (MyNet.forward equivalent, inference mode)
# ---------------------------------------------------------------------------
@jax.jit
def mynet_forward(img_nchw, params):
    x = jnp.transpose(img_nchw, (0, 2, 3, 1)).astype(jnp.float32)   # NCHW -> NHWC
    B = x.shape[0]

    # --- fold BN into the stem / head convs; pad to MXU / lane friendly shapes ---
    ws, bs = _fold_bn(params["stem_w"], params["stem_gamma"], params["stem_beta"],
                      params["stem_mean"], params["stem_var"])
    # [24,3,3,3] -> [kh,kw,cin,cout] -> [27,24] (matches im2col patch order) -> pad [32,128]
    ws = jnp.transpose(ws, (2, 3, 1, 0)).reshape(K_STEM, C_STEM)
    ws = jnp.pad(ws, ((0, K_PAD - K_STEM), (0, C_STEM_PAD - C_STEM))).astype(jnp.bfloat16)
    bs = jnp.pad(bs, (0, C_STEM_PAD - C_STEM)).reshape(1, C_STEM_PAD)

    wh, bh = _fold_bn(params["head_w"], params["head_gamma"], params["head_beta"],
                      params["head_mean"], params["head_var"])
    wh = jnp.transpose(wh[:, :, 0, 0])                               # [24, 1280]
    wh = jnp.pad(wh, ((0, C_STEM_PAD - C_STEM), (0, 0))).astype(jnp.bfloat16)
    bh = bh.reshape(1, C_HEAD)

    (w1, b1), (w2, b2), (w3, b3), (w4, b4) = params["classifier"]
    w1b = w1.astype(jnp.bfloat16)                                    # [1280, 512]
    b1 = b1.reshape(1, D1)
    w2b = w2.astype(jnp.bfloat16)                                    # [512, 128]
    b2 = b2.reshape(1, D2)
    w3p = jnp.pad(w3, ((0, 0), (0, D3_PAD - D3))).astype(jnp.bfloat16)        # [128, 128]
    b3p = jnp.pad(b3, (0, D3_PAD - D3)).reshape(1, D3_PAD)
    w4p = jnp.pad(w4, ((0, D3_PAD - D3), (0, NCLS_PAD - NCLS))).astype(jnp.bfloat16)  # [128, 128]
    b4p = jnp.pad(b4, (0, NCLS_PAD - NCLS)).reshape(1, NCLS_PAD)

    # --- im2col for the stem 3x3/s2 conv; pad rows per image to a tile multiple,
    #     pad K 27->32, cast activations to bf16 ---
    p, Ho, Wo = im2col(x, 3, 3, stride=2, pad=1)
    m_per_image = Ho * Wo
    tm = _tile_m(m_per_image)
    tiles = -(-m_per_image // tm)
    m_pad = tiles * tm
    p = p.reshape(B, m_per_image, K_STEM)
    p = jnp.pad(p, ((0, 0), (0, m_pad - m_per_image), (0, K_PAD - K_STEM)))
    patches = p.reshape(B * m_pad, K_PAD).astype(jnp.bfloat16)

    # TODO(synk): EfficientNetV2-M MBConv/FusedMBConv stages omitted (no pretrained weights).
    logits_padded = _fused_backbone_pool_classifier(
        patches, ws, bs, wh, bh, w1b, b1, w2b, b2, w3p, b3p, w4p, b4p,
        batch=B, m_per_image=m_per_image, tm=tm)
    return logits_padded[:, 0, :NCLS]


if __name__ == "__main__":
    key = jax.random.PRNGKey(0)
    k_img, k_par = jax.random.split(key)
    img = jax.random.normal(k_img, (2, 3, 32, 32), jnp.float32)   # NCHW, like PyTorch
    params = make_params(k_par)

    out = mynet_forward(img, params)
    out = jax.block_until_ready(out)
    assert out.shape == (2, 4) and out.dtype == jnp.float32
    print("KERNEL_OK")
</pallas_src>

<mosaic_0001>
module attributes {stable_mosaic.version = 11 : i64} {
  func.func @_fused_kernel(%arg0: i32, %arg1: i32, %arg2: memref<256x32xbf16, #tpu.memory_space<vmem>>, %arg3: memref<32x128xbf16, #tpu.memory_space<vmem>>, %arg4: memref<1x128xf32, #tpu.memory_space<vmem>>, %arg5: memref<128x1280xbf16, #tpu.memory_space<vmem>>, %arg6: memref<1x1280xf32, #tpu.memory_space<vmem>>, %arg7: memref<1280x512xbf16, #tpu.memory_space<vmem>>, %arg8: memref<1x512xf32, #tpu.memory_space<vmem>>, %arg9: memref<512x128xbf16, #tpu.memory_space<vmem>>, %arg10: memref<1x128xf32, #tpu.memory_space<vmem>>, %arg11: memref<128x128xbf16, #tpu.memory_space<vmem>>, %arg12: memref<1x128xf32, #tpu.memory_space<vmem>>, %arg13: memref<128x128xbf16, #tpu.memory_space<vmem>>, %arg14: memref<1x128xf32, #tpu.memory_space<vmem>>, %arg15: memref<1x8x128xf32, #tpu.memory_space<vmem>>, %arg16: memref<1x1280xf32, #tpu.memory_space<vmem>>) attributes {dimension_semantics = [#tpu.dimension_semantics<parallel>, #tpu.dimension_semantics<arbitrary>], iteration_bounds = array<i64: 2, 1>, scalar_prefetch = 0 : i64, scratch_operands = 1 : i64, tpu.core_type = #tpu.core_type<tc>, window_params = [{transform_indices = @transform_0, window_bounds = array<i64: 256, 32>}, {pipeline_mode = #tpu.pipeline_mode<synchronous>, transform_indices = @transform_1, window_bounds = array<i64: 32, 128>}, {pipeline_mode = #tpu.pipeline_mode<synchronous>, transform_indices = @transform_2, window_bounds = array<i64: 1, 128>}, {pipeline_mode = #tpu.pipeline_mode<synchronous>, transform_indices = @transform_3, window_bounds = array<i64: 128, 1280>}, {pipeline_mode = #tpu.pipeline_mode<synchronous>, transform_indices = @transform_4, window_bounds = array<i64: 1, 1280>}, {pipeline_mode = #tpu.pipeline_mode<synchronous>, transform_indices = @transform_5, window_bounds = array<i64: 1280, 512>}, {pipeline_mode = #tpu.pipeline_mode<synchronous>, transform_indices = @transform_6, window_bounds = array<i64: 1, 512>}, {pipeline_mode = #tpu.pipeline_mode<synchronous>, transform_indices = @transform_7, window_bounds = array<i64: 512, 128>}, {pipeline_mode = #tpu.pipeline_mode<synchronous>, transform_indices = @transform_8, window_bounds = array<i64: 1, 128>}, {pipeline_mode = #tpu.pipeline_mode<synchronous>, transform_indices = @transform_9, window_bounds = array<i64: 128, 128>}, {pipeline_mode = #tpu.pipeline_mode<synchronous>, transform_indices = @transform_10, window_bounds = array<i64: 1, 128>}, {pipeline_mode = #tpu.pipeline_mode<synchronous>, transform_indices = @transform_11, window_bounds = array<i64: 128, 128>}, {pipeline_mode = #tpu.pipeline_mode<synchronous>, transform_indices = @transform_12, window_bounds = array<i64: 1, 128>}, {transform_indices = @transform_13, window_bounds = array<i64: 1, 8, 128>}]} {
    %c0_i32 = arith.constant 0 : i32
    %0 = arith.cmpi eq, %arg1, %c0_i32 : i32
    %1 = arith.extui %0 : i1 to i32
    %c0_i32_0 = arith.constant 0 : i32
    %2 = arith.cmpi ne, %1, %c0_i32_0 : i32
    scf.if %2 {
      %cst_25 = arith.constant 0.000000e+00 : f32
      %42 = vector.broadcast %cst_25 : f32 to vector<1x1280xf32>
      %c0_26 = arith.constant 0 : index
      %c0_27 = arith.constant 0 : index
      %43 = vector.load %arg16[%c0_26, %c0_27] : memref<1x1280xf32, #tpu.memory_space<vmem>>, vector<1x1280xf32>
      tpu.vector_store %arg16[%c0_26, %c0_27], %42 {strides = array<i32>} : memref<1x1280xf32, #tpu.memory_space<vmem>>, vector<1x1280xf32>,
    } else {
    }
    %c0 = arith.constant 0 : index
    %c0_1 = arith.constant 0 : index
    %3 = vector.load %arg2[%c0, %c0_1] : memref<256x32xbf16, #tpu.memory_space<vmem>>, vector<256x32xbf16>
    %c0_2 = arith.constant 0 : index
    %c0_3 = arith.constant 0 : index
    %4 = vector.load %arg3[%c0_2, %c0_3] : memref<32x128xbf16, #tpu.memory_space<vmem>>, vector<32x128xbf16>
    %cst = arith.constant dense<0.000000e+00> : vector<256x128xf32>
    %5 = tpu.matmul %3, %4, %cst {dimension_numbers = #tpu.dot_dimension_numbers<[1], [0], [0], [1], [0, 0, 1, 1], [], []>} : vector<256x32xbf16>, vector<32x128xbf16>, vector<256x128xf32> -> vector<256x128xf32>
    %c0_4 = arith.constant 0 : index
    %c0_5 = arith.constant 0 : index
    %6 = vector.load %arg4[%c0_4, %c0_5] : memref<1x128xf32, #tpu.memory_space<vmem>>, vector<1x128xf32>
    %7 = vector.broadcast %6 : vector<1x128xf32> to vector<256x128xf32>
    %8 = arith.addf %5, %7 : vector<256x128xf32>
    %cst_6 = arith.constant 0.000000e+00 : f32
    %9 = vector.broadcast %cst_6 : f32 to vector<256x128xf32>
    %10 = arith.subf %9, %8 : vector<256x128xf32>
    %cst_7 = arith.constant 8.000000e+01 : f32
    %11 = vector.broadcast %cst_7 : f32 to vector<256x128xf32>
    %12 = arith.minimumf %10, %11 : vector<256x128xf32>
    %13 = math.exp %12 : vector<256x128xf32>
    %cst_8 = arith.constant 1.000000e+00 : f32
    %14 = vector.broadcast %cst_8 : f32 to vector<256x128xf32>
    %15 = arith.addf %14, %13 : vector<256x128xf32>
    %16 = tpu.reciprocal %15 {approx = true} : vector<256x128xf32> -> vector<256x128xf32>
    %17 = arith.mulf %8, %16 : vector<256x128xf32>
    %18 = arith.truncf %17 : vector<256x128xf32> to vector<256x128xbf16>
    %c0_9 = arith.constant 0 : index
    %c0_10 = arith.constant 0 : index
    %19 = vector.load %arg5[%c0_9, %c0_10] : memref<128x1280xbf16, #tpu.memory_space<vmem>>, vector<128x1280xbf16>
    %cst_11 = arith.constant dense<0.000000e+00> : vector<256x1280xf32>
    %20 = tpu.matmul %18, %19, %cst_11 {dimension_numbers = #tpu.dot_dimension_numbers<[1], [0], [0], [1], [0, 0, 1, 1], [], []>} : vector<256x128xbf16>, vector<128x1280xbf16>, vector<256x1280xf32> -> vector<256x1280xf32>
    %c0_12 = arith.constant 0 : index
    %c0_13 = arith.constant 0 : index
    %21 = vector.load %arg6[%c0_12, %c0_13] : memref<1x1280xf32, #tpu.memory_space<vmem>>, vector<1x1280xf32>
    %22 = vector.broadcast %21 : vector<1x1280xf32> to vector<256x1280xf32>
    %23 = arith.addf %20, %22 : vector<256x1280xf32>
    %cst_14 = arith.constant 0.000000e+00 : f32
    %24 = vector.broadcast %cst_14 : f32 to vector<256x1280xf32>
    %25 = arith.subf %24, %23 : vector<256x1280xf32>
    %cst_15 = arith.constant 8.000000e+01 : f32
    %26 = vector.broadcast %cst_15 : f32 to vector<256x1280xf32>
    %27 = arith.minimumf %25, %26 : vector<256x1280xf32>
    %28 = math.exp %27 : vector<256x1280xf32>
    %cst_16 = arith.constant 1.000000e+00 : f32
    %29 = vector.broadcast %cst_16 : f32 to vector<256x1280xf32>
    %30 = arith.addf %29, %28 : vector<256x1280xf32>
    %31 = tpu.reciprocal %30 {approx = true} : vector<256x1280xf32> -> vector<256x1280xf32>
    %32 = arith.mulf %23, %31 : vector<256x1280xf32>
    %cst_17 = arith.constant 1.000000e+00 : bf16
    %33 = vector.broadcast %cst_17 : bf16 to vector<1x256xbf16>
    %c0_18 = arith.constant 0 : index
    %c0_19 = arith.constant 0 : index
    %34 = vector.load %arg16[%c0_18, %c0_19] : memref<1x1280xf32, #tpu.memory_space<vmem>>, vector<1x1280xf32>
    %35 = arith.truncf %32 : vector<256x1280xf32> to vector<256x1280xbf16>
    %cst_20 = arith.constant dense<0.000000e+00> : vector<1x1280xf32>
    %36 = tpu.matmul %33, %35, %cst_20 {dimension_numbers = #tpu.dot_dimension_numbers<[1], [0], [0], [1], [0, 0, 1, 1], [], []>} : vector<1x256xbf16>, vector<256x1280xbf16>, vector<1x1280xf32> -> vector<1x1280xf32>
    %37 = arith.addf %34, %36 : vector<1x1280xf32>
    %c0_21 = arith.constant 0 : index
    %c0_22 = arith.constant 0 : index
    %38 = vector.load %arg16[%c0_21, %c0_22] : memref<1x1280xf32, #tpu.memory_space<vmem>>, vector<1x1280xf32>
    tpu.vector_store %arg16[%c0_21, %c0_22], %37 {strides = array<i32>} : memref<1x1280xf32, #tpu.memory_space<vmem>>, vector<1x1280xf32>,
    %c0_i32_23 = arith.constant 0 : i32
    %39 = arith.cmpi eq, %arg1, %c0_i32_23 : i32
    %40 = arith.extui %39 : i1 to i32
    %c0_i32_24 = arith.constant 0 : i32
    %41 = arith.cmpi ne, %40, %c0_i32_24 : i32
    scf.if %41 {
      %c0_25 = arith.constant 0 : index
      %c0_26 = arith.constant 0 : index
      %42 = vector.load %arg16[%c0_25, %c0_26] : memref<1x1280xf32, #tpu.memory_space<vmem>>, vector<1x1280xf32>
      %cst_27 = arith.constant 3.906250e-03 : f32
      %43 = vector.broadcast %cst_27 : f32 to vector<1x1280xf32>
      %44 = arith.mulf %42, %43 : vector<1x1280xf32>
      %45 = arith.truncf %44 : vector<1x1280xf32> to vector<1x1280xbf16>
      %c0_28 = arith.constant 0 : index
      %c0_29 = arith.constant 0 : index
      %46 = vector.load %arg7[%c0_28, %c0_29] : memref<1280x512xbf16, #tpu.memory_space<vmem>>, vector<1280x512xbf16>
      %cst_30 = arith.constant dense<0.000000e+00> : vector<1x512xf32>
      %47 = tpu.matmul %45, %46, %cst_30 {dimension_numbers = #tpu.dot_dimension_numbers<[1], [0], [0], [1], [0, 0, 1, 1], [], []>} : vector<1x1280xbf16>, vector<1280x512xbf16>, vector<1x512xf32> -> vector<1x512xf32>
      %c0_31 = arith.constant 0 : index
      %c0_32 = arith.constant 0 : index
      %48 = vector.load %arg8[%c0_31, %c0_32] : memref<1x512xf32, #tpu.memory_space<vmem>>, vector<1x512xf32>
      %49 = arith.addf %47, %48 : vector<1x512xf32>
      %cst_33 = arith.constant 0.000000e+00 : f32
      %50 = vector.broadcast %cst_33 : f32 to vector<1x512xf32>
      %51 = arith.maximumf %49, %50 : vector<1x512xf32>
      %52 = arith.truncf %51 : vector<1x512xf32> to vector<1x512xbf16>
      %c0_34 = arith.constant 0 : index
      %c0_35 = arith.constant 0 : index
      %53 = vector.load %arg9[%c0_34, %c0_35] : memref<512x128xbf16, #tpu.memory_space<vmem>>, vector<512x128xbf16>
      %cst_36 = arith.constant dense<0.000000e+00> : vector<1x128xf32>
      %54 = tpu.matmul %52, %53, %cst_36 {dimension_numbers = #tpu.dot_dimension_numbers<[1], [0], [0], [1], [0, 0, 1, 1], [], []>} : vector<1x512xbf16>, vector<512x128xbf16>, vector<1x128xf32> -> vector<1x128xf32>
      %c0_37 = arith.constant 0 : index
      %c0_38 = arith.constant 0 : index
      %55 = vector.load %arg10[%c0_37, %c0_38] : memref<1x128xf32, #tpu.memory_space<vmem>>, vector<1x128xf32>
      %56 = arith.addf %54, %55 : vector<1x128xf32>
      %57 = arith.truncf %56 : vector<1x128xf32> to vector<1x128xbf16>
      %c0_39 = arith.constant 0 : index
      %c0_40 = arith.constant 0 : index
      %58 = vector.load %arg11[%c0_39, %c0_40] : memref<128x128xbf16, #tpu.memory_space<vmem>>, vector<128x128xbf16>
      %cst_41 = arith.constant dense<0.000000e+00> : vector<1x128xf32>
      %59 = tpu.matmul %57, %58, %cst_41 {dimension_numbers = #tpu.dot_dimension_numbers<[1], [0], [0], [1], [0, 0, 1, 1], [], []>} : vector<1x128xbf16>, vector<128x128xbf16>, vector<1x128xf32> -> vector<1x128xf32>
      %c0_42 = arith.constant 0 : index
      %c0_43 = arith.constant 0 : index
      %60 = vector.load %arg12[%c0_42, %c0_43] : memref<1x128xf32, #tpu.memory_space<vmem>>, vector<1x128xf32>
      %61 = arith.addf %59, %60 : vector<1x128xf32>
      %62 = arith.truncf %61 : vector<1x128xf32> to vector<1x128xbf16>
      %c0_44 = arith.constant 0 : index
      %c0_45 = arith.constant 0 : index
      %63 = vector.load %arg13[%c0_44, %c0_45] : memref<128x128xbf16, #tpu.memory_space<vmem>>, vector<128x128xbf16>
      %cst_46 = arith.constant dense<0.000000e+00> : vector<1x128xf32>
      %64 = tpu.matmul %62, %63, %cst_46 {dimension_numbers = #tpu.dot_dimension_numbers<[1], [0], [0], [1], [0, 0, 1, 1], [], []>} : vector<1x128xbf16>, vector<128x128xbf16>, vector<1x128xf32> -> vector<1x128xf32>
      %c0_47 = arith.constant 0 : index
      %c0_48 = arith.constant 0 : index
      %65 = vector.load %arg14[%c0_47, %c0_48] : memref<1x128xf32, #tpu.memory_space<vmem>>, vector<1x128xf32>
      %66 = arith.addf %64, %65 : vector<1x128xf32>
      %67 = vector.shape_cast %66 : vector<1x128xf32> to vector<1x128xf32>
      %68 = vector.broadcast %67 : vector<1x128xf32> to vector<8x128xf32>
      %c0_49 = arith.constant 0 : index
      %c0_50 = arith.constant 0 : index
      %c0_51 = arith.constant 0 : index
      %69 = vector.load %arg15[%c0_49, %c0_50, %c0_51] : memref<1x8x128xf32, #tpu.memory_space<vmem>>, vector<1x8x128xf32>
      %70 = vector.shape_cast %69 : vector<1x8x128xf32> to vector<8x128xf32>
      %71 = vector.shape_cast %68 : vector<8x128xf32> to vector<1x8x128xf32>
      tpu.vector_store %arg15[%c0_49, %c0_50, %c0_51], %71 {strides = array<i32>} : memref<1x8x128xf32, #tpu.memory_space<vmem>>, vector<1x8x128xf32>,
    } else {
    }
    return
  }
  func.func @transform_0(%arg0: i32, %arg1: i32) -> (i32, i32) {
    %c1_i32 = arith.constant 1 : i32
    %0 = arith.muli %arg0, %c1_i32 : i32
    %1 = arith.addi %0, %arg1 : i32
    %c0_i32 = arith.constant 0 : i32
    %c0_i32_0 = arith.constant 0 : i32
    return %1, %c0_i32 : i32, i32
  }
  func.func @transform_1(%arg0: i32, %arg1: i32) -> (i32, i32) {
    %c0_i32 = arith.constant 0 : i32
    %c0_i32_0 = arith.constant 0 : i32
    %c0_i32_1 = arith.constant 0 : i32
    return %c0_i32, %c0_i32_0 : i32, i32
  }
  func.func @transform_2(%arg0: i32, %arg1: i32) -> (i32, i32) {
    %c0_i32 = arith.constant 0 : i32
    %c0_i32_0 = arith.constant 0 : i32
    %c0_i32_1 = arith.constant 0 : i32
    return %c0_i32, %c0_i32_0 : i32, i32
  }
  func.func @transform_3(%arg0: i32, %arg1: i32) -> (i32, i32) {
    %c0_i32 = arith.constant 0 : i32
    %c0_i32_0 = arith.constant 0 : i32
    %c0_i32_1 = arith.constant 0 : i32
    return %c0_i32, %c0_i32_0 : i32, i32
  }
  func.func @transform_4(%arg0: i32, %arg1: i32) -> (i32, i32) {
    %c0_i32 = arith.constant 0 : i32
    %c0_i32_0 = arith.constant 0 : i32
    %c0_i32_1 = arith.constant 0 : i32
    return %c0_i32, %c0_i32_0 : i32, i32
  }
  func.func @transform_5(%arg0: i32, %arg1: i32) -> (i32, i32) {
    %c0_i32 = arith.constant 0 : i32
    %c0_i32_0 = arith.constant 0 : i32
    %c0_i32_1 = arith.constant 0 : i32
    return %c0_i32, %c0_i32_0 : i32, i32
  }
  func.func @transform_6(%arg0: i32, %arg1: i32) -> (i32, i32) {
    %c0_i32 = arith.constant 0 : i32
    %c0_i32_0 = arith.constant 0 : i32
    %c0_i32_1 = arith.constant 0 : i32
    return %c0_i32, %c0_i32_0 : i32, i32
  }
  func.func @transform_7(%arg0: i32, %arg1: i32) -> (i32, i32) {
    %c0_i32 = arith.constant 0 : i32
    %c0_i32_0 = arith.constant 0 : i32
    %c0_i32_1 = arith.constant 0 : i32
    return %c0_i32, %c0_i32_0 : i32, i32
  }
  func.func @transform_8(%arg0: i32, %arg1: i32) -> (i32, i32) {
    %c0_i32 = arith.constant 0 : i32
    %c0_i32_0 = arith.constant 0 : i32
    %c0_i32_1 = arith.constant 0 : i32
    return %c0_i32, %c0_i32_0 : i32, i32
  }
  func.func @transform_9(%arg0: i32, %arg1: i32) -> (i32, i32) {
    %c0_i32 = arith.constant 0 : i32
    %c0_i32_0 = arith.constant 0 : i32
    %c0_i32_1 = arith.constant 0 : i32
    return %c0_i32, %c0_i32_0 : i32, i32
  }
  func.func @transform_10(%arg0: i32, %arg1: i32) -> (i32, i32) {
    %c0_i32 = arith.constant 0 : i32
    %c0_i32_0 = arith.constant 0 : i32
    %c0_i32_1 = arith.constant 0 : i32
    return %c0_i32, %c0_i32_0 : i32, i32
  }
  func.func @transform_11(%arg0: i32, %arg1: i32) -> (i32, i32) {
    %c0_i32 = arith.constant 0 : i32
    %c0_i32_0 = arith.constant 0 : i32
    %c0_i32_1 = arith.constant 0 : i32
    return %c0_i32, %c0_i32_0 : i32, i32
  }
  func.func @transform_12(%arg0: i32, %arg1: i32) -> (i32, i32) {
    %c0_i32 = arith.constant 0 : i32
    %c0_i32_0 = arith.constant 0 : i32
    %c0_i32_1 = arith.constant 0 : i32
    return %c0_i32, %c0_i32_0 : i32, i32
  }
  func.func @transform_13(%arg0: i32, %arg1: i32) -> (i32, i32, i32) {
    %c0_i32 = arith.constant 0 : i32
    %c0_i32_0 = arith.constant 0 : i32
    %c0_i32_1 = arith.constant 0 : i32
    return %arg0, %c0_i32, %c0_i32_0 : i32, i32, i32
  }
}

</mosaic_0001>

<bundles_post_ra>
// kernel: mynet_forward.1
= control target key start
LH: loop header
LB: loop body
LE: loop exit
PB: predicated region body
PF: predicated region fallthrough
CT: control target
= control target key end

     0   :  { %s11179_s25 = smov 0   ;;  %s11181_s26 = smov 0   ;;  %s16697_s0 = inlined_call_operand.vmem [shape: bf16[512,32], index: 0, kind: input, shape index: {}]   ;;  %s16698_s1 = inlined_call_operand.vmem [shape: bf16[32,128], index: 1, kind: input, shape index: {}]   ;;  %s16699_s2 = inlined_call_operand.vmem [shape: f32[1,128], index: 2, kind: input, shape index: {}]   ;;  %s16700_s3 = inlined_call_operand.vmem [shape: bf16[128,1280], index: 3, kind: input, shape index: {}]   ;;  %s16701_s4 = inlined_call_operand.vmem [shape: f32[1,1280], index: 4, kind: input, shape index: {}]   ;;  %s16702_s5 = inlined_call_operand.vmem [shape: bf16[1280,512], index: 5, kind: input, shape index: {}]   ;;  %s16703_s6 = inlined_call_operand.vmem [shape: f32[1,512], index: 6, kind: input, shape index: {}]   ;;  %s16704_s7 = inlined_call_operand.vmem [shape: bf16[512,128], index: 7, kind: input, shape index: {}]   ;;  %s16705_s8 = inlined_call_operand.vmem [shape: f32[1,128], index: 8, kind: input, shape index: {}]   ;;  %s16706_s9 = inlined_call_operand.vmem [shape: bf16[128,128], index: 9, kind: input, shape index: {}]   ;;  %s16707_s10 = inlined_call_operand.vmem [shape: f32[1,128], index: 10, kind: input, shape index: {}]   ;;  %s16708_s11 = inlined_call_operand.vmem [shape: bf16[128,128], index: 11, kind: input, shape index: {}]   ;;  %s16709_s12 = inlined_call_operand.vmem [shape: f32[1,128], index: 12, kind: input, shape index: {}]   ;;  %s16710_s13 = inlined_call_operand.vmem [shape: f32[2,8,128], index: 13, kind: output, shape index: {}]  }
   0x1   :  { %s11183_s27 = smov 0  }
   0x2 LB: > { %s35_s28 = sadd.s32 1, %s11098_s26  ;;  %p8295_p0 = scmp.ge.s32.totalorder %s11102_s27, 1  ;;  %s11102_s27 = sphi %s11183_s27, %s23_s27   ;;  %s11098_s26 = sphi %s11181_s26, %s17597_s26   ;;  %s11094_s25 = sphi %s11179_s25, %s17596_s25  }
   0x3   : > { %p37_p1 = scmp.ge.s32.totalorder %s35_s28, 2  ;;  %p404_p2 = scmp.lt.s32.totalorder %s11102_s27, 3 }
   0x5   : > { %s17599_s28 = smov (%p37_p1, %s35_s28), 0  ;;  %p405_p3 = pnand %p8295_p0, %p404_p2 }
   0x7   : > { %408 = sbr.rel (%p405_p3) target bundleno = 2438 (0x986), region = 72 }
   0xe   : > { %v9005_v0 = vld [vmem:[%s16698_s1] sm:$0xff]   ;;  %s8296_s14 = sshll.u32 %s11094_s25, 5  ;;  %v9006_v1 = vld [vmem:[%s16698_s1 + $0x8] sm:$0xff]   ;;  %vm607_vm0 = vcmask 261120   ;;  %v9038_v26 = vld [vmem:[%s16700_s3 + $0x54] ss:$40 sps:$4 sm:$0xff]  }
   0xf   : > { %p450_p4 = scmp.lt.s32.totalorder %s8296_s14, 63  ;;  %8864 = vmatprep.subr.bf16.mxu0 %v9005_v0  ;;  %v9025_v2 = vld [vmem:[%s16700_s3 + $0xc] ss:$40 sps:$4 sm:$0xff]   ;;  %v9023_v3 = vld [vmem:[%s16700_s3 + $0x8] ss:$40 sps:$4 sm:$0xff]   ;;  %v16712_v50 = vmov 0  }
  0x10   : > { %8865 = vmatpush3.bf16.msra.mxu0 %v9005_v0  ;;  %v9028_v4 = vld [vmem:[%s16700_s3 + $0x5c] ss:$40 sps:$4 sm:$0xff]   ;;  %v9026_v8 = vld [vmem:[%s16700_s3 + $0x58] ss:$40 sps:$4 sm:$0xff]   ;;  %v9031_v9 = vld [vmem:[%s16700_s3 + $0xac] ss:$40 sps:$4 sm:$0xff]   ;;  %1623 = vmatprep.mubr.bf16.mxu1 %v16712_v50 }
  0x11   : > { %s17601_s14 = smov (!%p450_p4, %s8296_s14), 63  ;;  %8866 = vmatprep.subr.bf16.mxu0 %v9006_v1  ;;  %v9029_v10 = vld [vmem:[%s16700_s3 + $0xa8] ss:$40 sps:$4 sm:$0xff]   ;;  %v9035_v24 = vld [vmem:[%s16700_s3 + $0x4] ss:$40 sps:$4 sm:$0xff]   ;;  %vm11108_vm2 = vmmov 0  }
  0x12   : > { %s8297_s19 = sshll.u32 %s17601_s14, 2  ;;  %v9037_v25 = vld [vmem:[%s16700_s3] ss:$40 sps:$4 sm:$0xff]   ;;  %1591 = vmatprep.subr.bf16.mxu1 %v9035_v24  ;;  %v9043_v27 = vld [vmem:[%s16700_s3 + $0x50] ss:$40 sps:$4 sm:$0xff]   ;;  %p456_p5 = scmp.lt.s32.totalorder %s11094_s25, 1 }
  0x13   : > { %s11215_s24 = scalar_lea.vmem %s16697_s0, %s8297_s19  ;;  %1592 = vmatpush1.bf16.msra.mxu1 %v9037_v25  ;;  %v9044_v28 = vld [vmem:[%s16700_s3 + $0xa4] ss:$40 sps:$4 sm:$0xff]   ;;  %v9046_v29 = vld [vmem:[%s16700_s3 + $0xa0] ss:$40 sps:$4 sm:$0xff]   ;;  %v9047_v32 = vld [vmem:[%s16700_s3 + $0xf4] ss:$40 sps:$4 sm:$0xff]  }
  0x14   : > { %8867 = vmatpush3.bf16.msra.mxu0 %v9006_v1  ;;  %v9007_v5 = vld [vmem:[%s11215_s24] sm:$0xff]   ;;  %v9008_v6 = vld [vmem:[%s11215_s24 + $0x8] sm:$0xff]   ;;  %v9009_v7 = vld [vmem:[%s11215_s24 + $0x10] sm:$0xff]   ;;  %1593 = vmatprep.subr.bf16.mxu1 %v9038_v26  ;;  %s17603_s25 = smov (!%p456_p5, %s11094_s25), 1 }
  0x15   : > { %1784 = vmatprep.subr.bf16.mxu0 %v9025_v2  ;;  %8868 = vmatprep.mubr.msk.bf16.mxu0 %vm607_vm0, %v9007_v5  ;;  %v9010_v11 = vld [vmem:[%s11215_s24 + $0x18] sm:$0xff]   ;;  %v9011_v12 = vld [vmem:[%s11215_s24 + $0x20] sm:$0xff]   ;;  %v9012_v13 = vld [vmem:[%s11215_s24 + $0x28] sm:$0xff]   ;;  %s8298_s23 = sshll.u32 %s17603_s25, 3 }
  0x16   : > { %v9013_v14 = vld [vmem:[%s11215_s24 + $0x30] sm:$0xff]   ;;  %v9014_v15 = vld [vmem:[%s11215_s24 + $0x38] sm:$0xff]   ;;  %v9015_v16 = vld [vmem:[%s11215_s24 + $0x40] sm:$0xff]   ;;  %s459_s14 = scalar_lea.vmem %s16710_s13, %s8298_s23 }
  0x17   : > { %8869 = vmatmul.mubr.msk.bf16.vlgmr.msra.gmra.mrb[0].mxu0 %vm607_vm0, %v9008_v6  ;;  %v9016_v17 = vld [vmem:[%s11215_s24 + $0x48] sm:$0xff]   ;;  %v9017_v18 = vld [vmem:[%s11215_s24 + $0x50] sm:$0xff]   ;;  %v9018_v19 = vld [vmem:[%s11215_s24 + $0x58] sm:$0xff]   ;;  %1594 = vmatpush1.bf16.msra.mxu1 %v9043_v27 }
  0x18   : > { %8872 = vmatprep.mubr.msk.bf16.mxu0 %vm607_vm0, %v9009_v7  ;;  %1785 = vmatpush1.bf16.msra.mxu0 %v9023_v3  ;;  %v9019_v20 = vld [vmem:[%s11215_s24 + $0x60] sm:$0xff]   ;;  %v9020_v21 = vld [vmem:[%s11215_s24 + $0x68] sm:$0xff]   ;;  %v9021_v22 = vld [vmem:[%s11215_s24 + $0x70] sm:$0xff]  }
  0x19   : > { %1786 = vmatprep.subr.bf16.mxu0 %v9028_v4  ;;  %v9022_v23 = vld [vmem:[%s11215_s24 + $0x78] sm:$0xff]   ;;  %1595 = vmatprep.subr.bf16.mxu1 %v9044_v28  ;;  %v9042_v34 = vld [vmem:[%s16700_s3 + $0x14c] ss:$40 sps:$4 sm:$0xff]   ;;  %v9040_v35 = vld [vmem:[%s16700_s3 + $0x148] ss:$40 sps:$4 sm:$0xff]  }
  0x1a   : > { %v9034_v30 = vld [vmem:[%s16700_s3 + $0xfc] ss:$40 sps:$4 sm:$0xff]   ;;  %v9032_v31 = vld [vmem:[%s16700_s3 + $0xf8] ss:$40 sps:$4 sm:$0xff]   ;;  %v9060_v42 = vld [vmem:[%s16700_s3 + $0x1ec] ss:$40 sps:$4 sm:$0xff]  }
  0x1b   : > { %1596 = vmatpush1.bf16.msra.mxu1 %v9046_v29  ;;  %v9052_v33 = vld [vmem:[%s16700_s3 + $0xf0] ss:$40 sps:$4 sm:$0xff]   ;;  %v9053_v36 = vld [vmem:[%s16700_s3 + $0x144] ss:$40 sps:$4 sm:$0xff]   ;;  %v9055_v37 = vld [vmem:[%s16700_s3 + $0x140] ss:$40 sps:$4 sm:$0xff]  }
  0x1c   : > { %1787 = vmatpush1.bf16.msra.mxu0 %v9026_v8  ;;  %1597 = vmatprep.subr.bf16.mxu1 %v9047_v32  ;;  %v9051_v38 = vld [vmem:[%s16700_s3 + $0x19c] ss:$40 sps:$4 sm:$0xff]   ;;  %v9049_v40 = vld [vmem:[%s16700_s3 + $0x198] ss:$40 sps:$4 sm:$0xff]   ;;  %v9058_v44 = vld [vmem:[%s16700_s3 + $0x1e8] ss:$40 sps:$4 sm:$0xff]  }
  0x1d   : > { %1788 = vmatprep.subr.bf16.mxu0 %v9031_v9  ;;  %v9056_v39 = vld [vmem:[%s16700_s3 + $0x194] ss:$40 sps:$4 sm:$0xff]   ;;  %v9061_v41 = vld [vmem:[%s16700_s3 + $0x190] ss:$40 sps:$4 sm:$0xff]   ;;  %v9062_v43 = vld [vmem:[%s16700_s3 + $0x1e4] ss:$40 sps:$4 sm:$0xff]  }
  0x1e   : > { %v9064_v45 = vld [vmem:[%s16700_s3 + $0x1e0] ss:$40 sps:$4 sm:$0xff]   ;;  %v9065_v46 = vld [vmem:[%s16700_s3 + $0x234] ss:$40 sps:$4 sm:$0xff]   ;;  %v9070_v49 = vld [vmem:[%s16700_s3 + $0x230] ss:$40 sps:$4 sm:$0xff]  }
  0x1f   : > { %8873 = vmatmul.mubr.msk.bf16.gmra.mrb[4].mxu0 %vm607_vm0, %v9010_v11  ;;  %1598 = vmatpush1.bf16.msra.mxu1 %v9052_v33  ;;  %v9069_v47 = vld [vmem:[%s16700_s3 + $0x23c] ss:$40 sps:$4 sm:$0xff]   ;;  %v9067_v48 = vld [vmem:[%s16700_s3 + $0x238] ss:$40 sps:$4 sm:$0xff]  }
  0x20   : > { %8876 = vmatprep.mubr.msk.bf16.mxu0 %vm607_vm0, %v9011_v12  ;;  %1789 = vmatpush1.bf16.msra.mxu0 %v9029_v10  ;;  %v9073_v51 = vld [vmem:[%s16700_s3 + $0x14] ss:$40 sps:$4 sm:$0xff]   ;;  %v11350_v53 = vld [vmem:[%s16699_s2] ss:$0 sm:$0xff] }
  0x21   : > { %1790 = vmatprep.subr.bf16.mxu0 %v9034_v30  ;;  %1599 = vmatprep.subr.bf16.mxu1 %v9053_v36  ;;  %v9076_v52 = vld [vmem:[%s16700_s3 + $0x1c] ss:$40 sps:$4 sm:$0xff]  }
  0x23   : > { %1600 = vmatpush1.bf16.msra.mxu1 %v9055_v37 }
  0x24   : > { %1791 = vmatpush1.bf16.msra.mxu0 %v9032_v31  ;;  %1601 = vmatprep.subr.bf16.mxu1 %v9056_v39 }
  0x25   : > { %1792 = vmatprep.subr.bf16.mxu0 %v9042_v34 }
  0x27   : > { %8877 = vmatmul.mubr.msk.bf16.gmra.mrb[8].mxu0 %vm607_vm0, %v9012_v13  ;;  %1602 = vmatpush1.bf16.msra.mxu1 %v9061_v41 }
  0x28   : > { %8880 = vmatprep.mubr.msk.bf16.mxu0 %vm607_vm0, %v9013_v14  ;;  %1793 = vmatpush1.bf16.msra.mxu0 %v9040_v35 }
  0x29   : > { %1794 = vmatprep.subr.bf16.mxu0 %v9051_v38  ;;  %1603 = vmatprep.subr.bf16.mxu1 %v9062_v43 }
  0x2b   : > { %1604 = vmatpush1.bf16.msra.mxu1 %v9064_v45 }
  0x2c   : > { %1795 = vmatpush1.bf16.msra.mxu0 %v9049_v40  ;;  %1605 = vmatprep.subr.bf16.mxu1 %v9065_v46 }
  0x2d   : > { %1796 = vmatprep.subr.bf16.mxu0 %v9060_v42 }
  0x2f   : > { %8881 = vmatmul.mubr.msk.bf16.gmra.mrb[12].mxu0 %vm607_vm0, %v9014_v15  ;;  %1606 = vmatpush1.bf16.msra.mxu1 %v9070_v49 }
  0x30   : > { %8884 = vmatprep.mubr.msk.bf16.mxu0 %vm607_vm0, %v9015_v16  ;;  %1797 = vmatpush1.bf16.msra.mxu0 %v9058_v44 }
  0x31   : > { %1798 = vmatprep.subr.bf16.mxu0 %v9069_v47  ;;  %1977 = vmatprep.subr.bf16.mxu1 %v9073_v51 }
  0x34   : > { %1799 = vmatpush1.bf16.msra.mxu0 %v9067_v48 }
  0x35   : > { %2170 = vmatprep.subr.bf16.mxu0 %v9076_v52 }
  0x37   : > { %8885 = vmatmul.mubr.msk.bf16.gmra.mrb[16].mxu0 %vm607_vm0, %v9016_v17 }
  0x38   : > { %8888 = vmatprep.mubr.msk.bf16.mxu0 %vm607_vm0, %v9017_v18 }
  0x3f   : > { %8889 = vmatmul.mubr.msk.bf16.gmra.mrb[20].mxu0 %vm607_vm0, %v9018_v19 }
  0x40   : > { %8892 = vmatprep.mubr.msk.bf16.mxu0 %vm607_vm0, %v9019_v20 }
  0x47   : > { %8893 = vmatmul.mubr.msk.bf16.gmra.mrb[24].mxu0 %vm607_vm0, %v9020_v21 }
  0x48   : > { %8896 = vmatprep.mubr.msk.bf16.mxu0 %vm607_vm0, %v9021_v22 }
  0x4f   : > { %8897 = vmatmul.mubr.msk.bf16.gmra.mrb[28].mxu0 %vm607_vm0, %v9022_v23 }
  0x50   : > { %1816 = vmatprep.mubr.bf16.mxu0 %v16712_v50 }
  0xea   : > { %v8870_v54 = vpop.f32.mrb[0].mxu0 }
  0xeb   : > { %v11353_v55 = vadd.f32 %v8870_v54, %v11350_v53  ;;  %v690_v56 = vpop.f32.mrb[1].mxu0 }
  0xec   : > { %v11356_v57 = vadd.f32 %v11350_v53, %v690_v56  ;;  %v8871_v58 = vpop.f32.mrb[2].mxu0 }
  0xed   : > { %v819_v59 = vsub.f32 0.0, %v11353_v55  ;;  %v11360_v60 = vadd.f32 %v8871_v58, %v11350_v53  ;;  %v693_v61 = vpop.f32.mrb[3].mxu0 }
  0xee   : > { %v817_v62 = vsub.f32 0.0, %v11356_v57  ;;  %v11364_v63 = vadd.f32 %v11350_v53, %v693_v61 }
  0xef   : > { %v851_v0 = vmin.f32 %v819_v59, 80.0  ;;  %v820_v1 = vsub.f32 0.0, %v11360_v60 }
  0xf0   : > { %v849_v2 = vmin.f32 %v817_v62, 80.0  ;;  %v818_v3 = vsub.f32 0.0, %v11364_v63 }
  0xf1   : > { %v885_v4 = vmul.f32 1.442695, %v851_v0  ;;  %v852_v5 = vmin.f32 %v820_v1, 80.0 }
  0xf2   : > { %v881_v6 = vmul.f32 1.442695, %v849_v2  ;;  %v850_v7 = vmin.f32 %v818_v3, 80.0  ;;  %v8874_v8 = vpop.f32.mrb[4].mxu0 }
  0xf3   : > { %9671 = vpow2.f32 %v885_v4  ;;  %v887_v9 = vmul.f32 1.442695, %v852_v5  ;;  %v11369_v10 = vadd.f32 %v8874_v8, %v11350_v53  ;;  %v706_v11 = vpop.f32.mrb[5].mxu0 }
  0xf4   : > { %9673 = vpow2.f32 %v881_v6  ;;  %v883_v12 = vmul.f32 1.442695, %v850_v7  ;;  %v11372_v13 = vadd.f32 %v11350_v53, %v706_v11  ;;  %v8875_v14 = vpop.f32.mrb[6].mxu0 }
  0xf5   : > { %9675 = vpow2.f32 %v887_v9  ;;  %v823_v15 = vsub.f32 0.0, %v11369_v10  ;;  %v11376_v16 = vadd.f32 %v8875_v14, %v11350_v53  ;;  %v709_v17 = vpop.f32.mrb[7].mxu0 }
  0xf6   : > { %9677 = vpow2.f32 %v883_v12  ;;  %v821_v18 = vsub.f32 0.0, %v11372_v13  ;;  %v11380_v19 = vadd.f32 %v11350_v53, %v709_v17 }
  0xf7   : > { %v855_v20 = vmin.f32 %v823_v15, 80.0  ;;  %v824_v21 = vsub.f32 0.0, %v11376_v16 }
  0xf8   : > { %v853_v22 = vmin.f32 %v821_v18, 80.0  ;;  %v822_v23 = vsub.f32 0.0, %v11380_v19 }
  0xf9   : > { %v893_v24 = vmul.f32 1.442695, %v855_v20  ;;  %v856_v25 = vmin.f32 %v824_v21, 80.0 }
  0xfa   : > { %v889_v26 = vmul.f32 1.442695, %v853_v22  ;;  %v854_v27 = vmin.f32 %v822_v23, 80.0  ;;  %v8878_v28 = vpop.f32.mrb[8].mxu0 }
  0xfb   : > { %9679 = vpow2.f32 %v893_v24  ;;  %v895_v29 = vmul.f32 1.442695, %v856_v25  ;;  %v11385_v30 = vadd.f32 %v8878_v28, %v11350_v53  ;;  %v722_v31 = vpop.f32.mrb[9].mxu0 }
  0xfc   : > { %9681 = vpow2.f32 %v889_v26  ;;  %v891_v32 = vmul.f32 1.442695, %v854_v27  ;;  %v11388_v33 = vadd.f32 %v11350_v53, %v722_v31  ;;  %v8879_v34 = vpop.f32.mrb[10].mxu0 }
  0xfd   : > { %v9672_v35 = vpop.eup %9671  ;;  %9683 = vpow2.f32 %v895_v29  ;;  %v827_v36 = vsub.f32 0.0, %v11385_v30  ;;  %v11392_v37 = vadd.f32 %v8879_v34, %v11350_v53  ;;  %v725_v38 = vpop.f32.mrb[11].mxu0 }
  0xfe   : > { %v9674_v39 = vpop.eup %9673  ;;  %v947_v40 = vadd.f32 1.0, %v9672_v35  ;;  %9685 = vpow2.f32 %v891_v32  ;;  %v825_v41 = vsub.f32 0.0, %v11388_v33  ;;  %v11396_v42 = vadd.f32 %v11350_v53, %v725_v38 }
  0xff   : > { %v9676_v43 = vpop.eup %9675  ;;  %v945_v44 = vadd.f32 1.0, %v9674_v39  ;;  %v859_v45 = vmin.f32 %v827_v36, 80.0  ;;  %v828_v46 = vsub.f32 0.0, %v11392_v37 }
 0x100   : > { %v9678_v47 = vpop.eup %9677  ;;  %9687 = vrcp.f32 %v947_v40  ;;  %v948_v48 = vadd.f32 1.0, %v9676_v43  ;;  %v857_v49 = vmin.f32 %v825_v41, 80.0  ;;  %v826_v51 = vsub.f32 0.0, %v11396_v42 }
 0x101   : > { %9689 = vrcp.f32 %v945_v44  ;;  %v946_v52 = vadd.f32 1.0, %v9678_v47  ;;  %v901_v54 = vmul.f32 1.442695, %v859_v45  ;;  %v860_v56 = vmin.f32 %v828_v46, 80.0 }
 0x102   : > { %9691 = vrcp.f32 %v948_v48  ;;  %v897_v58 = vmul.f32 1.442695, %v857_v49  ;;  %v858_v59 = vmin.f32 %v826_v51, 80.0  ;;  %v8882_v61 = vpop.f32.mrb[12].mxu0 }
 0x103   : > { %9693 = vrcp.f32 %v946_v52  ;;  %v903_v62 = vmul.f32 1.442695, %v860_v56  ;;  %v11401_v0 = vadd.f32 %v8882_v61, %v11350_v53  ;;  %v738_v1 = vpop.f32.mrb[13].mxu0  ;;  %v9071_v61 = vld [vmem:[%s16700_s3 + $0x10] ss:$40 sps:$4 sm:$0xff]  }
 0x104   : > { %9695 = vpow2.f32 %v901_v54  ;;  %v899_v2 = vmul.f32 1.442695, %v858_v59  ;;  %v11404_v3 = vadd.f32 %v11350_v53, %v738_v1  ;;  %v8883_v4 = vpop.f32.mrb[14].mxu0 }
 0x105   : > { %v9680_v5 = vpop.eup %9679  ;;  %9697 = vpow2.f32 %v897_v58  ;;  %v831_v6 = vsub.f32 0.0, %v11401_v0  ;;  %v11408_v7 = vadd.f32 %v8883_v4, %v11350_v53  ;;  %v741_v8 = vpop.f32.mrb[15].mxu0 }
 0x106   : > { %v9682_v9 = vpop.eup %9681  ;;  %v951_v11 = vadd.f32 1.0, %v9680_v5  ;;  %9699 = vpow2.f32 %v903_v62  ;;  %v829_v12 = vsub.f32 0.0, %v11404_v3  ;;  %v11412_v14 = vadd.f32 %v11350_v53, %v741_v8 }
 0x107   : > { %v9684_v15 = vpop.eup %9683  ;;  %v949_v17 = vadd.f32 1.0, %v9682_v9  ;;  %9701 = vpow2.f32 %v899_v2  ;;  %v863_v18 = vmin.f32 %v831_v6, 80.0  ;;  %v832_v20 = vsub.f32 0.0, %v11408_v7  ;;  %v9079_v6 = vld [vmem:[%s16700_s3 + $0x64] ss:$40 sps:$4 sm:$0xff]  }
 0x108   : > { %v9686_v21 = vpop.eup %9685  ;;  %9703 = vrcp.f32 %v951_v11  ;;  %v952_v22 = vadd.f32 1.0, %v9684_v15  ;;  %v861_v23 = vmin.f32 %v829_v12, 80.0  ;;  %v830_v24 = vsub.f32 0.0, %v11412_v14  ;;  %v9077_v15 = vld [vmem:[%s16700_s3 + $0x60] ss:$40 sps:$4 sm:$0xff]  }
 0x109   : > { %9705 = vrcp.f32 %v949_v17  ;;  %v950_v25 = vadd.f32 1.0, %v9686_v21  ;;  %v909_v26 = vmul.f32 1.442695, %v863_v18  ;;  %v864_v27 = vmin.f32 %v832_v20, 80.0  ;;  %v9082_v17 = vld [vmem:[%s16700_s3 + $0x6c] ss:$40 sps:$4 sm:$0xff]  }
 0x10a   : > { %v9688_v28 = vpop.eup %9687  ;;  %9707 = vrcp.f32 %v952_v22  ;;  %v905_v29 = vmul.f32 1.442695, %v861_v23  ;;  %v862_v31 = vmin.f32 %v830_v24, 80.0  ;;  %v8886_v32 = vpop.f32.mrb[16].mxu0 }
 0x10b   : > { %v9690_v34 = vpop.eup %9689  ;;  %v1011_v35 = vmul.f32 %v9688_v28, %v11353_v55  ;;  %9709 = vrcp.f32 %v950_v25  ;;  %v911_v36 = vmul.f32 1.442695, %v864_v27  ;;  %v11418_v38 = vadd.f32 %v8886_v32, %v11350_v53  ;;  %v754_v39 = vpop.f32.mrb[17].mxu0 }
 0x10c   : > { %v9692_v40 = vpop.eup %9691  ;;  %v1009_v41 = vmul.f32 %v9690_v34, %v11356_v57  ;;  %9711 = vpow2.f32 %v909_v26  ;;  %v907_v43 = vmul.f32 1.442695, %v862_v31  ;;  %v11422_v44 = vadd.f32 %v11350_v53, %v754_v39  ;;  %v8887_v45 = vpop.f32.mrb[18].mxu0  ;;  %v9085_v31 = vld [vmem:[%s16700_s3 + $0xb4] ss:$40 sps:$4 sm:$0xff]  }
 0x10d   : > { %v9694_v46 = vpop.eup %9693  ;;  %v1012_v47 = vmul.f32 %v9692_v40, %v11360_v60  ;;  %9713 = vpow2.f32 %v905_v29  ;;  %v835_v55 = vsub.f32 0.0, %v11418_v38  ;;  %v11427_v48 = vadd.f32 %v8887_v45, %v11350_v53  ;;  %v757_v49 = vpop.f32.mrb[19].mxu0  ;;  %v9080_v29 = vld [vmem:[%s16700_s3 + $0x68] ss:$40 sps:$4 sm:$0xff]   ;;  %v9088_v39 = vld [vmem:[%s16700_s3 + $0xbc] ss:$40 sps:$4 sm:$0xff]  }
 0x10e   : > { %v9696_v51 = vpop.eup %9695  ;;  %v1010_v52 = vmul.f32 %v9694_v46, %v11364_v63  ;;  %9715 = vpow2.f32 %v911_v36  ;;  %v833_v57 = vsub.f32 0.0, %v11422_v44  ;;  %v11432_v54 = vadd.f32 %v11350_v53, %v757_v49  ;;  %v9074_v63 = vld [vmem:[%s16700_s3 + $0x18] ss:$40 sps:$4 sm:$0xff]  }
 0x10f   : > { %v9698_v56 = vpop.eup %9697  ;;  %v11434_v58 = vpack.c.bf16 %v1012_v47, %v1011_v35  ;;  %v955_v60 = vadd.f32 1.0, %v9696_v51  ;;  %9717 = vpow2.f32 %v907_v43  ;;  %v867_v59 = vmin.f32 %v835_v55, 80.0 }
 0x110   : > { %v9700_v62 = vpop.eup %9699  ;;  %v11442_v1 = vpack.c.bf16 %v1010_v52, %v1009_v41  ;;  %v953_v2 = vadd.f32 1.0, %v9698_v56  ;;  %v865_v4 = vmin.f32 %v833_v57, 80.0  ;;  %v836_v5 = vsub.f32 0.0, %v11427_v48  ;;  %v9083_v56 = vld [vmem:[%s16700_s3 + $0xb0] ss:$40 sps:$4 sm:$0xff]  }
 0x111   : > { %v9702_v8 = vpop.eup %9701  ;;  %9719 = vrcp.f32 %v955_v60  ;;  %v956_v9 = vadd.f32 1.0, %v9700_v62  ;;  %v917_v11 = vmul.f32 1.442695, %v867_v59  ;;  %v834_v12 = vsub.f32 0.0, %v11432_v54  ;;  %v9091_v62 = vld [vmem:[%s16700_s3 + $0x104] ss:$40 sps:$4 sm:$0xff]  }
 0x112   : > { %v9704_v18 = vpop.eup %9703  ;;  %9721 = vrcp.f32 %v953_v2  ;;  %v954_v20 = vadd.f32 1.0, %v9702_v8  ;;  %v913_v21 = vmul.f32 1.442695, %v865_v4  ;;  %v868_v22 = vmin.f32 %v836_v5, 80.0  ;;  %1624 = vmatmul.mubr.bf16.vlgmr.msra.gmra.mrb[0].mxu1 %v11442_v1  ;;  %1817 = vmatmul.mubr.bf16.vlgmr.msra.gmra.mrb[32].mxu0 %v11442_v1  ;;  %v8890_v23 = vpop.f32.mrb[20].mxu0 }
 0x113   : > { %v9706_v24 = vpop.eup %9705  ;;  %v1015_v25 = vmul.f32 %v9704_v18, %v11369_v10  ;;  %9723 = vrcp.f32 %v956_v9  ;;  %v866_v26 = vmin.f32 %v834_v12, 80.0  ;;  %1978 = vmatpush1.bf16.msra.mxu1 %v9071_v61  ;;  %2171 = vmatpush1.bf16.msra.mxu0 %v9074_v63  ;;  %v11459_v27 = vadd.f32 %v8890_v23, %v11350_v53  ;;  %v770_v28 = vpop.f32.mrb[21].mxu0  ;;  %v9086_v63 = vld [vmem:[%s16700_s3 + $0xb8] ss:$40 sps:$4 sm:$0xff]   ;;  %v9094_v8 = vld [vmem:[%s16700_s3 + $0x10c] ss:$40 sps:$4 sm:$0xff]  }
 0x114   : > { %v9708_v32 = vpop.eup %9707  ;;  %v1013_v34 = vmul.f32 %v9706_v24, %v11372_v13  ;;  %9725 = vrcp.f32 %v954_v20  ;;  %v919_v10 = vmul.f32 1.442695, %v868_v22  ;;  %1633 = vmatprep.mubr.bf16.mxu1 %v16712_v50  ;;  %1826 = vmatprep.mubr.bf16.mxu0 %v16712_v50  ;;  %v11471_v35 = vadd.f32 %v11350_v53, %v770_v28  ;;  %v8891_v36 = vpop.f32.mrb[22].mxu0  ;;  %v9089_v22 = vld [vmem:[%s16700_s3 + $0x100] ss:$40 sps:$4 sm:$0xff]  }
 0x115   : > { %v9710_v40 = vpop.eup %9709  ;;  %v1016_v41 = vmul.f32 %v9708_v32, %v11376_v16  ;;  %9727 = vpow2.f32 %v917_v11  ;;  %v915_v43 = vmul.f32 1.442695, %v866_v26  ;;  %v839_v13 = vsub.f32 0.0, %v11459_v27  ;;  %v773_v45 = vpop.f32.mrb[23].mxu0  ;;  %1979 = vmatprep.subr.bf16.mxu1 %v9079_v6  ;;  %2172 = vmatprep.subr.bf16.mxu0 %v9082_v17 }
 0x116   : > { %v9712_v46 = vpop.eup %9711  ;;  %v1014_v47 = vmul.f32 %v9710_v40, %v11380_v19  ;;  %9729 = vpow2.f32 %v913_v21  ;;  %v837_v55 = vsub.f32 0.0, %v11471_v35  ;;  %v11481_v49 = vadd.f32 %v8891_v36, %v11350_v53 }
 0x117   : > { %v9714_v51 = vpop.eup %9713  ;;  %v11483_v52 = vpack.c.bf16 %v1016_v41, %v1015_v25  ;;  %v959_v16 = vadd.f32 1.0, %v9712_v46  ;;  %9731 = vpow2.f32 %v919_v10  ;;  %v871_v57 = vmin.f32 %v839_v13, 80.0  ;;  %1980 = vmatpush1.bf16.msra.mxu1 %v9077_v15  ;;  %2173 = vmatpush1.bf16.msra.mxu0 %v9080_v29  ;;  %v9092_v29 = vld [vmem:[%s16700_s3 + $0x108] ss:$40 sps:$4 sm:$0xff]  }
 0x118   : > { %v9716_v60 = vpop.eup %9715  ;;  %v11488_v19 = vpack.c.bf16 %v1014_v47, %v1013_v34  ;;  %v957_v59 = vadd.f32 1.0, %v9714_v51  ;;  %9733 = vpow2.f32 %v915_v43  ;;  %v869_v61 = vmin.f32 %v837_v55, 80.0  ;;  %1981 = vmatprep.subr.bf16.mxu1 %v9085_v31  ;;  %2174 = vmatprep.subr.bf16.mxu0 %v9088_v39  ;;  %v9097_v31 = vld [vmem:[%s16700_s3 + $0x154] ss:$40 sps:$4 sm:$0xff]   ;;  %v9095_v55 = vld [vmem:[%s16700_s3 + $0x150] ss:$40 sps:$4 sm:$0xff]  }
 0x119   : > { %16811 = vst [vmem:[#allocation3_spill] sm:$0xff] %v11483_v52  ;;  %v9718_v2 = vpop.eup %9717  ;;  %9735 = vrcp.f32 %v959_v16  ;;  %v960_v4 = vadd.f32 1.0, %v9716_v60  ;;  %v925_v5 = vmul.f32 1.442695, %v871_v57  ;;  %v840_v6 = vsub.f32 0.0, %v11481_v49 }
 0x11a   : > { %9737 = vrcp.f32 %v957_v59  ;;  %v958_v9 = vadd.f32 1.0, %v9718_v2  ;;  %v921_v11 = vmul.f32 1.442695, %v869_v61  ;;  %1634 = vmatmul.mubr.bf16.gmra.mrb[4].mxu1 %v11434_v58  ;;  %1827 = vmatmul.mubr.bf16.gmra.mrb[36].mxu0 %v11434_v58  ;;  %v11503_v12 = vadd.f32 %v11350_v53, %v773_v45  ;;  %v8894_v15 = vpop.f32.mrb[24].mxu0  ;;  %v9100_v39 = vld [vmem:[%s16700_s3 + $0x15c] ss:$40 sps:$4 sm:$0xff]  }
 0x11b   : > { %v9720_v17 = vpop.eup %9719  ;;  %9739 = vrcp.f32 %v960_v4  ;;  %v872_v18 = vmin.f32 %v840_v6, 80.0  ;;  %1643 = vmatprep.mubr.bf16.mxu1 %v16712_v50  ;;  %1836 = vmatprep.mubr.bf16.mxu0 %v16712_v50  ;;  %v11508_v20 = vadd.f32 %v8894_v15, %v11350_v53  ;;  %v786_v21 = vpop.f32.mrb[25].mxu0  ;;  %v9106_v4 = vld [vmem:[%s16700_s3 + $0x1ac] ss:$40 sps:$4 sm:$0xff]  }
 0x11c   : > { %v9722_v23 = vpop.eup %9721  ;;  %v1019_v24 = vmul.f32 %v9720_v17, %v11385_v30  ;;  %9741 = vrcp.f32 %v958_v9  ;;  %v838_v25 = vsub.f32 0.0, %v11503_v12  ;;  %v11516_v26 = vadd.f32 %v11350_v53, %v786_v21  ;;  %v8895_v28 = vpop.f32.mrb[26].mxu0  ;;  %1982 = vmatpush1.bf16.msra.mxu1 %v9083_v56  ;;  %2175 = vmatpush1.bf16.msra.mxu0 %v9086_v63 }
 0x11d   : > { %v9724_v32 = vpop.eup %9723  ;;  %v1017_v30 = vmul.f32 %v9722_v23, %v11388_v33  ;;  %9743 = vpow2.f32 %v925_v5  ;;  %v927_v34 = vmul.f32 1.442695, %v872_v18  ;;  %v843_v10 = vsub.f32 0.0, %v11508_v20  ;;  %v789_v36 = vpop.f32.mrb[27].mxu0  ;;  %1983 = vmatprep.subr.bf16.mxu1 %v9091_v62  ;;  %2176 = vmatprep.subr.bf16.mxu0 %v9094_v8  ;;  %v9101_v23 = vld [vmem:[%s16700_s3 + $0x1a0] ss:$40 sps:$4 sm:$0xff]  }
 0x11e   : > { %v9726_v40 = vpop.eup %9725  ;;  %v1020_v41 = vmul.f32 %v9724_v32, %v11392_v37  ;;  %9745 = vpow2.f32 %v921_v11  ;;  %v870_v43 = vmin.f32 %v838_v25, 80.0  ;;  %v841_v13 = vsub.f32 0.0, %v11516_v26  ;;  %v9098_v37 = vld [vmem:[%s16700_s3 + $0x158] ss:$40 sps:$4 sm:$0xff]   ;;  %v9104_v32 = vld [vmem:[%s16700_s3 + $0x1a8] ss:$40 sps:$4 sm:$0xff]  }
 0x11f   : > { %v9728_v45 = vpop.eup %9727  ;;  %v1018_v33 = vmul.f32 %v9726_v40, %v11396_v42  ;;  %9747 = vpow2.f32 %v927_v34  ;;  %v875_v46 = vmin.f32 %v843_v10, 80.0  ;;  %v11533_v47 = vadd.f32 %v8895_v28, %v11350_v53  ;;  %v9103_v42 = vld [vmem:[%s16700_s3 + $0x1a4] ss:$40 sps:$4 sm:$0xff]  }
 0x120   : > { %v9730_v51 = vpop.eup %9729  ;;  %v11541_v16 = vpack.c.bf16 %v1020_v41, %v1019_v24  ;;  %v963_v57 = vadd.f32 1.0, %v9728_v45  ;;  %v923_v56 = vmul.f32 1.442695, %v870_v43  ;;  %v873_v60 = vmin.f32 %v841_v13, 80.0  ;;  %1984 = vmatpush1.bf16.msra.mxu1 %v9089_v22  ;;  %2177 = vmatpush1.bf16.msra.mxu0 %v9092_v29  ;;  %v9112_v40 = vld [vmem:[%s16700_s3 + $0x1fc] ss:$40 sps:$4 sm:$0xff]  }
 0x121   : > { %v9732_v59 = vpop.eup %9731  ;;  %v11546_v61 = vpack.c.bf16 %v1018_v33, %v1017_v30  ;;  %v961_v63 = vadd.f32 1.0, %v9730_v51  ;;  %v933_v62 = vmul.f32 1.442695, %v875_v46  ;;  %v844_v2 = vsub.f32 0.0, %v11533_v47  ;;  %1985 = vmatprep.subr.bf16.mxu1 %v9097_v31  ;;  %2178 = vmatprep.subr.bf16.mxu0 %v9100_v39  ;;  %v9109_v30 = vld [vmem:[%s16700_s3 + $0x1f4] ss:$40 sps:$4 sm:$0xff]  }
 0x122   : > { %16812 = vst [vmem:[#allocation4_spill] sm:$0xff] %v11541_v16  ;;  %v9734_v5 = vpop.eup %9733  ;;  %9749 = vrcp.f32 %v963_v57  ;;  %v964_v6 = vadd.f32 1.0, %v9732_v59  ;;  %1644 = vmatmul.mubr.bf16.gmra.mrb[8].mxu1 %v11488_v19  ;;  %1837 = vmatmul.mubr.bf16.gmra.mrb[40].mxu0 %v11488_v19  ;;  %v929_v8 = vmul.f32 1.442695, %v873_v60  ;;  %v11555_v9 = vadd.f32 %v11350_v53, %v789_v36  ;;  %v8898_v11 = vpop.f32.mrb[28].mxu0 }
 0x123   : > { %16813 = vst [vmem:[#allocation5_spill] sm:$0xff] %v11546_v61  ;;  %v9736_v15 = vpop.eup %9735  ;;  %9751 = vrcp.f32 %v961_v63  ;;  %v962_v17 = vadd.f32 1.0, %v9734_v5  ;;  %1653 = vmatprep.mubr.bf16.mxu1 %v16712_v50  ;;  %1846 = vmatprep.mubr.bf16.mxu0 %v16712_v50  ;;  %v876_v18 = vmin.f32 %v844_v2, 80.0  ;;  %v11560_v21 = vadd.f32 %v8898_v11, %v11350_v53  ;;  %v802_v22 = vpop.f32.mrb[29].mxu0  ;;  %v9118_v2 = vld [vmem:[%s16700_s3 + $0x24c] ss:$40 sps:$4 sm:$0xff]  }
 0x124   : > { %v9738_v24 = vpop.eup %9737  ;;  %v1023_v25 = vmul.f32 %v9736_v15, %v11401_v0  ;;  %9753 = vrcp.f32 %v964_v6  ;;  %v842_v28 = vsub.f32 0.0, %v11555_v9  ;;  %v11568_v29 = vadd.f32 %v11350_v53, %v802_v22  ;;  %v8899_v31 = vpop.f32.mrb[30].mxu0  ;;  %1986 = vmatpush1.bf16.msra.mxu1 %v9095_v55  ;;  %2179 = vmatpush1.bf16.msra.mxu0 %v9098_v37  ;;  %v9107_v37 = vld [vmem:[%s16700_s3 + $0x1f0] ss:$40 sps:$4 sm:$0xff]   ;;  %v9113_v11 = vld [vmem:[%s16700_s3 + $0x240] ss:$40 sps:$4 sm:$0xff]  }
 0x125   : > { %v9740_v34 = vpop.eup %9739  ;;  %v1021_v0 = vmul.f32 %v9738_v24, %v11404_v3  ;;  %9755 = vrcp.f32 %v962_v17  ;;  %v935_v10 = vmul.f32 1.442695, %v876_v18  ;;  %v847_v36 = vsub.f32 0.0, %v11560_v21  ;;  %v805_v39 = vpop.f32.mrb[31].mxu0  ;;  %1987 = vmatprep.subr.bf16.mxu1 %v9103_v42  ;;  %2180 = vmatprep.subr.bf16.mxu0 %v9106_v4  ;;  %v9116_v22 = vld [vmem:[%s16700_s3 + $0x248] ss:$40 sps:$4 sm:$0xff]  }
 0x126   : > { %v9742_v41 = vpop.eup %9741  ;;  %v1024_v43 = vmul.f32 %v9740_v34, %v11408_v7  ;;  %9757 = vpow2.f32 %v923_v56  ;;  %v874_v13 = vmin.f32 %v842_v28, 80.0  ;;  %v845_v45 = vsub.f32 0.0, %v11568_v29  ;;  %v9110_v7 = vld [vmem:[%s16700_s3 + $0x1f8] ss:$40 sps:$4 sm:$0xff]  }
 0x127   : > { %v9744_v33 = vpop.eup %9743  ;;  %v1022_v3 = vmul.f32 %v9742_v41, %v11412_v14  ;;  %9759 = vpow2.f32 %v933_v62  ;;  %v879_v46 = vmin.f32 %v847_v36, 80.0  ;;  %v11585_v55 = vadd.f32 %v8899_v31, %v11350_v53  ;;  %v9115_v14 = vld [vmem:[%s16700_s3 + $0x244] ss:$40 sps:$4 sm:$0xff]  }
 0x128   : > { %v9746_v51 = vpop.eup %9745  ;;  %v11593_v57 = vpack.c.bf16 %v1024_v43, %v1023_v25  ;;  %v967_v56 = vadd.f32 1.0, %v9744_v33  ;;  %9761 = vpow2.f32 %v929_v8  ;;  %v931_v60 = vmul.f32 1.442695, %v874_v13  ;;  %1988 = vmatpush1.bf16.msra.mxu1 %v9101_v23  ;;  %2181 = vmatpush1.bf16.msra.mxu0 %v9104_v32 }
 0x129   : > { %v9748_v42 = vpop.eup %9747  ;;  %v11598_v59 = vpack.c.bf16 %v1022_v3, %v1021_v0  ;;  %v965_v63 = vadd.f32 1.0, %v9746_v51  ;;  %9763 = vpow2.f32 %v935_v10  ;;  %v941_v62 = vmul.f32 1.442695, %v879_v46  ;;  %1989 = vmatprep.subr.bf16.mxu1 %v9109_v30  ;;  %2182 = vmatprep.subr.bf16.mxu0 %v9112_v40 }
 0x12a   : > { %16814 = vst [vmem:[#allocation6_spill] sm:$0xff] %v11593_v57  ;;  %9765 = vrcp.f32 %v967_v56  ;;  %v968_v4 = vadd.f32 1.0, %v9748_v42  ;;  %1654 = vmatmul.mubr.bf16.gmra.mrb[12].mxu1 %v11483_v52  ;;  %1847 = vmatmul.mubr.bf16.gmra.mrb[44].mxu0 %v11483_v52  ;;  %v877_v5 = vmin.f32 %v845_v45, 80.0  ;;  %v848_v6 = vsub.f32 0.0, %v11585_v55 }
 0x12b   : > { %16815 = vst [vmem:[#allocation7_spill] sm:$0xff] %v11598_v59  ;;  %9767 = vrcp.f32 %v965_v63  ;;  %1663 = vmatprep.mubr.bf16.mxu1 %v16712_v50  ;;  %1856 = vmatprep.mubr.bf16.mxu0 %v16712_v50  ;;  %v11609_v8 = vadd.f32 %v11350_v53, %v805_v39 }
 0x12c   : > { %v9750_v15 = vpop.eup %9749  ;;  %9769 = vrcp.f32 %v968_v4  ;;  %v937_v17 = vmul.f32 1.442695, %v877_v5  ;;  %v880_v18 = vmin.f32 %v848_v6, 80.0  ;;  %1990 = vmatpush1.bf16.msra.mxu1 %v9107_v37  ;;  %2183 = vmatpush1.bf16.msra.mxu0 %v9110_v7 }
 0x12d   : > { %v9752_v23 = vpop.eup %9751  ;;  %v1027_v24 = vmul.f32 %v9750_v15, %v11418_v38  ;;  %9771 = vpow2.f32 %v931_v60  ;;  %v846_v53 = vsub.f32 0.0, %v11609_v8  ;;  %1991 = vmatprep.subr.bf16.mxu1 %v9115_v14  ;;  %2184 = vmatprep.subr.bf16.mxu0 %v9118_v2 }
 0x12e   : > { %v9754_v25 = vpop.eup %9753  ;;  %v1025_v28 = vmul.f32 %v9752_v23, %v11422_v44  ;;  %9773 = vpow2.f32 %v941_v62  ;;  %v943_v31 = vmul.f32 1.442695, %v880_v18 }
 0x12f   : > { %v9756_v32 = vpop.eup %9755  ;;  %v1028_v30 = vmul.f32 %v9754_v25, %v11427_v48  ;;  %9775 = vpow2.f32 %v937_v17  ;;  %v878_v34 = vmin.f32 %v846_v53, 80.0 }
 0x130   : > { %v9758_v0 = vpop.eup %9757  ;;  %v1026_v10 = vmul.f32 %v9756_v32, %v11432_v54  ;;  %9777 = vpow2.f32 %v943_v31  ;;  %1992 = vmatpush1.bf16.msra.mxu1 %v9113_v11  ;;  %2185 = vmatpush1.bf16.msra.mxu0 %v9116_v22 }
 0x131   : > { %v9760_v38 = vpop.eup %9759  ;;  %v11622_v36 = vpack.c.bf16 %v1028_v30, %v1027_v24  ;;  %v966_v39 = vadd.f32 1.0, %v9758_v0  ;;  %v939_v54 = vmul.f32 1.442695, %v878_v34 }
 0x132   : > { %v9762_v40 = vpop.eup %9761  ;;  %v11624_v41 = vpack.c.bf16 %v1026_v10, %v1025_v28  ;;  %v971_v44 = vadd.f32 1.0, %v9760_v38  ;;  %1664 = vmatmul.mubr.bf16.gmra.mrb[16].mxu1 %v11546_v61  ;;  %1857 = vmatmul.mubr.bf16.gmra.mrb[48].mxu0 %v11546_v61  ;;  %v9127_v10 = vld [vmem:[%s16700_s3 + $0xc4] ss:$40 sps:$4 sm:$0xff]   ;;  %v9125_v38 = vld [vmem:[%s16700_s3 + $0xc0] ss:$40 sps:$4 sm:$0xff]  }
 0x133   : > { %16816 = vst [vmem:[#allocation8_spill] sm:$0xff] %v11622_v36  ;;  %v9764_v48 = vpop.eup %9763  ;;  %9779 = vrcp.f32 %v966_v39  ;;  %v969_v43 = vadd.f32 1.0, %v9762_v40  ;;  %1673 = vmatprep.mubr.bf16.mxu1 %v16712_v50  ;;  %1866 = vmatprep.mubr.bf16.mxu0 %v16712_v50  ;;  %v9130_v39 = vld [vmem:[%s16700_s3 + $0x114] ss:$40 sps:$4 sm:$0xff]   ;;  %v9128_v40 = vld [vmem:[%s16700_s3 + $0x110] ss:$40 sps:$4 sm:$0xff]  }
 0x134   : > { %16817 = vst [vmem:[#allocation9_spill] sm:$0xff] %v11624_v41  ;;  %v9766_v13 = vpop.eup %9765  ;;  %9781 = vrcp.f32 %v971_v44  ;;  %v972_v45 = vadd.f32 1.0, %v9764_v48  ;;  %v9133_v44 = vld [vmem:[%s16700_s3 + $0x164] ss:$40 sps:$4 sm:$0xff]   ;;  %v9131_v48 = vld [vmem:[%s16700_s3 + $0x160] ss:$40 sps:$4 sm:$0xff]  }
 0x135   : > { %v9768_v33 = vpop.eup %9767  ;;  %v1031_v3 = vmul.f32 %v9766_v13, %v11459_v27  ;;  %9783 = vrcp.f32 %v969_v43  ;;  %v9136_v43 = vld [vmem:[%s16700_s3 + $0x1b4] ss:$40 sps:$4 sm:$0xff]   ;;  %v9139_v13 = vld [vmem:[%s16700_s3 + $0x204] ss:$40 sps:$4 sm:$0xff]  }
 0x136   : > { %v9770_v46 = vpop.eup %9769  ;;  %9785 = vrcp.f32 %v972_v45  ;;  %v9137_v45 = vld [vmem:[%s16700_s3 + $0x200] ss:$40 sps:$4 sm:$0xff]  }
 0x137   : > { %v9772_v37 = vpop.eup %9771  ;;  %v1032_v7 = vmul.f32 %v9770_v46, %v11481_v49  ;;  %9787 = vpow2.f32 %v939_v54  ;;  %v1029_v49 = vmul.f32 %v9768_v33, %v11471_v35  ;;  %v9121_v35 = vld [vmem:[%s16700_s3 + $0x24] ss:$40 sps:$4 sm:$0xff]   ;;  %v9134_v54 = vld [vmem:[%s16700_s3 + $0x1b0] ss:$40 sps:$4 sm:$0xff]   ;;  %v9142_v33 = vld [vmem:[%s16700_s3 + $0x254] ss:$40 sps:$4 sm:$0xff]   ;;  %v16711_v46 = vlaneseq }
 0x138   : > { %v9774_v51 = vpop.eup %9773  ;;  %v970_v56 = vadd.f32 1.0, %v9772_v37  ;;  %2363 = vmatprep.subr.bf16.mxu1 %v9121_v35 }
 0x139   : > { %v9776_v60 = vpop.eup %9775  ;;  %v11632_v14 = vpack.c.bf16 %v1032_v7, %v1031_v3  ;;  %v975_v42 = vadd.f32 1.0, %v9774_v51  ;;  %v9140_v3 = vld [vmem:[%s16700_s3 + $0x250] ss:$40 sps:$4 sm:$0xff]   ;;  %v11785_v37 = vshrl.u32 %v16711_v46, 7 }
 0x13a   : > { %v9778_v63 = vpop.eup %9777  ;;  %9789 = vrcp.f32 %v970_v56  ;;  %1674 = vmatmul.mubr.bf16.gmra.mrb[20].mxu1 %v11541_v16  ;;  %1867 = vmatmul.mubr.bf16.gmra.mrb[52].mxu0 %v11541_v16  ;;  %v973_v62 = vadd.f32 1.0, %v9776_v60  ;;  %v1137_v56 = vld [vmem:[%s16701_s4] sm:$0xff] }
 0x13b   : > { %16818 = vst [vmem:[#allocation10_spill] sm:$0xff] %v11632_v14  ;;  %9791 = vrcp.f32 %v975_v42  ;;  %v976_v27 = vadd.f32 1.0, %v9778_v63  ;;  %1683 = vmatprep.mubr.bf16.mxu1 %v16712_v50  ;;  %1876 = vmatprep.mubr.bf16.mxu0 %v16712_v50  ;;  %16824 = vst [vmem:[#allocation16_spill] sm:$0xff] %v11785_v37  ;;  %v11790_v7 = vsub.s32 0, %v11785_v37  ;;  %v11793_v51 = vsub.s32 2, %v11785_v37 }
 0x13c   : > { %v11799_v60 = vsub.s32 1, %v11785_v37  ;;  %v11802_v42 = vsub.s32 3, %v11785_v37 }
 0x13d   : > { %v9780_v2 = vpop.eup %9779  ;;  %9793 = vrcp.f32 %v976_v27  ;;  %16825 = vst [vmem:[#allocation17_spill] sm:$0xff] %v11790_v7  ;;  %16826 = vst [vmem:[#allocation18_spill] sm:$0xff] %v11793_v51  ;;  %v11807_v63 = vrot.slane %v1137_v56, %v11790_v7  ;;  %v11810_v27 = vrot.slane %v1137_v56, %v11793_v51  ;;  %v16829_v51 = vmov 0  }
 0x13e   : > { %v9782_v4 = vpop.eup %9781  ;;  %v1030_v5 = vmul.f32 %v9780_v2, %v11503_v12  ;;  %9795 = vrcp.f32 %v973_v62  ;;  %16827 = vst [vmem:[#allocation19_spill] sm:$0xff] %v11799_v60  ;;  %16828 = vst [vmem:[#allocation20_spill] sm:$0xff] %v11802_v42  ;;  %v11816_v62 = vrot.slane %v1137_v56, %v11802_v42 }
 0x13f   : > { %v9784_v6 = vpop.eup %9783  ;;  %v1035_v11 = vmul.f32 %v9782_v4, %v11508_v20 }
 0x140   : > { %v9786_v15 = vpop.eup %9785  ;;  %v11641_v17 = vpack.c.bf16 %v1030_v5, %v1029_v49  ;;  %v1033_v12 = vmul.f32 %v9784_v6, %v11516_v26  ;;  %v11813_v49 = vrot.slane %v1137_v56, %v11799_v60 }
 0x141   : > { %v9788_v18 = vpop.eup %9787  ;;  %v1036_v22 = vmul.f32 %v9786_v15, %v11533_v47 }
 0x142   : > { %16819 = vst [vmem:[#allocation11_spill] sm:$0xff] %v11641_v17  ;;  %v974_v23 = vadd.f32 1.0, %v9788_v18  ;;  %1684 = vmatmul.mubr.bf16.gmra.mrb[24].mxu1 %v11598_v59  ;;  %1877 = vmatmul.mubr.bf16.gmra.mrb[56].mxu0 %v11598_v59 }
 0x143   : > { %v11650_v24 = vpack.c.bf16 %v1036_v22, %v1035_v11  ;;  %1693 = vmatprep.mubr.bf16.mxu1 %v16712_v50  ;;  %1886 = vmatprep.mubr.bf16.mxu0 %v16712_v50 }
 0x144   : > { %v9790_v20 = vpop.eup %9789  ;;  %9797 = vrcp.f32 %v974_v23 }
 0x145   : > { %16820 = vst [vmem:[#allocation12_spill] sm:$0xff] %v11650_v24  ;;  %v9792_v47 = vpop.eup %9791  ;;  %v1034_v53 = vmul.f32 %v9790_v20, %v11555_v9 }
 0x146   : > { %v1039_v25 = vmul.f32 %v9792_v47, %v11560_v21 }
 0x147   : > { %v9794_v28 = vpop.eup %9793  ;;  %v11656_v31 = vpack.c.bf16 %v1034_v53, %v1033_v12 }
 0x148   : > { %v1040_v32 = vmul.f32 %v9794_v28, %v11585_v55  ;;  %v9796_v26 = vpop.eup %9795  ;;  %v9124_v55 = vld [vmem:[%s16700_s3 + $0x74] ss:$40 sps:$4 sm:$0xff]  }
 0x149   : > { %16821 = vst [vmem:[#allocation13_spill] sm:$0xff] %v11656_v31  ;;  %v1037_v9 = vmul.f32 %v9796_v26, %v11568_v29  ;;  %v9119_v29 = vld [vmem:[%s16700_s3 + $0x20] ss:$40 sps:$4 sm:$0xff]  }
 0x14a   : > { %v11659_v30 = vpack.c.bf16 %v1040_v32, %v1039_v25  ;;  %1694 = vmatmul.mubr.bf16.gmra.mrb[28].mxu1 %v11593_v57  ;;  %1887 = vmatmul.mubr.bf16.gmra.mrb[60].mxu0 %v11593_v57 }
 0x14b   : > { %1703 = vmatprep.mubr.bf16.mxu1 %v16712_v50  ;;  %1896 = vmatprep.mubr.bf16.mxu0 %v16712_v50 }
 0x14c   : > { %16822 = vst [vmem:[#allocation14_spill] sm:$0xff] %v11659_v30 }
 0x14e   : > { %v9798_v34 = vpop.eup %9797 }
 0x14f   : > { %v1038_v21 = vmul.f32 %v9798_v34, %v11609_v8  ;;  %v9122_v8 = vld [vmem:[%s16700_s3 + $0x70] ss:$40 sps:$4 sm:$0xff]  }
 0x151   : > { %v11667_v0 = vpack.c.bf16 %v1038_v21, %v1037_v9 }
 0x152   : > { %1704 = vmatmul.mubr.bf16.gmra.mrb[32].mxu1 %v11624_v41  ;;  %1897 = vmatmul.mubr.bf16.gmra.mrb[64].mxu0 %v11624_v41 }
 0x153   : > { %16823 = vst [vmem:[#allocation15_spill] sm:$0xff] %v11667_v0  ;;  %1713 = vmatprep.mubr.bf16.mxu1 %v16712_v50  ;;  %1906 = vmatprep.mubr.bf16.mxu0 %v16712_v50 }
 0x15a   : > { %1714 = vmatmul.mubr.bf16.gmra.mrb[36].mxu1 %v11622_v36  ;;  %1907 = vmatmul.mubr.bf16.gmra.mrb[68].mxu0 %v11622_v36 }
 0x15b   : > { %1723 = vmatprep.mubr.bf16.mxu1 %v16712_v50  ;;  %1916 = vmatprep.mubr.bf16.mxu0 %v16712_v50 }
 0x162   : > { %1724 = vmatmul.mubr.bf16.gmra.mrb[40].mxu1 %v11641_v17  ;;  %1917 = vmatmul.mubr.bf16.gmra.mrb[72].mxu0 %v11641_v17 }
 0x163   : > { %1733 = vmatprep.mubr.bf16.mxu1 %v16712_v50  ;;  %1926 = vmatprep.mubr.bf16.mxu0 %v16712_v50 }
 0x16a   : > { %1734 = vmatmul.mubr.bf16.gmra.mrb[44].mxu1 %v11632_v14  ;;  %1927 = vmatmul.mubr.bf16.gmra.mrb[76].mxu0 %v11632_v14 }
 0x16b   : > { %1743 = vmatprep.mubr.bf16.mxu1 %v16712_v50  ;;  %1936 = vmatprep.mubr.bf16.mxu0 %v16712_v50 }
 0x172   : > { %1744 = vmatmul.mubr.bf16.gmra.mrb[48].mxu1 %v11656_v31  ;;  %1937 = vmatmul.mubr.bf16.gmra.mrb[80].mxu0 %v11656_v31 }
 0x173   : > { %1753 = vmatprep.mubr.bf16.mxu1 %v16712_v50  ;;  %1946 = vmatprep.mubr.bf16.mxu0 %v16712_v50 }
 0x17a   : > { %1754 = vmatmul.mubr.bf16.gmra.mrb[52].mxu1 %v11650_v24  ;;  %1947 = vmatmul.mubr.bf16.gmra.mrb[84].mxu0 %v11650_v24 }
 0x17b   : > { %1763 = vmatprep.mubr.bf16.mxu1 %v16712_v50  ;;  %1956 = vmatprep.mubr.bf16.mxu0 %v16712_v50 }
 0x182   : > { %1764 = vmatmul.mubr.bf16.gmra.mrb[56].mxu1 %v11667_v0  ;;  %1957 = vmatmul.mubr.bf16.gmra.mrb[88].mxu0 %v11667_v0 }
 0x183   : > { %1773 = vmatprep.mubr.bf16.mxu1 %v16712_v50  ;;  %1966 = vmatprep.mubr.bf16.mxu0 %v16712_v50 }
 0x18a   : > { %1774 = vmatmul.mubr.bf16.gmra.mrb[60].mxu1 %v11659_v30  ;;  %1967 = vmatmul.mubr.bf16.gmra.mrb[92].mxu0 %v11659_v30 }
 0x18b   : > { %2009 = vmatprep.mubr.bf16.mxu1 %v16712_v50  ;;  %2202 = vmatprep.mubr.bf16.mxu0 %v16712_v50 }
 0x192   : > { %2010 = vmatmul.mubr.bf16.vlgmr.msra.gmra.mrb[64].mxu1 %v11442_v1  ;;  %2203 = vmatmul.mubr.bf16.vlgmr.msra.gmra.mrb[96].mxu0 %v11442_v1 }
 0x193   : > { %2019 = vmatprep.mubr.bf16.mxu1 %v16712_v50  ;;  %2212 = vmatprep.mubr.bf16.mxu0 %v16712_v50 }
 0x194   : > { %2364 = vmatpush1.bf16.msra.mxu1 %v9119_v29 }
 0x195   : > { %2365 = vmatprep.subr.bf16.mxu1 %v9124_v55 }
 0x198   : > { %2366 = vmatpush1.bf16.msra.mxu1 %v9122_v8 }
 0x199   : > { %2367 = vmatprep.subr.bf16.mxu1 %v9127_v10 }
 0x19a   : > { %2020 = vmatmul.mubr.bf16.gmra.mrb[68].mxu1 %v11434_v58  ;;  %2213 = vmatmul.mubr.bf16.gmra.mrb[100].mxu0 %v11434_v58 }
 0x19b   : > { %2029 = vmatprep.mubr.bf16.mxu1 %v16712_v50  ;;  %2222 = vmatprep.mubr.bf16.mxu0 %v16712_v50 }
 0x19c   : > { %2368 = vmatpush1.bf16.msra.mxu1 %v9125_v38 }
 0x19d   : > { %2369 = vmatprep.subr.bf16.mxu1 %v9130_v39 }
 0x1a0   : > { %2370 = vmatpush1.bf16.msra.mxu1 %v9128_v40 }
 0x1a1   : > { %2371 = vmatprep.subr.bf16.mxu1 %v9133_v44 }
 0x1a2   : > { %2030 = vmatmul.mubr.bf16.gmra.mrb[72].mxu1 %v11488_v19  ;;  %2223 = vmatmul.mubr.bf16.gmra.mrb[104].mxu0 %v11488_v19 }
 0x1a3   : > { %2039 = vmatprep.mubr.bf16.mxu1 %v16712_v50  ;;  %2232 = vmatprep.mubr.bf16.mxu0 %v16712_v50 }
 0x1a4   : > { %2372 = vmatpush1.bf16.msra.mxu1 %v9131_v48 }
 0x1a5   : > { %2373 = vmatprep.subr.bf16.mxu1 %v9136_v43 }
 0x1a8   : > { %2374 = vmatpush1.bf16.msra.mxu1 %v9134_v54 }
 0x1a9   : > { %2375 = vmatprep.subr.bf16.mxu1 %v9139_v13 }
 0x1aa   : > { %2040 = vmatmul.mubr.bf16.gmra.mrb[76].mxu1 %v11483_v52  ;;  %2233 = vmatmul.mubr.bf16.gmra.mrb[108].mxu0 %v11483_v52 }
 0x1ab   : > { %2049 = vmatprep.mubr.bf16.mxu1 %v16712_v50  ;;  %2242 = vmatprep.mubr.bf16.mxu0 %v16712_v50 }
 0x1ac   : > { %2376 = vmatpush1.bf16.msra.mxu1 %v9137_v45 }
 0x1ad   : > { %2377 = vmatprep.subr.bf16.mxu1 %v9142_v33 }
 0x1b0   : > { %2378 = vmatpush1.bf16.msra.mxu1 %v9140_v3 }
 0x1b2   : > { %2050 = vmatmul.mubr.bf16.gmra.mrb[80].mxu1 %v11546_v61  ;;  %2243 = vmatmul.mubr.bf16.gmra.mrb[112].mxu0 %v11546_v61 }
 0x1b3   : > { %2059 = vmatprep.mubr.bf16.mxu1 %v16712_v50  ;;  %2252 = vmatprep.mubr.bf16.mxu0 %v16712_v50 }
 0x1ba   : > { %2060 = vmatmul.mubr.bf16.gmra.mrb[84].mxu1 %v11541_v16  ;;  %2253 = vmatmul.mubr.bf16.gmra.mrb[116].mxu0 %v11541_v16 }
 0x1bb   : > { %2069 = vmatprep.mubr.bf16.mxu1 %v16712_v50  ;;  %2262 = vmatprep.mubr.bf16.mxu0 %v16712_v50 }
 0x1c2   : > { %2070 = vmatmul.mubr.bf16.gmra.mrb[88].mxu1 %v11598_v59  ;;  %2263 = vmatmul.mubr.bf16.gmra.mrb[120].mxu0 %v11598_v59 }
 0x1c3   : > { %2079 = vmatprep.mubr.bf16.mxu1 %v16712_v50  ;;  %2272 = vmatprep.mubr.bf16.mxu0 %v16712_v50 }
 0x1ca   : > { %2080 = vmatmul.mubr.bf16.gmra.mrb[92].mxu1 %v11593_v57  ;;  %2273 = vmatmul.mubr.bf16.gmra.mrb[124].mxu0 %v11593_v57 }
 0x1cb   : > { %2089 = vmatprep.mubr.bf16.mxu1 %v16712_v50  ;;  %2282 = vmatprep.mubr.bf16.mxu0 %v16712_v50 }
 0x1d2   : > { %2090 = vmatmul.mubr.bf16.gmra.mrb[96].mxu1 %v11624_v41  ;;  %2283 = vmatmul.mubr.bf16.gmra.mrb[128].mxu0 %v11624_v41 }
 0x1d3   : > { %2099 = vmatprep.mubr.bf16.mxu1 %v16712_v50  ;;  %2292 = vmatprep.mubr.bf16.mxu0 %v16712_v50 }
 0x1da   : > { %2100 = vmatmul.mubr.bf16.gmra.mrb[100].mxu1 %v11622_v36  ;;  %2293 = vmatmul.mubr.bf16.gmra.mrb[132].mxu0 %v11622_v36 }
 0x1db   : > { %2109 = vmatprep.mubr.bf16.mxu1 %v16712_v50  ;;  %2302 = vmatprep.mubr.bf16.mxu0 %v16712_v50 }
 0x1e2   : > { %2110 = vmatmul.mubr.bf16.gmra.mrb[104].mxu1 %v11641_v17  ;;  %2303 = vmatmul.mubr.bf16.gmra.mrb[136].mxu0 %v11641_v17 }
 0x1e3   : > { %2119 = vmatprep.mubr.bf16.mxu1 %v16712_v50  ;;  %2312 = vmatprep.mubr.bf16.mxu0 %v16712_v50 }
 0x1e5   : > { %v1625_v2 = vpop.f32.mrb[0].mxu1  ;;  %v1818_v4 = vpop.f32.mrb[32].mxu0 }
 0x1e6   : > { %v11821_v5 = vadd.f32 %v1625_v2, %v11807_v63  ;;  %v11824_v6 = vadd.f32 %v1818_v4, %v11810_v27  ;;  %v1627_v11 = vpop.f32.mrb[1].mxu1  ;;  %v1820_v15 = vpop.f32.mrb[33].mxu0 }
 0x1e7   : > { %v11827_v18 = vadd.f32 %v1627_v11, %v11813_v49  ;;  %v11830_v22 = vadd.f32 %v1820_v15, %v11816_v62  ;;  %v1629_v23 = vpop.f32.mrb[2].mxu1  ;;  %v1822_v35 = vpop.f32.mrb[34].mxu0 }
 0x1e8   : > { %v2556_v12 = vsub.f32 0.0, %v11821_v5  ;;  %v2558_v20 = vsub.f32 0.0, %v11824_v6  ;;  %v11835_v47 = vadd.f32 %v1629_v23, %v11807_v63  ;;  %v11838_v53 = vadd.f32 %v1822_v35, %v11810_v27  ;;  %v1631_v25 = vpop.f32.mrb[3].mxu1  ;;  %v1824_v28 = vpop.f32.mrb[35].mxu0 }
 0x1e9   : > { %v2557_v32 = vsub.f32 0.0, %v11827_v18  ;;  %v2559_v26 = vsub.f32 0.0, %v11830_v22  ;;  %v11843_v9 = vadd.f32 %v1631_v25, %v11813_v49  ;;  %v11846_v34 = vadd.f32 %v1824_v28, %v11816_v62 }
 0x1ea   : > { %v2876_v21 = vmin.f32 %v2556_v12, 80.0  ;;  %v2878_v29 = vmin.f32 %v2558_v20, 80.0  ;;  %v2566_v55 = vsub.f32 0.0, %v11835_v47  ;;  %v2568_v8 = vsub.f32 0.0, %v11838_v53  ;;  %2120 = vmatmul.mubr.bf16.gmra.mrb[108].mxu1 %v11632_v14  ;;  %2313 = vmatmul.mubr.bf16.gmra.mrb[140].mxu0 %v11632_v14 }
 0x1eb   : > { %v2877_v10 = vmin.f32 %v2557_v32, 80.0  ;;  %v2879_v38 = vmin.f32 %v2559_v26, 80.0  ;;  %v2567_v39 = vsub.f32 0.0, %v11843_v9  ;;  %v2569_v40 = vsub.f32 0.0, %v11846_v34  ;;  %2129 = vmatprep.mubr.bf16.mxu1 %v16712_v50  ;;  %2322 = vmatprep.mubr.bf16.mxu0 %v16712_v50 }
 0x1ec   : > { %v3196_v44 = vmul.f32 1.442695, %v2876_v21  ;;  %v3200_v48 = vmul.f32 1.442695, %v2878_v29  ;;  %v2886_v43 = vmin.f32 %v2566_v55, 80.0  ;;  %v2888_v54 = vmin.f32 %v2568_v8, 80.0 }
 0x1ed   : > { %v3198_v13 = vmul.f32 1.442695, %v2877_v10  ;;  %v3202_v45 = vmul.f32 1.442695, %v2879_v38  ;;  %v2887_v33 = vmin.f32 %v2567_v39, 80.0  ;;  %v2889_v3 = vmin.f32 %v2569_v40, 80.0 }
 0x1ee   : > { %9799 = vpow2.f32 %v3196_v44  ;;  %v3216_v56 = vmul.f32 1.442695, %v2886_v43  ;;  %v3220_v2 = vmul.f32 1.442695, %v2888_v54  ;;  %v1635_v4 = vpop.f32.mrb[4].mxu1  ;;  %v1828_v11 = vpop.f32.mrb[36].mxu0 }
 0x1ef   : > { %9801 = vpow2.f32 %v3200_v48  ;;  %v3218_v15 = vmul.f32 1.442695, %v2887_v33  ;;  %v3222_v23 = vmul.f32 1.442695, %v2889_v3  ;;  %v11857_v35 = vadd.f32 %v1635_v4, %v11807_v63  ;;  %v1637_v12 = vpop.f32.mrb[5].mxu1  ;;  %v1830_v20 = vpop.f32.mrb[37].mxu0 }
 0x1f0   : > { %9803 = vpow2.f32 %v3198_v13  ;;  %v11860_v25 = vadd.f32 %v1828_v11, %v11810_v27  ;;  %v11863_v28 = vadd.f32 %v1637_v12, %v11813_v49  ;;  %v11866_v32 = vadd.f32 %v1830_v20, %v11816_v62  ;;  %v1639_v26 = vpop.f32.mrb[6].mxu1  ;;  %v1832_v21 = vpop.f32.mrb[38].mxu0 }
 0x1f1   : > { %9805 = vpow2.f32 %v3202_v45  ;;  %v2576_v29 = vsub.f32 0.0, %v11857_v35  ;;  %v11870_v55 = vadd.f32 %v1639_v26, %v11807_v63  ;;  %v11873_v8 = vadd.f32 %v1832_v21, %v11810_v27  ;;  %v1641_v10 = vpop.f32.mrb[7].mxu1  ;;  %v1834_v38 = vpop.f32.mrb[39].mxu0 }
 0x1f2   : > { %9807 = vpow2.f32 %v3216_v56  ;;  %v2578_v39 = vsub.f32 0.0, %v11860_v25  ;;  %v2577_v40 = vsub.f32 0.0, %v11863_v28  ;;  %v2579_v44 = vsub.f32 0.0, %v11866_v32  ;;  %2130 = vmatmul.mubr.bf16.gmra.mrb[112].mxu1 %v11656_v31  ;;  %2323 = vmatmul.mubr.bf16.gmra.mrb[144].mxu0 %v11656_v31 }
 0x1f3   : > { %9809 = vpow2.f32 %v3220_v2  ;;  %v2896_v48 = vmin.f32 %v2576_v29, 80.0  ;;  %v2586_v43 = vsub.f32 0.0, %v11870_v55  ;;  %v2588_v54 = vsub.f32 0.0, %v11873_v8  ;;  %2139 = vmatprep.mubr.bf16.mxu1 %v16712_v50  ;;  %2332 = vmatprep.mubr.bf16.mxu0 %v16712_v50 }
 0x1f4   : > { %9811 = vpow2.f32 %v3218_v15  ;;  %v2898_v13 = vmin.f32 %v2578_v39, 80.0  ;;  %v2897_v45 = vmin.f32 %v2577_v40, 80.0  ;;  %v2899_v33 = vmin.f32 %v2579_v44, 80.0 }
 0x1f5   : > { %9813 = vpow2.f32 %v3222_v23  ;;  %v3236_v3 = vmul.f32 1.442695, %v2896_v48  ;;  %v2906_v56 = vmin.f32 %v2586_v43, 80.0  ;;  %v2908_v4 = vmin.f32 %v2588_v54, 80.0  ;;  %v1645_v11 = vpop.f32.mrb[8].mxu1  ;;  %v1838_v12 = vpop.f32.mrb[40].mxu0 }
 0x1f6   : > { %v3240_v2 = vmul.f32 1.442695, %v2898_v13  ;;  %v3238_v20 = vmul.f32 1.442695, %v2897_v45  ;;  %v3242_v26 = vmul.f32 1.442695, %v2899_v33  ;;  %v11885_v21 = vadd.f32 %v1641_v10, %v11813_v49 }
 0x1f7   : > { %9815 = vpow2.f32 %v3236_v3  ;;  %v11887_v29 = vmul.f32 1.442695, %v2906_v56  ;;  %v11889_v46 = vmul.f32 1.442695, %v2908_v4  ;;  %v11892_v15 = vadd.f32 %v1834_v38, %v11816_v62  ;;  %v1647_v23 = vpop.f32.mrb[9].mxu1  ;;  %v1840_v39 = vpop.f32.mrb[41].mxu0 }
 0x1f8   : > { %v9800_v40 = vpop.eup %9799  ;;  %9817 = vpow2.f32 %v3240_v2  ;;  %v2587_v44 = vsub.f32 0.0, %v11885_v21  ;;  %v11896_v48 = vadd.f32 %v1645_v11, %v11807_v63  ;;  %v11899_v10 = vadd.f32 %v1838_v12, %v11810_v27  ;;  %v1649_v43 = vpop.f32.mrb[10].mxu1 }
 0x1f9   : > { %v1842_v54 = vpop.f32.mrb[42].mxu0  ;;  %v9802_v13 = vpop.eup %9801  ;;  %v3836_v45 = vadd.f32 1.0, %v9800_v40  ;;  %9819 = vpow2.f32 %v3238_v20  ;;  %v2589_v38 = vsub.f32 0.0, %v11892_v15  ;;  %v11903_v33 = vadd.f32 %v1647_v23, %v11813_v49 }
 0x1fa   : > { %v1651_v3 = vpop.f32.mrb[11].mxu1  ;;  %v11905_v56 = vpop.f32.mrb[43].mxu0  ;;  %v3838_v2 = vadd.f32 1.0, %v9802_v13  ;;  %9821 = vpow2.f32 %v3242_v26  ;;  %v2907_v11 = vmin.f32 %v2587_v44, 80.0  ;;  %v2596_v12 = vsub.f32 0.0, %v11896_v48  ;;  %2140 = vmatmul.mubr.bf16.gmra.mrb[116].mxu1 %v11650_v24  ;;  %2333 = vmatmul.mubr.bf16.gmra.mrb[148].mxu0 %v11650_v24 }
 0x1fb   : > { %v9804_v4 = vpop.eup %9803  ;;  %9823 = vrcp.f32 %v3836_v45  ;;  %v2909_v50 = vmin.f32 %v2589_v38, 80.0  ;;  %v2598_v23 = vsub.f32 0.0, %v11899_v10  ;;  %2149 = vmatprep.mubr.bf16.mxu1 %v16829_v51  ;;  %2342 = vmatprep.mubr.bf16.mxu0 %v16829_v51  ;;  %v11938_v17 = vadd.f32 %v1649_v43, %v11807_v63 }
 0x1fc   : > { %v9806_v40 = vpop.eup %9805  ;;  %v3837_v20 = vadd.f32 1.0, %v9804_v4  ;;  %9825 = vrcp.f32 %v3838_v2  ;;  %v11913_v44 = vmul.f32 1.442695, %v2907_v11  ;;  %v2916_v13 = vmin.f32 %v2596_v12, 80.0 }
 0x1fd   : > { %v9808_v42 = vpop.eup %9807  ;;  %v3839_v26 = vadd.f32 1.0, %v9806_v40  ;;  %v11915_v37 = vmul.f32 1.442695, %v2909_v50  ;;  %v2918_v45 = vmin.f32 %v2598_v23, 80.0  ;;  %v11917_v4 = vpop.f32.mrb[12].mxu1  ;;  %v2597_v2 = vsub.f32 0.0, %v11903_v33 }
 0x1fe   : > { %v9810_v60 = vpop.eup %9809  ;;  %9827 = vrcp.f32 %v3837_v20  ;;  %v3846_v7 = vadd.f32 1.0, %v9808_v42  ;;  %v11919_v38 = vpop.f32.mrb[44].mxu0  ;;  %v11921_v14 = vmul.f32 1.442695, %v2916_v13  ;;  %v11931_v20 = vadd.f32 %v1840_v39, %v11816_v62  ;;  %16830 = vst [vmem:[#allocation21_spill] sm:$0xff] %v11938_v17 }
 0x1ff   : > { %v9812_v24 = vpop.eup %9811  ;;  %9829 = vrcp.f32 %v3839_v26  ;;  %v3848_v31 = vadd.f32 1.0, %v9810_v60  ;;  %v11924_v11 = vpop.f32.mrb[13].mxu1  ;;  %v11928_v42 = vmul.f32 1.442695, %v2918_v45  ;;  %v2917_v13 = vmin.f32 %v2597_v2, 80.0 }
 0x200   : > { %v11926_v12 = vpop.f32.mrb[45].mxu0  ;;  %v9814_v40 = vpop.eup %9813  ;;  %9831 = vrcp.f32 %v3846_v7  ;;  %v3847_v50 = vadd.f32 1.0, %v9812_v24  ;;  %v2599_v7 = vsub.f32 0.0, %v11931_v20  ;;  %v11946_v39 = vadd.f32 %v1842_v54, %v11810_v27 }
 0x201   : > { %v11933_v23 = vpop.f32.mrb[14].mxu1  ;;  %v11935_v26 = vpop.f32.mrb[46].mxu0  ;;  %9833 = vrcp.f32 %v3848_v31  ;;  %v3849_v60 = vadd.f32 1.0, %v9814_v40  ;;  %v11949_v45 = vadd.f32 %v1651_v3, %v11813_v49  ;;  %v11951_v40 = vmul.f32 1.442695, %v2917_v13 }
 0x202   : > { %v11940_v36 = vpop.f32.mrb[15].mxu1  ;;  %v11942_v41 = vpop.f32.mrb[47].mxu0  ;;  %9835 = vrcp.f32 %v3847_v50  ;;  %16831 = vst [vmem:[#allocation22_spill] sm:$0xff] %v11946_v39  ;;  %v2606_v43 = vsub.f32 0.0, %v11938_v17  ;;  %2150 = vmatmul.mubr.bf16.gmra.mrb[120].mxu1 %v11667_v0  ;;  %2343 = vmatmul.mubr.bf16.gmra.mrb[152].mxu0 %v11667_v0  ;;  %v2919_v54 = vmin.f32 %v2599_v7, 80.0  ;;  %v2608_v59 = vsub.f32 0.0, %v11946_v39 }
 0x203   : > { %v9816_v24 = vpop.eup %9815  ;;  %16832 = vst [vmem:[#allocation23_spill] sm:$0xff] %v11949_v45  ;;  %9837 = vrcp.f32 %v3849_v60  ;;  %2159 = vmatprep.mubr.bf16.mxu1 %v16829_v51  ;;  %2352 = vmatprep.mubr.bf16.mxu0 %v16829_v51 }
 0x204   : > { %v9818_v31 = vpop.eup %9817  ;;  %v3856_v2 = vadd.f32 1.0, %v9816_v24  ;;  %9839 = vpow2.f32 %v11887_v29  ;;  %v2926_v13 = vmin.f32 %v2606_v43, 80.0  ;;  %v2607_v24 = vsub.f32 0.0, %v11949_v45 }
 0x205   : > { %v9820_v50 = vpop.eup %9819  ;;  %v3858_v57 = vadd.f32 1.0, %v9818_v31  ;;  %v3282_v61 = vmul.f32 1.442695, %v2919_v54  ;;  %v2928_v31 = vmin.f32 %v2608_v59, 80.0  ;;  %v11961_v52 = vpop.f32.mrb[16].mxu1  ;;  %v11979_v54 = vadd.f32 %v11905_v56, %v11816_v62 }
 0x206   : > { %v9822_v3 = vpop.eup %9821  ;;  %9841 = vrcp.f32 %v3856_v2  ;;  %v3857_v60 = vadd.f32 1.0, %v9820_v50  ;;  %v11963_v29 = vpop.f32.mrb[48].mxu0  ;;  %v3296_v17 = vmul.f32 1.442695, %v2926_v13  ;;  %v2927_v2 = vmin.f32 %v2607_v24, 80.0 }
 0x207   : > { %v9824_v16 = vpop.eup %9823  ;;  %9843 = vrcp.f32 %v3858_v57  ;;  %v3859_v0 = vadd.f32 1.0, %v9822_v3  ;;  %v11968_v50 = vpop.f32.mrb[17].mxu1  ;;  %v11975_v59 = vmul.f32 1.442695, %v2928_v31 }
 0x208   : > { %v9826_v7 = vpop.eup %9825  ;;  %v11966_v39 = vmul.f32 %v9824_v16, %v11821_v5  ;;  %9845 = vrcp.f32 %v3857_v60  ;;  %v11970_v43 = vpop.f32.mrb[49].mxu0  ;;  %v3298_v13 = vmul.f32 1.442695, %v2927_v2 }
 0x209   : > { %v9828_v45 = vpop.eup %9827  ;;  %v11973_v57 = vmul.f32 %v9826_v7, %v11824_v6  ;;  %9847 = vrcp.f32 %v3859_v0  ;;  %v11981_v16 = vpop.f32.mrb[18].mxu1  ;;  %v11991_v0 = vadd.f32 %v11917_v4, %v11807_v63 }
 0x20a   : > { %v11983_v5 = vpop.f32.mrb[50].mxu0  ;;  %v9830_v3 = vpop.eup %9829  ;;  %v11986_v60 = vmul.f32 %v9828_v45, %v11827_v18  ;;  %9849 = vpow2.f32 %v11889_v46  ;;  %v2609_v18 = vsub.f32 0.0, %v11979_v54  ;;  %v12004_v46 = vadd.f32 %v11919_v38, %v11810_v27  ;;  %2160 = vmatmul.mubr.bf16.gmra.mrb[124].mxu1 %v11659_v30  ;;  %2353 = vmatmul.mubr.bf16.gmra.mrb[156].mxu0 %v11659_v30 }
 0x20b   : > { %16833 = vst [vmem:[#allocation24_spill] sm:$0xff] %v11973_v57  ;;  %v11993_v6 = vpop.f32.mrb[19].mxu1  ;;  %v11995_v24 = vpop.f32.mrb[51].mxu0  ;;  %v11998_v31 = vmul.f32 %v9830_v3, %v11830_v22  ;;  %9851 = vpow2.f32 %v11913_v44  ;;  %v2616_v7 = vsub.f32 0.0, %v11991_v0  ;;  %v12013_v22 = vadd.f32 %v11924_v11, %v11813_v49  ;;  %2395 = vmatprep.mubr.bf16.mxu1 %v16829_v51 }
 0x20c   : > { %v9832_v56 = vpop.eup %9831  ;;  %16835 = vst [vmem:[#allocation26_spill] sm:$0xff] %v12004_v46  ;;  %9853 = vpow2.f32 %v11915_v37  ;;  %v2618_v2 = vsub.f32 0.0, %v12004_v46 }
 0x20d   : > { %16834 = vst [vmem:[#allocation25_spill] sm:$0xff] %v11998_v31  ;;  %v9834_v45 = vpop.eup %9833  ;;  %v12007_v4 = vmul.f32 %v9832_v56, %v11835_v47  ;;  %9855 = vpow2.f32 %v11921_v14  ;;  %v2929_v47 = vmin.f32 %v2609_v18, 80.0  ;;  %v2936_v56 = vmin.f32 %v2616_v7, 80.0  ;;  %v12037_v30 = vpop.f32.mrb[52].mxu0 }
 0x20e   : > { %v9836_v44 = vpop.eup %9835  ;;  %v12018_v38 = vmul.f32 %v9834_v45, %v11838_v53  ;;  %9857 = vpow2.f32 %v11928_v42  ;;  %v12035_v45 = vpop.f32.mrb[20].mxu1  ;;  %v2938_v42 = vmin.f32 %v2618_v2, 80.0 }
 0x20f   : > { %v9838_v37 = vpop.eup %9837  ;;  %v12026_v3 = vmul.f32 %v9836_v44, %v11843_v9  ;;  %9859 = vpow2.f32 %v11951_v40  ;;  %v3302_v18 = vmul.f32 1.442695, %v2929_v47  ;;  %v3316_v44 = vmul.f32 1.442695, %v2936_v56  ;;  %v12039_v7 = vpop.f32.mrb[21].mxu1 }
 0x210   : > { %16836 = vst [vmem:[#allocation27_spill] sm:$0xff] %v12018_v38  ;;  %v9840_v31 = vpop.eup %9839  ;;  %v12032_v14 = vmul.f32 %v9838_v37, %v11846_v34  ;;  %9861 = vpow2.f32 %v3282_v61  ;;  %v12041_v46 = vpop.f32.mrb[53].mxu0  ;;  %v2617_v40 = vsub.f32 0.0, %v12013_v22  ;;  %v12049_v47 = vadd.f32 %v11926_v12, %v11816_v62 }
 0x211   : > { %v9842_v11 = vpop.eup %9841  ;;  %v3866_v9 = vadd.f32 1.0, %v9840_v31  ;;  %9863 = vpow2.f32 %v3296_v17  ;;  %v12051_v37 = vpop.f32.mrb[22].mxu1  ;;  %v12058_v56 = vmul.f32 1.442695, %v2938_v42  ;;  %v12062_v17 = vadd.f32 %v11933_v23, %v11807_v63 }
 0x212   : > { %16837 = vst [vmem:[#allocation28_spill] sm:$0xff] %v12032_v14  ;;  %v9844_v53 = vpop.eup %9843  ;;  %v12044_v34 = vmul.f32 %v9842_v11, %v11857_v35  ;;  %v12053_v61 = vpop.f32.mrb[54].mxu0  ;;  %v2937_v38 = vmin.f32 %v2617_v40, 80.0  ;;  %v12079_v42 = vadd.f32 %v11935_v26, %v11810_v27  ;;  %2396 = vmatmul.mubr.bf16.vlgmr.msra.gmra.mrb[128].mxu1 %v11442_v1  ;;  %v12090_v1 = vadd.f32 %v11940_v36, %v11813_v49 }
 0x213   : > { %v9846_v31 = vpop.eup %9845  ;;  %v12056_v2 = vmul.f32 %v9844_v53, %v11860_v25  ;;  %9865 = vrcp.f32 %v3866_v9  ;;  %v12064_v35 = vpop.f32.mrb[23].mxu1  ;;  %v2619_v25 = vsub.f32 0.0, %v12049_v47  ;;  %v2626_v23 = vsub.f32 0.0, %v12062_v17  ;;  %2405 = vmatprep.mubr.bf16.mxu1 %v16829_v51 }
 0x214   : > { %v12066_v11 = vpop.f32.mrb[55].mxu0  ;;  %v9848_v12 = vpop.eup %9847  ;;  %v12069_v57 = vmul.f32 %v9846_v31, %v11863_v28  ;;  %9867 = vpow2.f32 %v11975_v59  ;;  %16841 = vst [vmem:[#allocation32_spill] sm:$0xff] %v12079_v42  ;;  %v12082_v59 = vmul.f32 1.442695, %v2937_v38  ;;  %16842 = vst [vmem:[#allocation33_spill] sm:$0xff] %v12090_v1  ;;  %v2627_v36 = vsub.f32 0.0, %v12090_v1 }
 0x215   : > { %16838 = vst [vmem:[#allocation29_spill] sm:$0xff] %v12056_v2  ;;  %v9850_v53 = vpop.eup %9849  ;;  %v12074_v9 = vmul.f32 %v9848_v12, %v11866_v32  ;;  %9869 = vpow2.f32 %v3298_v13  ;;  %v2939_v40 = vmin.f32 %v2619_v25, 80.0  ;;  %v2946_v13 = vmin.f32 %v2626_v23, 80.0  ;;  %v12092_v38 = vpop.f32.mrb[24].mxu1 }
 0x216   : > { %16839 = vst [vmem:[#allocation30_spill] sm:$0xff] %v12069_v57  ;;  %v9852_v28 = vpop.eup %9851  ;;  %v3868_v31 = vadd.f32 1.0, %v9850_v53  ;;  %9871 = vpow2.f32 %v3302_v18  ;;  %v2628_v12 = vsub.f32 0.0, %v12079_v42  ;;  %v12094_v18 = vpop.f32.mrb[56].mxu0  ;;  %v12105_v42 = vadd.f32 %v11942_v41, %v11816_v62 }
 0x217   : > { %16840 = vst [vmem:[#allocation31_spill] sm:$0xff] %v12074_v9  ;;  %v9854_v14 = vpop.eup %9853  ;;  %v3867_v32 = vadd.f32 1.0, %v9852_v28  ;;  %9873 = vpow2.f32 %v3316_v44  ;;  %v12086_v57 = vmul.f32 1.442695, %v2939_v40  ;;  %16843 = vst [vmem:[#allocation34_spill] sm:$0xff] %v12094_v18  ;;  %v12098_v28 = vpop.f32.mrb[25].mxu1 }
 0x218   : > { %v9856_v9 = vpop.eup %9855  ;;  %9875 = vrcp.f32 %v3868_v31  ;;  %v3869_v26 = vadd.f32 1.0, %v9854_v14  ;;  %v12096_v44 = vmul.f32 1.442695, %v2946_v13  ;;  %v2948_v23 = vmin.f32 %v2628_v12, 80.0  ;;  %16844 = vst [vmem:[#allocation35_spill] sm:$0xff] %v12098_v28  ;;  %v12100_v31 = vpop.f32.mrb[57].mxu0 }
 0x219   : > { %v9858_v25 = vpop.eup %9857  ;;  %9877 = vrcp.f32 %v3867_v32  ;;  %v3876_v53 = vadd.f32 1.0, %v9856_v9  ;;  %16845 = vst [vmem:[#allocation36_spill] sm:$0xff] %v12100_v31  ;;  %16846 = vst [vmem:[#allocation37_spill] sm:$0xff] %v12105_v42  ;;  %v12107_v18 = vpop.f32.mrb[26].mxu1  ;;  %v12115_v31 = vadd.f32 %v11961_v52, %v11807_v63  ;;  %v2947_v1 = vmin.f32 %v2627_v36, 80.0 }
 0x21a   : > { %v9860_v14 = vpop.eup %9859  ;;  %9879 = vrcp.f32 %v3869_v26  ;;  %v3878_v40 = vadd.f32 1.0, %v9858_v25  ;;  %16847 = vst [vmem:[#allocation38_spill] sm:$0xff] %v12107_v18  ;;  %v12109_v32 = vpop.f32.mrb[58].mxu0  ;;  %v12111_v12 = vmul.f32 1.442695, %v2948_v23  ;;  %v2629_v18 = vsub.f32 0.0, %v12105_v42  ;;  %2406 = vmatmul.mubr.bf16.gmra.mrb[132].mxu1 %v11434_v58 }
 0x21b   : > { %16848 = vst [vmem:[#allocation39_spill] sm:$0xff] %v12109_v32  ;;  %v9862_v9 = vpop.eup %9861  ;;  %9881 = vrcp.f32 %v3876_v53  ;;  %v3877_v13 = vadd.f32 1.0, %v9860_v14  ;;  %16849 = vst [vmem:[#allocation40_spill] sm:$0xff] %v12115_v31  ;;  %v12117_v26 = vpop.f32.mrb[27].mxu1  ;;  %v2636_v23 = vsub.f32 0.0, %v12115_v31  ;;  %v12125_v14 = vadd.f32 %v11963_v29, %v11810_v27  ;;  %2415 = vmatprep.mubr.bf16.mxu1 %v16829_v51 }
 0x21c   : > { %16850 = vst [vmem:[#allocation41_spill] sm:$0xff] %v12117_v26  ;;  %v12119_v25 = vpop.f32.mrb[59].mxu0  ;;  %v9864_v28 = vpop.eup %9863  ;;  %9883 = vrcp.f32 %v3878_v40  ;;  %v3879_v41 = vadd.f32 1.0, %v9862_v9  ;;  %v12131_v40 = vmul.f32 1.442695, %v2947_v1  ;;  %v2949_v36 = vmin.f32 %v2629_v18, 80.0 }
 0x21d   : > { %16851 = vst [vmem:[#allocation42_spill] sm:$0xff] %v12119_v25  ;;  %v9866_v32 = vpop.eup %9865  ;;  %9885 = vrcp.f32 %v3877_v13  ;;  %v3886_v53 = vadd.f32 1.0, %v9864_v28  ;;  %16852 = vst [vmem:[#allocation43_spill] sm:$0xff] %v12125_v14  ;;  %v2956_v13 = vmin.f32 %v2636_v23, 80.0  ;;  %v2638_v26 = vsub.f32 0.0, %v12125_v14  ;;  %v12140_v1 = vpop.f32.mrb[60].mxu0 }
 0x21e   : > { %v9868_v52 = vpop.eup %9867  ;;  %v12129_v25 = vmul.f32 %v9866_v32, %v11870_v55  ;;  %9887 = vrcp.f32 %v3879_v41  ;;  %v3342_v55 = vmul.f32 1.442695, %v2949_v36  ;;  %v12138_v32 = vpop.f32.mrb[28].mxu1  ;;  %v12152_v36 = vadd.f32 %v11970_v43, %v11816_v62 }
 0x21f   : > { %v9870_v9 = vpop.eup %9869  ;;  %9889 = vrcp.f32 %v3886_v53  ;;  %v3888_v28 = vadd.f32 1.0, %v9868_v52  ;;  %v3356_v53 = vmul.f32 1.442695, %v2956_v13  ;;  %v2958_v52 = vmin.f32 %v2638_v26, 80.0  ;;  %v12142_v23 = vpop.f32.mrb[29].mxu1 }
 0x220   : > { %v9872_v29 = vpop.eup %9871  ;;  %v3887_v31 = vadd.f32 1.0, %v9870_v9  ;;  %9891 = vpow2.f32 %v12058_v56  ;;  %v12144_v14 = vpop.f32.mrb[61].mxu0  ;;  %v12148_v56 = vadd.f32 %v11968_v50, %v11813_v49 }
 0x221   : > { %v9874_v18 = vpop.eup %9873  ;;  %9893 = vrcp.f32 %v3888_v28  ;;  %v3889_v41 = vadd.f32 1.0, %v9872_v29  ;;  %16853 = vst [vmem:[#allocation44_spill] sm:$0xff] %v12144_v14  ;;  %v12154_v9 = vpop.f32.mrb[30].mxu1  ;;  %v3360_v29 = vmul.f32 1.442695, %v2958_v52 }
 0x222   : > { %v9876_v42 = vpop.eup %9875  ;;  %9895 = vrcp.f32 %v3887_v31  ;;  %v3896_v58 = vadd.f32 1.0, %v9874_v18  ;;  %v12156_v28 = vpop.f32.mrb[62].mxu0  ;;  %v12163_v31 = vadd.f32 %v11981_v16, %v11807_v63  ;;  %2416 = vmatmul.mubr.bf16.gmra.mrb[136].mxu1 %v11488_v19  ;;  %v12193_v19 = vadd.f32 %v11983_v5, %v11810_v27 }
 0x223   : > { %16854 = vst [vmem:[#allocation45_spill] sm:$0xff] %v12156_v28  ;;  %v9878_v26 = vpop.eup %9877  ;;  %v12159_v13 = vmul.f32 %v9876_v42, %v11873_v8  ;;  %9897 = vrcp.f32 %v3889_v41  ;;  %v12165_v50 = vpop.f32.mrb[31].mxu1  ;;  %v2637_v28 = vsub.f32 0.0, %v12148_v56  ;;  %v2639_v8 = vsub.f32 0.0, %v12152_v36  ;;  %2425 = vmatprep.mubr.bf16.mxu1 %v16829_v51 }
 0x224   : > { %v12167_v18 = vpop.f32.mrb[63].mxu0  ;;  %v9880_v43 = vpop.eup %9879  ;;  %v12170_v14 = vmul.f32 %v9878_v26, %v11885_v21  ;;  %9899 = vrcp.f32 %v3896_v58  ;;  %v2646_v52 = vsub.f32 0.0, %v12163_v31 }
 0x225   : > { %16855 = vst [vmem:[#allocation46_spill] sm:$0xff] %v12159_v13  ;;  %16856 = vst [vmem:[#allocation47_spill] sm:$0xff] %v12167_v18  ;;  %v9882_v42 = vpop.eup %9881  ;;  %v12177_v16 = vmul.f32 %v9880_v43, %v11892_v15  ;;  %9901 = vpow2.f32 %v12082_v59  ;;  %v2957_v26 = vmin.f32 %v2637_v28, 80.0  ;;  %v2959_v18 = vmin.f32 %v2639_v8, 80.0  ;;  %v12199_v8 = vpop.f32.mrb[32].mxu1  ;;  %v16866_v13 = vld [vmem:[#allocation22_spill] sm:$0xff] }
 0x226   : > { %v9884_v21 = vpop.eup %9883  ;;  %v12183_v58 = vmul.f32 %v9882_v42, %v11896_v48  ;;  %9903 = vpow2.f32 %v12086_v57  ;;  %v2966_v59 = vmin.f32 %v2646_v52, 80.0  ;;  %v12201_v42 = vpop.f32.mrb[64].mxu0  ;;  %v2648_v52 = vsub.f32 0.0, %v12193_v19 }
 0x227   : > { %16857 = vst [vmem:[#allocation48_spill] sm:$0xff] %v12177_v16  ;;  %v9886_v41 = vpop.eup %9885  ;;  %v12188_v15 = vmul.f32 %v9884_v21, %v11899_v10  ;;  %9905 = vpow2.f32 %v12096_v44  ;;  %v3358_v57 = vmul.f32 1.442695, %v2957_v26  ;;  %v3362_v28 = vmul.f32 1.442695, %v2959_v18  ;;  %v12208_v21 = vpop.f32.mrb[33].mxu1 }
 0x228   : > { %v9888_v43 = vpop.eup %9887  ;;  %v12196_v48 = vmul.f32 %v9886_v41, %v11903_v33  ;;  %9907 = vpow2.f32 %v12111_v12  ;;  %v3376_v5 = vmul.f32 1.442695, %v2966_v59  ;;  %v12210_v33 = vpop.f32.mrb[65].mxu0  ;;  %v16861_v41 = vld [vmem:[#allocation21_spill] sm:$0xff]  ;;  %v12217_v26 = vadd.f32 %v11993_v6, %v11813_v49 }
 0x229   : > { %16858 = vst [vmem:[#allocation49_spill] sm:$0xff] %v12188_v15  ;;  %v9890_v10 = vpop.eup %9889  ;;  %v12204_v44 = vmul.f32 %v9888_v43, %v11931_v20  ;;  %9909 = vpow2.f32 %v12131_v40  ;;  %16860 = vst [vmem:[#allocation51_spill] sm:$0xff] %v12210_v33  ;;  %v12221_v20 = vadd.f32 %v11995_v24, %v11816_v62  ;;  %v12223_v40 = vpop.f32.mrb[34].mxu1  ;;  %v2968_v2 = vmin.f32 %v2648_v52, 80.0  ;;  %v16868_v52 = vld [vmem:[#allocation23_spill] sm:$0xff] }
 0x22a   : > { %v9892_v12 = vpop.eup %9891  ;;  %v12213_v18 = vmul.f32 %v9890_v10, %v16861_v41  ;;  %9911 = vpow2.f32 %v3342_v55  ;;  %16862 = vst [vmem:[#allocation21_spill] sm:$0xff] %v12223_v40  ;;  %v12225_v59 = vpop.f32.mrb[66].mxu0  ;;  %v12229_v10 = vadd.f32 %v12035_v45, %v11807_v63  ;;  %v16869_v40 = vld [vmem:[#allocation3_spill] sm:$0xff]  ;;  %v4799_v24 = vpack.c.bf16 %v12026_v3, %v11986_v60 }
 0x22b   : > { %16859 = vst [vmem:[#allocation50_spill] sm:$0xff] %v12204_v44  ;;  %16863 = vst [vmem:[#allocation52_spill] sm:$0xff] %v12225_v59  ;;  %v9894_v43 = vpop.eup %9893  ;;  %v3898_v44 = vadd.f32 1.0, %v9892_v12  ;;  %9913 = vpow2.f32 %v3356_v53  ;;  %v12231_v55 = vpop.f32.mrb[35].mxu1  ;;  %v2647_v12 = vsub.f32 0.0, %v12217_v26  ;;  %2426 = vmatmul.mubr.bf16.gmra.mrb[140].mxu1 %v16869_v40 }
 0x22c   : > { %16864 = vst [vmem:[#allocation53_spill] sm:$0xff] %v12231_v55  ;;  %v12233_v6 = vpop.f32.mrb[67].mxu0  ;;  %v9896_v41 = vpop.eup %9895  ;;  %v12238_v16 = vmul.f32 %v9894_v43, %v16866_v13  ;;  %9915 = vpow2.f32 %v3360_v29  ;;  %v3380_v45 = vmul.f32 1.442695, %v2968_v2  ;;  %v2649_v55 = vsub.f32 0.0, %v12221_v20  ;;  %2435 = vmatprep.mubr.bf16.mxu1 %v16829_v51  ;;  %4958 = vmatprep.subr.bf16.mxu0 %v4799_v24 }
 0x22d   : > { %16865 = vst [vmem:[#allocation54_spill] sm:$0xff] %v12233_v6  ;;  %v9898_v53 = vpop.eup %9897  ;;  %v12242_v59 = vmul.f32 %v9896_v41, %v16868_v52  ;;  %9917 = vrcp.f32 %v3898_v44  ;;  %v2967_v29 = vmin.f32 %v2647_v12, 80.0  ;;  %v2656_v44 = vsub.f32 0.0, %v12229_v10  ;;  %v12264_v12 = vpop.f32.mrb[68].mxu0 }
 0x22e   : > { %16867 = vst [vmem:[#allocation22_spill] sm:$0xff] %v12238_v16  ;;  %v9900_v6 = vpop.eup %9899  ;;  %v12249_v13 = vmul.f32 %v9898_v53, %v11979_v54  ;;  %9919 = vpow2.f32 %v3358_v57  ;;  %v2969_v2 = vmin.f32 %v2649_v55, 80.0  ;;  %v12260_v54 = vadd.f32 %v12037_v30, %v11810_v27  ;;  %v12262_v57 = vpop.f32.mrb[36].mxu1  ;;  %16871 = vst [vmem:[#allocation3_spill] sm:$0xff] %v12264_v12 }
 0x22f   : > { %v9902_v43 = vpop.eup %9901  ;;  %v12253_v41 = vmul.f32 %v9900_v6, %v11991_v0  ;;  %9921 = vpow2.f32 %v3362_v28  ;;  %v12256_v33 = vmul.f32 1.442695, %v2967_v29  ;;  %v2976_v55 = vmin.f32 %v2656_v44, 80.0  ;;  %v12268_v6 = vpop.f32.mrb[37].mxu1 }
 0x230   : > { %16870 = vst [vmem:[#allocation23_spill] sm:$0xff] %v12249_v13  ;;  %v9904_v40 = vpop.eup %9903  ;;  %v3897_v52 = vadd.f32 1.0, %v9902_v43  ;;  %9923 = vpow2.f32 %v3376_v5  ;;  %v12266_v28 = vmul.f32 1.442695, %v2969_v2  ;;  %16872 = vst [vmem:[#allocation55_spill] sm:$0xff] %v12268_v6  ;;  %v12270_v43 = vpop.f32.mrb[69].mxu0 }
 0x231   : > { %v9906_v53 = vpop.eup %9905  ;;  %v3899_v0 = vadd.f32 1.0, %v9904_v40  ;;  %9925 = vpow2.f32 %v3380_v45  ;;  %16873 = vst [vmem:[#allocation56_spill] sm:$0xff] %v12270_v43  ;;  %v2658_v30 = vsub.f32 0.0, %v12260_v54  ;;  %v12275_v15 = vpop.f32.mrb[38].mxu1  ;;  %v12279_v44 = vmul.f32 1.442695, %v2976_v55 }
 0x232   : > { %v9908_v5 = vpop.eup %9907  ;;  %9927 = vrcp.f32 %v3897_v52  ;;  %v3906_v29 = vadd.f32 1.0, %v9906_v53  ;;  %16874 = vst [vmem:[#allocation57_spill] sm:$0xff] %v12275_v15  ;;  %v12277_v16 = vpop.f32.mrb[70].mxu0  ;;  %v12283_v40 = vadd.f32 %v12039_v7, %v11813_v49  ;;  %v16878_v7 = vpack.c.bf16 %v12007_v4, %v11966_v39 }
 0x233   : > { %16875 = vst [vmem:[#allocation58_spill] sm:$0xff] %v12277_v16  ;;  %v9910_v45 = vpop.eup %9909  ;;  %9929 = vrcp.f32 %v3899_v0  ;;  %v3908_v2 = vadd.f32 1.0, %v9908_v5  ;;  %v12285_v52 = vpop.f32.mrb[39].mxu1  ;;  %v2978_v3 = vmin.f32 %v2658_v30, 80.0  ;;  %v12291_v16 = vadd.f32 %v12041_v46, %v11816_v62 }
 0x234   : > { %16876 = vst [vmem:[#allocation59_spill] sm:$0xff] %v12285_v52  ;;  %v12287_v53 = vpop.f32.mrb[71].mxu0  ;;  %v9912_v13 = vpop.eup %9911  ;;  %9931 = vrcp.f32 %v3906_v29  ;;  %v3907_v60 = vadd.f32 1.0, %v9910_v45  ;;  %v2657_v5 = vsub.f32 0.0, %v12283_v40  ;;  %4959 = vmatpush1.bf16.msra.mxu0 %v16878_v7  ;;  %v16879_v29 = vld [vmem:[#allocation5_spill] sm:$0xff] }
 0x235   : > { %16877 = vst [vmem:[#allocation60_spill] sm:$0xff] %v12287_v53  ;;  %v9914_v0 = vpop.eup %9913  ;;  %9933 = vrcp.f32 %v3908_v2  ;;  %v3909_v55 = vadd.f32 1.0, %v9912_v13  ;;  %v12299_v53 = vadd.f32 %v12051_v37, %v11807_v63  ;;  %2436 = vmatmul.mubr.bf16.gmra.mrb[144].mxu1 %v16879_v29  ;;  %v12302_v46 = vmul.f32 1.442695, %v2978_v3  ;;  %v16880_v37 = vld [vmem:[#allocation26_spill] sm:$0xff]  ;;  %v12314_v3 = vpop.f32.mrb[40].mxu1 }
 0x236   : > { %v9916_v24 = vpop.eup %9915  ;;  %9935 = vrcp.f32 %v3907_v60  ;;  %v3916_v30 = vadd.f32 1.0, %v9914_v0  ;;  %v2659_v45 = vsub.f32 0.0, %v12291_v16  ;;  %2445 = vmatprep.mubr.bf16.mxu1 %v16829_v51  ;;  %v2977_v39 = vmin.f32 %v2657_v5, 80.0  ;;  %16882 = vst [vmem:[#allocation26_spill] sm:$0xff] %v12314_v3  ;;  %v12316_v0 = vpop.f32.mrb[72].mxu0 }
 0x237   : > { %v9918_v13 = vpop.eup %9917  ;;  %9937 = vrcp.f32 %v3909_v55  ;;  %v3918_v2 = vadd.f32 1.0, %v9916_v24  ;;  %v2666_v4 = vsub.f32 0.0, %v12299_v53  ;;  %v12312_v60 = vadd.f32 %v12053_v61, %v11810_v27  ;;  %16883 = vst [vmem:[#allocation61_spill] sm:$0xff] %v12316_v0  ;;  %v12318_v43 = vpop.f32.mrb[41].mxu1 }
 0x238   : > { %v9920_v7 = vpop.eup %9919  ;;  %v12308_v52 = vmul.f32 %v9918_v13, %v16880_v37  ;;  %9939 = vrcp.f32 %v3916_v30  ;;  %v2979_v29 = vmin.f32 %v2659_v45, 80.0  ;;  %v3398_v5 = vmul.f32 1.442695, %v2977_v39  ;;  %16884 = vst [vmem:[#allocation62_spill] sm:$0xff] %v12318_v43  ;;  %v12320_v6 = vpop.f32.mrb[73].mxu0 }
 0x239   : > { %v9922_v15 = vpop.eup %9921  ;;  %9941 = vrcp.f32 %v3918_v2  ;;  %v3917_v55 = vadd.f32 1.0, %v9920_v7  ;;  %v2986_v24 = vmin.f32 %v2666_v4, 80.0  ;;  %16885 = vst [vmem:[#allocation63_spill] sm:$0xff] %v12320_v6  ;;  %v2668_v61 = vsub.f32 0.0, %v12312_v60  ;;  %v12324_v37 = vpop.f32.mrb[42].mxu1 }
 0x23a   : > { %16881 = vst [vmem:[#allocation5_spill] sm:$0xff] %v12308_v52  ;;  %v9924_v13 = vpop.eup %9923  ;;  %v3919_v30 = vadd.f32 1.0, %v9922_v15  ;;  %9943 = vpow2.f32 %v12256_v33  ;;  %v3402_v45 = vmul.f32 1.442695, %v2979_v29  ;;  %16886 = vst [vmem:[#allocation64_spill] sm:$0xff] %v12324_v37  ;;  %v12326_v3 = vpop.f32.mrb[74].mxu0  ;;  %v12330_v4 = vadd.f32 %v12064_v35, %v11813_v49 }
 0x23b   : > { %16887 = vst [vmem:[#allocation65_spill] sm:$0xff] %v12326_v3  ;;  %v9926_v0 = vpop.eup %9925  ;;  %9945 = vrcp.f32 %v3917_v55  ;;  %v3926_v2 = vadd.f32 1.0, %v9924_v13  ;;  %v3416_v39 = vmul.f32 1.442695, %v2986_v24  ;;  %v12332_v7 = vpop.f32.mrb[43].mxu1  ;;  %v2988_v6 = vmin.f32 %v2668_v61, 80.0 }
 0x23c   : > { %16888 = vst [vmem:[#allocation66_spill] sm:$0xff] %v12332_v7  ;;  %v12334_v15 = vpop.f32.mrb[75].mxu0  ;;  %v9928_v33 = vpop.eup %9927  ;;  %9947 = vrcp.f32 %v3919_v30  ;;  %v3928_v29 = vadd.f32 1.0, %v9926_v0  ;;  %v12338_v37 = vadd.f32 %v12066_v11, %v11816_v62  ;;  %v2667_v35 = vsub.f32 0.0, %v12330_v4  ;;  %v16890_v13 = vld [vmem:[#allocation4_spill] sm:$0xff] }
 0x23d   : > { %16889 = vst [vmem:[#allocation67_spill] sm:$0xff] %v12334_v15  ;;  %v9930_v3 = vpop.eup %9929  ;;  %v12341_v55 = vmul.f32 %v9928_v33, %v12013_v22  ;;  %9949 = vrcp.f32 %v3926_v2  ;;  %v12346_v24 = vadd.f32 %v12092_v38, %v11807_v63  ;;  %2446 = vmatmul.mubr.bf16.gmra.mrb[148].mxu1 %v16890_v13  ;;  %v3420_v11 = vmul.f32 1.442695, %v2988_v6  ;;  %v16892_v15 = vld [vmem:[#allocation32_spill] sm:$0xff]  ;;  %v16894_v6 = vld [vmem:[#allocation34_spill] sm:$0xff] }
 0x23e   : > { %v9932_v30 = vpop.eup %9931  ;;  %v12350_v0 = vmul.f32 %v9930_v3, %v12049_v47  ;;  %9951 = vrcp.f32 %v3928_v29  ;;  %v2669_v61 = vsub.f32 0.0, %v12338_v37  ;;  %2455 = vmatprep.mubr.bf16.mxu1 %v16829_v51  ;;  %v2987_v38 = vmin.f32 %v2667_v35, 80.0  ;;  %v12367_v29 = vpop.f32.mrb[44].mxu1  ;;  %v16897_v35 = vld [vmem:[#allocation33_spill] sm:$0xff] }
 0x23f   : > { %v9934_v22 = vpop.eup %9933  ;;  %v12355_v2 = vmul.f32 %v9932_v30, %v12062_v17  ;;  %9953 = vpow2.f32 %v12266_v28  ;;  %v2676_v33 = vsub.f32 0.0, %v12346_v24  ;;  %v12365_v3 = vadd.f32 %v16894_v6, %v11810_v27  ;;  %16895 = vst [vmem:[#allocation34_spill] sm:$0xff] %v12367_v29  ;;  %v12369_v17 = vpop.f32.mrb[76].mxu0  ;;  %v16900_v29 = vld [vmem:[#allocation37_spill] sm:$0xff] }
 0x240   : > { %16891 = vst [vmem:[#allocation4_spill] sm:$0xff] %v12350_v0  ;;  %v9936_v13 = vpop.eup %9935  ;;  %v12360_v7 = vmul.f32 %v9934_v22, %v16892_v15  ;;  %9955 = vpow2.f32 %v12279_v44  ;;  %v2989_v47 = vmin.f32 %v2669_v61, 80.0  ;;  %16896 = vst [vmem:[#allocation68_spill] sm:$0xff] %v12369_v17  ;;  %v3418_v15 = vmul.f32 1.442695, %v2987_v38  ;;  %v12377_v44 = vpop.f32.mrb[45].mxu1 }
 0x241   : > { %v9938_v30 = vpop.eup %9937  ;;  %v12374_v0 = vmul.f32 %v9936_v13, %v16897_v35  ;;  %9957 = vpow2.f32 %v12302_v46  ;;  %16898 = vst [vmem:[#allocation33_spill] sm:$0xff] %v12377_v44  ;;  %v12379_v61 = vpop.f32.mrb[77].mxu0  ;;  %v16904_v46 = vld [vmem:[#allocation40_spill] sm:$0xff]  ;;  %v2996_v44 = vmin.f32 %v2676_v33, 80.0 }
 0x242   : > { %16893 = vst [vmem:[#allocation32_spill] sm:$0xff] %v12360_v7  ;;  %16899 = vst [vmem:[#allocation69_spill] sm:$0xff] %v12379_v61  ;;  %v9940_v22 = vpop.eup %9939  ;;  %v12384_v17 = vmul.f32 %v9938_v30, %v16900_v29  ;;  %9959 = vpow2.f32 %v3398_v5  ;;  %v3422_v43 = vmul.f32 1.442695, %v2989_v47  ;;  %v12386_v28 = vpop.f32.mrb[46].mxu1  ;;  %v2678_v61 = vsub.f32 0.0, %v12365_v3 }
 0x243   : > { %16902 = vst [vmem:[#allocation70_spill] sm:$0xff] %v12386_v28  ;;  %v12388_v13 = vpop.f32.mrb[78].mxu0  ;;  %v9942_v35 = vpop.eup %9941  ;;  %v12391_v38 = vmul.f32 %v9940_v22, %v16904_v46  ;;  %9961 = vpow2.f32 %v3402_v45  ;;  %v16908_v30 = vld [vmem:[#allocation43_spill] sm:$0xff]  ;;  %v16910_v47 = vld [vmem:[#allocation30_spill] sm:$0xff]  ;;  %v3436_v46 = vmul.f32 1.442695, %v2996_v44 }
 0x244   : > { %16901 = vst [vmem:[#allocation37_spill] sm:$0xff] %v12384_v17  ;;  %16903 = vst [vmem:[#allocation71_spill] sm:$0xff] %v12388_v13  ;;  %v12394_v12 = vpop.f32.mrb[47].mxu1  ;;  %v12396_v6 = vpop.f32.mrb[79].mxu0  ;;  %v12399_v5 = vmul.f32 %v9942_v35, %v16908_v30  ;;  %9963 = vpow2.f32 %v3416_v39  ;;  %v4809_v52 = vpack.c.bf16 %v12170_v14, %v16910_v47  ;;  %v16911_v7 = vld [vmem:[#allocation35_spill] sm:$0xff]  ;;  %v2998_v17 = vmin.f32 %v2678_v61, 80.0 }
 0x245   : > { %16905 = vst [vmem:[#allocation40_spill] sm:$0xff] %v12391_v38  ;;  %16906 = vst [vmem:[#allocation72_spill] sm:$0xff] %v12394_v12  ;;  %v9944_v29 = vpop.eup %9943  ;;  %v12405_v22 = vadd.f32 %v16911_v7, %v11813_v49  ;;  %9965 = vpow2.f32 %v3420_v11  ;;  %v16912_v12 = vld [vmem:[#allocation7_spill] sm:$0xff]  ;;  %v16913_v14 = vld [vmem:[#allocation36_spill] sm:$0xff] }
 0x246   : > { %16907 = vst [vmem:[#allocation73_spill] sm:$0xff] %v12396_v6  ;;  %16909 = vst [vmem:[#allocation43_spill] sm:$0xff] %v12399_v5  ;;  %v9946_v45 = vpop.eup %9945  ;;  %v3927_v33 = vadd.f32 1.0, %v9944_v29  ;;  %2456 = vmatmul.mubr.bf16.gmra.mrb[152].mxu1 %v16912_v12  ;;  %9967 = vpow2.f32 %v3418_v15  ;;  %4960 = vmatprep.subr.bf16.mxu0 %v4809_v52  ;;  %v12414_v35 = vadd.f32 %v16913_v14, %v11816_v62  ;;  %v3440_v12 = vmul.f32 1.442695, %v2998_v17  ;;  %v16916_v52 = vld [vmem:[#allocation38_spill] sm:$0xff] }
 0x247   : > { %v9948_v6 = vpop.eup %9947  ;;  %v12409_v13 = vmul.f32 %v9946_v45, %v12148_v56  ;;  %v2677_v39 = vsub.f32 0.0, %v12405_v22  ;;  %2465 = vmatprep.mubr.bf16.mxu1 %v16829_v51  ;;  %v16915_v56 = vpack.c.bf16 %v12129_v25, %v12044_v34  ;;  %v12425_v15 = vadd.f32 %v16916_v52, %v11807_v63  ;;  %v16920_v47 = vld [vmem:[#allocation39_spill] sm:$0xff] }
 0x248   : > { %v9950_v7 = vpop.eup %9949  ;;  %v12418_v11 = vmul.f32 %v9948_v6, %v12152_v36  ;;  %9969 = vrcp.f32 %v3927_v33  ;;  %v2679_v30 = vsub.f32 0.0, %v12414_v35  ;;  %v12431_v36 = vpop.f32.mrb[48].mxu1  ;;  %v12441_v45 = vadd.f32 %v16920_v47, %v11810_v27 }
 0x249   : > { %4961 = vmatpush1.bf16.msra.mxu0 %v16915_v56  ;;  %v9952_v44 = vpop.eup %9951  ;;  %v12428_v61 = vmul.f32 %v9950_v7, %v12163_v31  ;;  %9971 = vpow2.f32 %v3422_v43  ;;  %v2997_v29 = vmin.f32 %v2677_v39, 80.0  ;;  %16917 = vst [vmem:[#allocation35_spill] sm:$0xff] %v12431_v36  ;;  %v12433_v6 = vpop.f32.mrb[80].mxu0  ;;  %v2686_v25 = vsub.f32 0.0, %v12425_v15 }
 0x24a   : > { %16914 = vst [vmem:[#allocation30_spill] sm:$0xff] %v12418_v11  ;;  %16918 = vst [vmem:[#allocation7_spill] sm:$0xff] %v12433_v6  ;;  %v9954_v17 = vpop.eup %9953  ;;  %v12436_v34 = vmul.f32 %v9952_v44, %v12193_v19  ;;  %9973 = vpow2.f32 %v3436_v46  ;;  %v12443_v31 = vpop.f32.mrb[49].mxu1  ;;  %v2999_v47 = vmin.f32 %v2679_v30, 80.0 }
 0x24b   : > { %16921 = vst [vmem:[#allocation38_spill] sm:$0xff] %v12443_v31  ;;  %v12445_v43 = vpop.f32.mrb[81].mxu0  ;;  %v9956_v33 = vpop.eup %9955  ;;  %v3929_v14 = vadd.f32 1.0, %v9954_v17  ;;  %9975 = vpow2.f32 %v3440_v12  ;;  %v3438_v7 = vmul.f32 1.442695, %v2997_v29  ;;  %v3006_v11 = vmin.f32 %v2686_v25, 80.0 }
 0x24c   : > { %16919 = vst [vmem:[#allocation36_spill] sm:$0xff] %v12436_v34  ;;  %16922 = vst [vmem:[#allocation39_spill] sm:$0xff] %v12445_v43  ;;  %v12449_v19 = vpop.f32.mrb[50].mxu1  ;;  %v12451_v46 = vpop.f32.mrb[82].mxu0  ;;  %v3936_v44 = vadd.f32 1.0, %v9956_v33  ;;  %v2688_v12 = vsub.f32 0.0, %v12441_v45 }
 0x24d   : > { %16923 = vst [vmem:[#allocation74_spill] sm:$0xff] %v12449_v19  ;;  %16924 = vst [vmem:[#allocation75_spill] sm:$0xff] %v12451_v46  ;;  %v9958_v56 = vpop.eup %9957  ;;  %v12455_v31 = vpop.f32.mrb[51].mxu1  ;;  %9977 = vrcp.f32 %v3929_v14  ;;  %v16927_v29 = vld [vmem:[#allocation41_spill] sm:$0xff]  ;;  %v12464_v52 = vmul.f32 1.442695, %v2999_v47 }
 0x24e   : > { %16925 = vst [vmem:[#allocation76_spill] sm:$0xff] %v12455_v31  ;;  %v12457_v43 = vpop.f32.mrb[83].mxu0  ;;  %v9960_v6 = vpop.eup %9959  ;;  %v3938_v17 = vadd.f32 1.0, %v9958_v56  ;;  %v12462_v39 = vadd.f32 %v16927_v29, %v11813_v49  ;;  %9979 = vrcp.f32 %v3936_v44  ;;  %v12466_v30 = vmul.f32 1.442695, %v3006_v11  ;;  %v16928_v25 = vld [vmem:[#allocation6_spill] sm:$0xff] }
 0x24f   : > { %16926 = vst [vmem:[#allocation77_spill] sm:$0xff] %v12457_v43  ;;  %v9962_v46 = vpop.eup %9961  ;;  %v3937_v19 = vadd.f32 1.0, %v9960_v6  ;;  %2466 = vmatmul.mubr.bf16.gmra.mrb[156].mxu1 %v16928_v25  ;;  %v3008_v14 = vmin.f32 %v2688_v12, 80.0  ;;  %v16929_v44 = vld [vmem:[#allocation42_spill] sm:$0xff]  ;;  %v12477_v11 = vadd.f32 %v12138_v32, %v11807_v63  ;;  %v12481_v25 = vpop.f32.mrb[52].mxu1 }
 0x250   : > { %v9964_v33 = vpop.eup %9963  ;;  %9981 = vrcp.f32 %v3938_v17  ;;  %v3939_v5 = vadd.f32 1.0, %v9962_v46  ;;  %v2687_v56 = vsub.f32 0.0, %v12462_v39  ;;  %2475 = vmatprep.mubr.bf16.mxu1 %v16829_v51  ;;  %v12473_v6 = vadd.f32 %v16929_v44, %v11816_v62  ;;  %16930 = vst [vmem:[#allocation41_spill] sm:$0xff] %v12481_v25  ;;  %v12483_v43 = vpop.f32.mrb[84].mxu0 }
 0x251   : > { %v9966_v34 = vpop.eup %9965  ;;  %9983 = vrcp.f32 %v3937_v19  ;;  %v3946_v29 = vadd.f32 1.0, %v9964_v33  ;;  %v12479_v46 = vmul.f32 1.442695, %v3008_v14  ;;  %16931 = vst [vmem:[#allocation6_spill] sm:$0xff] %v12483_v43  ;;  %v2696_v31 = vsub.f32 0.0, %v12477_v11  ;;  %v12487_v36 = vpop.f32.mrb[53].mxu1 }
 0x252   : > { %v9968_v47 = vpop.eup %9967  ;;  %9985 = vrcp.f32 %v3939_v5  ;;  %v3948_v17 = vadd.f32 1.0, %v9966_v34  ;;  %v3007_v12 = vmin.f32 %v2687_v56, 80.0  ;;  %v2689_v44 = vsub.f32 0.0, %v12473_v6  ;;  %16932 = vst [vmem:[#allocation42_spill] sm:$0xff] %v12487_v36  ;;  %v12489_v32 = vpop.f32.mrb[85].mxu0 }
 0x253   : > { %v9970_v19 = vpop.eup %9969  ;;  %9987 = vrcp.f32 %v3946_v29  ;;  %v3947_v33 = vadd.f32 1.0, %v9968_v47  ;;  %16933 = vst [vmem:[#allocation78_spill] sm:$0xff] %v12489_v32  ;;  %v12496_v56 = vadd.f32 %v12140_v1, %v11810_v27  ;;  %v12498_v29 = vpop.f32.mrb[54].mxu1  ;;  %v3016_v28 = vmin.f32 %v2696_v31, 80.0 }
 0x254   : > { %v9972_v5 = vpop.eup %9971  ;;  %v12492_v34 = vmul.f32 %v9970_v19, %v12217_v26  ;;  %9989 = vrcp.f32 %v3948_v17  ;;  %v3458_v14 = vmul.f32 1.442695, %v3007_v12  ;;  %16934 = vst [vmem:[#allocation79_spill] sm:$0xff] %v12498_v29  ;;  %v12500_v47 = vpop.f32.mrb[86].mxu0  ;;  %v3009_v36 = vmin.f32 %v2689_v44, 80.0 }
 0x255   : > { %16935 = vst [vmem:[#allocation80_spill] sm:$0xff] %v12500_v47  ;;  %v9974_v43 = vpop.eup %9973  ;;  %9991 = vrcp.f32 %v3947_v33  ;;  %v3949_v25 = vadd.f32 1.0, %v9972_v5  ;;  %v12502_v32 = vpop.f32.mrb[55].mxu1  ;;  %v2698_v12 = vsub.f32 0.0, %v12496_v56  ;;  %v4819_v1 = vpack.c.bf16 %v12242_v59, %v12196_v48  ;;  %v16936_v33 = vld [vmem:[#allocation9_spill] sm:$0xff] }
 0x256   : > { %v12504_v38 = vpop.f32.mrb[87].mxu0  ;;  %v9976_v26 = vpop.eup %9975  ;;  %v3956_v17 = vadd.f32 1.0, %v9974_v43  ;;  %9993 = vpow2.f32 %v3438_v7  ;;  %v3462_v47 = vmul.f32 1.442695, %v3009_v36  ;;  %v3476_v29 = vmul.f32 1.442695, %v3016_v28 }
 0x257   : > { %9995 = vrcp.f32 %v3949_v25  ;;  %v3958_v19 = vadd.f32 1.0, %v9976_v26  ;;  %2476 = vmatmul.mubr.bf16.gmra.mrb[160].mxu1 %v16936_v33  ;;  %v9978_v44 = vpop.eup %9977  ;;  %v3018_v31 = vmin.f32 %v2698_v12, 80.0  ;;  %4962 = vmatprep.subr.bf16.mxu0 %v4819_v1  ;;  %v12512_v5 = vadd.f32 %v12142_v23, %v11813_v49  ;;  %v16937_v43 = vld [vmem:[#allocation44_spill] sm:$0xff]  ;;  %v16940_v23 = vld [vmem:[#allocation45_spill] sm:$0xff]  ;;  %v12538_v1 = vpop.f32.mrb[56].mxu1 }
 0x258   : > { %9997 = vrcp.f32 %v3956_v17  ;;  %v12516_v7 = vadd.f32 %v16937_v43, %v11816_v62  ;;  %2485 = vmatprep.mubr.bf16.mxu1 %v16829_v51  ;;  %v9980_v48 = vpop.eup %9979  ;;  %v12520_v59 = vmul.f32 %v9978_v44, %v12221_v20  ;;  %v16939_v28 = vpack.c.bf16 %v12213_v18, %v12183_v58  ;;  %v12540_v58 = vpop.f32.mrb[88].mxu0 }
 0x259   : > { %9999 = vrcp.f32 %v3958_v19  ;;  %v12527_v36 = vadd.f32 %v12154_v9, %v11807_v63  ;;  %v12531_v25 = vadd.f32 %v16940_v23, %v11810_v27  ;;  %v12534_v17 = vmul.f32 %v9980_v48, %v12229_v10  ;;  %v12548_v33 = vpop.f32.mrb[57].mxu1 }
 0x25a   : > { %16938 = vst [vmem:[#allocation9_spill] sm:$0xff] %v12520_v59  ;;  %4963 = vmatpush1.bf16.msra.mxu0 %v16939_v28  ;;  %v9982_v26 = vpop.eup %9981  ;;  %10001 = vpow2.f32 %v12464_v52  ;;  %v3480_v20 = vmul.f32 1.442695, %v3018_v31  ;;  %v2697_v12 = vsub.f32 0.0, %v12512_v5  ;;  %v2699_v19 = vsub.f32 0.0, %v12516_v7  ;;  %16942 = vst [vmem:[#allocation45_spill] sm:$0xff] %v12548_v33 }
 0x25b   : > { %v9984_v18 = vpop.eup %9983  ;;  %v12543_v9 = vmul.f32 %v9982_v26, %v12260_v54  ;;  %10003 = vpow2.f32 %v12466_v30  ;;  %v2706_v10 = vsub.f32 0.0, %v12527_v36  ;;  %v12550_v52 = vpop.f32.mrb[89].mxu0  ;;  %v2708_v54 = vsub.f32 0.0, %v12531_v25 }
 0x25c   : > { %16943 = vst [vmem:[#allocation81_spill] sm:$0xff] %v12550_v52  ;;  %v9986_v44 = vpop.eup %9985  ;;  %v12553_v31 = vmul.f32 %v9984_v18, %v12283_v40  ;;  %10005 = vpow2.f32 %v12479_v46  ;;  %v3017_v43 = vmin.f32 %v2697_v12, 80.0  ;;  %v12557_v48 = vpop.f32.mrb[58].mxu1  ;;  %v3019_v26 = vmin.f32 %v2699_v19, 80.0  ;;  %v16949_v19 = vld [vmem:[#allocation8_spill] sm:$0xff] }
 0x25d   : > { %16941 = vst [vmem:[#allocation44_spill] sm:$0xff] %v12543_v9  ;;  %16944 = vst [vmem:[#allocation82_spill] sm:$0xff] %v12557_v48  ;;  %v12559_v30 = vpop.f32.mrb[90].mxu0  ;;  %v9988_v28 = vpop.eup %9987  ;;  %v12562_v23 = vmul.f32 %v9986_v44, %v12291_v16  ;;  %10007 = vpow2.f32 %v3458_v14  ;;  %v3026_v59 = vmin.f32 %v2706_v10, 80.0  ;;  %v3028_v48 = vmin.f32 %v2708_v54, 80.0 }
 0x25e   : > { %16945 = vst [vmem:[#allocation83_spill] sm:$0xff] %v12559_v30  ;;  %v12564_v52 = vpop.f32.mrb[59].mxu1  ;;  %v12566_v40 = vpop.f32.mrb[91].mxu0  ;;  %v12569_v46 = vmul.f32 %v9988_v28, %v12299_v53  ;;  %10009 = vpow2.f32 %v3462_v47  ;;  %v3478_v12 = vmul.f32 1.442695, %v3017_v43 }
 0x25f   : > { %16946 = vst [vmem:[#allocation84_spill] sm:$0xff] %v12562_v23  ;;  %16947 = vst [vmem:[#allocation85_spill] sm:$0xff] %v12566_v40  ;;  %v9990_v18 = vpop.eup %9989  ;;  %10011 = vpow2.f32 %v3476_v29  ;;  %v3482_v16 = vmul.f32 1.442695, %v3019_v26  ;;  %v3496_v14 = vmul.f32 1.442695, %v3026_v59  ;;  %2486 = vmatmul.mubr.bf16.gmra.mrb[164].mxu1 %v16949_v19  ;;  %v12585_v59 = vadd.f32 %v12165_v50, %v11813_v49 }
 0x260   : > { %v9992_v33 = vpop.eup %9991  ;;  %v12572_v30 = vmul.f32 %v9990_v18, %v12312_v60  ;;  %10013 = vpow2.f32 %v3480_v20  ;;  %v3500_v53 = vmul.f32 1.442695, %v3028_v48  ;;  %2495 = vmatprep.mubr.bf16.mxu1 %v16829_v51  ;;  %v12598_v48 = vpop.f32.mrb[60].mxu1  ;;  %v12608_v18 = vadd.f32 %v12201_v42, %v11810_v27 }
 0x261   : > { %v9994_v10 = vpop.eup %9993  ;;  %v12578_v23 = vmul.f32 %v9992_v33, %v12330_v4  ;;  %10015 = vpow2.f32 %v3478_v12  ;;  %v16951_v4 = vld [vmem:[#allocation47_spill] sm:$0xff]  ;;  %v12596_v33 = vadd.f32 %v12199_v8, %v11807_v63  ;;  %v12600_v28 = vpop.f32.mrb[92].mxu0 }
 0x262   : > { %16948 = vst [vmem:[#allocation86_spill] sm:$0xff] %v12572_v30  ;;  %v9996_v47 = vpop.eup %9995  ;;  %v3957_v29 = vadd.f32 1.0, %v9994_v10  ;;  %10017 = vpow2.f32 %v3482_v16  ;;  %v12592_v20 = vadd.f32 %v16951_v4, %v11816_v62  ;;  %16952 = vst [vmem:[#allocation47_spill] sm:$0xff] %v12598_v48  ;;  %v12610_v12 = vpop.f32.mrb[61].mxu1  ;;  %v2718_v42 = vsub.f32 0.0, %v12608_v18  ;;  %v16966_v48 = vld [vmem:[#allocation10_spill] sm:$0xff] }
 0x263   : > { %v9998_v43 = vpop.eup %9997  ;;  %v12588_v54 = vmul.f32 %v9996_v47, %v12338_v37  ;;  %16953 = vst [vmem:[#allocation87_spill] sm:$0xff] %v12600_v28  ;;  %v2707_v37 = vsub.f32 0.0, %v12585_v59  ;;  %16954 = vst [vmem:[#allocation88_spill] sm:$0xff] %v12610_v12  ;;  %v2716_v10 = vsub.f32 0.0, %v12596_v33  ;;  %v12622_v12 = vpop.f32.mrb[62].mxu1 }
 0x264   : > { %v10000_v26 = vpop.eup %9999  ;;  %v12603_v50 = vmul.f32 %v9998_v43, %v12346_v24  ;;  %10019 = vrcp.f32 %v3957_v29  ;;  %v2709_v19 = vsub.f32 0.0, %v12592_v20  ;;  %v12617_v24 = vpop.f32.mrb[93].mxu0  ;;  %16957 = vst [vmem:[#allocation91_spill] sm:$0xff] %v12622_v12 }
 0x265   : > { %16950 = vst [vmem:[#allocation8_spill] sm:$0xff] %v12588_v54  ;;  %v10002_v16 = vpop.eup %10001  ;;  %v12613_v8 = vmul.f32 %v10000_v26, %v12365_v3  ;;  %10021 = vpow2.f32 %v3496_v14  ;;  %16956 = vst [vmem:[#allocation90_spill] sm:$0xff] %v12617_v24  ;;  %v3027_v43 = vmin.f32 %v2707_v37, 80.0  ;;  %v3036_v9 = vmin.f32 %v2716_v10, 80.0  ;;  %v12624_v24 = vpop.f32.mrb[94].mxu0 }
 0x266   : > { %v10004_v47 = vpop.eup %10003  ;;  %v3959_v29 = vadd.f32 1.0, %v10002_v16  ;;  %10023 = vpow2.f32 %v3500_v53  ;;  %v3029_v44 = vmin.f32 %v2709_v19, 80.0  ;;  %v4829_v3 = vpack.c.bf16 %v12374_v0, %v12341_v55  ;;  %16958 = vst [vmem:[#allocation92_spill] sm:$0xff] %v12624_v24  ;;  %v16959_v53 = vld [vmem:[#allocation11_spill] sm:$0xff] }
 0x267   : > { %16955 = vst [vmem:[#allocation89_spill] sm:$0xff] %v12613_v8  ;;  %v10006_v4 = vpop.eup %10005  ;;  %v3966_v60 = vadd.f32 1.0, %v10004_v47  ;;  %v3498_v30 = vmul.f32 1.442695, %v3027_v43  ;;  %v3038_v54 = vmin.f32 %v2718_v42, 80.0  ;;  %2496 = vmatmul.mubr.bf16.gmra.mrb[168].mxu1 %v16959_v53  ;;  %v16961_v43 = vld [vmem:[#allocation51_spill] sm:$0xff] }
 0x268   : > { %v10008_v14 = vpop.eup %10007  ;;  %10025 = vrcp.f32 %v3959_v29  ;;  %v3968_v26 = vadd.f32 1.0, %v10006_v4  ;;  %v12627_v47 = vmul.f32 1.442695, %v3029_v44  ;;  %v12629_v19 = vmul.f32 1.442695, %v3036_v9  ;;  %4964 = vmatprep.subr.bf16.mxu0 %v4829_v3  ;;  %2505 = vmatprep.mubr.bf16.mxu1 %v16829_v51  ;;  %v16962_v4 = vld [vmem:[#allocation21_spill] sm:$0xff] }
 0x269   : > { %v10010_v37 = vpop.eup %10009  ;;  %10027 = vrcp.f32 %v3966_v60  ;;  %v3967_v16 = vadd.f32 1.0, %v10008_v14  ;;  %v12632_v10 = vmul.f32 1.442695, %v3038_v54  ;;  %v12636_v29 = vadd.f32 %v12208_v21, %v11813_v49  ;;  %v12649_v54 = vpop.f32.mrb[63].mxu1 }
 0x26a   : > { %v10012_v55 = vpop.eup %10011  ;;  %10029 = vrcp.f32 %v3968_v26  ;;  %v3969_v0 = vadd.f32 1.0, %v10010_v37  ;;  %v16960_v60 = vpack.c.bf16 %v12355_v2, %v12253_v41  ;;  %v12643_v42 = vadd.f32 %v16961_v43, %v11816_v62  ;;  %16963 = vst [vmem:[#allocation11_spill] sm:$0xff] %v12649_v54  ;;  %v12651_v14 = vpop.f32.mrb[95].mxu0  ;;  %v16965_v2 = vld [vmem:[#allocation52_spill] sm:$0xff] }
 0x26b   : > { %v10014_v44 = vpop.eup %10013  ;;  %10031 = vrcp.f32 %v3967_v16  ;;  %v3976_v9 = vadd.f32 1.0, %v10012_v55  ;;  %v12647_v3 = vadd.f32 %v16962_v4, %v11807_v63  ;;  %16964 = vst [vmem:[#allocation51_spill] sm:$0xff] %v12651_v14  ;;  %v2717_v41 = vsub.f32 0.0, %v12636_v29 }
 0x26c   : > { %4965 = vmatpush1.bf16.msra.mxu0 %v16960_v60  ;;  %v10016_v21 = vpop.eup %10015  ;;  %10033 = vrcp.f32 %v3969_v0  ;;  %v3978_v26 = vadd.f32 1.0, %v10014_v44  ;;  %v12656_v53 = vadd.f32 %v16965_v2, %v11810_v27  ;;  %v2719_v55 = vsub.f32 0.0, %v12643_v42 }
 0x26d   : > { %v10018_v37 = vpop.eup %10017  ;;  %10035 = vrcp.f32 %v3976_v9  ;;  %v3977_v16 = vadd.f32 1.0, %v10016_v21  ;;  %v2726_v60 = vsub.f32 0.0, %v12647_v3  ;;  %v3037_v14 = vmin.f32 %v2717_v41, 80.0 }
 0x26e   : > { %v10020_v43 = vpop.eup %10019  ;;  %10037 = vrcp.f32 %v3978_v26  ;;  %v3979_v4 = vadd.f32 1.0, %v10018_v37  ;;  %v2728_v0 = vsub.f32 0.0, %v12656_v53  ;;  %v3039_v2 = vmin.f32 %v2719_v55, 80.0  ;;  %v12665_v37 = vpop.f32.mrb[64].mxu1  ;;  %v16967_v55 = vld [vmem:[#allocation53_spill] sm:$0xff] }
 0x26f   : > { %v10022_v44 = vpop.eup %10021  ;;  %v12662_v54 = vmul.f32 %v10020_v43, %v12405_v22  ;;  %10039 = vrcp.f32 %v3977_v16  ;;  %v3046_v24 = vmin.f32 %v2726_v60, 80.0  ;;  %v3518_v21 = vmul.f32 1.442695, %v3037_v14  ;;  %2506 = vmatmul.mubr.bf16.gmra.mrb[172].mxu1 %v16966_v48  ;;  %v16968_v14 = vld [vmem:[#allocation54_spill] sm:$0xff]  ;;  %v12676_v48 = vpop.f32.mrb[96].mxu0 }
 0x270   : > { %v10024_v12 = vpop.eup %10023  ;;  %10041 = vrcp.f32 %v3979_v4  ;;  %v3986_v9 = vadd.f32 1.0, %v10022_v44  ;;  %v3048_v28 = vmin.f32 %v2728_v0, 80.0  ;;  %v3522_v26 = vmul.f32 1.442695, %v3039_v2  ;;  %2515 = vmatprep.mubr.bf16.mxu1 %v16829_v51  ;;  %16969 = vst [vmem:[#allocation21_spill] sm:$0xff] %v12676_v48  ;;  %v16972_v4 = vld [vmem:[#allocation3_spill] sm:$0xff] }
 0x271   : > { %v3988_v40 = vadd.f32 1.0, %v10024_v12  ;;  %10043 = vpow2.f32 %v3498_v30  ;;  %v3536_v41 = vmul.f32 1.442695, %v3046_v24  ;;  %v12670_v60 = vadd.f32 %v16967_v55, %v11813_v49  ;;  %v12678_v30 = vpop.f32.mrb[65].mxu1  ;;  %v12691_v44 = vpop.f32.mrb[97].mxu0 }
 0x272   : > { %v10026_v22 = vpop.eup %10025  ;;  %10045 = vrcp.f32 %v3986_v9  ;;  %v3540_v16 = vmul.f32 1.442695, %v3048_v28  ;;  %v12674_v43 = vadd.f32 %v16968_v14, %v11816_v62  ;;  %16970 = vst [vmem:[#allocation52_spill] sm:$0xff] %v12678_v30  ;;  %v12685_v28 = vadd.f32 %v12262_v57, %v11807_v63  ;;  %16973 = vst [vmem:[#allocation53_spill] sm:$0xff] %v12691_v44  ;;  %v12716_v44 = vpop.f32.mrb[66].mxu1 }
 0x273   : > { %v10028_v12 = vpop.eup %10027  ;;  %v12681_v24 = vmul.f32 %v10026_v22, %v12414_v35  ;;  %10047 = vrcp.f32 %v3988_v40  ;;  %v12689_v0 = vadd.f32 %v16972_v4, %v11810_v27  ;;  %v2727_v35 = vsub.f32 0.0, %v12670_v60  ;;  %16976 = vst [vmem:[#allocation93_spill] sm:$0xff] %v12716_v44  ;;  %v17002_v44 = vld [vmem:[#allocation15_spill] sm:$0xff] }
 0x274   : > { %v10030_v2 = vpop.eup %10029  ;;  %v12694_v9 = vmul.f32 %v10028_v12, %v12425_v15  ;;  %10049 = vpow2.f32 %v12627_v47  ;;  %v2729_v40 = vsub.f32 0.0, %v12674_v43  ;;  %v2736_v55 = vsub.f32 0.0, %v12685_v28 }
 0x275   : > { %16971 = vst [vmem:[#allocation10_spill] sm:$0xff] %v12681_v24  ;;  %v10032_v22 = vpop.eup %10031  ;;  %v12700_v57 = vmul.f32 %v10030_v2, %v12441_v45  ;;  %10051 = vpow2.f32 %v12629_v19  ;;  %v2738_v14 = vsub.f32 0.0, %v12689_v0  ;;  %v3047_v12 = vmin.f32 %v2727_v35, 80.0 }
 0x276   : > { %v10034_v4 = vpop.eup %10033  ;;  %v12708_v47 = vmul.f32 %v10032_v22, %v12462_v39  ;;  %10053 = vpow2.f32 %v12632_v10  ;;  %v3049_v2 = vmin.f32 %v2729_v40, 80.0  ;;  %v3056_v22 = vmin.f32 %v2736_v55, 80.0  ;;  %v16977_v10 = vld [vmem:[#allocation13_spill] sm:$0xff] }
 0x277   : > { %16974 = vst [vmem:[#allocation54_spill] sm:$0xff] %v12700_v57  ;;  %v10036_v24 = vpop.eup %10035  ;;  %v12714_v19 = vmul.f32 %v10034_v4, %v12473_v6  ;;  %10055 = vpow2.f32 %v3518_v21  ;;  %v3538_v39 = vmul.f32 1.442695, %v3047_v12  ;;  %2516 = vmatmul.mubr.bf16.gmra.mrb[176].mxu1 %v16977_v10  ;;  %v3058_v4 = vmin.f32 %v2738_v14, 80.0  ;;  %v12738_v14 = vpop.f32.mrb[98].mxu0  ;;  %v16984_v10 = vld [vmem:[#allocation40_spill] sm:$0xff] }
 0x278   : > { %v10038_v30 = vpop.eup %10037  ;;  %v12719_v15 = vmul.f32 %v10036_v24, %v12477_v11  ;;  %10057 = vpow2.f32 %v3522_v26  ;;  %v3542_v6 = vmul.f32 1.442695, %v3049_v2  ;;  %2525 = vmatprep.mubr.bf16.mxu1 %v16829_v51  ;;  %v3556_v11 = vmul.f32 1.442695, %v3056_v22 }
 0x279   : > { %16975 = vst [vmem:[#allocation3_spill] sm:$0xff] %v12714_v19  ;;  %v10040_v35 = vpop.eup %10039  ;;  %v12723_v48 = vmul.f32 %v10038_v30, %v12496_v56  ;;  %10059 = vpow2.f32 %v3536_v41  ;;  %v4839_v26 = vpack.c.bf16 %v12492_v34, %v12409_v13  ;;  %v3560_v56 = vmul.f32 1.442695, %v3058_v4  ;;  %v16980_v41 = vld [vmem:[#allocation55_spill] sm:$0xff]  ;;  %v16983_v13 = vld [vmem:[#allocation57_spill] sm:$0xff] }
 0x27a   : > { %v10042_v21 = vpop.eup %10041  ;;  %v12727_v40 = vmul.f32 %v10040_v35, %v12512_v5  ;;  %10061 = vpow2.f32 %v3540_v16  ;;  %v12736_v30 = vadd.f32 %v16980_v41, %v11813_v49  ;;  %16981 = vst [vmem:[#allocation55_spill] sm:$0xff] %v12738_v14  ;;  %v16982_v16 = vld [vmem:[#allocation56_spill] sm:$0xff]  ;;  %v12746_v34 = vadd.f32 %v16983_v13, %v11807_v63  ;;  %v12766_v41 = vpop.f32.mrb[99].mxu0 }
 0x27b   : > { %16978 = vst [vmem:[#allocation13_spill] sm:$0xff] %v12723_v48  ;;  %v10044_v24 = vpop.eup %10043  ;;  %v12732_v55 = vmul.f32 %v10042_v21, %v12516_v7  ;;  %10063 = vpow2.f32 %v3538_v39  ;;  %4966 = vmatprep.subr.bf16.mxu0 %v4839_v26  ;;  %v12742_v2 = vadd.f32 %v16982_v16, %v11816_v62  ;;  %v16985_v35 = vpack.c.bf16 %v12428_v61, %v16984_v10  ;;  %v12759_v21 = vpop.f32.mrb[67].mxu1 }
 0x27c   : > { %v10046_v12 = vpop.eup %10045  ;;  %v3987_v5 = vadd.f32 1.0, %v10044_v24  ;;  %10065 = vpow2.f32 %v3542_v6  ;;  %v2737_v22 = vsub.f32 0.0, %v12736_v30  ;;  %v16986_v6 = vld [vmem:[#allocation58_spill] sm:$0xff]  ;;  %16987 = vst [vmem:[#allocation56_spill] sm:$0xff] %v12759_v21  ;;  %16989 = vst [vmem:[#allocation40_spill] sm:$0xff] %v12766_v41  ;;  %v17000_v41 = vld [vmem:[#allocation61_spill] sm:$0xff] }
 0x27d   : > { %16979 = vst [vmem:[#allocation94_spill] sm:$0xff] %v12732_v55  ;;  %v10048_v7 = vpop.eup %10047  ;;  %v12749_v39 = vmul.f32 %v10046_v12, %v12527_v36  ;;  %10067 = vpow2.f32 %v3556_v11  ;;  %4967 = vmatpush1.bf16.msra.mxu0 %v16985_v35  ;;  %v12757_v4 = vadd.f32 %v16986_v6, %v11810_v27  ;;  %v2739_v36 = vsub.f32 0.0, %v12742_v2  ;;  %v16990_v6 = vld [vmem:[#allocation12_spill] sm:$0xff] }
 0x27e   : > { %v10050_v26 = vpop.eup %10049  ;;  %v12762_v24 = vmul.f32 %v10048_v7, %v12531_v25  ;;  %10069 = vrcp.f32 %v3987_v5  ;;  %v2746_v11 = vsub.f32 0.0, %v12746_v34  ;;  %v3057_v13 = vmin.f32 %v2737_v22, 80.0  ;;  %v16992_v35 = vld [vmem:[#allocation60_spill] sm:$0xff] }
 0x27f   : > { %v10052_v12 = vpop.eup %10051  ;;  %v3989_v16 = vadd.f32 1.0, %v10050_v26  ;;  %10071 = vpow2.f32 %v3560_v56  ;;  %v3059_v7 = vmin.f32 %v2739_v36, 80.0  ;;  %2526 = vmatmul.mubr.bf16.gmra.mrb[180].mxu1 %v16990_v6  ;;  %v2748_v57 = vsub.f32 0.0, %v12757_v4  ;;  %v16991_v6 = vld [vmem:[#allocation59_spill] sm:$0xff] }
 0x280   : > { %16988 = vst [vmem:[#allocation57_spill] sm:$0xff] %v12762_v24  ;;  %v10054_v10 = vpop.eup %10053  ;;  %v3996_v25 = vadd.f32 1.0, %v10052_v12  ;;  %v3066_v5 = vmin.f32 %v2746_v11, 80.0  ;;  %v3558_v8 = vmul.f32 1.442695, %v3057_v13  ;;  %2535 = vmatprep.mubr.bf16.mxu1 %v16829_v51  ;;  %v12785_v48 = vadd.f32 %v16992_v35, %v11816_v62 }
 0x281   : > { %v10056_v45 = vpop.eup %10055  ;;  %10073 = vrcp.f32 %v3989_v16  ;;  %v3998_v55 = vadd.f32 1.0, %v10054_v10  ;;  %v12775_v22 = vmul.f32 1.442695, %v3059_v7  ;;  %v3068_v11 = vmin.f32 %v2748_v57, 80.0  ;;  %v12791_v7 = vpop.f32.mrb[68].mxu1 }
 0x282   : > { %v10058_v26 = vpop.eup %10057  ;;  %10075 = vrcp.f32 %v3996_v25  ;;  %v3997_v56 = vadd.f32 1.0, %v10056_v45  ;;  %v12777_v61 = vmul.f32 1.442695, %v3066_v5  ;;  %v12781_v16 = vadd.f32 %v16991_v6, %v11813_v49  ;;  %v16993_v45 = vld [vmem:[#allocation26_spill] sm:$0xff]  ;;  %16994 = vst [vmem:[#allocation58_spill] sm:$0xff] %v12791_v7 }
 0x283   : > { %v10060_v12 = vpop.eup %10059  ;;  %10077 = vrcp.f32 %v3998_v55  ;;  %v3999_v36 = vadd.f32 1.0, %v10058_v26  ;;  %v12789_v25 = vadd.f32 %v16993_v45, %v11807_v63  ;;  %v12793_v55 = vpop.f32.mrb[100].mxu0  ;;  %v3580_v26 = vmul.f32 1.442695, %v3068_v11 }
 0x284   : > { %v10062_v13 = vpop.eup %10061  ;;  %10079 = vrcp.f32 %v3997_v56  ;;  %v4006_v10 = vadd.f32 1.0, %v10060_v12  ;;  %16995 = vst [vmem:[#allocation12_spill] sm:$0xff] %v12793_v55  ;;  %v2747_v6 = vsub.f32 0.0, %v12781_v16  ;;  %v12796_v56 = vpop.f32.mrb[69].mxu1  ;;  %v2749_v45 = vsub.f32 0.0, %v12785_v48 }
 0x285   : > { %v10064_v57 = vpop.eup %10063  ;;  %10081 = vrcp.f32 %v3999_v36  ;;  %v4008_v5 = vadd.f32 1.0, %v10062_v13  ;;  %16996 = vst [vmem:[#allocation59_spill] sm:$0xff] %v12796_v56  ;;  %v12798_v12 = vpop.f32.mrb[101].mxu0  ;;  %v2756_v19 = vsub.f32 0.0, %v12789_v25  ;;  %v12808_v56 = vadd.f32 %v17000_v41, %v11810_v27 }
 0x286   : > { %16997 = vst [vmem:[#allocation60_spill] sm:$0xff] %v12798_v12  ;;  %v10066_v35 = vpop.eup %10065  ;;  %10083 = vrcp.f32 %v4006_v10  ;;  %v4007_v24 = vadd.f32 1.0, %v10064_v57  ;;  %v12802_v7 = vpop.f32.mrb[70].mxu1  ;;  %v3067_v13 = vmin.f32 %v2747_v6, 80.0  ;;  %v3069_v57 = vmin.f32 %v2749_v45, 80.0 }
 0x287   : > { %16998 = vst [vmem:[#allocation26_spill] sm:$0xff] %v12802_v7  ;;  %v12804_v55 = vpop.f32.mrb[102].mxu0  ;;  %v10068_v36 = vpop.eup %10067  ;;  %10085 = vrcp.f32 %v4008_v5  ;;  %v4009_v11 = vadd.f32 1.0, %v10066_v35  ;;  %v3076_v21 = vmin.f32 %v2756_v19, 80.0  ;;  %2536 = vmatmul.mubr.bf16.gmra.mrb[184].mxu1 %v17002_v44  ;;  %v2758_v6 = vsub.f32 0.0, %v12808_v56 }
 0x288   : > { %16999 = vst [vmem:[#allocation95_spill] sm:$0xff] %v12804_v55  ;;  %v10070_v12 = vpop.eup %10069  ;;  %10087 = vrcp.f32 %v4007_v24  ;;  %v4016_v10 = vadd.f32 1.0, %v10068_v36  ;;  %v12810_v14 = vpop.f32.mrb[71].mxu1  ;;  %v3578_v5 = vmul.f32 1.442695, %v3067_v13  ;;  %2545 = vmatprep.mubr.bf16.mxu1 %v16829_v51  ;;  %v4849_v44 = vpack.c.bf16 %v12578_v23, %v12553_v31  ;;  %v17006_v51 = vld [vmem:[#allocation63_spill] sm:$0xff] }
 0x289   : > { %17001 = vst [vmem:[#allocation61_spill] sm:$0xff] %v12810_v14  ;;  %v10072_v7 = vpop.eup %10071  ;;  %v12814_v55 = vmul.f32 %v10070_v12, %v12585_v59  ;;  %10089 = vrcp.f32 %v4009_v11  ;;  %v3582_v24 = vmul.f32 1.442695, %v3069_v57  ;;  %v3596_v35 = vmul.f32 1.442695, %v3076_v21  ;;  %v12818_v45 = vpop.f32.mrb[103].mxu0 }
 0x28a   : > { %10091 = vrcp.f32 %v4016_v10  ;;  %v4018_v41 = vadd.f32 1.0, %v10072_v7  ;;  %17003 = vst [vmem:[#allocation15_spill] sm:$0xff] %v12818_v45  ;;  %v3078_v36 = vmin.f32 %v2758_v6, 80.0  ;;  %v17004_v59 = vld [vmem:[#allocation62_spill] sm:$0xff]  ;;  %v12831_v21 = vadd.f32 %v17006_v51, %v11816_v62  ;;  %v17007_v7 = vld [vmem:[#allocation64_spill] sm:$0xff]  ;;  %4968 = vmatprep.subr.bf16.mxu0 %v4849_v44  ;;  %v17010_v44 = vld [vmem:[#allocation65_spill] sm:$0xff] }
 0x28b   : > { %v10074_v19 = vpop.eup %10073  ;;  %10093 = vpow2.f32 %v3558_v8  ;;  %v12824_v12 = vadd.f32 %v17004_v59, %v11813_v49  ;;  %v12835_v8 = vadd.f32 %v17007_v7, %v11807_v63 }
 0x28c   : > { %v10076_v11 = vpop.eup %10075  ;;  %v12827_v13 = vmul.f32 %v10074_v19, %v12592_v20  ;;  %10095 = vrcp.f32 %v4018_v41  ;;  %v3600_v23 = vmul.f32 1.442695, %v3078_v36  ;;  %v2759_v41 = vsub.f32 0.0, %v12831_v21 }
 0x28d   : > { %v10078_v10 = vpop.eup %10077  ;;  %v12838_v31 = vmul.f32 %v10076_v11, %v12596_v33  ;;  %10097 = vpow2.f32 %v12775_v22  ;;  %v2757_v20 = vsub.f32 0.0, %v12824_v12  ;;  %v17009_v19 = vpack.c.bf16 %v12569_v46, %v12534_v17  ;;  %v17012_v46 = vld [vmem:[#allocation14_spill] sm:$0xff] }
 0x28e   : > { %17005 = vst [vmem:[#allocation62_spill] sm:$0xff] %v12827_v13  ;;  %v10080_v57 = vpop.eup %10079  ;;  %v12843_v6 = vmul.f32 %v10078_v10, %v12608_v18  ;;  %10099 = vpow2.f32 %v12777_v61  ;;  %v2766_v33 = vsub.f32 0.0, %v12835_v8  ;;  %v12856_v18 = vadd.f32 %v17010_v44, %v11810_v27  ;;  %v17017_v44 = vld [vmem:[#allocation66_spill] sm:$0xff] }
 0x28f   : > { %4969 = vmatpush1.bf16.msra.mxu0 %v17009_v19  ;;  %v10082_v59 = vpop.eup %10081  ;;  %v12852_v22 = vmul.f32 %v10080_v57, %v12636_v29  ;;  %10101 = vpow2.f32 %v3580_v26  ;;  %v3077_v36 = vmin.f32 %v2757_v20, 80.0  ;;  %v3079_v51 = vmin.f32 %v2759_v41, 80.0  ;;  %2546 = vmatmul.mubr.bf16.gmra.mrb[188].mxu1 %v17012_v46  ;;  %v12871_v41 = vpop.f32.mrb[104].mxu0 }
 0x290   : > { %17008 = vst [vmem:[#allocation63_spill] sm:$0xff] %v12843_v6  ;;  %v10084_v11 = vpop.eup %10083  ;;  %v12859_v61 = vmul.f32 %v10082_v59, %v12643_v42  ;;  %10103 = vpow2.f32 %v3578_v5  ;;  %v3086_v17 = vmin.f32 %v2766_v33, 80.0  ;;  %v2768_v26 = vsub.f32 0.0, %v12856_v18  ;;  %v12869_v5 = vpop.f32.mrb[72].mxu1  ;;  %17015 = vst [vmem:[#allocation96_spill] sm:$0xff] %v12871_v41 }
 0x291   : > { %v10086_v7 = vpop.eup %10085  ;;  %v12863_v10 = vmul.f32 %v10084_v11, %v12647_v3  ;;  %10105 = vpow2.f32 %v3582_v24  ;;  %v3598_v29 = vmul.f32 1.442695, %v3077_v36  ;;  %v3602_v42 = vmul.f32 1.442695, %v3079_v51  ;;  %17014 = vst [vmem:[#allocation14_spill] sm:$0xff] %v12869_v5 }
 0x292   : > { %17011 = vst [vmem:[#allocation64_spill] sm:$0xff] %v12859_v61  ;;  %v10088_v20 = vpop.eup %10087  ;;  %v12867_v57 = vmul.f32 %v10086_v7, %v12656_v53  ;;  %10107 = vpow2.f32 %v3596_v35  ;;  %v3616_v19 = vmul.f32 1.442695, %v3086_v17  ;;  %v3088_v59 = vmin.f32 %v2768_v26, 80.0 }
 0x293   : > { %v10090_v33 = vpop.eup %10089  ;;  %v12876_v24 = vmul.f32 %v10088_v20, %v12670_v60  ;;  %10109 = vpow2.f32 %v3600_v23  ;;  %v12885_v11 = vadd.f32 %v17017_v44, %v11813_v49  ;;  %v17018_v23 = vld [vmem:[#allocation67_spill] sm:$0xff]  ;;  %v12901_v44 = vpop.f32.mrb[105].mxu0 }
 0x294   : > { %17013 = vst [vmem:[#allocation65_spill] sm:$0xff] %v12867_v57  ;;  %v10092_v36 = vpop.eup %10091  ;;  %v12881_v35 = vmul.f32 %v10090_v33, %v12674_v43  ;;  %10111 = vpow2.f32 %v3598_v29  ;;  %v3620_v60 = vmul.f32 1.442695, %v3088_v59  ;;  %v12892_v46 = vadd.f32 %v17018_v23, %v11816_v62  ;;  %v17019_v29 = vld [vmem:[#allocation34_spill] sm:$0xff]  ;;  %v12899_v33 = vpop.f32.mrb[73].mxu1  ;;  %17021 = vst [vmem:[#allocation67_spill] sm:$0xff] %v12901_v44 }
 0x295   : > { %v10094_v51 = vpop.eup %10093  ;;  %v12888_v17 = vmul.f32 %v10092_v36, %v12685_v28  ;;  %10113 = vpow2.f32 %v3602_v42  ;;  %v2767_v43 = vsub.f32 0.0, %v12885_v11  ;;  %v12897_v20 = vadd.f32 %v17019_v29, %v11807_v63  ;;  %17020 = vst [vmem:[#allocation66_spill] sm:$0xff] %v12899_v33  ;;  %v17023_v36 = vld [vmem:[#allocation68_spill] sm:$0xff] }
 0x296   : > { %17016 = vst [vmem:[#allocation97_spill] sm:$0xff] %v12881_v35  ;;  %v10096_v7 = vpop.eup %10095  ;;  %v4017_v26 = vadd.f32 1.0, %v10094_v51  ;;  %10115 = vpow2.f32 %v3616_v19  ;;  %v2769_v59 = vsub.f32 0.0, %v12892_v46  ;;  %v12909_v19 = vadd.f32 %v17023_v36, %v11810_v27 }
 0x297   : > { %v10098_v28 = vpop.eup %10097  ;;  %v12904_v42 = vmul.f32 %v10096_v7, %v12689_v0  ;;  %10117 = vpow2.f32 %v3620_v60  ;;  %v3087_v29 = vmin.f32 %v2767_v43, 80.0  ;;  %v2776_v53 = vsub.f32 0.0, %v12897_v20  ;;  %v12915_v60 = vpop.f32.mrb[74].mxu1 }
 0x298   : > { %v10100_v51 = vpop.eup %10099  ;;  %10119 = vrcp.f32 %v4017_v26  ;;  %v4019_v23 = vadd.f32 1.0, %v10098_v28  ;;  %v3089_v57 = vmin.f32 %v2769_v59, 80.0  ;;  %v2778_v35 = vsub.f32 0.0, %v12909_v19  ;;  %17024 = vst [vmem:[#allocation68_spill] sm:$0xff] %v12915_v60  ;;  %v12917_v7 = vpop.f32.mrb[106].mxu0 }
 0x299   : > { %17022 = vst [vmem:[#allocation34_spill] sm:$0xff] %v12904_v42  ;;  %v10102_v3 = vpop.eup %10101  ;;  %v4026_v6 = vadd.f32 1.0, %v10100_v51  ;;  %v4859_v0 = vpack.c.bf16 %v12708_v47, %v12662_v54  ;;  %17025 = vst [vmem:[#allocation98_spill] sm:$0xff] %v12917_v7  ;;  %v3618_v26 = vmul.f32 1.442695, %v3087_v29  ;;  %v3096_v28 = vmin.f32 %v2776_v53, 80.0 }
 0x29a   : > { %v10104_v36 = vpop.eup %10103  ;;  %10121 = vrcp.f32 %v4019_v23  ;;  %v4028_v61 = vadd.f32 1.0, %v10102_v3  ;;  %v3622_v44 = vmul.f32 1.442695, %v3089_v57  ;;  %v3098_v51 = vmin.f32 %v2778_v35, 80.0  ;;  %v17026_v54 = vld [vmem:[#allocation33_spill] sm:$0xff]  ;;  %v12926_v3 = vpop.f32.mrb[75].mxu1 }
 0x29b   : > { %v10106_v43 = vpop.eup %10105  ;;  %10123 = vrcp.f32 %v4026_v6  ;;  %v4027_v13 = vadd.f32 1.0, %v10104_v36  ;;  %4970 = vmatprep.subr.bf16.mxu0 %v4859_v0  ;;  %v3636_v41 = vmul.f32 1.442695, %v3096_v28  ;;  %v12921_v47 = vadd.f32 %v17026_v54, %v11813_v49  ;;  %17028 = vst [vmem:[#allocation33_spill] sm:$0xff] %v12926_v3  ;;  %v12928_v53 = vpop.f32.mrb[107].mxu0 }
 0x29c   : > { %v10108_v59 = vpop.eup %10107  ;;  %10125 = vrcp.f32 %v4028_v61  ;;  %v4029_v33 = vadd.f32 1.0, %v10106_v43  ;;  %v17027_v23 = vpack.c.bf16 %v12694_v9, %v12603_v50  ;;  %17029 = vst [vmem:[#allocation99_spill] sm:$0xff] %v12928_v53  ;;  %v3640_v35 = vmul.f32 1.442695, %v3098_v51  ;;  %v17030_v61 = vld [vmem:[#allocation69_spill] sm:$0xff]  ;;  %v17031_v50 = vld [vmem:[#allocation70_spill] sm:$0xff] }
 0x29d   : > { %v10110_v6 = vpop.eup %10109  ;;  %10127 = vrcp.f32 %v4027_v13  ;;  %v4036_v57 = vadd.f32 1.0, %v10108_v59  ;;  %v12932_v29 = vadd.f32 %v17030_v61, %v11816_v62  ;;  %v2777_v28 = vsub.f32 0.0, %v12921_v47  ;;  %v17032_v51 = vld [vmem:[#allocation71_spill] sm:$0xff]  ;;  %v12951_v45 = vpop.f32.mrb[108].mxu0 }
 0x29e   : > { %4971 = vmatpush1.bf16.msra.mxu0 %v17027_v23  ;;  %v10112_v0 = vpop.eup %10111  ;;  %10129 = vrcp.f32 %v4029_v33  ;;  %v4038_v36 = vadd.f32 1.0, %v10110_v6  ;;  %v12937_v9 = vadd.f32 %v17031_v50, %v11807_v63  ;;  %v12942_v59 = vadd.f32 %v17032_v51, %v11810_v27  ;;  %17034 = vst [vmem:[#allocation70_spill] sm:$0xff] %v12951_v45 }
 0x29f   : > { %v10114_v43 = vpop.eup %10113  ;;  %10131 = vrcp.f32 %v4036_v57  ;;  %v4037_v54 = vadd.f32 1.0, %v10112_v0  ;;  %v2779_v13 = vsub.f32 0.0, %v12932_v29  ;;  %v3097_v33 = vmin.f32 %v2777_v28, 80.0  ;;  %v12949_v28 = vpop.f32.mrb[76].mxu1 }
 0x2a0   : > { %v10116_v23 = vpop.eup %10115  ;;  %10133 = vrcp.f32 %v4038_v36  ;;  %v4039_v61 = vadd.f32 1.0, %v10114_v43  ;;  %v2786_v6 = vsub.f32 0.0, %v12937_v9  ;;  %v2788_v7 = vsub.f32 0.0, %v12942_v59  ;;  %17033 = vst [vmem:[#allocation69_spill] sm:$0xff] %v12949_v28 }
 0x2a1   : > { %v10118_v53 = vpop.eup %10117  ;;  %10135 = vrcp.f32 %v4037_v54  ;;  %v4046_v3 = vadd.f32 1.0, %v10116_v23  ;;  %v3099_v50 = vmin.f32 %v2779_v13, 80.0  ;;  %v3638_v60 = vmul.f32 1.442695, %v3097_v33  ;;  %v17035_v23 = vld [vmem:[#allocation72_spill] sm:$0xff]  ;;  %v17038_v33 = vld [vmem:[#allocation35_spill] sm:$0xff] }
 0x2a2   : > { %v10120_v57 = vpop.eup %10119  ;;  %10137 = vrcp.f32 %v4039_v61  ;;  %v4048_v0 = vadd.f32 1.0, %v10118_v53  ;;  %v3106_v5 = vmin.f32 %v2786_v6, 80.0  ;;  %v3108_v43 = vmin.f32 %v2788_v7, 80.0  ;;  %v17036_v53 = vld [vmem:[#allocation73_spill] sm:$0xff] }
 0x2a3   : > { %v12947_v51 = vmul.f32 %v10120_v57, %v12736_v30  ;;  %10139 = vrcp.f32 %v4046_v3  ;;  %v3642_v36 = vmul.f32 1.442695, %v3099_v50  ;;  %v12955_v14 = vadd.f32 %v17035_v23, %v11813_v49 }
 0x2a4   : > { %v10122_v54 = vpop.eup %10121  ;;  %10141 = vrcp.f32 %v4048_v0  ;;  %v3656_v13 = vmul.f32 1.442695, %v3106_v5  ;;  %v12959_v61 = vadd.f32 %v17036_v53, %v11816_v62  ;;  %v3660_v7 = vmul.f32 1.442695, %v3108_v43 }
 0x2a5   : > { %v10124_v30 = vpop.eup %10123  ;;  %v12962_v3 = vmul.f32 %v10122_v54, %v12742_v2  ;;  %10143 = vpow2.f32 %v3618_v26  ;;  %v12966_v6 = vadd.f32 %v17038_v33, %v11807_v63  ;;  %v2787_v57 = vsub.f32 0.0, %v12955_v14  ;;  %v17040_v26 = vld [vmem:[#allocation7_spill] sm:$0xff]  ;;  %v12981_v54 = vpop.f32.mrb[77].mxu1 }
 0x2a6   : > { %v10126_v50 = vpop.eup %10125  ;;  %v12969_v5 = vmul.f32 %v10124_v30, %v12746_v34  ;;  %10145 = vpow2.f32 %v3622_v44  ;;  %v2789_v0 = vsub.f32 0.0, %v12959_v61  ;;  %v12979_v43 = vadd.f32 %v17040_v26, %v11810_v27  ;;  %17041 = vst [vmem:[#allocation73_spill] sm:$0xff] %v12981_v54  ;;  %v12983_v34 = vpop.f32.mrb[109].mxu0 }
 0x2a7   : > { %17037 = vst [vmem:[#allocation71_spill] sm:$0xff] %v12962_v3  ;;  %v10128_v23 = vpop.eup %10127  ;;  %v12974_v53 = vmul.f32 %v10126_v50, %v12757_v4  ;;  %10147 = vpow2.f32 %v3636_v41  ;;  %v2796_v2 = vsub.f32 0.0, %v12966_v6  ;;  %17042 = vst [vmem:[#allocation35_spill] sm:$0xff] %v12983_v34  ;;  %v3107_v4 = vmin.f32 %v2787_v57, 80.0  ;;  %v12990_v41 = vpop.f32.mrb[78].mxu1 }
 0x2a8   : > { %v10130_v44 = vpop.eup %10129  ;;  %v12988_v33 = vmul.f32 %v10128_v23, %v12781_v16  ;;  %10149 = vpow2.f32 %v3640_v35  ;;  %17043 = vst [vmem:[#allocation7_spill] sm:$0xff] %v12990_v41  ;;  %v3109_v34 = vmin.f32 %v2789_v0, 80.0  ;;  %v13000_v35 = vpop.f32.mrb[110].mxu0 }
 0x2a9   : > { %17039 = vst [vmem:[#allocation72_spill] sm:$0xff] %v12974_v53  ;;  %v10132_v50 = vpop.eup %10131  ;;  %v12995_v3 = vmul.f32 %v10130_v44, %v12785_v48  ;;  %10151 = vpow2.f32 %v3638_v60  ;;  %v3658_v16 = vmul.f32 1.442695, %v3107_v4  ;;  %v3116_v23 = vmin.f32 %v2796_v2, 80.0  ;;  %17045 = vst [vmem:[#allocation101_spill] sm:$0xff] %v13000_v35 }
 0x2aa   : > { %v10134_v54 = vpop.eup %10133  ;;  %v12998_v45 = vmul.f32 %v10132_v50, %v12789_v25  ;;  %10153 = vpow2.f32 %v3642_v36  ;;  %v3662_v26 = vmul.f32 1.442695, %v3109_v34  ;;  %v2798_v48 = vsub.f32 0.0, %v12979_v43 }
 0x2ab   : > { %17044 = vst [vmem:[#allocation100_spill] sm:$0xff] %v12995_v3  ;;  %v10136_v57 = vpop.eup %10135  ;;  %v13003_v30 = vmul.f32 %v10134_v54, %v12808_v56  ;;  %10155 = vpow2.f32 %v3656_v13  ;;  %v3676_v25 = vmul.f32 1.442695, %v3116_v23  ;;  %v4869_v36 = vpack.c.bf16 %v12814_v55, %v12727_v40  ;;  %v17048_v13 = vld [vmem:[#allocation38_spill] sm:$0xff] }
 0x2ac   : > { %v10138_v44 = vpop.eup %10137  ;;  %v13007_v60 = vmul.f32 %v10136_v57, %v12824_v12  ;;  %10157 = vpow2.f32 %v3660_v7  ;;  %v3118_v56 = vmin.f32 %v2798_v48, 80.0  ;;  %v13016_v54 = vadd.f32 %v17048_v13, %v11813_v49  ;;  %v17049_v12 = vld [vmem:[#allocation39_spill] sm:$0xff]  ;;  %v17050_v40 = vld [vmem:[#allocation74_spill] sm:$0xff]  ;;  %v13038_v57 = vpop.f32.mrb[111].mxu0 }
 0x2ad   : > { %17046 = vst [vmem:[#allocation102_spill] sm:$0xff] %v13003_v30  ;;  %v10140_v0 = vpop.eup %10139  ;;  %v13012_v2 = vmul.f32 %v10138_v44, %v12831_v21  ;;  %10159 = vpow2.f32 %v3658_v16  ;;  %4972 = vmatprep.subr.bf16.mxu0 %v4869_v36  ;;  %v13023_v7 = vadd.f32 %v17049_v12, %v11816_v62  ;;  %v13027_v55 = vadd.f32 %v17050_v40, %v11807_v63 }
 0x2ae   : > { %v10142_v34 = vpop.eup %10141  ;;  %v13019_v4 = vmul.f32 %v10140_v0, %v12835_v8  ;;  %10161 = vpow2.f32 %v3662_v26  ;;  %v3680_v16 = vmul.f32 1.442695, %v3118_v56  ;;  %v2797_v23 = vsub.f32 0.0, %v13016_v54  ;;  %v13036_v26 = vpop.f32.mrb[79].mxu1  ;;  %17054 = vst [vmem:[#allocation74_spill] sm:$0xff] %v13038_v57 }
 0x2af   : > { %17047 = vst [vmem:[#allocation103_spill] sm:$0xff] %v13012_v2  ;;  %v10144_v21 = vpop.eup %10143  ;;  %v13030_v50 = vmul.f32 %v10142_v34, %v12856_v18  ;;  %10163 = vpow2.f32 %v3676_v25  ;;  %v17052_v8 = vpack.c.bf16 %v12749_v39, %v12719_v15  ;;  %17053 = vst [vmem:[#allocation39_spill] sm:$0xff] %v13036_v26  ;;  %v2799_v18 = vsub.f32 0.0, %v13023_v7  ;;  %v17055_v2 = vld [vmem:[#allocation75_spill] sm:$0xff] }
 0x2b0   : > { %v10146_v48 = vpop.eup %10145  ;;  %v4047_v36 = vadd.f32 1.0, %v10144_v21  ;;  %v2806_v25 = vsub.f32 0.0, %v13027_v55  ;;  %10165 = vpow2.f32 %v3680_v16  ;;  %v3117_v15 = vmin.f32 %v2797_v23, 80.0 }
 0x2b1   : > { %17051 = vst [vmem:[#allocation38_spill] sm:$0xff] %v13030_v50  ;;  %4973 = vmatpush1.bf16.msra.mxu0 %v17052_v8  ;;  %v10148_v0 = vpop.eup %10147  ;;  %v4049_v13 = vadd.f32 1.0, %v10146_v48  ;;  %v3119_v12 = vmin.f32 %v2799_v18, 80.0  ;;  %v13048_v42 = vadd.f32 %v17055_v2, %v11810_v27  ;;  %v17056_v18 = vld [vmem:[#allocation76_spill] sm:$0xff] }
 0x2b2   : > { %v10150_v39 = vpop.eup %10149  ;;  %10167 = vrcp.f32 %v4047_v36  ;;  %v4056_v34 = vadd.f32 1.0, %v10148_v0  ;;  %v3126_v40 = vmin.f32 %v2806_v25, 80.0  ;;  %v3678_v21 = vmul.f32 1.442695, %v3117_v15  ;;  %v13057_v0 = vpop.f32.mrb[80].mxu1 }
 0x2b3   : > { %v10152_v8 = vpop.eup %10151  ;;  %10169 = vrcp.f32 %v4049_v13  ;;  %v4058_v44 = vadd.f32 1.0, %v10150_v39  ;;  %v3682_v56 = vmul.f32 1.442695, %v3119_v12  ;;  %v2808_v36 = vsub.f32 0.0, %v13048_v42  ;;  %17057 = vst [vmem:[#allocation75_spill] sm:$0xff] %v13057_v0  ;;  %v13059_v13 = vpop.f32.mrb[112].mxu0 }
 0x2b4   : > { %v10154_v53 = vpop.eup %10153  ;;  %10171 = vrcp.f32 %v4056_v34  ;;  %v4057_v3 = vadd.f32 1.0, %v10152_v8  ;;  %v13050_v48 = vmul.f32 1.442695, %v3126_v40  ;;  %v13055_v25 = vadd.f32 %v17056_v18, %v11813_v49  ;;  %17058 = vst [vmem:[#allocation76_spill] sm:$0xff] %v13059_v13  ;;  %v17059_v39 = vld [vmem:[#allocation77_spill] sm:$0xff]  ;;  %v13072_v13 = vpop.f32.mrb[81].mxu1 }
 0x2b5   : > { %v10156_v16 = vpop.eup %10155  ;;  %10173 = vrcp.f32 %v4058_v44  ;;  %v4059_v23 = vadd.f32 1.0, %v10154_v53  ;;  %v13063_v34 = vadd.f32 %v17059_v39, %v11816_v62  ;;  %v17060_v44 = vld [vmem:[#allocation41_spill] sm:$0xff]  ;;  %v3128_v8 = vmin.f32 %v2808_v36, 80.0  ;;  %17061 = vst [vmem:[#allocation77_spill] sm:$0xff] %v13072_v13  ;;  %v13074_v39 = vpop.f32.mrb[113].mxu0  ;;  %v17064_v13 = vld [vmem:[#allocation6_spill] sm:$0xff] }
 0x2b6   : > { %v10158_v2 = vpop.eup %10157  ;;  %10175 = vrcp.f32 %v4057_v3  ;;  %v4066_v15 = vadd.f32 1.0, %v10156_v16  ;;  %v13067_v53 = vadd.f32 %v17060_v44, %v11807_v63  ;;  %v2807_v18 = vsub.f32 0.0, %v13055_v25  ;;  %v13078_v36 = vpop.f32.mrb[114].mxu0 }
 0x2b7   : > { %v10160_v12 = vpop.eup %10159  ;;  %10177 = vrcp.f32 %v4059_v23  ;;  %v4068_v40 = vadd.f32 1.0, %v10158_v2  ;;  %v2809_v3 = vsub.f32 0.0, %v13063_v34  ;;  %v3700_v57 = vmul.f32 1.442695, %v3128_v8  ;;  %v13076_v2 = vpop.f32.mrb[82].mxu1  ;;  %17063 = vst [vmem:[#allocation104_spill] sm:$0xff] %v13078_v36 }
 0x2b8   : > { %v10162_v30 = vpop.eup %10161  ;;  %10179 = vrcp.f32 %v4066_v15  ;;  %v4067_v50 = vadd.f32 1.0, %v10160_v12  ;;  %v2816_v16 = vsub.f32 0.0, %v13067_v53  ;;  %v3127_v23 = vmin.f32 %v2807_v18, 80.0  ;;  %17062 = vst [vmem:[#allocation41_spill] sm:$0xff] %v13076_v2 }
 0x2b9   : > { %v10164_v0 = vpop.eup %10163  ;;  %10181 = vrcp.f32 %v4068_v40  ;;  %v4069_v44 = vadd.f32 1.0, %v10162_v30  ;;  %v3129_v12 = vmin.f32 %v2809_v3, 80.0  ;;  %v13082_v28 = vadd.f32 %v17064_v13, %v11810_v27  ;;  %v17065_v3 = vld [vmem:[#allocation42_spill] sm:$0xff] }
 0x2ba   : > { %10183 = vrcp.f32 %v4067_v50  ;;  %v4076_v15 = vadd.f32 1.0, %v10164_v0  ;;  %v3136_v26 = vmin.f32 %v2816_v16, 80.0  ;;  %v10166_v35 = vpop.eup %10165  ;;  %v3698_v41 = vmul.f32 1.442695, %v3127_v23 }
 0x2bb   : > { %10185 = vrcp.f32 %v4069_v44  ;;  %v4879_v30 = vpack.c.bf16 %v12876_v24, %v12852_v22  ;;  %v4078_v8 = vadd.f32 1.0, %v10166_v35  ;;  %v3702_v18 = vmul.f32 1.442695, %v3129_v12  ;;  %v17067_v24 = vld [vmem:[#allocation78_spill] sm:$0xff] }
 0x2bc   : > { %v10168_v40 = vpop.eup %10167  ;;  %10187 = vrcp.f32 %v4076_v15  ;;  %v3716_v2 = vmul.f32 1.442695, %v3136_v26  ;;  %v2818_v0 = vsub.f32 0.0, %v13082_v28  ;;  %v13092_v13 = vadd.f32 %v17065_v3, %v11813_v49  ;;  %v17069_v26 = vld [vmem:[#allocation79_spill] sm:$0xff] }
 0x2bd   : > { %v10170_v36 = vpop.eup %10169  ;;  %v13087_v50 = vmul.f32 %v10168_v40, %v12885_v11  ;;  %10189 = vpow2.f32 %v3678_v21  ;;  %4974 = vmatprep.subr.bf16.mxu0 %v4879_v30  ;;  %v13099_v35 = vadd.f32 %v17067_v24, %v11816_v62  ;;  %v17068_v11 = vpack.c.bf16 %v12863_v10, %v12838_v31 }
 0x2be   : > { %v10172_v16 = vpop.eup %10171  ;;  %v13095_v22 = vmul.f32 %v10170_v36, %v12892_v46  ;;  %10191 = vrcp.f32 %v4078_v8  ;;  %v13106_v21 = vadd.f32 %v17069_v26, %v11807_v63  ;;  %v3138_v46 = vmin.f32 %v2818_v0, 80.0 }
 0x2bf   : > { %4975 = vmatpush1.bf16.msra.mxu0 %v17068_v11  ;;  %v10174_v44 = vpop.eup %10173  ;;  %v13109_v23 = vmul.f32 %v10172_v16, %v12897_v20  ;;  %10193 = vpow2.f32 %v3682_v56  ;;  %v2817_v36 = vsub.f32 0.0, %v13092_v13  ;;  %v2819_v31 = vsub.f32 0.0, %v13099_v35  ;;  %v17072_v11 = vld [vmem:[#allocation80_spill] sm:$0xff] }
 0x2c0   : > { %17066 = vst [vmem:[#allocation6_spill] sm:$0xff] %v13095_v22  ;;  %v10176_v15 = vpop.eup %10175  ;;  %v13113_v12 = vmul.f32 %v10174_v44, %v12909_v19  ;;  %10195 = vpow2.f32 %v13050_v48  ;;  %v2826_v10 = vsub.f32 0.0, %v13106_v21  ;;  %v3720_v20 = vmul.f32 1.442695, %v3138_v46 }
 0x2c1   : > { %v10178_v30 = vpop.eup %10177  ;;  %v13119_v40 = vmul.f32 %v10176_v15, %v12921_v47  ;;  %10197 = vpow2.f32 %v3700_v57  ;;  %v3137_v56 = vmin.f32 %v2817_v36, 80.0  ;;  %v3139_v19 = vmin.f32 %v2819_v31, 80.0 }
 0x2c2   : > { %17070 = vst [vmem:[#allocation42_spill] sm:$0xff] %v13113_v12  ;;  %v10180_v8 = vpop.eup %10179  ;;  %v13122_v0 = vmul.f32 %v10178_v30, %v12932_v29  ;;  %10199 = vpow2.f32 %v3698_v41  ;;  %v3146_v3 = vmin.f32 %v2826_v10, 80.0  ;;  %v13129_v47 = vadd.f32 %v17072_v11, %v11810_v27 }
 0x2c3   : > { %v10182_v16 = vpop.eup %10181  ;;  %v13125_v48 = vmul.f32 %v10180_v8, %v12937_v9  ;;  %10201 = vpow2.f32 %v3702_v18  ;;  %v3718_v24 = vmul.f32 1.442695, %v3137_v56  ;;  %v3722_v29 = vmul.f32 1.442695, %v3139_v19 }
 0x2c4   : > { %17071 = vst [vmem:[#allocation78_spill] sm:$0xff] %v13122_v0  ;;  %v10184_v57 = vpop.eup %10183  ;;  %v13132_v26 = vmul.f32 %v10182_v16, %v12942_v59  ;;  %10203 = vpow2.f32 %v3716_v2  ;;  %v3736_v44 = vmul.f32 1.442695, %v3146_v3  ;;  %v2828_v18 = vsub.f32 0.0, %v13129_v47 }
 0x2c5   : > { %v10186_v41 = vpop.eup %10185  ;;  %v13137_v9 = vmul.f32 %v10184_v57, %v12955_v14  ;;  %10205 = vpow2.f32 %v3720_v20  ;;  %v13147_v2 = vadd.f32 %v12502_v32, %v11813_v49  ;;  %v13154_v30 = vadd.f32 %v12504_v38, %v11816_v62 }
 0x2c6   : > { %17073 = vst [vmem:[#allocation79_spill] sm:$0xff] %v13132_v26  ;;  %v10188_v36 = vpop.eup %10187  ;;  %v13143_v59 = vmul.f32 %v10186_v41, %v12959_v61  ;;  %10207 = vpow2.f32 %v3718_v24  ;;  %v3148_v14 = vmin.f32 %v2828_v18, 80.0  ;;  %v13159_v8 = vadd.f32 %v12538_v1, %v11807_v63 }
 0x2c7   : > { %v10190_v31 = vpop.eup %10189  ;;  %v13150_v10 = vmul.f32 %v10188_v36, %v12966_v6  ;;  %10209 = vpow2.f32 %v3722_v29  ;;  %v2827_v61 = vsub.f32 0.0, %v13147_v2  ;;  %v2829_v3 = vsub.f32 0.0, %v13154_v30 }
 0x2c8   : > { %17074 = vst [vmem:[#allocation80_spill] sm:$0xff] %v13143_v59  ;;  %v10192_v20 = vpop.eup %10191  ;;  %v4077_v56 = vadd.f32 1.0, %v10190_v31  ;;  %10211 = vpow2.f32 %v3736_v44  ;;  %v3740_v6 = vmul.f32 1.442695, %v3148_v14  ;;  %v13167_v38 = vadd.f32 %v12540_v58, %v11810_v27 }
 0x2c9   : > { %v10194_v32 = vpop.eup %10193  ;;  %v13162_v19 = vmul.f32 %v10192_v20, %v12979_v43  ;;  %v3147_v11 = vmin.f32 %v2827_v61, 80.0  ;;  %v2836_v57 = vsub.f32 0.0, %v13159_v8  ;;  %v3149_v44 = vmin.f32 %v2829_v3, 80.0 }
 0x2ca   : > { %v10196_v16 = vpop.eup %10195  ;;  %10213 = vrcp.f32 %v4077_v56  ;;  %v4079_v24 = vadd.f32 1.0, %v10194_v32  ;;  %v2838_v43 = vsub.f32 0.0, %v13167_v38 }
 0x2cb   : > { %17075 = vst [vmem:[#allocation105_spill] sm:$0xff] %v13162_v19  ;;  %v10198_v29 = vpop.eup %10197  ;;  %v4086_v1 = vadd.f32 1.0, %v10196_v16  ;;  %10215 = vpow2.f32 %v3740_v6  ;;  %v3738_v36 = vmul.f32 1.442695, %v3147_v11  ;;  %v3156_v31 = vmin.f32 %v2836_v57, 80.0 }
 0x2cc   : > { %v10200_v41 = vpop.eup %10199  ;;  %10217 = vrcp.f32 %v4079_v24  ;;  %v4088_v18 = vadd.f32 1.0, %v10198_v29  ;;  %v3742_v20 = vmul.f32 1.442695, %v3149_v44  ;;  %v3158_v56 = vmin.f32 %v2838_v43, 80.0  ;;  %v17076_v24 = vld [vmem:[#allocation45_spill] sm:$0xff]  ;;  %v17078_v43 = vld [vmem:[#allocation82_spill] sm:$0xff] }
 0x2cd   : > { %v10202_v14 = vpop.eup %10201  ;;  %10219 = vrcp.f32 %v4086_v1  ;;  %v4087_v58 = vadd.f32 1.0, %v10200_v41  ;;  %v3756_v15 = vmul.f32 1.442695, %v3156_v31  ;;  %v4889_v6 = vpack.c.bf16 %v12988_v33, %v12947_v51  ;;  %v17077_v1 = vld [vmem:[#allocation81_spill] sm:$0xff] }
 0x2ce   : > { %v10204_v32 = vpop.eup %10203  ;;  %10221 = vrcp.f32 %v4088_v18  ;;  %v4089_v61 = vadd.f32 1.0, %v10202_v14  ;;  %v3760_v46 = vmul.f32 1.442695, %v3158_v56  ;;  %v13175_v11 = vadd.f32 %v17076_v24, %v11813_v49  ;;  %v17080_v14 = vld [vmem:[#allocation83_spill] sm:$0xff] }
 0x2cf   : > { %v10206_v3 = vpop.eup %10205  ;;  %10223 = vrcp.f32 %v4087_v58  ;;  %v4096_v16 = vadd.f32 1.0, %v10204_v32  ;;  %4976 = vmatprep.subr.bf16.mxu0 %v4889_v6  ;;  %v13179_v44 = vadd.f32 %v17077_v1, %v11816_v62  ;;  %v13183_v41 = vadd.f32 %v17078_v43, %v11807_v63 }
 0x2d0   : > { %v10208_v57 = vpop.eup %10207  ;;  %10225 = vrcp.f32 %v4089_v61  ;;  %v4098_v29 = vadd.f32 1.0, %v10206_v3  ;;  %v2837_v18 = vsub.f32 0.0, %v13175_v11  ;;  %v17079_v31 = vpack.c.bf16 %v12969_v5, %v12888_v17 }
 0x2d1   : > { %v10210_v51 = vpop.eup %10209  ;;  %10227 = vrcp.f32 %v4096_v16  ;;  %v4097_v33 = vadd.f32 1.0, %v10208_v57  ;;  %v13191_v58 = vadd.f32 %v17080_v14, %v11810_v27  ;;  %v2839_v61 = vsub.f32 0.0, %v13179_v44 }
 0x2d2   : > { %4977 = vmatpush1.bf16.msra.mxu0 %v17079_v31  ;;  %v10212_v56 = vpop.eup %10211  ;;  %10229 = vrcp.f32 %v4098_v29  ;;  %v4099_v32 = vadd.f32 1.0, %v10210_v51  ;;  %v2846_v6 = vsub.f32 0.0, %v13183_v41  ;;  %v3157_v16 = vmin.f32 %v2837_v18, 80.0 }
 0x2d3   : > { %10231 = vrcp.f32 %v4097_v33  ;;  %v4106_v3 = vadd.f32 1.0, %v10212_v56  ;;  %v2848_v24 = vsub.f32 0.0, %v13191_v58  ;;  %v3159_v17 = vmin.f32 %v2839_v61, 80.0 }
 0x2d4   : > { %v10214_v57 = vpop.eup %10213  ;;  %10233 = vrcp.f32 %v4099_v32  ;;  %v3166_v5 = vmin.f32 %v2846_v6, 80.0  ;;  %v13198_v1 = vadd.f32 %v12564_v52, %v11813_v49  ;;  %v3758_v51 = vmul.f32 1.442695, %v3157_v16 }
 0x2d5   : > { %v10216_v43 = vpop.eup %10215  ;;  %v13201_v29 = vmul.f32 %v10214_v57, %v13016_v54  ;;  %10235 = vrcp.f32 %v4106_v3  ;;  %v3168_v31 = vmin.f32 %v2848_v24, 80.0  ;;  %v3762_v18 = vmul.f32 1.442695, %v3159_v17  ;;  %v17082_v3 = vld [vmem:[#allocation85_spill] sm:$0xff]  ;;  %v17085_v17 = vld [vmem:[#allocation87_spill] sm:$0xff] }
 0x2d6   : > { %v10218_v33 = vpop.eup %10217  ;;  %v4108_v14 = vadd.f32 1.0, %v10216_v43  ;;  %10237 = vpow2.f32 %v3738_v36  ;;  %v3776_v56 = vmul.f32 1.442695, %v3166_v5  ;;  %v2847_v52 = vsub.f32 0.0, %v13198_v1  ;;  %v17083_v36 = vld [vmem:[#allocation47_spill] sm:$0xff] }
 0x2d7   : > { %v10220_v12 = vpop.eup %10219  ;;  %v13204_v32 = vmul.f32 %v10218_v33, %v13023_v7  ;;  %10239 = vpow2.f32 %v3742_v20  ;;  %v3780_v61 = vmul.f32 1.442695, %v3168_v31  ;;  %v13212_v16 = vadd.f32 %v17082_v3, %v11816_v62 }
 0x2d8   : > { %v10222_v6 = vpop.eup %10221  ;;  %v13208_v54 = vmul.f32 %v10220_v12, %v13027_v55  ;;  %10241 = vrcp.f32 %v4108_v14  ;;  %v13216_v24 = vadd.f32 %v17083_v36, %v11807_v63  ;;  %v3167_v20 = vmin.f32 %v2847_v52, 80.0 }
 0x2d9   : > { %17081 = vst [vmem:[#allocation45_spill] sm:$0xff] %v13204_v32  ;;  %v10224_v57 = vpop.eup %10223  ;;  %v13219_v7 = vmul.f32 %v10222_v6, %v13048_v42  ;;  %10243 = vpow2.f32 %v3756_v15  ;;  %v13223_v5 = vadd.f32 %v17085_v17, %v11810_v27  ;;  %v2849_v31 = vsub.f32 0.0, %v13212_v16 }
 0x2da   : > { %v10226_v55 = vpop.eup %10225  ;;  %v13228_v43 = vmul.f32 %v10224_v57, %v13055_v25  ;;  %10245 = vpow2.f32 %v3760_v46  ;;  %v3778_v14 = vmul.f32 1.442695, %v3167_v20  ;;  %v2856_v25 = vsub.f32 0.0, %v13216_v24 }
 0x2db   : > { %17084 = vst [vmem:[#allocation81_spill] sm:$0xff] %v13219_v7  ;;  %v10228_v33 = vpop.eup %10227  ;;  %v13234_v15 = vmul.f32 %v10226_v55, %v13063_v34  ;;  %10247 = vpow2.f32 %v3758_v51  ;;  %v3169_v3 = vmin.f32 %v2849_v31, 80.0  ;;  %v2858_v57 = vsub.f32 0.0, %v13223_v5  ;;  %v13246_v51 = vpop.f32.mrb[83].mxu1 }
 0x2dc   : > { %v10230_v52 = vpop.eup %10229  ;;  %v13237_v6 = vmul.f32 %v10228_v33, %v13067_v53  ;;  %10249 = vpow2.f32 %v3762_v18  ;;  %v4899_v34 = vpack.c.bf16 %v13087_v50, %v13007_v60  ;;  %v3176_v17 = vmin.f32 %v2856_v25, 80.0 }
 0x2dd   : > { %17086 = vst [vmem:[#allocation82_spill] sm:$0xff] %v13234_v15  ;;  %v10232_v46 = vpop.eup %10231  ;;  %v13241_v36 = vmul.f32 %v10230_v52, %v13082_v28  ;;  %10251 = vpow2.f32 %v3776_v56  ;;  %v3782_v18 = vmul.f32 1.442695, %v3169_v3  ;;  %v3178_v28 = vmin.f32 %v2858_v57, 80.0  ;;  %v17089_v56 = vld [vmem:[#allocation88_spill] sm:$0xff]  ;;  %v17092_v57 = vld [vmem:[#allocation91_spill] sm:$0xff] }
 0x2de   : > { %v10234_v20 = vpop.eup %10233  ;;  %v13249_v53 = vmul.f32 %v10232_v46, %v13092_v13  ;;  %10253 = vpow2.f32 %v3780_v61  ;;  %4978 = vmatprep.subr.bf16.mxu0 %v4899_v34  ;;  %v13256_v33 = vadd.f32 %v17089_v56, %v11813_v49  ;;  %v3796_v13 = vmul.f32 1.442695, %v3176_v17  ;;  %v17090_v61 = vld [vmem:[#allocation90_spill] sm:$0xff] }
 0x2df   : > { %17087 = vst [vmem:[#allocation83_spill] sm:$0xff] %v13241_v36  ;;  %v10236_v55 = vpop.eup %10235  ;;  %v13252_v31 = vmul.f32 %v10234_v20, %v13099_v35  ;;  %10255 = vpow2.f32 %v3778_v14  ;;  %v13263_v52 = vadd.f32 %v17090_v61, %v11816_v62  ;;  %v17091_v35 = vpack.c.bf16 %v13019_v4, %v12998_v45 }
 0x2e0   : > { %v10238_v60 = vpop.eup %10237  ;;  %v13259_v50 = vmul.f32 %v10236_v55, %v13106_v21  ;;  %10257 = vpow2.f32 %v3782_v18  ;;  %v3800_v25 = vmul.f32 1.442695, %v3178_v28  ;;  %v2857_v46 = vsub.f32 0.0, %v13256_v33  ;;  %v13276_v55 = vpop.f32.mrb[115].mxu0 }
 0x2e1   : > { %17088 = vst [vmem:[#allocation85_spill] sm:$0xff] %v13252_v31  ;;  %4979 = vmatpush1.bf16.msra.mxu0 %v17091_v35  ;;  %v10240_v14 = vpop.eup %10239  ;;  %v4107_v3 = vadd.f32 1.0, %v10238_v60  ;;  %v13271_v34 = vadd.f32 %v17092_v57, %v11807_v63  ;;  %10259 = vpow2.f32 %v3796_v13  ;;  %v2859_v17 = vsub.f32 0.0, %v13263_v52  ;;  %v17094_v35 = vld [vmem:[#allocation92_spill] sm:$0xff]  ;;  %v13295_v57 = vpop.f32.mrb[116].mxu0 }
 0x2e2   : > { %v10242_v21 = vpop.eup %10241  ;;  %v4109_v18 = vadd.f32 1.0, %v10240_v14  ;;  %v3177_v28 = vmin.f32 %v2857_v46, 80.0  ;;  %v13284_v14 = vadd.f32 %v17094_v35, %v11810_v27  ;;  %v17095_v35 = vld [vmem:[#allocation11_spill] sm:$0xff] }
 0x2e3   : > { %v10244_v45 = vpop.eup %10243  ;;  %v13279_v4 = vmul.f32 %v10242_v21, %v13129_v47  ;;  %10261 = vrcp.f32 %v4107_v3  ;;  %v2866_v56 = vsub.f32 0.0, %v13271_v34  ;;  %v3179_v61 = vmin.f32 %v2859_v17, 80.0  ;;  %v13288_v21 = vpop.f32.mrb[84].mxu1 }
 0x2e4   : > { %v10246_v63 = vpop.eup %10245  ;;  %10263 = vrcp.f32 %v4109_v18  ;;  %v4116_v60 = vadd.f32 1.0, %v10244_v45  ;;  %v3798_v47 = vmul.f32 1.442695, %v3177_v28  ;;  %v2868_v27 = vsub.f32 0.0, %v13284_v14  ;;  %v13302_v36 = vpop.f32.mrb[85].mxu1 }
 0x2e5   : > { %17093 = vst [vmem:[#allocation47_spill] sm:$0xff] %v13279_v4  ;;  %v10248_v13 = vpop.eup %10247  ;;  %v4118_v42 = vadd.f32 1.0, %v10246_v63  ;;  %10265 = vpow2.f32 %v3800_v25  ;;  %v3802_v20 = vmul.f32 1.442695, %v3179_v61  ;;  %v3186_v18 = vmin.f32 %v2866_v56, 80.0 }
 0x2e6   : > { %v10250_v3 = vpop.eup %10249  ;;  %10267 = vrcp.f32 %v4116_v60  ;;  %v4117_v46 = vadd.f32 1.0, %v10248_v13  ;;  %v13293_v12 = vadd.f32 %v17095_v35, %v11813_v49  ;;  %v17096_v60 = vld [vmem:[#allocation51_spill] sm:$0xff]  ;;  %v3188_v61 = vmin.f32 %v2868_v27, 80.0 }
 0x2e7   : > { %v10252_v45 = vpop.eup %10251  ;;  %10269 = vrcp.f32 %v4118_v42  ;;  %v4119_v17 = vadd.f32 1.0, %v10250_v3  ;;  %v3816_v63 = vmul.f32 1.442695, %v3186_v18  ;;  %v13299_v13 = vadd.f32 %v17096_v60, %v11816_v62  ;;  %v13306_v18 = vpop.f32.mrb[117].mxu0 }
 0x2e8   : > { %v10254_v25 = vpop.eup %10253  ;;  %10271 = vrcp.f32 %v4117_v46  ;;  %v4126_v28 = vadd.f32 1.0, %v10252_v45  ;;  %v2867_v3 = vsub.f32 0.0, %v13293_v12  ;;  %v17097_v46 = vld [vmem:[#allocation16_spill] sm:$0xff]  ;;  %v3820_v60 = vmul.f32 1.442695, %v3188_v61 }
 0x2e9   : > { %v10256_v56 = vpop.eup %10255  ;;  %10273 = vrcp.f32 %v4119_v17  ;;  %v4128_v42 = vadd.f32 1.0, %v10254_v25  ;;  %v2869_v4 = vsub.f32 0.0, %v13299_v13  ;;  %v16774_v45 = vsub.s32 4, %v17097_v46  ;;  %v13308_v17 = vpop.f32.mrb[86].mxu1 }
 0x2ea   : > { %v10258_v49 = vpop.eup %10257  ;;  %10275 = vrcp.f32 %v4126_v28  ;;  %v4127_v35 = vadd.f32 1.0, %v10256_v56  ;;  %v3187_v31 = vmin.f32 %v2867_v3, 80.0  ;;  %v11079_v28 = vld [vmem:[%s16701_s4] sm:$0xff]  ;;  %v4909_v3 = vpack.c.bf16 %v13137_v9, %v13119_v40 }
 0x2eb   : > { %10277 = vrcp.f32 %v4128_v42  ;;  %v4129_v62 = vadd.f32 1.0, %v10258_v49  ;;  %v10260_v27 = vpop.eup %10259  ;;  %v3189_v25 = vmin.f32 %v2869_v4, 80.0  ;;  %v13315_v56 = vrot.slane %v11079_v28, %v16774_v45  ;;  %v13327_v45 = vpop.f32.mrb[118].mxu0 }
 0x2ec   : > { %10279 = vrcp.f32 %v4127_v35  ;;  %v4136_v42 = vadd.f32 1.0, %v10260_v27  ;;  %v3818_v61 = vmul.f32 1.442695, %v3187_v31  ;;  %v17099_v31 = vsub.s32 6, %v17097_v46  ;;  %4980 = vmatprep.subr.bf16.mxu0 %v4909_v3 }
 0x2ed   : > { %v10262_v7 = vpop.eup %10261  ;;  %10281 = vrcp.f32 %v4129_v62  ;;  %v3822_v35 = vmul.f32 1.442695, %v3189_v25  ;;  %v13325_v15 = vadd.f32 %v12665_v37, %v13315_v56  ;;  %v16775_v9 = vsub.s32 5, %v17097_v46  ;;  %v13344_v25 = vpop.f32.mrb[119].mxu0 }
 0x2ee   : > { %v10264_v49 = vpop.eup %10263  ;;  %v13321_v4 = vmul.f32 %v10262_v7, %v13147_v2  ;;  %10283 = vpow2.f32 %v3798_v47  ;;  %v13334_v40 = vrot.slane %v11079_v28, %v17099_v31  ;;  %v13337_v2 = vpop.f32.mrb[87].mxu1  ;;  %17102 = vst [vmem:[#allocation90_spill] sm:$0xff] %v13344_v25 }
 0x2ef   : > { %v10266_v19 = vpop.eup %10265  ;;  %v13330_v62 = vmul.f32 %v10264_v49, %v13154_v30  ;;  %10285 = vrcp.f32 %v4136_v42  ;;  %17100 = vst [vmem:[#allocation88_spill] sm:$0xff] %v13337_v2  ;;  %v2560_v37 = vsub.f32 0.0, %v13325_v15  ;;  %v17101_v30 = vpack.c.bf16 %v13125_v48, %v13109_v23  ;;  %v17103_v49 = vld [vmem:[#allocation21_spill] sm:$0xff] }
 0x2f0   : > { %v10268_v7 = vpop.eup %10267  ;;  %v4138_v47 = vadd.f32 1.0, %v10266_v19  ;;  %10287 = vpow2.f32 %v3802_v20  ;;  %v13351_v31 = vadd.f32 %v17103_v49, %v13334_v40  ;;  %v13355_v19 = vrot.slane %v11079_v28, %v16775_v9  ;;  %v17106_v49 = vld [vmem:[#allocation52_spill] sm:$0xff] }
 0x2f1   : > { %17098 = vst [vmem:[#allocation87_spill] sm:$0xff] %v13330_v62  ;;  %4981 = vmatpush1.bf16.msra.mxu0 %v17101_v30  ;;  %v10270_v42 = vpop.eup %10269  ;;  %v13347_v3 = vmul.f32 %v10268_v7, %v13159_v8  ;;  %10289 = vpow2.f32 %v3816_v63  ;;  %v2880_v23 = vmin.f32 %v2560_v37, 80.0  ;;  %v17105_v48 = vsub.s32 7, %v17097_v46  ;;  %v13372_v62 = vpop.f32.mrb[88].mxu1  ;;  %v17109_v37 = vld [vmem:[#allocation53_spill] sm:$0xff] }
 0x2f2   : > { %v10272_v20 = vpop.eup %10271  ;;  %v13358_v27 = vmul.f32 %v10270_v42, %v13167_v38  ;;  %10291 = vrcp.f32 %v4138_v47  ;;  %v2562_v7 = vsub.f32 0.0, %v13351_v31  ;;  %v13370_v9 = vadd.f32 %v17106_v49, %v13355_v19  ;;  %17107 = vst [vmem:[#allocation92_spill] sm:$0xff] %v13372_v62  ;;  %v13385_v49 = vpop.f32.mrb[120].mxu0 }
 0x2f3   : > { %v13362_v30 = vrot.slane %v11079_v28, %v17105_v48  ;;  %v10274_v8 = vpop.eup %10273  ;;  %v13365_v63 = vmul.f32 %v10272_v20, %v13175_v11  ;;  %10293 = vpow2.f32 %v3820_v60  ;;  %v3204_v28 = vmul.f32 1.442695, %v2880_v23  ;;  %17110 = vst [vmem:[#allocation51_spill] sm:$0xff] %v13385_v49  ;;  %v17112_v23 = vld [vmem:[#allocation93_spill] sm:$0xff] }
 0x2f4   : > { %17104 = vst [vmem:[#allocation91_spill] sm:$0xff] %v13358_v27  ;;  %v10276_v38 = vpop.eup %10275  ;;  %v13375_v47 = vmul.f32 %v10274_v8, %v13179_v44  ;;  %10295 = vpow2.f32 %v3818_v61  ;;  %v2882_v20 = vmin.f32 %v2562_v7, 80.0  ;;  %v2561_v48 = vsub.f32 0.0, %v13370_v9 }
 0x2f5   : > { %v13379_v42 = vadd.f32 %v17109_v37, %v13362_v30  ;;  %v10278_v11 = vpop.eup %10277  ;;  %v13382_v60 = vmul.f32 %v10276_v38, %v13183_v41  ;;  %10297 = vpow2.f32 %v3822_v35  ;;  %v13393_v8 = vadd.f32 %v17112_v23, %v13315_v56  ;;  %v17114_v41 = vld [vmem:[#allocation55_spill] sm:$0xff] }
 0x2f6   : > { %17108 = vst [vmem:[#allocation11_spill] sm:$0xff] %v13375_v47  ;;  %v10280_v46 = vpop.eup %10279  ;;  %v13388_v44 = vmul.f32 %v10278_v11, %v13191_v58  ;;  %10299 = vpow2.f32 %v3204_v28  ;;  %v3208_v7 = vmul.f32 1.442695, %v2882_v20  ;;  %v2881_v38 = vmin.f32 %v2561_v48, 80.0 }
 0x2f7   : > { %v2563_v61 = vsub.f32 0.0, %v13379_v42  ;;  %v10282_v37 = vpop.eup %10281  ;;  %v13398_v35 = vmul.f32 %v10280_v46, %v13198_v1  ;;  %v2570_v23 = vsub.f32 0.0, %v13393_v8  ;;  %v13408_v1 = vadd.f32 %v17114_v41, %v13334_v40  ;;  %v13422_v41 = vpop.f32.mrb[89].mxu1 }
 0x2f8   : > { %17111 = vst [vmem:[#allocation21_spill] sm:$0xff] %v13388_v44  ;;  %v10284_v47 = vpop.eup %10283  ;;  %v13403_v28 = vmul.f32 %v10282_v37, %v13212_v16  ;;  %10301 = vpow2.f32 %v3208_v7  ;;  %v3206_v59 = vmul.f32 1.442695, %v2881_v38  ;;  %v17115_v16 = vld [vmem:[#allocation56_spill] sm:$0xff]  ;;  %17117 = vst [vmem:[#allocation53_spill] sm:$0xff] %v13422_v41 }
 0x2f9   : > { %v2883_v11 = vmin.f32 %v2563_v61, 80.0  ;;  %v10286_v32 = vpop.eup %10285  ;;  %v4137_v26 = vadd.f32 1.0, %v10284_v47  ;;  %v2890_v58 = vmin.f32 %v2570_v23, 80.0  ;;  %v13415_v37 = vadd.f32 %v17115_v16, %v13355_v19  ;;  %v17116_v7 = vld [vmem:[#allocation40_spill] sm:$0xff]  ;;  %v13425_v23 = vpop.f32.mrb[121].mxu0 }
 0x2fa   : > { %17113 = vst [vmem:[#allocation52_spill] sm:$0xff] %v13403_v28  ;;  %v10288_v46 = vpop.eup %10287  ;;  %v13411_v20 = vmul.f32 %v10286_v32, %v13216_v24  ;;  %v2572_v47 = vsub.f32 0.0, %v13408_v1  ;;  %v13420_v38 = vadd.f32 %v17116_v7, %v13362_v30  ;;  %17118 = vst [vmem:[#allocation93_spill] sm:$0xff] %v13425_v23  ;;  %v13442_v25 = vpop.f32.mrb[122].mxu0 }
 0x2fb   : > { %v3210_v48 = vmul.f32 1.442695, %v2883_v11  ;;  %v10290_v61 = vpop.eup %10289  ;;  %10303 = vrcp.f32 %v4137_v26  ;;  %v4139_v27 = vadd.f32 1.0, %v10288_v46  ;;  %v3224_v24 = vmul.f32 1.442695, %v2890_v58  ;;  %v13435_v58 = vpop.f32.mrb[90].mxu1 }
 0x2fc   : > { %v10292_v44 = vpop.eup %10291  ;;  %v4146_v32 = vadd.f32 1.0, %v10290_v61  ;;  %10305 = vpow2.f32 %v3206_v59  ;;  %v2571_v11 = vsub.f32 0.0, %v13415_v37  ;;  %v2892_v46 = vmin.f32 %v2572_v47, 80.0  ;;  %v17120_v61 = vld [vmem:[#allocation58_spill] sm:$0xff]  ;;  %17121 = vst [vmem:[#allocation56_spill] sm:$0xff] %v13435_v58  ;;  %17123 = vst [vmem:[#allocation40_spill] sm:$0xff] %v13442_v25 }
 0x2fd   : > { %v10294_v16 = vpop.eup %10293  ;;  %v13428_v26 = vmul.f32 %v10292_v44, %v13223_v5  ;;  %10307 = vrcp.f32 %v4139_v27  ;;  %v2573_v28 = vsub.f32 0.0, %v13420_v38  ;;  %v13433_v59 = vadd.f32 %v17120_v61, %v13315_v56 }
 0x2fe   : > { %v10296_v7 = vpop.eup %10295  ;;  %10309 = vrcp.f32 %v4146_v32  ;;  %v4148_v0 = vadd.f32 1.0, %v10294_v16  ;;  %v2891_v22 = vmin.f32 %v2571_v11, 80.0  ;;  %v3228_v49 = vmul.f32 1.442695, %v2892_v46  ;;  %v17122_v16 = vld [vmem:[#allocation12_spill] sm:$0xff] }
 0x2ff   : > { %17119 = vst [vmem:[#allocation55_spill] sm:$0xff] %v13428_v26  ;;  %v10298_v41 = vpop.eup %10297  ;;  %v4147_v23 = vadd.f32 1.0, %v10296_v7  ;;  %10311 = vpow2.f32 %v3210_v48  ;;  %v2893_v5 = vmin.f32 %v2573_v28, 80.0  ;;  %v2580_v62 = vsub.f32 0.0, %v13433_v59 }
 0x300   : > { %v10300_v44 = vpop.eup %10299  ;;  %10313 = vrcp.f32 %v4148_v0  ;;  %v4149_v27 = vadd.f32 1.0, %v10298_v41  ;;  %v3226_v47 = vmul.f32 1.442695, %v2891_v22  ;;  %v13440_v61 = vadd.f32 %v17122_v16, %v13334_v40  ;;  %v17124_v0 = vld [vmem:[#allocation59_spill] sm:$0xff] }
 0x301   : > { %10315 = vrcp.f32 %v4147_v23  ;;  %v3840_v32 = vadd.f32 1.0, %v10300_v44  ;;  %v3230_v11 = vmul.f32 1.442695, %v2893_v5  ;;  %v2900_v7 = vmin.f32 %v2580_v62, 80.0  ;;  %v17125_v23 = vld [vmem:[#allocation60_spill] sm:$0xff]  ;;  %v17126_v5 = vld [vmem:[#allocation26_spill] sm:$0xff] }
 0x302   : > { %10317 = vrcp.f32 %v4149_v27  ;;  %v4919_v28 = vpack.c.bf16 %v13228_v43, %v13201_v29  ;;  %v13448_v48 = vadd.f32 %v17124_v0, %v13355_v19  ;;  %v10302_v22 = vpop.eup %10301  ;;  %v2582_v41 = vsub.f32 0.0, %v13440_v61  ;;  %v13459_v62 = vpop.f32.mrb[91].mxu1 }
 0x303   : > { %10319 = vrcp.f32 %v3840_v32  ;;  %v13453_v46 = vadd.f32 %v17125_v23, %v13362_v30  ;;  %v13457_v44 = vadd.f32 %v17126_v5, %v13315_v56  ;;  %17127 = vst [vmem:[#allocation58_spill] sm:$0xff] %v13459_v62  ;;  %v13461_v27 = vpop.f32.mrb[123].mxu0  ;;  %v3842_v29 = vadd.f32 1.0, %v10302_v22  ;;  %v13464_v16 = vpop.f32.mrb[92].mxu1  ;;  %v17132_v22 = vld [vmem:[#allocation95_spill] sm:$0xff] }
 0x304   : > { %17128 = vst [vmem:[#allocation12_spill] sm:$0xff] %v13461_v27  ;;  %10321 = vpow2.f32 %v3224_v24  ;;  %v3244_v43 = vmul.f32 1.442695, %v2900_v7  ;;  %4982 = vmatprep.subr.bf16.mxu0 %v4919_v28  ;;  %v2581_v32 = vsub.f32 0.0, %v13448_v48  ;;  %17129 = vst [vmem:[#allocation59_spill] sm:$0xff] %v13464_v16  ;;  %v2902_v23 = vmin.f32 %v2582_v41, 80.0 }
 0x305   : > { %v10304_v0 = vpop.eup %10303  ;;  %10323 = vpow2.f32 %v3228_v49  ;;  %v2583_v25 = vsub.f32 0.0, %v13453_v46  ;;  %v17130_v5 = vpack.c.bf16 %v13208_v54, %v13150_v10  ;;  %v2590_v62 = vsub.f32 0.0, %v13457_v44  ;;  %v13471_v27 = vpop.f32.mrb[124].mxu0 }
 0x306   : > { %17131 = vst [vmem:[#allocation60_spill] sm:$0xff] %v13471_v27  ;;  %v10306_v24 = vpop.eup %10305  ;;  %v13474_v7 = vmul.f32 %v10304_v0, %v13256_v33  ;;  %10325 = vrcp.f32 %v3842_v29  ;;  %v2901_v28 = vmin.f32 %v2581_v32, 80.0  ;;  %v13478_v49 = vadd.f32 %v17132_v22, %v13334_v40  ;;  %v13480_v41 = vpop.f32.mrb[93].mxu1 }
 0x307   : > { %4983 = vmatpush1.bf16.msra.mxu0 %v17130_v5  ;;  %17133 = vst [vmem:[#allocation26_spill] sm:$0xff] %v13480_v41  ;;  %v10308_v16 = vpop.eup %10307  ;;  %v3841_v58 = vadd.f32 1.0, %v10306_v24  ;;  %10327 = vpow2.f32 %v3226_v47  ;;  %v3248_v10 = vmul.f32 1.442695, %v2902_v23  ;;  %v2903_v54 = vmin.f32 %v2583_v25, 80.0  ;;  %v17135_v25 = vld [vmem:[#allocation61_spill] sm:$0xff] }
 0x308   : > { %v10310_v5 = vpop.eup %10309  ;;  %v13483_v27 = vmul.f32 %v10308_v16, %v13263_v52  ;;  %10329 = vpow2.f32 %v3230_v11  ;;  %v3246_v33 = vmul.f32 1.442695, %v2901_v28  ;;  %v2910_v0 = vmin.f32 %v2590_v62, 80.0  ;;  %v13493_v52 = vpop.f32.mrb[125].mxu0 }
 0x309   : > { %v10312_v29 = vpop.eup %10311  ;;  %v13486_v32 = vmul.f32 %v10310_v5, %v13271_v34  ;;  %10331 = vrcp.f32 %v3841_v58  ;;  %v3250_v22 = vmul.f32 1.442695, %v2903_v54  ;;  %v2592_v41 = vsub.f32 0.0, %v13478_v49  ;;  %v17137_v54 = vld [vmem:[#allocation15_spill] sm:$0xff] }
 0x30a   : > { %17134 = vst [vmem:[#allocation95_spill] sm:$0xff] %v13483_v27  ;;  %v10314_v2 = vpop.eup %10313  ;;  %v3843_v24 = vadd.f32 1.0, %v10312_v29  ;;  %10333 = vpow2.f32 %v3244_v43  ;;  %v3264_v47 = vmul.f32 1.442695, %v2910_v0  ;;  %v13491_v23 = vadd.f32 %v17135_v25, %v13355_v19  ;;  %v17140_v29 = vld [vmem:[#allocation14_spill] sm:$0xff] }
 0x30b   : > { %v10316_v11 = vpop.eup %10315  ;;  %v13498_v34 = vmul.f32 %v10314_v2, %v13284_v14  ;;  %10335 = vpow2.f32 %v3248_v10  ;;  %v2912_v58 = vmin.f32 %v2592_v41, 80.0  ;;  %v13506_v5 = vadd.f32 %v17137_v54, %v13362_v30  ;;  %v13513_v41 = vpop.f32.mrb[94].mxu1 }
 0x30c   : > { %v10318_v16 = vpop.eup %10317  ;;  %v13501_v28 = vmul.f32 %v10316_v11, %v13293_v12  ;;  %10337 = vrcp.f32 %v3843_v24  ;;  %v2591_v43 = vsub.f32 0.0, %v13491_v23  ;;  %17139 = vst [vmem:[#allocation106_spill] sm:$0xff] %v13513_v41  ;;  %v13521_v62 = vadd.f32 %v17140_v29, %v13315_v56  ;;  %v13532_v29 = vpop.f32.mrb[126].mxu0  ;;  %v17156_v41 = vld [vmem:[#allocation33_spill] sm:$0xff] }
 0x30d   : > { %17136 = vst [vmem:[#allocation61_spill] sm:$0xff] %v13498_v34  ;;  %v10320_v0 = vpop.eup %10319  ;;  %v13511_v14 = vmul.f32 %v10318_v16, %v13299_v13  ;;  %10339 = vpow2.f32 %v3246_v33  ;;  %v3268_v2 = vmul.f32 1.442695, %v2912_v58  ;;  %v2593_v25 = vsub.f32 0.0, %v13506_v5  ;;  %v17141_v13 = vld [vmem:[#allocation96_spill] sm:$0xff] }
 0x30e   : > { %v10322_v12 = vpop.eup %10321  ;;  %v13516_v10 = vmul.f32 %v10320_v0, %v13325_v15  ;;  %10341 = vpow2.f32 %v3250_v22  ;;  %v2911_v24 = vmin.f32 %v2591_v43, 80.0  ;;  %v13525_v33 = vadd.f32 %v17141_v13, %v13334_v40  ;;  %17143 = vst [vmem:[#allocation96_spill] sm:$0xff] %v13532_v29 }
 0x30f   : > { %17138 = vst [vmem:[#allocation15_spill] sm:$0xff] %v13511_v14  ;;  %v10324_v11 = vpop.eup %10323  ;;  %v3850_v54 = vadd.f32 1.0, %v10322_v12  ;;  %10343 = vpow2.f32 %v3264_v47  ;;  %v2913_v0 = vmin.f32 %v2593_v25, 80.0  ;;  %v2600_v47 = vsub.f32 0.0, %v13521_v62  ;;  %v17144_v14 = vld [vmem:[#allocation66_spill] sm:$0xff] }
 0x310   : > { %v10326_v58 = vpop.eup %10325  ;;  %v3852_v16 = vadd.f32 1.0, %v10324_v11  ;;  %10345 = vpow2.f32 %v3268_v2  ;;  %v3266_v15 = vmul.f32 1.442695, %v2911_v24  ;;  %v2602_v12 = vsub.f32 0.0, %v13525_v33 }
 0x311   : > { %v10328_v22 = vpop.eup %10327  ;;  %v13528_v43 = vmul.f32 %v10326_v58, %v13351_v31  ;;  %10347 = vrcp.f32 %v3850_v54  ;;  %v3270_v34 = vmul.f32 1.442695, %v2913_v0  ;;  %v4929_v2 = vpack.c.bf16 %v13321_v4, %v13249_v53 }
 0x312   : > { %v10330_v26 = vpop.eup %10329  ;;  %10349 = vrcp.f32 %v3852_v16  ;;  %v3851_v13 = vadd.f32 1.0, %v10328_v22  ;;  %v2920_v11 = vmin.f32 %v2600_v47, 80.0  ;;  %v2922_v31 = vmin.f32 %v2602_v12, 80.0  ;;  %v17145_v16 = vld [vmem:[#allocation67_spill] sm:$0xff] }
 0x313   : > { %17142 = vst [vmem:[#allocation14_spill] sm:$0xff] %v13528_v43  ;;  %v10332_v24 = vpop.eup %10331  ;;  %v3853_v25 = vadd.f32 1.0, %v10330_v26  ;;  %10351 = vpow2.f32 %v3266_v15  ;;  %4984 = vmatprep.subr.bf16.mxu0 %v4929_v2  ;;  %v13541_v27 = vadd.f32 %v17144_v14, %v13355_v19  ;;  %v13545_v0 = vadd.f32 %v17145_v16, %v13362_v30  ;;  %v13554_v2 = vpop.f32.mrb[127].mxu0 }
 0x314   : > { %v10334_v58 = vpop.eup %10333  ;;  %v13537_v54 = vmul.f32 %v10332_v24, %v13370_v9  ;;  %10353 = vrcp.f32 %v3851_v13  ;;  %v3284_v26 = vmul.f32 1.442695, %v2920_v11  ;;  %v3288_v15 = vmul.f32 1.442695, %v2922_v31  ;;  %v13552_v13 = vpop.f32.mrb[95].mxu1  ;;  %17148 = vst [vmem:[#allocation67_spill] sm:$0xff] %v13554_v2 }
 0x315   : > { %v10336_v53 = vpop.eup %10335  ;;  %10355 = vrcp.f32 %v3853_v25  ;;  %v3860_v4 = vadd.f32 1.0, %v10334_v58  ;;  %v17146_v22 = vpack.c.bf16 %v13259_v50, %v13237_v6  ;;  %v2601_v12 = vsub.f32 0.0, %v13541_v27  ;;  %17147 = vst [vmem:[#allocation66_spill] sm:$0xff] %v13552_v13  ;;  %v17150_v11 = vld [vmem:[#allocation68_spill] sm:$0xff]  ;;  %v17151_v50 = vld [vmem:[#allocation98_spill] sm:$0xff]  ;;  %v13567_v31 = vpop.f32.mrb[96].mxu1 }
 0x316   : > { %v10338_v9 = vpop.eup %10337  ;;  %v3862_v47 = vadd.f32 1.0, %v10336_v53  ;;  %10357 = vpow2.f32 %v3270_v34  ;;  %v2603_v14 = vsub.f32 0.0, %v13545_v0  ;;  %v13561_v6 = vadd.f32 %v17150_v11, %v13315_v56  ;;  %17152 = vst [vmem:[#allocation68_spill] sm:$0xff] %v13567_v31  ;;  %v13569_v2 = vpop.f32.mrb[128].mxu0 }
 0x317   : > { %4985 = vmatpush1.bf16.msra.mxu0 %v17146_v22  ;;  %v10340_v24 = vpop.eup %10339  ;;  %v13557_v25 = vmul.f32 %v10338_v9, %v13379_v42  ;;  %10359 = vrcp.f32 %v3860_v4  ;;  %v13565_v34 = vadd.f32 %v17151_v50, %v13334_v40  ;;  %v2921_v53 = vmin.f32 %v2601_v12, 80.0  ;;  %17153 = vst [vmem:[#allocation98_spill] sm:$0xff] %v13569_v2  ;;  %v13575_v2 = vpop.f32.mrb[129].mxu0 }
 0x318   : > { %v10342_v58 = vpop.eup %10341  ;;  %10361 = vrcp.f32 %v3862_v47  ;;  %v3861_v16 = vadd.f32 1.0, %v10340_v24  ;;  %v2923_v22 = vmin.f32 %v2603_v14, 80.0  ;;  %v2610_v4 = vsub.f32 0.0, %v13561_v6  ;;  %17155 = vst [vmem:[#allocation109_spill] sm:$0xff] %v13575_v2 }
 0x319   : > { %17149 = vst [vmem:[#allocation107_spill] sm:$0xff] %v13557_v25  ;;  %v10344_v42 = vpop.eup %10343  ;;  %v3863_v9 = vadd.f32 1.0, %v10342_v58  ;;  %10363 = vpow2.f32 %v3284_v26  ;;  %v2612_v11 = vsub.f32 0.0, %v13565_v34  ;;  %v13573_v25 = vpop.f32.mrb[97].mxu1  ;;  %v3286_v31 = vmul.f32 1.442695, %v2921_v53 }
 0x31a   : > { %17154 = vst [vmem:[#allocation108_spill] sm:$0xff] %v13573_v25  ;;  %v10346_v50 = vpop.eup %10345  ;;  %10365 = vrcp.f32 %v3861_v16  ;;  %v3870_v13 = vadd.f32 1.0, %v10344_v42  ;;  %v3290_v29 = vmul.f32 1.442695, %v2923_v22  ;;  %v2930_v14 = vmin.f32 %v2610_v4, 80.0  ;;  %v17157_v16 = vld [vmem:[#allocation99_spill] sm:$0xff] }
 0x31b   : > { %v10348_v47 = vpop.eup %10347  ;;  %10367 = vrcp.f32 %v3863_v9  ;;  %v3872_v12 = vadd.f32 1.0, %v10346_v50  ;;  %v2932_v24 = vmin.f32 %v2612_v11, 80.0  ;;  %v13582_v25 = vadd.f32 %v17156_v41, %v13355_v19  ;;  %v13591_v11 = vpop.f32.mrb[98].mxu1 }
 0x31c   : > { %v10350_v58 = vpop.eup %10349  ;;  %v13578_v26 = vmul.f32 %v10348_v47, %v13393_v8  ;;  %10369 = vrcp.f32 %v3870_v13  ;;  %v13586_v53 = vadd.f32 %v17157_v16, %v13362_v30  ;;  %v3304_v9 = vmul.f32 1.442695, %v2930_v14  ;;  %17159 = vst [vmem:[#allocation99_spill] sm:$0xff] %v13591_v11  ;;  %v13609_v13 = vpop.f32.mrb[130].mxu0 }
 0x31d   : > { %v10352_v22 = vpop.eup %10351  ;;  %v13589_v42 = vmul.f32 %v10350_v58, %v13408_v1  ;;  %10371 = vrcp.f32 %v3872_v12  ;;  %v3308_v4 = vmul.f32 1.442695, %v2932_v24  ;;  %v2611_v41 = vsub.f32 0.0, %v13582_v25 }
 0x31e   : > { %v10354_v8 = vpop.eup %10353  ;;  %v3871_v50 = vadd.f32 1.0, %v10352_v22  ;;  %10373 = vpow2.f32 %v3288_v15  ;;  %v2613_v12 = vsub.f32 0.0, %v13586_v53  ;;  %v17161_v15 = vld [vmem:[#allocation69_spill] sm:$0xff] }
 0x31f   : > { %17158 = vst [vmem:[#allocation33_spill] sm:$0xff] %v13589_v42  ;;  %v10356_v47 = vpop.eup %10355  ;;  %v13599_v1 = vmul.f32 %v10354_v8, %v13415_v37  ;;  %10375 = vpow2.f32 %v3286_v31  ;;  %v2931_v58 = vmin.f32 %v2611_v41, 80.0  ;;  %v13607_v22 = vadd.f32 %v17161_v15, %v13315_v56  ;;  %17162 = vst [vmem:[#allocation69_spill] sm:$0xff] %v13609_v13  ;;  %v17163_v31 = vld [vmem:[#allocation70_spill] sm:$0xff]  ;;  %v17183_v13 = vld [vmem:[#allocation76_spill] sm:$0xff] }
 0x320   : > { %v10358_v14 = vpop.eup %10357  ;;  %v13603_v24 = vmul.f32 %v10356_v47, %v13420_v38  ;;  %10377 = vrcp.f32 %v3871_v50  ;;  %v2933_v37 = vmin.f32 %v2613_v12, 80.0  ;;  %v13613_v8 = vadd.f32 %v17163_v31, %v13334_v40 }
 0x321   : > { %v10360_v11 = vpop.eup %10359  ;;  %v3873_v16 = vadd.f32 1.0, %v10358_v14  ;;  %10379 = vpow2.f32 %v3290_v29  ;;  %v3306_v50 = vmul.f32 1.442695, %v2931_v58  ;;  %v2620_v41 = vsub.f32 0.0, %v13607_v22 }
 0x322   : > { %17160 = vst [vmem:[#allocation110_spill] sm:$0xff] %v13603_v24  ;;  %v10362_v43 = vpop.eup %10361  ;;  %v13616_v38 = vmul.f32 %v10360_v11, %v13433_v59  ;;  %10381 = vpow2.f32 %v3304_v9  ;;  %v3310_v14 = vmul.f32 1.442695, %v2933_v37  ;;  %v2622_v29 = vsub.f32 0.0, %v13613_v8 }
 0x323   : > { %v10364_v47 = vpop.eup %10363  ;;  %v13620_v15 = vmul.f32 %v10362_v43, %v13440_v61  ;;  %10383 = vrcp.f32 %v3873_v16  ;;  %v2940_v31 = vmin.f32 %v2620_v41, 80.0  ;;  %v4939_v59 = vpack.c.bf16 %v13398_v35, %v13365_v63  ;;  %v17165_v61 = vld [vmem:[#allocation73_spill] sm:$0xff]  ;;  %v17167_v41 = vld [vmem:[#allocation35_spill] sm:$0xff]  ;;  %v13639_v35 = vpop.f32.mrb[99].mxu1 }
 0x324   : > { %v10366_v12 = vpop.eup %10365  ;;  %v3880_v42 = vadd.f32 1.0, %v10364_v47  ;;  %10385 = vpow2.f32 %v3308_v4  ;;  %v2942_v58 = vmin.f32 %v2622_v29, 80.0  ;;  %v13630_v43 = vadd.f32 %v17165_v61, %v13355_v19  ;;  %17168 = vst [vmem:[#allocation35_spill] sm:$0xff] %v13639_v35 }
 0x325   : > { %17164 = vst [vmem:[#allocation70_spill] sm:$0xff] %v13620_v15  ;;  %v10368_v11 = vpop.eup %10367  ;;  %v13626_v9 = vmul.f32 %v10366_v12, %v13448_v48  ;;  %10387 = vpow2.f32 %v3306_v50  ;;  %v3324_v4 = vmul.f32 1.442695, %v2940_v31  ;;  %4986 = vmatprep.subr.bf16.mxu0 %v4939_v59  ;;  %v13637_v63 = vadd.f32 %v17167_v41, %v13362_v30 }
 0x326   : > { %v10370_v16 = vpop.eup %10369  ;;  %v13633_v37 = vmul.f32 %v10368_v11, %v13453_v46  ;;  %10389 = vrcp.f32 %v3880_v42  ;;  %v3328_v47 = vmul.f32 1.442695, %v2942_v58  ;;  %v2621_v29 = vsub.f32 0.0, %v13630_v43  ;;  %v13648_v42 = vpop.f32.mrb[131].mxu0 }
 0x327   : > { %v10372_v48 = vpop.eup %10371  ;;  %v13642_v50 = vmul.f32 %v10370_v16, %v13457_v44  ;;  %10391 = vpow2.f32 %v3310_v14  ;;  %v17169_v46 = vpack.c.bf16 %v13382_v60, %v13347_v3  ;;  %17170 = vst [vmem:[#allocation111_spill] sm:$0xff] %v13648_v42  ;;  %v2623_v59 = vsub.f32 0.0, %v13637_v63  ;;  %v17172_v44 = vld [vmem:[#allocation7_spill] sm:$0xff]  ;;  %v13660_v60 = vpop.f32.mrb[100].mxu1 }
 0x328   : > { %17166 = vst [vmem:[#allocation73_spill] sm:$0xff] %v13633_v37  ;;  %v10374_v12 = vpop.eup %10373  ;;  %v13651_v31 = vmul.f32 %v10372_v48, %v13478_v49  ;;  %10393 = vpow2.f32 %v3324_v4  ;;  %v13656_v11 = vadd.f32 %v17172_v44, %v13315_v56  ;;  %v2941_v3 = vmin.f32 %v2621_v29, 80.0  ;;  %17173 = vst [vmem:[#allocation7_spill] sm:$0xff] %v13660_v60  ;;  %v13672_v49 = vpop.f32.mrb[132].mxu0 }
 0x329   : > { %4987 = vmatpush1.bf16.msra.mxu0 %v17169_v46  ;;  %v10376_v14 = vpop.eup %10375  ;;  %v3882_v61 = vadd.f32 1.0, %v10374_v12  ;;  %10395 = vpow2.f32 %v3328_v47  ;;  %v2943_v41 = vmin.f32 %v2623_v59, 80.0  ;;  %v17174_v12 = vld [vmem:[#allocation101_spill] sm:$0xff]  ;;  %v13706_v2 = vadd.f32 %v17183_v13, %v13334_v40 }
 0x32a   : > { %17171 = vst [vmem:[#allocation112_spill] sm:$0xff] %v13651_v31  ;;  %v10378_v16 = vpop.eup %10377  ;;  %v3881_v4 = vadd.f32 1.0, %v10376_v14  ;;  %v2630_v48 = vsub.f32 0.0, %v13656_v11  ;;  %v3326_v37 = vmul.f32 1.442695, %v2941_v3  ;;  %v13670_v47 = vadd.f32 %v17174_v12, %v13334_v40  ;;  %17175 = vst [vmem:[#allocation101_spill] sm:$0xff] %v13672_v49 }
 0x32b   : > { %v10380_v46 = vpop.eup %10379  ;;  %v13666_v44 = vmul.f32 %v10378_v16, %v13491_v23  ;;  %10397 = vrcp.f32 %v3882_v61  ;;  %v3330_v24 = vmul.f32 1.442695, %v2943_v41  ;;  %v17176_v23 = vld [vmem:[#allocation39_spill] sm:$0xff]  ;;  %v13679_v3 = vpop.f32.mrb[101].mxu1  ;;  %v17179_v41 = vld [vmem:[#allocation74_spill] sm:$0xff] }
 0x32c   : > { %v10382_v29 = vpop.eup %10381  ;;  %10399 = vrcp.f32 %v3881_v4  ;;  %v3883_v58 = vadd.f32 1.0, %v10380_v46  ;;  %v2950_v60 = vmin.f32 %v2630_v48, 80.0  ;;  %v2632_v15 = vsub.f32 0.0, %v13670_v47  ;;  %17177 = vst [vmem:[#allocation39_spill] sm:$0xff] %v13679_v3  ;;  %v13688_v46 = vpop.f32.mrb[133].mxu0 }
 0x32d   : > { %v10384_v59 = vpop.eup %10383  ;;  %v3890_v14 = vadd.f32 1.0, %v10382_v29  ;;  %10401 = vpow2.f32 %v3326_v37  ;;  %v13677_v61 = vadd.f32 %v17176_v23, %v13355_v19  ;;  %v13686_v48 = vadd.f32 %v17179_v41, %v13362_v30  ;;  %17180 = vst [vmem:[#allocation74_spill] sm:$0xff] %v13688_v46  ;;  %v13691_v49 = vpop.f32.mrb[102].mxu1 }
 0x32e   : > { %v10386_v16 = vpop.eup %10385  ;;  %v13682_v12 = vmul.f32 %v10384_v59, %v13506_v5  ;;  %10403 = vrcp.f32 %v3883_v58  ;;  %v3344_v4 = vmul.f32 1.442695, %v2950_v60  ;;  %v2952_v31 = vmin.f32 %v2632_v15, 80.0  ;;  %17181 = vst [vmem:[#allocation114_spill] sm:$0xff] %v13691_v49  ;;  %v17182_v58 = vld [vmem:[#allocation75_spill] sm:$0xff] }
 0x32f   : > { %v10388_v37 = vpop.eup %10387  ;;  %10405 = vrcp.f32 %v3890_v14  ;;  %v3892_v29 = vadd.f32 1.0, %v10386_v16  ;;  %v2631_v23 = vsub.f32 0.0, %v13677_v61  ;;  %v2633_v5 = vsub.f32 0.0, %v13686_v48 }
 0x330   : > { %17178 = vst [vmem:[#allocation113_spill] sm:$0xff] %v13682_v12  ;;  %v10390_v3 = vpop.eup %10389  ;;  %v3891_v42 = vadd.f32 1.0, %v10388_v37  ;;  %10407 = vpow2.f32 %v3330_v24  ;;  %v13696_v60 = vadd.f32 %v17182_v58, %v13315_v56  ;;  %v3348_v14 = vmul.f32 1.442695, %v2952_v31  ;;  %v13702_v24 = vpop.f32.mrb[134].mxu0 }
 0x331   : > { %v10392_v59 = vpop.eup %10391  ;;  %v13699_v41 = vmul.f32 %v10390_v3, %v13521_v62  ;;  %10409 = vrcp.f32 %v3892_v29  ;;  %v2951_v15 = vmin.f32 %v2631_v23, 80.0  ;;  %v2953_v49 = vmin.f32 %v2633_v5, 80.0  ;;  %v13708_v29 = vpop.f32.mrb[103].mxu1 }
 0x332   : > { %v10394_v16 = vpop.eup %10393  ;;  %10411 = vrcp.f32 %v3891_v42  ;;  %v3893_v12 = vadd.f32 1.0, %v10392_v59  ;;  %v2640_v37 = vsub.f32 0.0, %v13696_v60  ;;  %v13710_v42 = vpop.f32.mrb[135].mxu0  ;;  %v2642_v5 = vsub.f32 0.0, %v13706_v2  ;;  %v17185_v59 = vld [vmem:[#allocation77_spill] sm:$0xff] }
 0x333   : > { %v10396_v46 = vpop.eup %10395  ;;  %v3900_v35 = vadd.f32 1.0, %v10394_v16  ;;  %10413 = vpow2.f32 %v3344_v4  ;;  %v3346_v58 = vmul.f32 1.442695, %v2951_v15  ;;  %v3350_v31 = vmul.f32 1.442695, %v2953_v49  ;;  %17184 = vst [vmem:[#allocation75_spill] sm:$0xff] %v13710_v42 }
 0x334   : > { %10415 = vrcp.f32 %v3893_v12  ;;  %v3902_v62 = vadd.f32 1.0, %v10396_v46  ;;  %v2960_v3 = vmin.f32 %v2640_v37, 80.0  ;;  %v4949_v4 = vpack.c.bf16 %v13501_v28, %v13474_v7 }
 0x335   : > { %v10398_v23 = vpop.eup %10397  ;;  %10417 = vrcp.f32 %v3900_v35  ;;  %v13717_v15 = vadd.f32 %v17185_v59, %v13355_v19  ;;  %v13724_v46 = vadd.f32 %v13074_v39, %v13362_v30  ;;  %v2962_v7 = vmin.f32 %v2642_v5, 80.0  ;;  %v17188_v39 = vld [vmem:[#allocation41_spill] sm:$0xff] }
 0x336   : > { %v10400_v13 = vpop.eup %10399  ;;  %v13720_v12 = vmul.f32 %v10398_v23, %v13525_v33  ;;  %10419 = vrcp.f32 %v3902_v62  ;;  %v3364_v49 = vmul.f32 1.442695, %v2960_v3  ;;  %4988 = vmatprep.subr.bf16.mxu0 %v4949_v4  ;;  %v17187_v62 = vpack.c.bf16 %v13486_v32, %v13411_v20 }
 0x337   : > { %v10402_v35 = vpop.eup %10401  ;;  %v13727_v16 = vmul.f32 %v10400_v13, %v13541_v27  ;;  %10421 = vpow2.f32 %v3348_v14  ;;  %v2641_v28 = vsub.f32 0.0, %v13717_v15  ;;  %v2643_v33 = vsub.f32 0.0, %v13724_v46  ;;  %v13738_v27 = vpop.f32.mrb[104].mxu1 }
 0x338   : > { %17186 = vst [vmem:[#allocation76_spill] sm:$0xff] %v13720_v12  ;;  %v10404_v37 = vpop.eup %10403  ;;  %v3901_v59 = vadd.f32 1.0, %v10402_v35  ;;  %10423 = vpow2.f32 %v3346_v58  ;;  %4989 = vmatpush1.bf16.msra.mxu0 %v17187_v62  ;;  %v13736_v3 = vadd.f32 %v17188_v39, %v13315_v56  ;;  %17189 = vst [vmem:[#allocation77_spill] sm:$0xff] %v13738_v27  ;;  %v3368_v5 = vmul.f32 1.442695, %v2962_v7  ;;  %v17191_v27 = vld [vmem:[#allocation104_spill] sm:$0xff] }
 0x339   : > { %v10406_v14 = vpop.eup %10405  ;;  %v13741_v23 = vmul.f32 %v10404_v37, %v13545_v0  ;;  %10425 = vpow2.f32 %v3350_v31  ;;  %v2961_v4 = vmin.f32 %v2641_v28, 80.0  ;;  %v2963_v20 = vmin.f32 %v2643_v33, 80.0  ;;  %v17199_v12 = vld [vmem:[#allocation27_spill] sm:$0xff] }
 0x33a   : > { %v10408_v58 = vpop.eup %10407  ;;  %v13744_v13 = vmul.f32 %v10406_v14, %v13561_v6  ;;  %10427 = vrcp.f32 %v3901_v59  ;;  %v2650_v32 = vsub.f32 0.0, %v13736_v3  ;;  %v13749_v42 = vadd.f32 %v17191_v27, %v13334_v40 }
 0x33b   : > { %17190 = vst [vmem:[#allocation41_spill] sm:$0xff] %v13741_v23  ;;  %v10410_v35 = vpop.eup %10409  ;;  %v3903_v62 = vadd.f32 1.0, %v10408_v58  ;;  %10429 = vpow2.f32 %v3364_v49  ;;  %v3366_v39 = vmul.f32 1.442695, %v2961_v4  ;;  %v3370_v6 = vmul.f32 1.442695, %v2963_v20 }
 0x33c   : > { %v10412_v0 = vpop.eup %10411  ;;  %v13754_v7 = vmul.f32 %v10410_v35, %v13565_v34  ;;  %10431 = vpow2.f32 %v3368_v5  ;;  %v2970_v49 = vmin.f32 %v2650_v32, 80.0  ;;  %v2652_v59 = vsub.f32 0.0, %v13749_v42  ;;  %v17193_v4 = vld [vmem:[#allocation25_spill] sm:$0xff]  ;;  %v17194_v58 = vld [vmem:[#allocation28_spill] sm:$0xff]  ;;  %v13764_v35 = vpop.f32.mrb[136].mxu0 }
 0x33d   : > { %v10414_v28 = vpop.eup %10413  ;;  %v13757_v37 = vmul.f32 %v10412_v0, %v13582_v25  ;;  %10433 = vrcp.f32 %v3903_v62  ;;  %v4801_v34 = vpack.c.bf16 %v17194_v58, %v17193_v4  ;;  %v17197_v58 = vld [vmem:[#allocation31_spill] sm:$0xff] }
 0x33e   : > { %17192 = vst [vmem:[#allocation104_spill] sm:$0xff] %v13754_v7  ;;  %v10416_v33 = vpop.eup %10415  ;;  %v3910_v14 = vadd.f32 1.0, %v10414_v28  ;;  %10435 = vpow2.f32 %v3366_v39  ;;  %v3384_v25 = vmul.f32 1.442695, %v2970_v49  ;;  %v2972_v32 = vmin.f32 %v2652_v59, 80.0  ;;  %v13783_v49 = vpop.f32.mrb[105].mxu1 }
 0x33f   : > { %v10418_v5 = vpop.eup %10417  ;;  %v13767_v20 = vmul.f32 %v10416_v33, %v13586_v53  ;;  %10437 = vpow2.f32 %v3370_v6  ;;  %4999 = vmatprep.subr.bf16.mxu0 %v4801_v34  ;;  %v13774_v39 = vadd.f32 %v13246_v51, %v13355_v19  ;;  %v13778_v28 = vadd.f32 %v13276_v55, %v13362_v30  ;;  %v17198_v55 = vld [vmem:[#allocation48_spill] sm:$0xff] }
 0x340   : > { %v10420_v62 = vpop.eup %10419  ;;  %v13770_v0 = vmul.f32 %v10418_v5, %v13607_v22  ;;  %10439 = vrcp.f32 %v3910_v14  ;;  %v3388_v6 = vmul.f32 1.442695, %v2972_v32  ;;  %v16788_v51 = vmov 1065369472   ;;  %v13790_v5 = vpop.f32.mrb[137].mxu0 }
 0x341   : > { %17195 = vst [vmem:[#allocation25_spill] sm:$0xff] %v13767_v20  ;;  %v10422_v4 = vpop.eup %10421  ;;  %v13781_v53 = vmul.f32 %v10420_v62, %v13613_v8  ;;  %10441 = vpow2.f32 %v3384_v25  ;;  %v2651_v33 = vsub.f32 0.0, %v13774_v39  ;;  %v2653_v14 = vsub.f32 0.0, %v13778_v28  ;;  %4990 = vmatprep.mubr.bf16.mxu0 %v16788_v51  ;;  %5072 = vmatprep.mubr.bf16.mxu1 %v16788_v51  ;;  %v13813_v23 = vpop.f32.mrb[138].mxu0 }
 0x342   : > { %v10424_v22 = vpop.eup %10423  ;;  %v3912_v59 = vadd.f32 1.0, %v10422_v4  ;;  %v4811_v34 = vpack.c.bf16 %v17198_v55, %v17197_v58  ;;  %10443 = vpow2.f32 %v3388_v6  ;;  %4991 = vmatmul.mubr.bf16.vlgmr.msra.gmra.mrb[160].mxu0 %v16788_v51  ;;  %v13796_v32 = vadd.f32 %v13288_v21, %v13315_v56  ;;  %v13802_v4 = vpop.f32.mrb[106].mxu1 }
 0x343   : > { %17196 = vst [vmem:[#allocation28_spill] sm:$0xff] %v13781_v53  ;;  %v10426_v8 = vpop.eup %10425  ;;  %v3911_v25 = vadd.f32 1.0, %v10424_v22  ;;  %v13800_v62 = vadd.f32 %v13295_v57, %v13334_v40  ;;  %v2971_v27 = vmin.f32 %v2651_v33, 80.0  ;;  %v2973_v31 = vmin.f32 %v2653_v14, 80.0  ;;  %v17200_v22 = vld [vmem:[#allocation24_spill] sm:$0xff]  ;;  %5031 = vmatprep.mubr.bf16.mxu0 %v16788_v51 }
 0x344   : > { %v10428_v58 = vpop.eup %10427  ;;  %10445 = vrcp.f32 %v3912_v59  ;;  %v3913_v55 = vadd.f32 1.0, %v10426_v8  ;;  %v17201_v6 = vpack.c.bf16 %v17199_v12, %v17200_v22  ;;  %v2660_v57 = vsub.f32 0.0, %v13796_v32 }
 0x345   : > { %v10430_v7 = vpop.eup %10429  ;;  %v13809_v21 = vmul.f32 %v10428_v58, %v13630_v43  ;;  %10447 = vrcp.f32 %v3911_v25  ;;  %v2662_v20 = vsub.f32 0.0, %v13800_v62  ;;  %v3386_v14 = vmul.f32 1.442695, %v2971_v27  ;;  %v17204_v27 = vld [vmem:[#allocation29_spill] sm:$0xff] }
 0x346   : > { %5000 = vmatpush1.bf16.msra.mxu0 %v17201_v6  ;;  %v10432_v59 = vpop.eup %10431  ;;  %10449 = vrcp.f32 %v3913_v55  ;;  %v3920_v33 = vadd.f32 1.0, %v10430_v7  ;;  %v3390_v8 = vmul.f32 1.442695, %v2973_v31  ;;  %v2980_v6 = vmin.f32 %v2660_v57, 80.0  ;;  %v17203_v7 = vld [vmem:[#allocation46_spill] sm:$0xff] }
 0x347   : > { %5001 = vmatprep.subr.bf16.mxu0 %v4811_v34  ;;  %v10434_v12 = vpop.eup %10433  ;;  %v3922_v22 = vadd.f32 1.0, %v10432_v59  ;;  %v2982_v51 = vmin.f32 %v2662_v20, 80.0  ;;  %v4803_v43 = vpack.c.bf16 %v13599_v1, %v13537_v54  ;;  %v13822_v58 = vadd.f32 %v13302_v36, %v13355_v19  ;;  %v13831_v20 = vpop.f32.mrb[107].mxu1 }
 0x348   : > { %v10436_v25 = vpop.eup %10435  ;;  %v13818_v34 = vmul.f32 %v10434_v12, %v13637_v63  ;;  %10451 = vrcp.f32 %v3920_v33  ;;  %v13826_v31 = vadd.f32 %v13306_v18, %v13362_v30  ;;  %v17205_v55 = vpack.c.bf16 %v17203_v7, %v17204_v27  ;;  %v13833_v54 = vpop.f32.mrb[139].mxu0 }
 0x349   : > { %17206 = vst [vmem:[#allocation48_spill] sm:$0xff] %v13833_v54  ;;  %v10438_v1 = vpop.eup %10437  ;;  %10453 = vrcp.f32 %v3922_v22  ;;  %v3921_v63 = vadd.f32 1.0, %v10436_v25  ;;  %v3404_v57 = vmul.f32 1.442695, %v2980_v6  ;;  %v3408_v59 = vmul.f32 1.442695, %v2982_v51  ;;  %5040 = vmatprep.subr.bf16.mxu1 %v4803_v43 }
 0x34a   : > { %17202 = vst [vmem:[#allocation31_spill] sm:$0xff] %v13818_v34  ;;  %5002 = vmatpush1.bf16.msra.mxu0 %v17205_v55  ;;  %v13835_v36 = vpop.f32.mrb[108].mxu1  ;;  %v10440_v33 = vpop.eup %10439  ;;  %v3923_v12 = vadd.f32 1.0, %v10438_v1  ;;  %10455 = vpow2.f32 %v3386_v14  ;;  %v2661_v18 = vsub.f32 0.0, %v13822_v58  ;;  %v2663_v7 = vsub.f32 0.0, %v13826_v31 }
 0x34b   : > { %17207 = vst [vmem:[#allocation27_spill] sm:$0xff] %v13835_v36  ;;  %v17208_v27 = vpack.c.bf16 %v13578_v26, %v13516_v10  ;;  %v13842_v55 = vpop.f32.mrb[140].mxu0  ;;  %v10442_v22 = vpop.eup %10441  ;;  %v13845_v6 = vmul.f32 %v10440_v33, %v13656_v11  ;;  %10457 = vrcp.f32 %v3921_v63  ;;  %v13849_v51 = vadd.f32 %v13308_v17, %v13315_v56  ;;  %v17214_v36 = vld [vmem:[#allocation23_spill] sm:$0xff] }
 0x34c   : > { %17209 = vst [vmem:[#allocation24_spill] sm:$0xff] %v13842_v55  ;;  %v13853_v14 = vadd.f32 %v13327_v45, %v13334_v40  ;;  %10459 = vrcp.f32 %v3923_v12  ;;  %v3930_v43 = vadd.f32 1.0, %v10442_v22  ;;  %v2981_v25 = vmin.f32 %v2661_v18, 80.0  ;;  %v13855_v26 = vpop.f32.mrb[109].mxu1  ;;  %v10444_v1 = vpop.eup %10443  ;;  %v17213_v55 = vld [vmem:[#allocation50_spill] sm:$0xff] }
 0x34d   : > { %5041 = vmatpush1.bf16.msra.mxu1 %v17208_v27  ;;  %v2983_v10 = vmin.f32 %v2663_v7, 80.0  ;;  %17210 = vst [vmem:[#allocation46_spill] sm:$0xff] %v13855_v26  ;;  %10461 = vpow2.f32 %v3390_v8  ;;  %v2670_v63 = vsub.f32 0.0, %v13849_v51  ;;  %v13861_v33 = vpop.f32.mrb[141].mxu0  ;;  %v3932_v45 = vadd.f32 1.0, %v10444_v1 }
 0x34e   : > { %v2672_v17 = vsub.f32 0.0, %v13853_v14  ;;  %17211 = vst [vmem:[#allocation29_spill] sm:$0xff] %v13861_v33  ;;  %v10446_v27 = vpop.eup %10445  ;;  %10463 = vrcp.f32 %v3930_v43  ;;  %v3406_v12 = vmul.f32 1.442695, %v2981_v25  ;;  %v4821_v33 = vpack.c.bf16 %v17214_v36, %v17213_v55  ;;  %v17215_v43 = vld [vmem:[#allocation88_spill] sm:$0xff]  ;;  %v17217_v36 = vld [vmem:[#allocation90_spill] sm:$0xff] }
 0x34f   : > { %v3410_v22 = vmul.f32 1.442695, %v2983_v10  ;;  %v10448_v18 = vpop.eup %10447  ;;  %v13864_v7 = vmul.f32 %v10446_v27, %v13670_v47  ;;  %10465 = vpow2.f32 %v3404_v57  ;;  %v2990_v34 = vmin.f32 %v2670_v63, 80.0 }
 0x350   : > { %v2992_v26 = vmin.f32 %v2672_v17, 80.0  ;;  %v10450_v11 = vpop.eup %10449  ;;  %v13867_v8 = vmul.f32 %v10448_v18, %v13677_v61  ;;  %10467 = vrcp.f32 %v3932_v45  ;;  %v13873_v1 = vadd.f32 %v17215_v43, %v13355_v19  ;;  %5003 = vmatprep.subr.bf16.mxu0 %v4821_v33  ;;  %v13885_v17 = vpop.f32.mrb[110].mxu1 }
 0x351   : > { %17212 = vst [vmem:[#allocation115_spill] sm:$0xff] %v13864_v7  ;;  %v13878_v47 = vmul.f32 %v10450_v11, %v13686_v48  ;;  %10469 = vpow2.f32 %v3408_v59  ;;  %v3424_v57 = vmul.f32 1.442695, %v2990_v34  ;;  %v13883_v55 = vadd.f32 %v17217_v36, %v13362_v30  ;;  %17218 = vst [vmem:[#allocation23_spill] sm:$0xff] %v13885_v17  ;;  %v17219_v48 = vld [vmem:[#allocation22_spill] sm:$0xff]  ;;  %v17220_v59 = vld [vmem:[#allocation49_spill] sm:$0xff] }
 0x352   : > { %v10452_v10 = vpop.eup %10451  ;;  %10471 = vpow2.f32 %v3406_v12  ;;  %v3428_v61 = vmul.f32 1.442695, %v2992_v26  ;;  %v2671_v63 = vsub.f32 0.0, %v13873_v1  ;;  %v17221_v34 = vpack.c.bf16 %v17219_v48, %v17220_v59  ;;  %v17222_v11 = vld [vmem:[#allocation4_spill] sm:$0xff]  ;;  %v17223_v26 = vld [vmem:[#allocation37_spill] sm:$0xff]  ;;  %v17226_v59 = vld [vmem:[#allocation51_spill] sm:$0xff] }
 0x353   : > { %17216 = vst [vmem:[#allocation50_spill] sm:$0xff] %v13878_v47  ;;  %v10454_v27 = vpop.eup %10453  ;;  %v13888_v45 = vmul.f32 %v10452_v10, %v13696_v60  ;;  %10473 = vpow2.f32 %v3410_v22  ;;  %v4831_v33 = vpack.c.bf16 %v17223_v26, %v17222_v11  ;;  %v17224_v12 = vld [vmem:[#allocation92_spill] sm:$0xff]  ;;  %v2673_v60 = vsub.f32 0.0, %v13883_v55 }
 0x354   : > { %5004 = vmatpush1.bf16.msra.mxu0 %v17221_v34  ;;  %v13897_v18 = vadd.f32 %v17224_v12, %v13315_v56  ;;  %v10456_v43 = vpop.eup %10455  ;;  %v13900_v36 = vmul.f32 %v10454_v27, %v13706_v2  ;;  %10475 = vpow2.f32 %v3424_v57  ;;  %v2991_v25 = vmin.f32 %v2671_v63, 80.0 }
 0x355   : > { %v10458_v22 = vpop.eup %10457  ;;  %v3931_v10 = vadd.f32 1.0, %v10456_v43  ;;  %10477 = vpow2.f32 %v3428_v61  ;;  %5005 = vmatprep.subr.bf16.mxu0 %v4831_v33  ;;  %v13906_v34 = vadd.f32 %v17226_v59, %v13334_v40  ;;  %v2993_v27 = vmin.f32 %v2673_v60, 80.0  ;;  %v17228_v43 = vld [vmem:[#allocation32_spill] sm:$0xff]  ;;  %v17229_v59 = vld [vmem:[#allocation5_spill] sm:$0xff] }
 0x356   : > { %17225 = vst [vmem:[#allocation88_spill] sm:$0xff] %v13900_v36  ;;  %v2680_v48 = vsub.f32 0.0, %v13897_v18  ;;  %v10460_v11 = vpop.eup %10459  ;;  %v13909_v26 = vmul.f32 %v10458_v22, %v13717_v15  ;;  %v3426_v2 = vmul.f32 1.442695, %v2991_v25  ;;  %v4813_v57 = vpack.c.bf16 %v13666_v44, %v13626_v9  ;;  %v17231_v60 = vld [vmem:[#allocation53_spill] sm:$0xff]  ;;  %v13924_v44 = vpop.f32.mrb[142].mxu0 }
 0x357   : > { %v10462_v63 = vpop.eup %10461  ;;  %v13914_v12 = vmul.f32 %v10460_v11, %v13724_v46  ;;  %10479 = vrcp.f32 %v3931_v10  ;;  %v2682_v33 = vsub.f32 0.0, %v13906_v34  ;;  %v17230_v53 = vpack.c.bf16 %v17228_v43, %v17229_v59  ;;  %17232 = vst [vmem:[#allocation22_spill] sm:$0xff] %v13924_v44  ;;  %v17233_v11 = vld [vmem:[#allocation93_spill] sm:$0xff]  ;;  %v17235_v43 = vld [vmem:[#allocation56_spill] sm:$0xff]  ;;  %v17243_v36 = vld [vmem:[#allocation30_spill] sm:$0xff] }
 0x358   : > { %v3000_v61 = vmin.f32 %v2680_v48, 80.0  ;;  %v10464_v7 = vpop.eup %10463  ;;  %v3933_v15 = vadd.f32 1.0, %v10462_v63  ;;  %10481 = vpow2.f32 %v3426_v2  ;;  %v3430_v25 = vmul.f32 1.442695, %v2993_v27  ;;  %5042 = vmatprep.subr.bf16.mxu1 %v4813_v57 }
 0x359   : > { %17227 = vst [vmem:[#allocation90_spill] sm:$0xff] %v13914_v12  ;;  %5006 = vmatpush1.bf16.msra.mxu0 %v17230_v53  ;;  %v13922_v9 = vadd.f32 %v17231_v60, %v13355_v19  ;;  %v10466_v46 = vpop.eup %10465  ;;  %v13927_v22 = vmul.f32 %v10464_v7, %v13736_v3  ;;  %v3002_v48 = vmin.f32 %v2682_v33, 80.0  ;;  %v13931_v53 = vadd.f32 %v17233_v11, %v13362_v30  ;;  %v13941_v3 = vpop.f32.mrb[111].mxu1 }
 0x35a   : > { %v3444_v10 = vmul.f32 1.442695, %v3000_v61  ;;  %v17234_v2 = vpack.c.bf16 %v13642_v50, %v13616_v38  ;;  %v10468_v27 = vpop.eup %10467  ;;  %10483 = vrcp.f32 %v3933_v15  ;;  %v3940_v57 = vadd.f32 1.0, %v10466_v46  ;;  %17236 = vst [vmem:[#allocation49_spill] sm:$0xff] %v13941_v3  ;;  %v13948_v50 = vpop.f32.mrb[143].mxu0  ;;  %v17242_v3 = vld [vmem:[#allocation40_spill] sm:$0xff] }
 0x35b   : > { %v2681_v63 = vsub.f32 0.0, %v13922_v9  ;;  %v13939_v59 = vadd.f32 %v17235_v43, %v13315_v56  ;;  %v10470_v7 = vpop.eup %10469  ;;  %v13946_v33 = vmul.f32 %v10468_v27, %v13749_v42  ;;  %10485 = vpow2.f32 %v3430_v25  ;;  %17238 = vst [vmem:[#allocation37_spill] sm:$0xff] %v13948_v50  ;;  %v13956_v25 = vpop.f32.mrb[144].mxu0 }
 0x35c   : > { %5043 = vmatpush1.bf16.msra.mxu1 %v17234_v2  ;;  %v3448_v38 = vmul.f32 1.442695, %v3002_v48  ;;  %v10472_v15 = vpop.eup %10471  ;;  %10487 = vrcp.f32 %v3940_v57  ;;  %v3942_v60 = vadd.f32 1.0, %v10470_v7  ;;  %v2683_v11 = vsub.f32 0.0, %v13931_v53  ;;  %v13951_v2 = vpop.f32.mrb[112].mxu1  ;;  %17240 = vst [vmem:[#allocation51_spill] sm:$0xff] %v13956_v25 }
 0x35d   : > { %17237 = vst [vmem:[#allocation4_spill] sm:$0xff] %v13946_v33  ;;  %v3001_v46 = vmin.f32 %v2681_v63, 80.0  ;;  %17239 = vst [vmem:[#allocation92_spill] sm:$0xff] %v13951_v2  ;;  %v10474_v43 = vpop.eup %10473  ;;  %v3941_v61 = vadd.f32 1.0, %v10472_v15  ;;  %10489 = vpow2.f32 %v3444_v10  ;;  %v2690_v42 = vsub.f32 0.0, %v13939_v59  ;;  %v13958_v63 = vpop.f32.mrb[113].mxu1 }
 0x35e   : > { %v10476_v48 = vpop.eup %10475  ;;  %10491 = vrcp.f32 %v3942_v60  ;;  %v3943_v27 = vadd.f32 1.0, %v10474_v43  ;;  %v3003_v7 = vmin.f32 %v2683_v11, 80.0  ;;  %17241 = vst [vmem:[#allocation32_spill] sm:$0xff] %v13958_v63  ;;  %v13962_v12 = vadd.f32 %v17242_v3, %v13334_v40  ;;  %v17244_v33 = vld [vmem:[#allocation9_spill] sm:$0xff]  ;;  %v13966_v60 = vpop.f32.mrb[145].mxu0  ;;  %v17251_v63 = vld [vmem:[#allocation36_spill] sm:$0xff] }
 0x35f   : > { %v3446_v57 = vmul.f32 1.442695, %v3001_v46  ;;  %v10478_v47 = vpop.eup %10477  ;;  %10493 = vrcp.f32 %v3941_v61  ;;  %v3950_v2 = vadd.f32 1.0, %v10476_v48  ;;  %v3010_v50 = vmin.f32 %v2690_v42, 80.0  ;;  %17245 = vst [vmem:[#allocation5_spill] sm:$0xff] %v13966_v60  ;;  %v17246_v61 = vld [vmem:[#allocation58_spill] sm:$0xff] }
 0x360   : > { %10495 = vrcp.f32 %v3943_v27  ;;  %v3952_v10 = vadd.f32 1.0, %v10478_v47  ;;  %v3450_v15 = vmul.f32 1.442695, %v3003_v7  ;;  %v4841_v25 = vpack.c.bf16 %v17244_v33, %v17243_v36  ;;  %v13973_v48 = vpop.f32.mrb[114].mxu1  ;;  %v17248_v36 = vld [vmem:[#allocation12_spill] sm:$0xff] }
 0x361   : > { %v10480_v46 = vpop.eup %10479  ;;  %10497 = vrcp.f32 %v3950_v2  ;;  %v3464_v11 = vmul.f32 1.442695, %v3010_v50  ;;  %v2692_v43 = vsub.f32 0.0, %v13962_v12  ;;  %v13971_v42 = vadd.f32 %v17246_v61, %v13355_v19  ;;  %17247 = vst [vmem:[#allocation53_spill] sm:$0xff] %v13973_v48  ;;  %v17249_v2 = vld [vmem:[#allocation84_spill] sm:$0xff]  ;;  %v17252_v48 = vld [vmem:[#allocation43_spill] sm:$0xff] }
 0x362   : > { %v10482_v3 = vpop.eup %10481  ;;  %v13976_v47 = vmul.f32 %v10480_v46, %v13774_v39  ;;  %10499 = vrcp.f32 %v3952_v10  ;;  %5007 = vmatprep.subr.bf16.mxu0 %v4841_v25  ;;  %v13980_v33 = vadd.f32 %v17248_v36, %v13362_v30  ;;  %v17250_v50 = vld [vmem:[#allocation8_spill] sm:$0xff]  ;;  %v17253_v44 = vpack.c.bf16 %v17251_v63, %v17252_v48  ;;  %v17254_v10 = vld [vmem:[#allocation59_spill] sm:$0xff] }
 0x363   : > { %v4851_v27 = vpack.c.bf16 %v17250_v50, %v17249_v2  ;;  %v3951_v7 = vadd.f32 1.0, %v10482_v3  ;;  %10501 = vpow2.f32 %v3448_v38  ;;  %v3012_v60 = vmin.f32 %v2692_v43, 80.0  ;;  %v17255_v36 = vld [vmem:[#allocation60_spill] sm:$0xff] }
 0x364   : > { %v2691_v61 = vsub.f32 0.0, %v13971_v42  ;;  %5008 = vmatpush1.bf16.msra.mxu0 %v17253_v44  ;;  %v10484_v39 = vpop.eup %10483  ;;  %10503 = vpow2.f32 %v3446_v57  ;;  %v2693_v25 = vsub.f32 0.0, %v13980_v33  ;;  %v13991_v46 = vadd.f32 %v17254_v10, %v13315_v56 }
 0x365   : > { %5009 = vmatprep.subr.bf16.mxu0 %v4851_v27  ;;  %v13995_v3 = vadd.f32 %v17255_v36, %v13334_v40  ;;  %v10486_v38 = vpop.eup %10485  ;;  %v13998_v43 = vmul.f32 %v10484_v39, %v13778_v28  ;;  %10505 = vrcp.f32 %v3951_v7  ;;  %v3468_v63 = vmul.f32 1.442695, %v3012_v60  ;;  %v14001_v27 = vpop.f32.mrb[146].mxu0  ;;  %v17258_v39 = vld [vmem:[#allocation86_spill] sm:$0xff]  ;;  %v17259_v7 = vld [vmem:[#allocation44_spill] sm:$0xff] }
 0x366   : > { %v3011_v44 = vmin.f32 %v2691_v61, 80.0  ;;  %v10488_v48 = vpop.eup %10487  ;;  %v3953_v57 = vadd.f32 1.0, %v10486_v38  ;;  %10507 = vpow2.f32 %v3450_v15  ;;  %v3013_v2 = vmin.f32 %v2693_v25, 80.0  ;;  %17257 = vst [vmem:[#allocation56_spill] sm:$0xff] %v14001_v27 }
 0x367   : > { %17256 = vst [vmem:[#allocation93_spill] sm:$0xff] %v13998_v43  ;;  %v2700_v50 = vsub.f32 0.0, %v13991_v46  ;;  %v10490_v10 = vpop.eup %10489  ;;  %v14004_v17 = vmul.f32 %v10488_v48, %v13796_v32  ;;  %10509 = vpow2.f32 %v3464_v11  ;;  %v2702_v28 = vsub.f32 0.0, %v13995_v3  ;;  %v14010_v43 = vpop.f32.mrb[115].mxu1 }
 0x368   : > { %v3466_v36 = vmul.f32 1.442695, %v3011_v44  ;;  %v17260_v60 = vpack.c.bf16 %v17258_v39, %v17259_v7  ;;  %v10492_v61 = vpop.eup %10491  ;;  %10511 = vrcp.f32 %v3953_v57  ;;  %v3960_v15 = vadd.f32 1.0, %v10490_v10 }
 0x369   : > { %v3470_v25 = vmul.f32 1.442695, %v3013_v2  ;;  %v3020_v38 = vmin.f32 %v2700_v50, 80.0  ;;  %v10494_v27 = vpop.eup %10493  ;;  %v14013_v54 = vmul.f32 %v10492_v61, %v13800_v62  ;;  %10513 = vpow2.f32 %v3468_v63  ;;  %v17262_v2 = vld [vmem:[#allocation26_spill] sm:$0xff] }
 0x36a   : > { %5010 = vmatpush1.bf16.msra.mxu0 %v17260_v60  ;;  %v3022_v32 = vmin.f32 %v2702_v28, 80.0  ;;  %v4823_v11 = vpack.c.bf16 %v13757_v37, %v13727_v16  ;;  %v10496_v44 = vpop.eup %10495  ;;  %v14018_v48 = vmul.f32 %v10494_v27, %v13822_v58  ;;  %10515 = vrcp.f32 %v3960_v15  ;;  %v14042_v28 = vpop.f32.mrb[147].mxu0  ;;  %v17267_v60 = vld [vmem:[#allocation96_spill] sm:$0xff] }
 0x36b   : > { %17261 = vst [vmem:[#allocation40_spill] sm:$0xff] %v14013_v54  ;;  %v3484_v57 = vmul.f32 1.442695, %v3020_v38  ;;  %v14022_v50 = vadd.f32 %v17262_v2, %v13355_v19  ;;  %v10498_v10 = vpop.eup %10497  ;;  %v14025_v39 = vmul.f32 %v10496_v44, %v13826_v31  ;;  %10517 = vpow2.f32 %v3466_v36  ;;  %v17265_v31 = vld [vmem:[#allocation106_spill] sm:$0xff]  ;;  %v17271_v54 = vld [vmem:[#allocation3_spill] sm:$0xff] }
 0x36c   : > { %v3488_v62 = vmul.f32 1.442695, %v3022_v32  ;;  %5044 = vmatprep.subr.bf16.mxu1 %v4823_v11  ;;  %v14029_v16 = vadd.f32 %v13493_v52, %v13362_v30  ;;  %v10500_v37 = vpop.eup %10499  ;;  %v14032_v58 = vmul.f32 %v10498_v10, %v13849_v51  ;;  %10519 = vpow2.f32 %v3470_v25 }
 0x36d   : > { %17263 = vst [vmem:[#allocation30_spill] sm:$0xff] %v14025_v39  ;;  %v2701_v63 = vsub.f32 0.0, %v14022_v50  ;;  %v17264_v27 = vpack.c.bf16 %v13744_v13, %v13699_v41  ;;  %v14040_v36 = vadd.f32 %v17265_v31, %v13315_v56  ;;  %v10502_v7 = vpop.eup %10501  ;;  %v14045_v52 = vmul.f32 %v10500_v37, %v13853_v14  ;;  %v17270_v41 = vld [vmem:[#allocation10_spill] sm:$0xff] }
 0x36e   : > { %10521 = vpow2.f32 %v3484_v57  ;;  %v2703_v51 = vsub.f32 0.0, %v14029_v16  ;;  %v14050_v61 = vadd.f32 %v17267_v60, %v13334_v40  ;;  %v10504_v15 = vpop.eup %10503  ;;  %v3962_v13 = vadd.f32 1.0, %v10502_v7  ;;  %v14057_v57 = vpop.f32.mrb[116].mxu1 }
 0x36f   : > { %5045 = vmatpush1.bf16.msra.mxu1 %v17264_v27  ;;  %17266 = vst [vmem:[#allocation9_spill] sm:$0xff] %v14045_v52  ;;  %10523 = vpow2.f32 %v3488_v62  ;;  %v3021_v25 = vmin.f32 %v2701_v63, 80.0  ;;  %v10506_v38 = vpop.eup %10505  ;;  %v3961_v14 = vadd.f32 1.0, %v10504_v15  ;;  %v2710_v44 = vsub.f32 0.0, %v14040_v36  ;;  %17268 = vst [vmem:[#allocation58_spill] sm:$0xff] %v14057_v57  ;;  %v14063_v62 = vpop.f32.mrb[148].mxu0 }
 0x370   : > { %v3023_v11 = vmin.f32 %v2703_v51, 80.0  ;;  %v10508_v2 = vpop.eup %10507  ;;  %v14060_v10 = vmul.f32 %v10506_v38, %v13873_v1  ;;  %10525 = vrcp.f32 %v3962_v13  ;;  %v2712_v27 = vsub.f32 0.0, %v14050_v61  ;;  %17269 = vst [vmem:[#allocation12_spill] sm:$0xff] %v14063_v62  ;;  %v14067_v1 = vpop.f32.mrb[117].mxu1 }
 0x371   : > { %v3486_v37 = vmul.f32 1.442695, %v3021_v25  ;;  %v10510_v63 = vpop.eup %10509  ;;  %10527 = vrcp.f32 %v3961_v14  ;;  %v3963_v31 = vadd.f32 1.0, %v10508_v2  ;;  %v3030_v60 = vmin.f32 %v2710_v44, 80.0  ;;  %17272 = vst [vmem:[#allocation84_spill] sm:$0xff] %v14067_v1  ;;  %v17274_v14 = vld [vmem:[#allocation66_spill] sm:$0xff] }
 0x372   : > { %v3490_v7 = vmul.f32 1.442695, %v3023_v11  ;;  %v10512_v51 = vpop.eup %10511  ;;  %v3970_v15 = vadd.f32 1.0, %v10510_v63  ;;  %v3032_v32 = vmin.f32 %v2712_v27, 80.0  ;;  %v4861_v52 = vpack.c.bf16 %v17271_v54, %v17270_v41  ;;  %v17275_v27 = vld [vmem:[#allocation67_spill] sm:$0xff]  ;;  %v14080_v41 = vpop.f32.mrb[149].mxu0 }
 0x373   : > { %10529 = vpow2.f32 %v3486_v37  ;;  %v10514_v13 = vpop.eup %10513  ;;  %v14070_v25 = vmul.f32 %v10512_v51, %v13883_v55  ;;  %v3504_v38 = vmul.f32 1.442695, %v3030_v60  ;;  %v14074_v2 = vadd.f32 %v17274_v14, %v13355_v19  ;;  %17276 = vst [vmem:[#allocation36_spill] sm:$0xff] %v14080_v41  ;;  %v17277_v60 = vld [vmem:[#allocation54_spill] sm:$0xff]  ;;  %v17278_v51 = vld [vmem:[#allocation89_spill] sm:$0xff] }
 0x374   : > { %10531 = vrcp.f32 %v3963_v31  ;;  %v10516_v11 = vpop.eup %10515  ;;  %v3972_v44 = vadd.f32 1.0, %v10514_v13  ;;  %v3508_v37 = vmul.f32 1.442695, %v3032_v32  ;;  %5011 = vmatprep.subr.bf16.mxu0 %v4861_v52  ;;  %v14078_v54 = vadd.f32 %v17275_v27, %v13362_v30  ;;  %v17281_v32 = vld [vmem:[#allocation62_spill] sm:$0xff]  ;;  %v14091_v13 = vpop.f32.mrb[118].mxu1 }
 0x375   : > { %17273 = vst [vmem:[#allocation8_spill] sm:$0xff] %v14070_v25  ;;  %10533 = vrcp.f32 %v3970_v15  ;;  %v10518_v63 = vpop.eup %10517  ;;  %v14083_v55 = vmul.f32 %v10516_v11, %v13897_v18  ;;  %v2711_v31 = vsub.f32 0.0, %v14074_v2  ;;  %v17279_v14 = vpack.c.bf16 %v17277_v60, %v17278_v51  ;;  %v17280_v15 = vld [vmem:[#allocation94_spill] sm:$0xff]  ;;  %17282 = vst [vmem:[#allocation43_spill] sm:$0xff] %v14091_v13  ;;  %v17283_v18 = vld [vmem:[#allocation68_spill] sm:$0xff] }
 0x376   : > { %10535 = vpow2.f32 %v3490_v7  ;;  %v4871_v52 = vpack.c.bf16 %v17281_v32, %v17280_v15  ;;  %v10520_v27 = vpop.eup %10519  ;;  %v3971_v25 = vadd.f32 1.0, %v10518_v63  ;;  %v2713_v39 = vsub.f32 0.0, %v14078_v54  ;;  %v17284_v60 = vld [vmem:[#allocation98_spill] sm:$0xff]  ;;  %v14103_v32 = vpop.f32.mrb[150].mxu0 }
 0x377   : > { %5012 = vmatpush1.bf16.msra.mxu0 %v17279_v14  ;;  %10537 = vrcp.f32 %v3972_v44  ;;  %v14096_v11 = vadd.f32 %v17283_v18, %v13315_v56  ;;  %v3973_v41 = vadd.f32 1.0, %v10520_v27  ;;  %v3031_v1 = vmin.f32 %v2711_v31, 80.0  ;;  %v17286_v31 = vld [vmem:[#allocation13_spill] sm:$0xff] }
 0x378   : > { %v10522_v7 = vpop.eup %10521  ;;  %10539 = vpow2.f32 %v3504_v38  ;;  %5013 = vmatprep.subr.bf16.mxu0 %v4871_v52  ;;  %v14100_v51 = vadd.f32 %v17284_v60, %v13334_v40  ;;  %v3033_v44 = vmin.f32 %v2713_v39, 80.0  ;;  %v17285_v38 = vld [vmem:[#allocation57_spill] sm:$0xff]  ;;  %v4833_v39 = vpack.c.bf16 %v13867_v8, %v13809_v21 }
 0x379   : > { %v10524_v14 = vpop.eup %10523  ;;  %10541 = vrcp.f32 %v3971_v25  ;;  %v3980_v15 = vadd.f32 1.0, %v10522_v7  ;;  %v2720_v63 = vsub.f32 0.0, %v14096_v11  ;;  %v3506_v13 = vmul.f32 1.442695, %v3031_v1  ;;  %v14111_v25 = vpop.f32.mrb[119].mxu1  ;;  %v17293_v8 = vld [vmem:[#allocation109_spill] sm:$0xff] }
 0x37a   : > { %10543 = vrcp.f32 %v3973_v41  ;;  %v3982_v18 = vadd.f32 1.0, %v10524_v14  ;;  %v2722_v27 = vsub.f32 0.0, %v14100_v51  ;;  %v17287_v52 = vpack.c.bf16 %v17285_v38, %v17286_v31  ;;  %v10526_v62 = vpop.eup %10525  ;;  %17288 = vst [vmem:[#allocation59_spill] sm:$0xff] %v14111_v25  ;;  %v14113_v7 = vpop.f32.mrb[151].mxu0  ;;  %v17291_v38 = vld [vmem:[#allocation108_spill] sm:$0xff]  ;;  %5046 = vmatprep.subr.bf16.mxu1 %v4833_v39 }
 0x37b   : > { %10545 = vrcp.f32 %v3980_v15  ;;  %v3510_v60 = vmul.f32 1.442695, %v3033_v44  ;;  %v3040_v57 = vmin.f32 %v2720_v63, 80.0  ;;  %17289 = vst [vmem:[#allocation60_spill] sm:$0xff] %v14113_v7  ;;  %v10528_v41 = vpop.eup %10527  ;;  %v14116_v1 = vmul.f32 %v10526_v62, %v13906_v34  ;;  %v14122_v15 = vpop.f32.mrb[120].mxu1 }
 0x37c   : > { %5014 = vmatpush1.bf16.msra.mxu0 %v17287_v52  ;;  %10547 = vrcp.f32 %v3982_v18  ;;  %v3042_v14 = vmin.f32 %v2722_v27, 80.0  ;;  %v14120_v31 = vadd.f32 %v17291_v38, %v13355_v19  ;;  %17292 = vst [vmem:[#allocation44_spill] sm:$0xff] %v14122_v15  ;;  %v14125_v63 = vmul.f32 %v10528_v41, %v13922_v9  ;;  %v14143_v41 = vpop.f32.mrb[152].mxu0 }
 0x37d   : > { %17290 = vst [vmem:[#allocation86_spill] sm:$0xff] %v14116_v1  ;;  %v10530_v44 = vpop.eup %10529  ;;  %10549 = vpow2.f32 %v3508_v37  ;;  %v3524_v21 = vmul.f32 1.442695, %v3040_v57  ;;  %v14129_v52 = vadd.f32 %v17293_v8, %v13362_v30  ;;  %v17294_v38 = vpack.c.bf16 %v13845_v6, %v13770_v0  ;;  %v17296_v37 = vld [vmem:[#allocation99_spill] sm:$0xff]  ;;  %17297 = vst [vmem:[#allocation106_spill] sm:$0xff] %v14143_v41  ;;  %v17298_v6 = vld [vmem:[#allocation69_spill] sm:$0xff] }
 0x37e   : > { %v10532_v34 = vpop.eup %10531  ;;  %v3981_v62 = vadd.f32 1.0, %v10530_v44  ;;  %10551 = vpow2.f32 %v3506_v13  ;;  %v3528_v18 = vmul.f32 1.442695, %v3042_v14  ;;  %v2721_v27 = vsub.f32 0.0, %v14120_v31  ;;  %v17311_v1 = vld [vmem:[#allocation65_spill] sm:$0xff] }
 0x37f   : > { %5047 = vmatpush1.bf16.msra.mxu1 %v17294_v38  ;;  %v10534_v15 = vpop.eup %10533  ;;  %v14136_v9 = vmul.f32 %v10532_v34, %v13931_v53  ;;  %10553 = vpow2.f32 %v3510_v60  ;;  %v2723_v57 = vsub.f32 0.0, %v14129_v52  ;;  %v14141_v39 = vadd.f32 %v17296_v37, %v13315_v56  ;;  %v14153_v38 = vpop.f32.mrb[121].mxu1 }
 0x380   : > { %v10536_v13 = vpop.eup %10535  ;;  %v14146_v14 = vmul.f32 %v10534_v15, %v13939_v59  ;;  %10555 = vrcp.f32 %v3981_v62  ;;  %v3041_v0 = vmin.f32 %v2721_v27, 80.0  ;;  %v14150_v44 = vadd.f32 %v17298_v6, %v13334_v40  ;;  %17299 = vst [vmem:[#allocation96_spill] sm:$0xff] %v14153_v38 }
 0x381   : > { %17295 = vst [vmem:[#allocation26_spill] sm:$0xff] %v14136_v9  ;;  %v10538_v53 = vpop.eup %10537  ;;  %v3983_v60 = vadd.f32 1.0, %v10536_v13  ;;  %10557 = vpow2.f32 %v3524_v21  ;;  %v3043_v8 = vmin.f32 %v2723_v57, 80.0  ;;  %v2730_v34 = vsub.f32 0.0, %v14141_v39 }
 0x382   : > { %v10540_v37 = vpop.eup %10539  ;;  %v14158_v59 = vmul.f32 %v10538_v53, %v13962_v12  ;;  %10559 = vpow2.f32 %v3528_v18  ;;  %v3526_v15 = vmul.f32 1.442695, %v3041_v0  ;;  %v2732_v9 = vsub.f32 0.0, %v14150_v44  ;;  %v17302_v0 = vld [vmem:[#allocation64_spill] sm:$0xff]  ;;  %v17303_v53 = vld [vmem:[#allocation97_spill] sm:$0xff] }
 0x383   : > { %v10542_v62 = vpop.eup %10541  ;;  %10561 = vrcp.f32 %v3983_v60  ;;  %v3990_v27 = vadd.f32 1.0, %v10540_v37  ;;  %v3530_v6 = vmul.f32 1.442695, %v3043_v8  ;;  %v3050_v13 = vmin.f32 %v2730_v34, 80.0  ;;  %v14171_v8 = vpop.f32.mrb[153].mxu0 }
 0x384   : > { %17300 = vst [vmem:[#allocation10_spill] sm:$0xff] %v14158_v59  ;;  %v10544_v21 = vpop.eup %10543  ;;  %v14163_v38 = vmul.f32 %v10542_v62, %v13971_v42  ;;  %10563 = vpow2.f32 %v3526_v15  ;;  %v4881_v60 = vpack.c.bf16 %v17303_v53, %v17302_v0  ;;  %17304 = vst [vmem:[#allocation66_spill] sm:$0xff] %v14171_v8  ;;  %v3052_v42 = vmin.f32 %v2732_v9, 80.0  ;;  %v17305_v15 = vld [vmem:[#allocation35_spill] sm:$0xff]  ;;  %v17309_v0 = vld [vmem:[#allocation100_spill] sm:$0xff] }
 0x385   : > { %v10546_v41 = vpop.eup %10545  ;;  %v14167_v12 = vmul.f32 %v10544_v21, %v13980_v33  ;;  %10565 = vrcp.f32 %v3990_v27  ;;  %v3544_v18 = vmul.f32 1.442695, %v3050_v13  ;;  %v14178_v62 = vadd.f32 %v17305_v15, %v13355_v19  ;;  %v17307_v27 = vld [vmem:[#allocation111_spill] sm:$0xff] }
 0x386   : > { %v10548_v34 = vpop.eup %10547  ;;  %v14174_v37 = vmul.f32 %v10546_v41, %v13991_v46  ;;  %10567 = vpow2.f32 %v3530_v6  ;;  %5015 = vmatprep.subr.bf16.mxu0 %v4881_v60  ;;  %v14185_v13 = vadd.f32 %v17307_v27, %v13362_v30  ;;  %v17308_v21 = vld [vmem:[#allocation71_spill] sm:$0xff]  ;;  %v14189_v41 = vpop.f32.mrb[122].mxu1  ;;  %v3548_v53 = vmul.f32 1.442695, %v3052_v42 }
 0x387   : > { %17301 = vst [vmem:[#allocation3_spill] sm:$0xff] %v14167_v12  ;;  %v10550_v57 = vpop.eup %10549  ;;  %v14181_v33 = vmul.f32 %v10548_v34, %v13995_v3  ;;  %10569 = vpow2.f32 %v3544_v18  ;;  %v4891_v46 = vpack.c.bf16 %v17309_v0, %v17308_v21  ;;  %17310 = vst [vmem:[#allocation54_spill] sm:$0xff] %v14189_v41  ;;  %v2731_v15 = vsub.f32 0.0, %v14178_v62  ;;  %v17312_v59 = vld [vmem:[#allocation63_spill] sm:$0xff]  ;;  %v17315_v21 = vld [vmem:[#allocation101_spill] sm:$0xff]  ;;  %v14219_v25 = vpop.f32.mrb[123].mxu1 }
 0x388   : > { %v10552_v9 = vpop.eup %10551  ;;  %v3992_v6 = vadd.f32 1.0, %v10550_v57  ;;  %v17313_v3 = vpack.c.bf16 %v17311_v1, %v17312_v59  ;;  %v17314_v18 = vld [vmem:[#allocation7_spill] sm:$0xff]  ;;  %v2733_v12 = vsub.f32 0.0, %v14185_v13  ;;  %v14202_v0 = vadd.f32 %v17315_v21, %v13334_v40 }
 0x389   : > { %17306 = vst [vmem:[#allocation67_spill] sm:$0xff] %v14181_v33  ;;  %v14197_v60 = vadd.f32 %v17314_v18, %v13315_v56  ;;  %v10554_v34 = vpop.eup %10553  ;;  %v3991_v27 = vadd.f32 1.0, %v10552_v9  ;;  %v4843_v57 = vpack.c.bf16 %v13976_v47, %v13909_v26  ;;  %v3051_v59 = vmin.f32 %v2731_v15, 80.0  ;;  %v17316_v47 = vld [vmem:[#allocation72_spill] sm:$0xff] }
 0x38a   : > { %5016 = vmatpush1.bf16.msra.mxu0 %v17313_v3  ;;  %v10556_v42 = vpop.eup %10555  ;;  %10571 = vrcp.f32 %v3992_v6  ;;  %v3993_v1 = vadd.f32 1.0, %v10554_v34  ;;  %v3053_v9 = vmin.f32 %v2733_v12, 80.0  ;;  %v17317_v6 = vld [vmem:[#allocation34_spill] sm:$0xff]  ;;  %v17319_v15 = vpack.c.bf16 %v13927_v22, %v13888_v45  ;;  %v17322_v45 = vld [vmem:[#allocation39_spill] sm:$0xff] }
 0x38b   : > { %5017 = vmatprep.subr.bf16.mxu0 %v4891_v46  ;;  %v2740_v3 = vsub.f32 0.0, %v14197_v60  ;;  %v10558_v18 = vpop.eup %10557  ;;  %v14208_v41 = vmul.f32 %v10556_v42, %v14022_v50  ;;  %10573 = vrcp.f32 %v3991_v27  ;;  %v2742_v46 = vsub.f32 0.0, %v14202_v0  ;;  %5048 = vmatprep.subr.bf16.mxu1 %v4843_v57  ;;  %v14217_v50 = vpop.f32.mrb[154].mxu0 }
 0x38c   : > { %v10560_v21 = vpop.eup %10559  ;;  %10575 = vrcp.f32 %v3993_v1  ;;  %v4000_v8 = vadd.f32 1.0, %v10558_v18  ;;  %v3546_v7 = vmul.f32 1.442695, %v3051_v59  ;;  %v17318_v34 = vpack.c.bf16 %v17316_v47, %v17317_v6  ;;  %5049 = vmatpush1.bf16.msra.mxu1 %v17319_v15  ;;  %v14221_v1 = vpop.f32.mrb[155].mxu0 }
 0x38d   : > { %v3060_v26 = vmin.f32 %v2740_v3, 80.0  ;;  %v10562_v27 = vpop.eup %10561  ;;  %v4002_v12 = vadd.f32 1.0, %v10560_v21  ;;  %10577 = vpow2.f32 %v3548_v53  ;;  %v3550_v42 = vmul.f32 1.442695, %v3053_v9  ;;  %17320 = vst [vmem:[#allocation89_spill] sm:$0xff] %v14221_v1  ;;  %v17323_v9 = vld [vmem:[#allocation74_spill] sm:$0xff] }
 0x38e   : > { %5018 = vmatpush1.bf16.msra.mxu0 %v17318_v34  ;;  %v3062_v57 = vmin.f32 %v2742_v46, 80.0  ;;  %v10564_v59 = vpop.eup %10563  ;;  %v14224_v3 = vmul.f32 %v10562_v27, %v14029_v16  ;;  %10579 = vrcp.f32 %v4000_v8  ;;  %v14228_v22 = vadd.f32 %v17322_v45, %v13355_v19  ;;  %v14234_v6 = vpop.f32.mrb[124].mxu1  ;;  %v17329_v1 = vld [vmem:[#allocation6_spill] sm:$0xff] }
 0x38f   : > { %v3564_v18 = vmul.f32 1.442695, %v3060_v26  ;;  %v10566_v47 = vpop.eup %10565  ;;  %10581 = vrcp.f32 %v4002_v12  ;;  %v4001_v21 = vadd.f32 1.0, %v10564_v59  ;;  %v14232_v46 = vadd.f32 %v17323_v9, %v13362_v30  ;;  %17324 = vst [vmem:[#allocation62_spill] sm:$0xff] %v14234_v6  ;;  %v17325_v26 = vld [vmem:[#allocation114_spill] sm:$0xff]  ;;  %v14249_v45 = vpop.f32.mrb[156].mxu0 }
 0x390   : > { %17321 = vst [vmem:[#allocation94_spill] sm:$0xff] %v14224_v3  ;;  %v3568_v53 = vmul.f32 1.442695, %v3062_v57  ;;  %v10568_v34 = vpop.eup %10567  ;;  %v14237_v16 = vmul.f32 %v10566_v47, %v14040_v36  ;;  %10583 = vpow2.f32 %v3546_v7  ;;  %v2741_v8 = vsub.f32 0.0, %v14228_v22  ;;  %17326 = vst [vmem:[#allocation68_spill] sm:$0xff] %v14249_v45  ;;  %v17328_v6 = vld [vmem:[#allocation103_spill] sm:$0xff] }
 0x391   : > { %v14242_v15 = vadd.f32 %v17325_v26, %v13315_v56  ;;  %v10570_v27 = vpop.eup %10569  ;;  %10585 = vrcp.f32 %v4001_v21  ;;  %v4003_v12 = vadd.f32 1.0, %v10568_v34  ;;  %v2743_v57 = vsub.f32 0.0, %v14232_v46  ;;  %v14255_v34 = vpop.f32.mrb[125].mxu1 }
 0x392   : > { %v14247_v59 = vadd.f32 %v13702_v24, %v13334_v40  ;;  %v4010_v7 = vadd.f32 1.0, %v10570_v27  ;;  %10587 = vpow2.f32 %v3550_v42  ;;  %v3061_v47 = vmin.f32 %v2741_v8, 80.0  ;;  %17327 = vst [vmem:[#allocation98_spill] sm:$0xff] %v14255_v34 }
 0x393   : > { %10589 = vrcp.f32 %v4003_v12  ;;  %v3063_v9 = vmin.f32 %v2743_v57, 80.0  ;;  %v2750_v26 = vsub.f32 0.0, %v14242_v15  ;;  %v4901_v45 = vpack.c.bf16 %v17329_v1, %v17328_v6  ;;  %v14266_v57 = vpop.f32.mrb[157].mxu0 }
 0x394   : > { %v2752_v21 = vsub.f32 0.0, %v14247_v59  ;;  %v10572_v3 = vpop.eup %10571  ;;  %10591 = vrcp.f32 %v4010_v7  ;;  %v3566_v24 = vmul.f32 1.442695, %v3061_v47  ;;  %v14261_v36 = vadd.f32 %v13708_v29, %v13355_v19  ;;  %17331 = vst [vmem:[#allocation13_spill] sm:$0xff] %v14266_v57  ;;  %v14272_v29 = vpop.f32.mrb[126].mxu1 }
 0x395   : > { %v10574_v42 = vpop.eup %10573  ;;  %v14264_v8 = vmul.f32 %v10572_v3, %v14050_v61  ;;  %10593 = vpow2.f32 %v3564_v18  ;;  %v3570_v27 = vmul.f32 1.442695, %v3063_v9  ;;  %v3070_v12 = vmin.f32 %v2750_v26, 80.0  ;;  %5019 = vmatprep.subr.bf16.mxu0 %v4901_v45  ;;  %17332 = vst [vmem:[#allocation108_spill] sm:$0xff] %v14272_v29  ;;  %v17333_v9 = vld [vmem:[#allocation38_spill] sm:$0xff]  ;;  %v17336_v61 = vld [vmem:[#allocation75_spill] sm:$0xff] }
 0x396   : > { %v10576_v34 = vpop.eup %10575  ;;  %v14269_v7 = vmul.f32 %v10574_v42, %v14074_v2  ;;  %10595 = vpow2.f32 %v3568_v53  ;;  %v3072_v47 = vmin.f32 %v2752_v21, 80.0  ;;  %v2751_v1 = vsub.f32 0.0, %v14261_v36  ;;  %v17334_v26 = vld [vmem:[#allocation102_spill] sm:$0xff] }
 0x397   : > { %17330 = vst [vmem:[#allocation57_spill] sm:$0xff] %v14264_v8  ;;  %v10578_v6 = vpop.eup %10577  ;;  %v14277_v3 = vmul.f32 %v10576_v34, %v14078_v54  ;;  %10597 = vpow2.f32 %v3566_v24  ;;  %v3584_v18 = vmul.f32 1.442695, %v3070_v12  ;;  %v17335_v2 = vpack.c.bf16 %v17333_v9, %v17334_v26  ;;  %v17337_v34 = vld [vmem:[#allocation78_spill] sm:$0xff]  ;;  %v17338_v24 = vld [vmem:[#allocation80_spill] sm:$0xff]  ;;  %v14303_v26 = vpop.f32.mrb[158].mxu0 }
 0x398   : > { %v10580_v53 = vpop.eup %10579  ;;  %v4012_v21 = vadd.f32 1.0, %v10578_v6  ;;  %10599 = vpow2.f32 %v3570_v27  ;;  %v3588_v45 = vmul.f32 1.442695, %v3072_v47  ;;  %v3071_v42 = vmin.f32 %v2751_v1, 80.0  ;;  %v17340_v47 = vld [vmem:[#allocation77_spill] sm:$0xff] }
 0x399   : > { %5020 = vmatpush1.bf16.msra.mxu0 %v17335_v2  ;;  %v10582_v57 = vpop.eup %10581  ;;  %v14283_v29 = vmul.f32 %v10580_v53, %v14096_v11  ;;  %10601 = vpow2.f32 %v3584_v18  ;;  %v14287_v54 = vadd.f32 %v17336_v61, %v13362_v30  ;;  %v4911_v12 = vpack.c.bf16 %v17338_v24, %v17337_v34  ;;  %v17341_v53 = vld [vmem:[#allocation79_spill] sm:$0xff] }
 0x39a   : > { %v10584_v33 = vpop.eup %10583  ;;  %v14292_v9 = vmul.f32 %v10582_v57, %v14100_v51  ;;  %10603 = vrcp.f32 %v4012_v21  ;;  %v3586_v27 = vmul.f32 1.442695, %v3071_v42  ;;  %v14296_v1 = vadd.f32 %v17340_v47, %v13315_v56  ;;  %v17342_v21 = vld [vmem:[#allocation42_spill] sm:$0xff] }
 0x39b   : > { %v10586_v11 = vpop.eup %10585  ;;  %v4011_v6 = vadd.f32 1.0, %v10584_v33  ;;  %10605 = vpow2.f32 %v3588_v45  ;;  %v2753_v18 = vsub.f32 0.0, %v14287_v54  ;;  %5021 = vmatprep.subr.bf16.mxu0 %v4911_v12  ;;  %v14301_v61 = vadd.f32 %v13764_v35, %v13334_v40 }
 0x39c   : > { %17339 = vst [vmem:[#allocation109_spill] sm:$0xff] %v14292_v9  ;;  %v10588_v51 = vpop.eup %10587  ;;  %v14306_v57 = vmul.f32 %v10586_v11, %v14120_v31  ;;  %10607 = vpow2.f32 %v3586_v27  ;;  %v2760_v2 = vsub.f32 0.0, %v14296_v1  ;;  %v4853_v33 = vpack.c.bf16 %v14060_v10, %v14018_v48  ;;  %v17357_v9 = vld [vmem:[#allocation87_spill] sm:$0xff] }
 0x39d   : > { %v17343_v45 = vpack.c.bf16 %v17341_v53, %v17342_v21  ;;  %v10590_v42 = vpop.eup %10589  ;;  %10609 = vrcp.f32 %v4011_v6  ;;  %v4013_v35 = vadd.f32 1.0, %v10588_v51  ;;  %v3073_v34 = vmin.f32 %v2753_v18, 80.0  ;;  %v14332_v51 = vpop.f32.mrb[127].mxu1 }
 0x39e   : > { %v2762_v24 = vsub.f32 0.0, %v14301_v61  ;;  %v10592_v12 = vpop.eup %10591  ;;  %v14316_v31 = vmul.f32 %v10590_v42, %v14129_v52  ;;  %v3080_v27 = vmin.f32 %v2760_v2, 80.0  ;;  %5050 = vmatprep.subr.bf16.mxu1 %v4853_v33  ;;  %v14320_v47 = vadd.f32 %v13783_v49, %v13355_v19  ;;  %v14334_v2 = vpop.f32.mrb[159].mxu0 }
 0x39f   : > { %5022 = vmatpush1.bf16.msra.mxu0 %v17343_v45  ;;  %v14324_v48 = vadd.f32 %v13790_v5, %v13362_v30  ;;  %v10594_v10 = vpop.eup %10593  ;;  %v14327_v11 = vmul.f32 %v10592_v12, %v14141_v39  ;;  %10611 = vrcp.f32 %v4013_v35  ;;  %v3590_v6 = vmul.f32 1.442695, %v3073_v34 }
 0x3a0   : > { %17344 = vst [vmem:[#allocation99_spill] sm:$0xff] %v14316_v31  ;;  %v3082_v18 = vmin.f32 %v2762_v24, 80.0  ;;  %v17345_v52 = vpack.c.bf16 %v14032_v58, %v14004_v17  ;;  %v10596_v49 = vpop.eup %10595  ;;  %v4020_v33 = vadd.f32 1.0, %v10594_v10  ;;  %v3604_v53 = vmul.f32 1.442695, %v3080_v27  ;;  %v14340_v17 = vpop.f32.mrb[128].mxu1 }
 0x3a1   : > { %v2761_v5 = vsub.f32 0.0, %v14320_v47  ;;  %v2763_v21 = vsub.f32 0.0, %v14324_v48  ;;  %v10598_v39 = vpop.eup %10597  ;;  %v4022_v42 = vadd.f32 1.0, %v10596_v49  ;;  %10613 = vpow2.f32 %v3590_v6  ;;  %17346 = vst [vmem:[#allocation69_spill] sm:$0xff] %v14340_v17  ;;  %v17350_v31 = vld [vmem:[#allocation82_spill] sm:$0xff] }
 0x3a2   : > { %5051 = vmatpush1.bf16.msra.mxu1 %v17345_v52  ;;  %v3608_v35 = vmul.f32 1.442695, %v3082_v18  ;;  %v10600_v58 = vpop.eup %10599  ;;  %10615 = vrcp.f32 %v4020_v33  ;;  %v4021_v34 = vadd.f32 1.0, %v10598_v39  ;;  %v14344_v52 = vadd.f32 %v13802_v4, %v13315_v56  ;;  %v14355_v4 = vpop.f32.mrb[129].mxu1 }
 0x3a3   : > { %v3081_v24 = vmin.f32 %v2761_v5, 80.0  ;;  %v3083_v12 = vmin.f32 %v2763_v21, 80.0  ;;  %v10602_v10 = vpop.eup %10601  ;;  %10617 = vrcp.f32 %v4022_v42  ;;  %v4023_v27 = vadd.f32 1.0, %v10600_v58  ;;  %17348 = vst [vmem:[#allocation97_spill] sm:$0xff] %v14355_v4  ;;  %v17349_v58 = vld [vmem:[#allocation45_spill] sm:$0xff] }
 0x3a4   : > { %v14348_v45 = vadd.f32 %v13813_v23, %v13334_v40  ;;  %v10604_v6 = vpop.eup %10603  ;;  %10619 = vrcp.f32 %v4021_v34  ;;  %v4030_v18 = vadd.f32 1.0, %v10602_v10  ;;  %v2770_v21 = vsub.f32 0.0, %v14344_v52 }
 0x3a5   : > { %v3606_v49 = vmul.f32 1.442695, %v3081_v24  ;;  %v3610_v17 = vmul.f32 1.442695, %v3083_v12  ;;  %v10606_v33 = vpop.eup %10605  ;;  %v14351_v5 = vmul.f32 %v10604_v6, %v14150_v44  ;;  %10621 = vrcp.f32 %v4023_v27  ;;  %v14365_v6 = vpop.f32.mrb[130].mxu1  ;;  %v17356_v44 = vld [vmem:[#allocation85_spill] sm:$0xff] }
 0x3a6   : > { %v2772_v39 = vsub.f32 0.0, %v14348_v45  ;;  %v10608_v42 = vpop.eup %10607  ;;  %10623 = vrcp.f32 %v4030_v18  ;;  %v4032_v23 = vadd.f32 1.0, %v10606_v33  ;;  %v4921_v34 = vpack.c.bf16 %v17350_v31, %v17349_v58  ;;  %17351 = vst [vmem:[#allocation35_spill] sm:$0xff] %v14365_v6  ;;  %v17352_v58 = vld [vmem:[#allocation48_spill] sm:$0xff] }
 0x3a7   : > { %17347 = vst [vmem:[#allocation64_spill] sm:$0xff] %v14351_v5  ;;  %v14361_v24 = vadd.f32 %v13831_v20, %v13355_v19  ;;  %v10610_v12 = vpop.eup %10609  ;;  %v4031_v10 = vadd.f32 1.0, %v10608_v42  ;;  %10625 = vpow2.f32 %v3604_v53  ;;  %v3090_v27 = vmin.f32 %v2770_v21, 80.0  ;;  %v17353_v42 = vld [vmem:[#allocation81_spill] sm:$0xff] }
 0x3a8   : > { %v14368_v4 = vmul.f32 %v10610_v12, %v14178_v62  ;;  %10627 = vrcp.f32 %v4032_v23  ;;  %v3092_v18 = vmin.f32 %v2772_v39, 80.0  ;;  %5023 = vmatprep.subr.bf16.mxu0 %v4921_v34  ;;  %v14373_v8 = vadd.f32 %v17352_v58, %v13362_v30  ;;  %v17354_v53 = vld [vmem:[#allocation105_spill] sm:$0xff]  ;;  %v14383_v12 = vpop.f32.mrb[131].mxu1  ;;  %v17359_v58 = vld [vmem:[#allocation27_spill] sm:$0xff] }
 0x3a9   : > { %v2771_v31 = vsub.f32 0.0, %v14361_v24  ;;  %v10612_v33 = vpop.eup %10611  ;;  %10629 = vrcp.f32 %v4031_v10  ;;  %v3624_v20 = vmul.f32 1.442695, %v3090_v27  ;;  %v17355_v21 = vpack.c.bf16 %v17353_v42, %v17354_v53  ;;  %17358 = vst [vmem:[#allocation111_spill] sm:$0xff] %v14383_v12  ;;  %v17360_v53 = vld [vmem:[#allocation24_spill] sm:$0xff] }
 0x3aa   : > { %v4931_v62 = vpack.c.bf16 %v17357_v9, %v17356_v44  ;;  %v14381_v23 = vmul.f32 %v10612_v33, %v14185_v13  ;;  %10631 = vpow2.f32 %v3608_v35  ;;  %v3628_v39 = vmul.f32 1.442695, %v3092_v18  ;;  %v14394_v13 = vpop.f32.mrb[132].mxu1 }
 0x3ab   : > { %5024 = vmatpush1.bf16.msra.mxu0 %v17355_v21  ;;  %v3091_v34 = vmin.f32 %v2771_v31, 80.0  ;;  %v10614_v10 = vpop.eup %10613  ;;  %10633 = vpow2.f32 %v3606_v49  ;;  %v2773_v27 = vsub.f32 0.0, %v14373_v8  ;;  %v14388_v42 = vadd.f32 %v17359_v58, %v13315_v56  ;;  %17361 = vst [vmem:[#allocation71_spill] sm:$0xff] %v14394_v13  ;;  %v17362_v58 = vld [vmem:[#allocation47_spill] sm:$0xff] }
 0x3ac   : > { %5025 = vmatprep.subr.bf16.mxu0 %v4931_v62  ;;  %v14392_v9 = vadd.f32 %v17360_v53, %v13334_v40  ;;  %v10616_v35 = vpop.eup %10615  ;;  %v4033_v44 = vadd.f32 1.0, %v10614_v10  ;;  %10635 = vpow2.f32 %v3610_v17  ;;  %v4863_v49 = vpack.c.bf16 %v14163_v38, %v14125_v63  ;;  %v17363_v53 = vld [vmem:[#allocation83_spill] sm:$0xff]  ;;  %v17366_v63 = vld [vmem:[#allocation46_spill] sm:$0xff] }
 0x3ad   : > { %v3626_v18 = vmul.f32 1.442695, %v3091_v34  ;;  %v10618_v31 = vpop.eup %10617  ;;  %v14399_v33 = vmul.f32 %v10616_v35, %v14197_v60  ;;  %10637 = vpow2.f32 %v3624_v20  ;;  %v3093_v21 = vmin.f32 %v2773_v27, 80.0 }
 0x3ae   : > { %v2780_v62 = vsub.f32 0.0, %v14388_v42  ;;  %v17364_v5 = vpack.c.bf16 %v17362_v58, %v17363_v53  ;;  %v10620_v13 = vpop.eup %10619  ;;  %v14406_v10 = vmul.f32 %v10618_v31, %v14202_v0  ;;  %10639 = vrcp.f32 %v4033_v44  ;;  %5052 = vmatprep.subr.bf16.mxu1 %v4863_v49  ;;  %v14419_v0 = vpop.f32.mrb[133].mxu1 }
 0x3af   : > { %v2782_v17 = vsub.f32 0.0, %v14392_v9  ;;  %v14411_v38 = vadd.f32 %v17366_v63, %v13355_v19  ;;  %v10622_v60 = vpop.eup %10621  ;;  %v14414_v20 = vmul.f32 %v10620_v13, %v14228_v22  ;;  %10641 = vpow2.f32 %v3628_v39  ;;  %17368 = vst [vmem:[#allocation65_spill] sm:$0xff] %v14419_v0  ;;  %v14425_v58 = vpop.f32.mrb[134].mxu1  ;;  %v17378_v0 = vld [vmem:[#allocation52_spill] sm:$0xff] }
 0x3b0   : > { %5026 = vmatpush1.bf16.msra.mxu0 %v17364_v5  ;;  %17365 = vst [vmem:[#allocation100_spill] sm:$0xff] %v14406_v10  ;;  %v3630_v34 = vmul.f32 1.442695, %v3093_v21  ;;  %v3100_v27 = vmin.f32 %v2780_v62, 80.0  ;;  %v17367_v5 = vpack.c.bf16 %v14146_v14, %v14083_v55  ;;  %v10624_v35 = vpop.eup %10623  ;;  %v14422_v44 = vmul.f32 %v10622_v60, %v14232_v46  ;;  %17370 = vst [vmem:[#allocation7_spill] sm:$0xff] %v14425_v58  ;;  %v17371_v55 = vld [vmem:[#allocation29_spill] sm:$0xff] }
 0x3b1   : > { %10643 = vpow2.f32 %v3626_v18  ;;  %v3102_v49 = vmin.f32 %v2782_v17, 80.0  ;;  %v2781_v31 = vsub.f32 0.0, %v14411_v38  ;;  %v10626_v22 = vpop.eup %10625  ;;  %v14428_v39 = vmul.f32 %v10624_v35, %v14242_v15  ;;  %v17372_v18 = vld [vmem:[#allocation23_spill] sm:$0xff]  ;;  %v14438_v63 = vpop.f32.mrb[135].mxu1 }
 0x3b2   : > { %5053 = vmatpush1.bf16.msra.mxu1 %v17367_v5  ;;  %17369 = vst [vmem:[#allocation63_spill] sm:$0xff] %v14422_v44  ;;  %10645 = vpow2.f32 %v3630_v34  ;;  %v3644_v13 = vmul.f32 1.442695, %v3100_v27  ;;  %v14432_v14 = vadd.f32 %v17371_v55, %v13362_v30  ;;  %v10628_v21 = vpop.eup %10627  ;;  %v4040_v62 = vadd.f32 1.0, %v10626_v22  ;;  %17373 = vst [vmem:[#allocation101_spill] sm:$0xff] %v14438_v63  ;;  %v14446_v5 = vpop.f32.mrb[136].mxu1 }
 0x3b3   : > { %v3648_v46 = vmul.f32 1.442695, %v3102_v49  ;;  %v3101_v53 = vmin.f32 %v2781_v31, 80.0  ;;  %v14436_v17 = vadd.f32 %v17372_v18, %v13315_v56  ;;  %v10630_v60 = vpop.eup %10629  ;;  %v14443_v34 = vmul.f32 %v10628_v21, %v14247_v59  ;;  %17375 = vst [vmem:[#allocation34_spill] sm:$0xff] %v14446_v5  ;;  %v17376_v5 = vld [vmem:[#allocation22_spill] sm:$0xff]  ;;  %v14460_v12 = vpop.f32.mrb[137].mxu1 }
 0x3b4   : > { %10647 = vpow2.f32 %v3644_v13  ;;  %v2783_v27 = vsub.f32 0.0, %v14432_v14  ;;  %v10632_v35 = vpop.eup %10631  ;;  %v14449_v49 = vmul.f32 %v10630_v60, %v14261_v36  ;;  %v14456_v58 = vadd.f32 %v17376_v5, %v13334_v40  ;;  %v17377_v60 = vld [vmem:[#allocation11_spill] sm:$0xff]  ;;  %17379 = vst [vmem:[#allocation39_spill] sm:$0xff] %v14460_v12 }
 0x3b5   : > { %17374 = vst [vmem:[#allocation72_spill] sm:$0xff] %v14443_v34  ;;  %10649 = vrcp.f32 %v4040_v62  ;;  %v3646_v31 = vmul.f32 1.442695, %v3101_v53  ;;  %v2790_v22 = vsub.f32 0.0, %v14436_v17  ;;  %v10634_v55 = vpop.eup %10633  ;;  %v4042_v15 = vadd.f32 1.0, %v10632_v35  ;;  %v17385_v18 = vld [vmem:[#allocation91_spill] sm:$0xff] }
 0x3b6   : > { %10651 = vpow2.f32 %v3648_v46  ;;  %v3103_v59 = vmin.f32 %v2783_v27, 80.0  ;;  %v10636_v13 = vpop.eup %10635  ;;  %v4041_v21 = vadd.f32 1.0, %v10634_v55  ;;  %v4941_v44 = vpack.c.bf16 %v17378_v0, %v17377_v60  ;;  %v17383_v0 = vld [vmem:[#allocation37_spill] sm:$0xff] }
 0x3b7   : > { %10653 = vpow2.f32 %v3646_v31  ;;  %v3110_v63 = vmin.f32 %v2790_v22, 80.0  ;;  %v10638_v36 = vpop.eup %10637  ;;  %v4043_v62 = vadd.f32 1.0, %v10636_v13  ;;  %v2792_v31 = vsub.f32 0.0, %v14456_v58  ;;  %v14463_v22 = vpop.f32.mrb[138].mxu1  ;;  %v17384_v60 = vld [vmem:[#allocation21_spill] sm:$0xff] }
 0x3b8   : > { %10655 = vrcp.f32 %v4042_v15  ;;  %v3650_v53 = vmul.f32 1.442695, %v3103_v59  ;;  %v10640_v35 = vpop.eup %10639  ;;  %v4050_v46 = vadd.f32 1.0, %v10638_v36  ;;  %17380 = vst [vmem:[#allocation74_spill] sm:$0xff] %v14463_v22  ;;  %5027 = vmatprep.subr.bf16.mxu0 %v4941_v44  ;;  %v17382_v15 = vld [vmem:[#allocation49_spill] sm:$0xff]  ;;  %v14474_v13 = vadd.f32 %v17383_v0, %v13362_v30  ;;  %v14481_v44 = vpop.f32.mrb[139].mxu1 }
 0x3b9   : > { %10657 = vrcp.f32 %v4041_v21  ;;  %v3664_v27 = vmul.f32 1.442695, %v3110_v63  ;;  %v10642_v55 = vpop.eup %10641  ;;  %v14466_v5 = vmul.f32 %v10640_v35, %v14287_v54  ;;  %v14470_v59 = vadd.f32 %v17382_v15, %v13355_v19  ;;  %v17387_v54 = vld [vmem:[#allocation95_spill] sm:$0xff]  ;;  %17389 = vst [vmem:[#allocation103_spill] sm:$0xff] %v14481_v44  ;;  %v14485_v34 = vpop.f32.mrb[140].mxu1 }
 0x3ba   : > { %10659 = vrcp.f32 %v4043_v62  ;;  %v4052_v63 = vadd.f32 1.0, %v10642_v55  ;;  %v3112_v36 = vmin.f32 %v2792_v31, 80.0  ;;  %v17386_v22 = vpack.c.bf16 %v17384_v60, %v17385_v18  ;;  %v17388_v35 = vld [vmem:[#allocation15_spill] sm:$0xff]  ;;  %17390 = vst [vmem:[#allocation6_spill] sm:$0xff] %v14485_v34  ;;  %v17391_v18 = vld [vmem:[#allocation92_spill] sm:$0xff] }
 0x3bb   : > { %17381 = vst [vmem:[#allocation114_spill] sm:$0xff] %v14466_v5  ;;  %v10644_v21 = vpop.eup %10643  ;;  %10661 = vrcp.f32 %v4050_v46  ;;  %v4951_v62 = vpack.c.bf16 %v17388_v35, %v17387_v54  ;;  %v2791_v10 = vsub.f32 0.0, %v14470_v59  ;;  %v2793_v0 = vsub.f32 0.0, %v14474_v13 }
 0x3bc   : > { %5028 = vmatpush1.bf16.msra.mxu0 %v17386_v22  ;;  %v10646_v12 = vpop.eup %10645  ;;  %v4051_v15 = vadd.f32 1.0, %v10644_v21  ;;  %10663 = vpow2.f32 %v3650_v53  ;;  %v3668_v31 = vmul.f32 1.442695, %v3112_v36  ;;  %v14489_v22 = vadd.f32 %v17391_v18, %v13315_v56  ;;  %v17392_v53 = vld [vmem:[#allocation51_spill] sm:$0xff]  ;;  %v17393_v36 = vld [vmem:[#allocation61_spill] sm:$0xff] }
 0x3bd   : > { %10665 = vrcp.f32 %v4052_v63  ;;  %v4053_v46 = vadd.f32 1.0, %v10646_v12  ;;  %5029 = vmatprep.subr.bf16.mxu0 %v4951_v62  ;;  %v3111_v60 = vmin.f32 %v2791_v10, 80.0  ;;  %v3113_v54 = vmin.f32 %v2793_v0, 80.0  ;;  %v17394_v62 = vld [vmem:[#allocation55_spill] sm:$0xff] }
 0x3be   : > { %v10648_v55 = vpop.eup %10647  ;;  %10667 = vrcp.f32 %v4051_v15  ;;  %v14493_v21 = vadd.f32 %v17392_v53, %v13334_v40  ;;  %v2800_v63 = vsub.f32 0.0, %v14489_v22  ;;  %v4873_v12 = vpack.c.bf16 %v14269_v7, %v14208_v41  ;;  %v14504_v53 = vpop.f32.mrb[141].mxu1 }
 0x3bf   : > { %v10650_v35 = vpop.eup %10649  ;;  %10669 = vrcp.f32 %v4053_v46  ;;  %v4060_v44 = vadd.f32 1.0, %v10648_v55  ;;  %v17395_v18 = vpack.c.bf16 %v17393_v36, %v17394_v62  ;;  %v3666_v15 = vmul.f32 1.442695, %v3111_v60  ;;  %17396 = vst [vmem:[#allocation38_spill] sm:$0xff] %v14504_v53  ;;  %v17397_v36 = vld [vmem:[#allocation32_spill] sm:$0xff] }
 0x3c0   : > { %v10652_v34 = vpop.eup %10651  ;;  %v14502_v10 = vmul.f32 %v10650_v35, %v14296_v1  ;;  %10671 = vpow2.f32 %v3664_v27  ;;  %v3670_v0 = vmul.f32 1.442695, %v3113_v54  ;;  %v3120_v5 = vmin.f32 %v2800_v63, 80.0  ;;  %5054 = vmatprep.subr.bf16.mxu1 %v4873_v12  ;;  %v17398_v1 = vld [vmem:[#allocation5_spill] sm:$0xff]  ;;  %v17423_v53 = vld [vmem:[#allocation112_spill] sm:$0xff] }
 0x3c1   : > { %5030 = vmatpush1.bf16.msra.mxu0 %v17395_v18  ;;  %v10654_v46 = vpop.eup %10653  ;;  %10673 = vrcp.f32 %v4060_v44  ;;  %v4062_v55 = vadd.f32 1.0, %v10652_v34  ;;  %v2802_v6 = vsub.f32 0.0, %v14493_v21  ;;  %v14509_v62 = vadd.f32 %v17397_v36, %v13355_v19  ;;  %v14519_v44 = vpop.f32.mrb[142].mxu1 }
 0x3c2   : > { %v10656_v41 = vpop.eup %10655  ;;  %v4061_v7 = vadd.f32 1.0, %v10654_v46  ;;  %10675 = vpow2.f32 %v3668_v31  ;;  %v14513_v27 = vadd.f32 %v17398_v1, %v13362_v30  ;;  %v17399_v60 = vpack.c.bf16 %v14237_v16, %v14174_v37  ;;  %17401 = vst [vmem:[#allocation102_spill] sm:$0xff] %v14519_v44  ;;  %v14524_v12 = vpop.f32.mrb[143].mxu1 }
 0x3c3   : > { %v17400_v34 = vmov 1065369472   ;;  %v10658_v54 = vpop.eup %10657  ;;  %v14522_v35 = vmul.f32 %v10656_v41, %v14301_v61  ;;  %10677 = vrcp.f32 %v4062_v55  ;;  %v3684_v31 = vmul.f32 1.442695, %v3120_v5  ;;  %17403 = vst [vmem:[#allocation78_spill] sm:$0xff] %v14524_v12  ;;  %v14539_v41 = vpop.f32.mrb[144].mxu1 }
 0x3c4   : > { %5055 = vmatpush1.bf16.msra.mxu1 %v17399_v60  ;;  %5032 = vmatmul.mubr.bf16.vlgmr.msra.gmra.mrb[164].mxu0 %v17400_v34  ;;  %v3122_v63 = vmin.f32 %v2802_v6, 80.0  ;;  %v10660_v18 = vpop.eup %10659  ;;  %v14528_v46 = vmul.f32 %v10658_v54, %v14320_v47  ;;  %10679 = vrcp.f32 %v4061_v7  ;;  %v2801_v37 = vsub.f32 0.0, %v14509_v62  ;;  %v17404_v6 = vld [vmem:[#allocation53_spill] sm:$0xff]  ;;  %17405 = vst [vmem:[#allocation80_spill] sm:$0xff] %v14539_v41  ;;  %v17418_v12 = vld [vmem:[#allocation14_spill] sm:$0xff] }
 0x3c5   : > { %17402 = vst [vmem:[#allocation75_spill] sm:$0xff] %v14522_v35  ;;  %5113 = vmatprep.mubr.bf16.mxu0 %v17400_v34  ;;  %v2803_v16 = vsub.f32 0.0, %v14513_v27  ;;  %v10662_v36 = vpop.eup %10661  ;;  %v14533_v61 = vmul.f32 %v10660_v18, %v14324_v48  ;;  %10681 = vpow2.f32 %v3666_v15  ;;  %v14537_v55 = vadd.f32 %v17404_v6, %v13315_v56  ;;  %v17406_v15 = vld [vmem:[#allocation56_spill] sm:$0xff] }
 0x3c6   : > { %v3688_v5 = vmul.f32 1.442695, %v3122_v63  ;;  %v10664_v1 = vpop.eup %10663  ;;  %v14542_v47 = vmul.f32 %v10662_v36, %v14344_v52  ;;  %10683 = vpow2.f32 %v3670_v0  ;;  %v3121_v7 = vmin.f32 %v2801_v37, 80.0  ;;  %v14554_v0 = vpop.f32.mrb[145].mxu1 }
 0x3c7   : > { %v3123_v60 = vmin.f32 %v2803_v16, 80.0  ;;  %v10666_v54 = vpop.eup %10665  ;;  %v4063_v34 = vadd.f32 1.0, %v10664_v1  ;;  %10685 = vpow2.f32 %v3684_v31  ;;  %v2810_v48 = vsub.f32 0.0, %v14537_v55  ;;  %17408 = vst [vmem:[#allocation79_spill] sm:$0xff] %v14554_v0 }
 0x3c8   : > { %v14547_v63 = vadd.f32 %v17406_v15, %v13334_v40  ;;  %v10668_v18 = vpop.eup %10667  ;;  %v14552_v41 = vmul.f32 %v10666_v54, %v14348_v45  ;;  %10687 = vpow2.f32 %v3688_v5  ;;  %v3686_v52 = vmul.f32 1.442695, %v3121_v7  ;;  %v14565_v5 = vpop.f32.mrb[146].mxu1 }
 0x3c9   : > { %v10670_v37 = vpop.eup %10669  ;;  %v14557_v31 = vmul.f32 %v10668_v18, %v14361_v24  ;;  %10689 = vrcp.f32 %v4063_v34  ;;  %v3690_v16 = vmul.f32 1.442695, %v3123_v60  ;;  %v3130_v36 = vmin.f32 %v2810_v48, 80.0  ;;  %17409 = vst [vmem:[#allocation42_spill] sm:$0xff] %v14565_v5  ;;  %v17410_v18 = vld [vmem:[#allocation107_spill] sm:$0xff]  ;;  %v17411_v34 = vld [vmem:[#allocation110_spill] sm:$0xff] }
 0x3ca   : > { %17407 = vst [vmem:[#allocation77_spill] sm:$0xff] %v14552_v41  ;;  %v10672_v1 = vpop.eup %10671  ;;  %v14562_v6 = vmul.f32 %v10670_v37, %v14373_v8  ;;  %10691 = vpow2.f32 %v3686_v52  ;;  %v2812_v45 = vsub.f32 0.0, %v14547_v63  ;;  %v4805_v60 = vpack.c.bf16 %v17411_v34, %v17410_v18  ;;  %v14569_v48 = vpop.f32.mrb[147].mxu1  ;;  %v17414_v18 = vld [vmem:[#allocation113_spill] sm:$0xff] }
 0x3cb   : > { %v10674_v7 = vpop.eup %10673  ;;  %v4070_v54 = vadd.f32 1.0, %v10672_v1  ;;  %10693 = vpow2.f32 %v3690_v16  ;;  %v3704_v24 = vmul.f32 1.442695, %v3130_v36  ;;  %17412 = vst [vmem:[#allocation45_spill] sm:$0xff] %v14569_v48  ;;  %v14576_v52 = vadd.f32 %v14010_v43, %v13355_v19  ;;  %v17413_v1 = vld [vmem:[#allocation73_spill] sm:$0xff]  ;;  %v17415_v48 = vld [vmem:[#allocation58_spill] sm:$0xff] }
 0x3cc   : > { %v10676_v0 = vpop.eup %10675  ;;  %v14572_v15 = vmul.f32 %v10674_v7, %v14388_v42  ;;  %v3132_v8 = vmin.f32 %v2812_v45, 80.0  ;;  %v14580_v37 = vadd.f32 %v14042_v28, %v13362_v30  ;;  %5081 = vmatprep.subr.bf16.mxu0 %v4805_v60  ;;  %v4815_v34 = vpack.c.bf16 %v17414_v18, %v17413_v1  ;;  %v17417_v5 = vld [vmem:[#allocation33_spill] sm:$0xff] }
 0x3cd   : > { %v10678_v16 = vpop.eup %10677  ;;  %10695 = vrcp.f32 %v4070_v54  ;;  %v4072_v36 = vadd.f32 1.0, %v10676_v0  ;;  %v14586_v42 = vadd.f32 %v17415_v48, %v13315_v56  ;;  %v2811_v28 = vsub.f32 0.0, %v14576_v52 }
 0x3ce   : > { %v10680_v45 = vpop.eup %10679  ;;  %v14589_v7 = vmul.f32 %v10678_v16, %v14392_v9  ;;  %10697 = vpow2.f32 %v3704_v24  ;;  %v3708_v43 = vmul.f32 1.442695, %v3132_v8  ;;  %v17419_v54 = vpack.c.bf16 %v17417_v5, %v17418_v12  ;;  %v17420_v8 = vld [vmem:[#allocation12_spill] sm:$0xff]  ;;  %v14604_v12 = vpop.f32.mrb[148].mxu1 }
 0x3cf   : > { %v10682_v0 = vpop.eup %10681  ;;  %v14596_v60 = vmul.f32 %v10680_v45, %v14411_v38  ;;  %10699 = vrcp.f32 %v4072_v36  ;;  %v2813_v48 = vsub.f32 0.0, %v14580_v37  ;;  %v2820_v1 = vsub.f32 0.0, %v14586_v42  ;;  %17421 = vst [vmem:[#allocation48_spill] sm:$0xff] %v14604_v12 }
 0x3d0   : > { %17416 = vst [vmem:[#allocation82_spill] sm:$0xff] %v14589_v7  ;;  %5082 = vmatpush1.bf16.msra.mxu0 %v17419_v54  ;;  %v10684_v9 = vpop.eup %10683  ;;  %v4071_v16 = vadd.f32 1.0, %v10682_v0  ;;  %10701 = vpow2.f32 %v3708_v43  ;;  %v3131_v24 = vmin.f32 %v2811_v28, 80.0  ;;  %v14602_v18 = vadd.f32 %v17420_v8, %v13334_v40  ;;  %v17424_v8 = vld [vmem:[#allocation70_spill] sm:$0xff] }
 0x3d1   : > { %5083 = vmatprep.subr.bf16.mxu0 %v4815_v34  ;;  %v10686_v5 = vpop.eup %10685  ;;  %v4073_v54 = vadd.f32 1.0, %v10684_v9  ;;  %v3133_v38 = vmin.f32 %v2813_v48, 80.0  ;;  %v3140_v45 = vmin.f32 %v2820_v1, 80.0  ;;  %v4883_v36 = vpack.c.bf16 %v14368_v4, %v14306_v57  ;;  %v14608_v34 = vpop.f32.mrb[149].mxu1 }
 0x3d2   : > { %17422 = vst [vmem:[#allocation81_spill] sm:$0xff] %v14608_v34  ;;  %v10688_v44 = vpop.eup %10687  ;;  %10703 = vrcp.f32 %v4071_v16  ;;  %v4080_v0 = vadd.f32 1.0, %v10686_v5  ;;  %v3706_v43 = vmul.f32 1.442695, %v3131_v24  ;;  %v2822_v28 = vsub.f32 0.0, %v14602_v18  ;;  %v14614_v12 = vpop.f32.mrb[150].mxu1 }
 0x3d3   : > { %v17425_v35 = vpack.c.bf16 %v17423_v53, %v17424_v8  ;;  %17426 = vst [vmem:[#allocation105_spill] sm:$0xff] %v14614_v12  ;;  %v10690_v9 = vpop.eup %10689  ;;  %10705 = vrcp.f32 %v4073_v54  ;;  %v4082_v48 = vadd.f32 1.0, %v10688_v44  ;;  %v3710_v1 = vmul.f32 1.442695, %v3133_v38  ;;  %5056 = vmatprep.subr.bf16.mxu1 %v4883_v36  ;;  %v14616_v57 = vpop.f32.mrb[151].mxu1  ;;  %v17429_v5 = vld [vmem:[#allocation84_spill] sm:$0xff] }
 0x3d4   : > { %v3724_v41 = vmul.f32 1.442695, %v3140_v45  ;;  %17427 = vst [vmem:[#allocation85_spill] sm:$0xff] %v14616_v57  ;;  %v10692_v4 = vpop.eup %10691  ;;  %v14619_v16 = vmul.f32 %v10690_v9, %v14432_v14  ;;  %10707 = vrcp.f32 %v4080_v0  ;;  %v3142_v24 = vmin.f32 %v2822_v28, 80.0  ;;  %v17431_v38 = vld [vmem:[#allocation36_spill] sm:$0xff]  ;;  %v17432_v14 = vld [vmem:[#allocation43_spill] sm:$0xff] }
 0x3d5   : > { %5084 = vmatpush1.bf16.msra.mxu0 %v17425_v35  ;;  %v14623_v53 = vadd.f32 %v17429_v5, %v13355_v19  ;;  %v17430_v35 = vpack.c.bf16 %v14327_v11, %v14283_v29  ;;  %v10694_v44 = vpop.eup %10693  ;;  %10709 = vrcp.f32 %v4082_v48  ;;  %v4081_v54 = vadd.f32 1.0, %v10692_v4 }
 0x3d6   : > { %17428 = vst [vmem:[#allocation87_spill] sm:$0xff] %v14619_v16  ;;  %v14630_v45 = vadd.f32 %v17431_v38, %v13362_v30  ;;  %v14634_v36 = vadd.f32 %v17432_v14, %v13315_v56  ;;  %v4083_v0 = vadd.f32 1.0, %v10694_v44  ;;  %10711 = vpow2.f32 %v3706_v43  ;;  %v17433_v43 = vld [vmem:[#allocation41_spill] sm:$0xff]  ;;  %v14648_v38 = vpop.f32.mrb[152].mxu1 }
 0x3d7   : > { %5057 = vmatpush1.bf16.msra.mxu1 %v17430_v35  ;;  %v3728_v28 = vmul.f32 1.442695, %v3142_v24  ;;  %v2821_v8 = vsub.f32 0.0, %v14623_v53  ;;  %v10696_v9 = vpop.eup %10695  ;;  %10713 = vrcp.f32 %v4081_v54  ;;  %v14641_v48 = vadd.f32 %v14103_v32, %v13334_v40  ;;  %v17434_v24 = vld [vmem:[#allocation25_spill] sm:$0xff]  ;;  %17435 = vst [vmem:[#allocation27_spill] sm:$0xff] %v14648_v38  ;;  %v14650_v34 = vpop.f32.mrb[153].mxu1 }
 0x3d8   : > { %v2823_v29 = vsub.f32 0.0, %v14630_v45  ;;  %v2830_v11 = vsub.f32 0.0, %v14634_v36  ;;  %v10698_v4 = vpop.eup %10697  ;;  %v14644_v5 = vmul.f32 %v10696_v9, %v14436_v17  ;;  %10715 = vrcp.f32 %v4083_v0  ;;  %17436 = vst [vmem:[#allocation24_spill] sm:$0xff] %v14650_v34 }
 0x3d9   : > { %v3141_v35 = vmin.f32 %v2821_v8, 80.0  ;;  %v4825_v44 = vpack.c.bf16 %v17434_v24, %v17433_v43  ;;  %v10700_v54 = vpop.eup %10699  ;;  %v4090_v14 = vadd.f32 1.0, %v10698_v4  ;;  %10717 = vpow2.f32 %v3710_v1  ;;  %v14657_v8 = vpop.f32.mrb[154].mxu1 }
 0x3da   : > { %v3143_v57 = vmin.f32 %v2823_v29, 80.0  ;;  %v3150_v12 = vmin.f32 %v2830_v11, 80.0  ;;  %v10702_v32 = vpop.eup %10701  ;;  %v14655_v17 = vmul.f32 %v10700_v54, %v14456_v58  ;;  %10719 = vpow2.f32 %v3724_v41  ;;  %17438 = vst [vmem:[#allocation83_spill] sm:$0xff] %v14657_v8  ;;  %v17439_v29 = vld [vmem:[#allocation104_spill] sm:$0xff]  ;;  %v14662_v24 = vpop.f32.mrb[155].mxu1 }
 0x3db   : > { %v3726_v0 = vmul.f32 1.442695, %v3141_v35  ;;  %5085 = vmatprep.subr.bf16.mxu0 %v4825_v44  ;;  %10721 = vrcp.f32 %v4090_v14  ;;  %v4092_v9 = vadd.f32 1.0, %v10702_v32  ;;  %v17440_v11 = vld [vmem:[#allocation76_spill] sm:$0xff]  ;;  %17442 = vst [vmem:[#allocation46_spill] sm:$0xff] %v14662_v24  ;;  %v2832_v41 = vsub.f32 0.0, %v14641_v48 }
 0x3dc   : > { %17437 = vst [vmem:[#allocation47_spill] sm:$0xff] %v14655_v17  ;;  %v3730_v4 = vmul.f32 1.442695, %v3143_v57  ;;  %v3744_v1 = vmul.f32 1.442695, %v3150_v12  ;;  %v17441_v43 = vpack.c.bf16 %v17439_v29, %v17440_v11  ;;  %v10704_v34 = vpop.eup %10703  ;;  %10723 = vpow2.f32 %v3728_v28  ;;  %v17443_v35 = vld [vmem:[#allocation59_spill] sm:$0xff] }
 0x3dd   : > { %v14669_v44 = vadd.f32 %v17443_v35, %v13355_v19  ;;  %v10706_v54 = vpop.eup %10705  ;;  %v14672_v12 = vmul.f32 %v10704_v34, %v14470_v59  ;;  %10725 = vrcp.f32 %v4092_v9  ;;  %v17444_v57 = vld [vmem:[#allocation60_spill] sm:$0xff]  ;;  %v17445_v32 = vld [vmem:[#allocation31_spill] sm:$0xff]  ;;  %v17446_v29 = vld [vmem:[#allocation50_spill] sm:$0xff]  ;;  %v3152_v58 = vmin.f32 %v2832_v41, 80.0 }
 0x3de   : > { %5086 = vmatpush1.bf16.msra.mxu0 %v17441_v43  ;;  %v14676_v14 = vadd.f32 %v17444_v57, %v13362_v30  ;;  %v4835_v11 = vpack.c.bf16 %v17446_v29, %v17445_v32  ;;  %v10708_v43 = vpop.eup %10707  ;;  %v14681_v28 = vmul.f32 %v10706_v54, %v14474_v13  ;;  %10727 = vpow2.f32 %v3726_v0  ;;  %v17447_v9 = vld [vmem:[#allocation44_spill] sm:$0xff]  ;;  %v14692_v32 = vpop.f32.mrb[156].mxu1  ;;  %v17450_v29 = vld [vmem:[#allocation115_spill] sm:$0xff] }
 0x3df   : > { %v2831_v35 = vsub.f32 0.0, %v14669_v44  ;;  %v10710_v16 = vpop.eup %10709  ;;  %v14685_v59 = vmul.f32 %v10708_v43, %v14489_v22  ;;  %10729 = vpow2.f32 %v3730_v4  ;;  %v14690_v57 = vadd.f32 %v17447_v9, %v13315_v56  ;;  %17448 = vst [vmem:[#allocation29_spill] sm:$0xff] %v14692_v32  ;;  %v17451_v22 = vld [vmem:[#allocation28_spill] sm:$0xff]  ;;  %v17453_v9 = vld [vmem:[#allocation106_spill] sm:$0xff]  ;;  %v14705_v32 = vpop.f32.mrb[157].mxu1 }
 0x3e0   : > { %v2833_v34 = vsub.f32 0.0, %v14676_v14  ;;  %5087 = vmatprep.subr.bf16.mxu0 %v4835_v11  ;;  %v10712_v13 = vpop.eup %10711  ;;  %v14695_v0 = vmul.f32 %v10710_v16, %v14493_v21  ;;  %10731 = vpow2.f32 %v3744_v1  ;;  %v3748_v41 = vmul.f32 1.442695, %v3152_v58  ;;  %17454 = vst [vmem:[#allocation22_spill] sm:$0xff] %v14705_v32 }
 0x3e1   : > { %v3151_v54 = vmin.f32 %v2831_v35, 80.0  ;;  %v17452_v43 = vpack.c.bf16 %v17450_v29, %v17451_v22  ;;  %v10714_v4 = vpop.eup %10713  ;;  %v4091_v24 = vadd.f32 1.0, %v10712_v13  ;;  %v2840_v8 = vsub.f32 0.0, %v14690_v57  ;;  %v14712_v35 = vpop.f32.mrb[158].mxu1 }
 0x3e2   : > { %17449 = vst [vmem:[#allocation23_spill] sm:$0xff] %v14695_v0  ;;  %v3153_v11 = vmin.f32 %v2833_v34, 80.0  ;;  %v14703_v38 = vadd.f32 %v17453_v9, %v13334_v40  ;;  %v10716_v21 = vpop.eup %10715  ;;  %v14708_v16 = vmul.f32 %v10714_v4, %v14509_v62  ;;  %10733 = vpow2.f32 %v3748_v41  ;;  %17455 = vst [vmem:[#allocation11_spill] sm:$0xff] %v14712_v35  ;;  %v17457_v41 = vld [vmem:[#allocation96_spill] sm:$0xff] }
 0x3e3   : > { %5088 = vmatpush1.bf16.msra.mxu0 %v17452_v43  ;;  %v3746_v1 = vmul.f32 1.442695, %v3151_v54  ;;  %v4893_v58 = vpack.c.bf16 %v14449_v49, %v14414_v20  ;;  %v10718_v34 = vpop.eup %10717  ;;  %v14715_v13 = vmul.f32 %v10716_v21, %v14513_v27  ;;  %10735 = vrcp.f32 %v4091_v24  ;;  %v14717_v43 = vpop.f32.mrb[159].mxu1  ;;  %v17458_v24 = vld [vmem:[#allocation66_spill] sm:$0xff] }
 0x3e4   : > { %v3750_v29 = vmul.f32 1.442695, %v3153_v11  ;;  %v3160_v22 = vmin.f32 %v2840_v8, 80.0  ;;  %17456 = vst [vmem:[#allocation52_spill] sm:$0xff] %v14717_v43  ;;  %v10720_v9 = vpop.eup %10719  ;;  %v4093_v32 = vadd.f32 1.0, %v10718_v34  ;;  %v2842_v62 = vsub.f32 0.0, %v14703_v38 }
 0x3e5   : > { %10737 = vpow2.f32 %v3746_v1  ;;  %5058 = vmatprep.subr.bf16.mxu1 %v4893_v58  ;;  %v14722_v20 = vadd.f32 %v17457_v41, %v13355_v19  ;;  %v10722_v49 = vpop.eup %10721  ;;  %v4100_v54 = vadd.f32 1.0, %v10720_v9  ;;  %v14726_v4 = vadd.f32 %v17458_v24, %v13362_v30  ;;  %v17460_v9 = vld [vmem:[#allocation54_spill] sm:$0xff] }
 0x3e6   : > { %10739 = vpow2.f32 %v3750_v29  ;;  %v3764_v27 = vmul.f32 1.442695, %v3160_v22  ;;  %v17459_v8 = vpack.c.bf16 %v14428_v39, %v14399_v33  ;;  %v10724_v11 = vpop.eup %10723  ;;  %v14732_v21 = vmul.f32 %v10722_v49, %v14537_v55  ;;  %v17466_v43 = vld [vmem:[#allocation90_spill] sm:$0xff] }
 0x3e7   : > { %10741 = vrcp.f32 %v4093_v32  ;;  %v3162_v1 = vmin.f32 %v2842_v62, 80.0  ;;  %v2841_v58 = vsub.f32 0.0, %v14722_v20  ;;  %v10726_v34 = vpop.eup %10725  ;;  %v4102_v29 = vadd.f32 1.0, %v10724_v11  ;;  %v14745_v32 = vpop.f32.mrb[160].mxu1 }
 0x3e8   : > { %5059 = vmatpush1.bf16.msra.mxu1 %v17459_v8  ;;  %10743 = vrcp.f32 %v4100_v54  ;;  %v2843_v22 = vsub.f32 0.0, %v14726_v4  ;;  %v14738_v41 = vadd.f32 %v17460_v9, %v13315_v56  ;;  %v10728_v24 = vpop.eup %10727  ;;  %v14743_v39 = vmul.f32 %v10726_v34, %v14547_v63  ;;  %17462 = vst [vmem:[#allocation37_spill] sm:$0xff] %v14745_v32  ;;  %v14747_v11 = vpop.f32.mrb[161].mxu1 }
 0x3e9   : > { %10745 = vpow2.f32 %v3764_v27  ;;  %v3768_v55 = vmul.f32 1.442695, %v3162_v1  ;;  %v10730_v62 = vpop.eup %10729  ;;  %v4101_v49 = vadd.f32 1.0, %v10728_v24  ;;  %v3161_v54 = vmin.f32 %v2841_v58, 80.0  ;;  %17463 = vst [vmem:[#allocation21_spill] sm:$0xff] %v14747_v11  ;;  %v14752_v34 = vpop.f32.mrb[162].mxu1 }
 0x3ea   : > { %17461 = vst [vmem:[#allocation49_spill] sm:$0xff] %v14743_v39  ;;  %10747 = vrcp.f32 %v4102_v29  ;;  %v3163_v8 = vmin.f32 %v2843_v22, 80.0  ;;  %v10732_v9 = vpop.eup %10731  ;;  %v4103_v35 = vadd.f32 1.0, %v10730_v62  ;;  %v2850_v63 = vsub.f32 0.0, %v14738_v41  ;;  %17464 = vst [vmem:[#allocation91_spill] sm:$0xff] %v14752_v34  ;;  %v14754_v29 = vpop.f32.mrb[163].mxu1 }
 0x3eb   : > { %10749 = vpow2.f32 %v3768_v55  ;;  %v4110_v27 = vadd.f32 1.0, %v10732_v9  ;;  %v3766_v1 = vmul.f32 1.442695, %v3161_v54  ;;  %17465 = vst [vmem:[#allocation95_spill] sm:$0xff] %v14754_v29  ;;  %v14758_v24 = vadd.f32 %v14217_v50, %v13334_v40  ;;  %v17467_v62 = vld [vmem:[#allocation93_spill] sm:$0xff]  ;;  %v17470_v29 = vld [vmem:[#allocation88_spill] sm:$0xff] }
 0x3ec   : > { %10751 = vrcp.f32 %v4101_v49  ;;  %v3770_v33 = vmul.f32 1.442695, %v3163_v8  ;;  %v10734_v58 = vpop.eup %10733  ;;  %v3170_v22 = vmin.f32 %v2850_v63, 80.0  ;;  %v4845_v55 = vpack.c.bf16 %v17467_v62, %v17466_v43  ;;  %v17468_v54 = vld [vmem:[#allocation89_spill] sm:$0xff]  ;;  %v17469_v62 = vld [vmem:[#allocation4_spill] sm:$0xff]  ;;  %v14781_v39 = vpop.f32.mrb[164].mxu1 }
 0x3ed   : > { %10753 = vrcp.f32 %v4103_v35  ;;  %v10736_v11 = vpop.eup %10735  ;;  %v4112_v32 = vadd.f32 1.0, %v10734_v58  ;;  %v14764_v49 = vadd.f32 %v14219_v25, %v13355_v19  ;;  %v14768_v8 = vadd.f32 %v17468_v54, %v13362_v30  ;;  %v14786_v17 = vpop.f32.mrb[165].mxu1 }
 0x3ee   : > { %10755 = vrcp.f32 %v4110_v27  ;;  %v14771_v9 = vmul.f32 %v10736_v11, %v14576_v52  ;;  %v3784_v50 = vmul.f32 1.442695, %v3170_v22  ;;  %v2852_v63 = vsub.f32 0.0, %v14758_v24  ;;  %5089 = vmatprep.subr.bf16.mxu0 %v4845_v55  ;;  %v17472_v11 = vld [vmem:[#allocation30_spill] sm:$0xff] }
 0x3ef   : > { %v10738_v35 = vpop.eup %10737  ;;  %10757 = vpow2.f32 %v3766_v1  ;;  %v2851_v58 = vsub.f32 0.0, %v14764_v49  ;;  %v2853_v25 = vsub.f32 0.0, %v14768_v8  ;;  %v17471_v54 = vpack.c.bf16 %v17469_v62, %v17470_v29  ;;  %v17473_v1 = vld [vmem:[#allocation8_spill] sm:$0xff] }
 0x3f0   : > { %v10740_v43 = vpop.eup %10739  ;;  %10759 = vrcp.f32 %v4112_v32  ;;  %v4111_v27 = vadd.f32 1.0, %v10738_v35  ;;  %v3172_v52 = vmin.f32 %v2852_v63, 80.0  ;;  %v4855_v22 = vpack.c.bf16 %v17473_v1, %v17472_v11  ;;  %v17474_v63 = vld [vmem:[#allocation62_spill] sm:$0xff]  ;;  %v17476_v11 = vld [vmem:[#allocation40_spill] sm:$0xff] }
 0x3f1   : > { %5090 = vmatpush1.bf16.msra.mxu0 %v17471_v54  ;;  %v10742_v34 = vpop.eup %10741  ;;  %v4113_v0 = vadd.f32 1.0, %v10740_v43  ;;  %10761 = vpow2.f32 %v3770_v33  ;;  %v3171_v35 = vmin.f32 %v2851_v58, 80.0  ;;  %v3173_v7 = vmin.f32 %v2853_v25, 80.0  ;;  %v14795_v54 = vpop.f32.mrb[166].mxu1  ;;  %v17475_v25 = vld [vmem:[#allocation9_spill] sm:$0xff] }
 0x3f2   : > { %v10744_v55 = vpop.eup %10743  ;;  %v14784_v32 = vmul.f32 %v10742_v34, %v14580_v37  ;;  %10763 = vrcp.f32 %v4111_v27  ;;  %v3788_v33 = vmul.f32 1.442695, %v3172_v52  ;;  %5091 = vmatprep.subr.bf16.mxu0 %v4855_v22  ;;  %v14793_v43 = vadd.f32 %v17474_v63, %v13315_v56 }
 0x3f3   : > { %v10746_v29 = vpop.eup %10745  ;;  %v14789_v62 = vmul.f32 %v10744_v55, %v14586_v42  ;;  %10765 = vrcp.f32 %v4113_v0  ;;  %v3786_v27 = vmul.f32 1.442695, %v3171_v35  ;;  %v3790_v58 = vmul.f32 1.442695, %v3173_v7  ;;  %v14800_v42 = vpop.f32.mrb[167].mxu1  ;;  %v17479_v55 = vld [vmem:[#allocation68_spill] sm:$0xff] }
 0x3f4   : > { %v10748_v37 = vpop.eup %10747  ;;  %v4120_v34 = vadd.f32 1.0, %v10746_v29  ;;  %10767 = vpow2.f32 %v3784_v50  ;;  %v17477_v1 = vpack.c.bf16 %v17475_v25, %v17476_v11  ;;  %17478 = vst [vmem:[#allocation15_spill] sm:$0xff] %v14800_v42  ;;  %v2860_v22 = vsub.f32 0.0, %v14793_v43  ;;  %v17480_v29 = vld [vmem:[#allocation98_spill] sm:$0xff] }
 0x3f5   : > { %v10750_v0 = vpop.eup %10749  ;;  %v14803_v52 = vmul.f32 %v10748_v37, %v14602_v18  ;;  %10769 = vpow2.f32 %v3788_v33  ;;  %v14808_v63 = vadd.f32 %v17479_v55, %v13334_v40  ;;  %v4903_v35 = vpack.c.bf16 %v14557_v31, %v14528_v46  ;;  %v17481_v31 = vld [vmem:[#allocation13_spill] sm:$0xff] }
 0x3f6   : > { %5092 = vmatpush1.bf16.msra.mxu0 %v17477_v1  ;;  %v10752_v50 = vpop.eup %10751  ;;  %10771 = vrcp.f32 %v4120_v34  ;;  %v4122_v7 = vadd.f32 1.0, %v10750_v0  ;;  %v14814_v25 = vadd.f32 %v17480_v29, %v13355_v19  ;;  %v3180_v33 = vmin.f32 %v2860_v22, 80.0 }
 0x3f7   : > { %v10754_v11 = vpop.eup %10753  ;;  %v14817_v18 = vmul.f32 %v10752_v50, %v14623_v53  ;;  %10773 = vpow2.f32 %v3786_v27  ;;  %v2862_v37 = vsub.f32 0.0, %v14808_v63  ;;  %5060 = vmatprep.subr.bf16.mxu1 %v4903_v35  ;;  %v14826_v34 = vadd.f32 %v17481_v31, %v13362_v30  ;;  %v17483_v31 = vld [vmem:[#allocation108_spill] sm:$0xff] }
 0x3f8   : > { %v10756_v1 = vpop.eup %10755  ;;  %v14821_v55 = vmul.f32 %v10754_v11, %v14630_v45  ;;  %10775 = vrcp.f32 %v4122_v7  ;;  %v2861_v46 = vsub.f32 0.0, %v14814_v25  ;;  %v3804_v27 = vmul.f32 1.442695, %v3180_v33  ;;  %v14834_v45 = vpop.f32.mrb[168].mxu1 }
 0x3f9   : > { %v10758_v0 = vpop.eup %10757  ;;  %v14829_v53 = vmul.f32 %v10756_v1, %v14634_v36  ;;  %10777 = vpow2.f32 %v3790_v58  ;;  %v3182_v22 = vmin.f32 %v2862_v37, 80.0  ;;  %v17482_v50 = vpack.c.bf16 %v14542_v47, %v14502_v10  ;;  %v14841_v36 = vpop.f32.mrb[169].mxu1 }
 0x3fa   : > { %v10760_v7 = vpop.eup %10759  ;;  %v4121_v35 = vadd.f32 1.0, %v10758_v0  ;;  %v3181_v29 = vmin.f32 %v2861_v46, 80.0  ;;  %v2863_v11 = vsub.f32 0.0, %v14826_v34  ;;  %v14839_v42 = vadd.f32 %v17483_v31, %v13315_v56  ;;  %17484 = vst [vmem:[#allocation92_spill] sm:$0xff] %v14841_v36  ;;  %v14848_v37 = vpop.f32.mrb[170].mxu1  ;;  %v17487_v36 = vld [vmem:[#allocation26_spill] sm:$0xff] }
 0x3fb   : > { %5061 = vmatpush1.bf16.msra.mxu1 %v17482_v50  ;;  %v10762_v58 = vpop.eup %10761  ;;  %v14846_v10 = vmul.f32 %v10760_v7, %v14641_v48  ;;  %10779 = vpow2.f32 %v3804_v27  ;;  %v3808_v47 = vmul.f32 1.442695, %v3182_v22  ;;  %17485 = vst [vmem:[#allocation51_spill] sm:$0xff] %v14848_v37  ;;  %v14850_v56 = vpop.f32.mrb[171].mxu1 }
 0x3fc   : > { %v10764_v1 = vpop.eup %10763  ;;  %10781 = vrcp.f32 %v4121_v35  ;;  %v4123_v46 = vadd.f32 1.0, %v10762_v58  ;;  %v3806_v0 = vmul.f32 1.442695, %v3181_v29  ;;  %v3183_v50 = vmin.f32 %v2863_v11, 80.0  ;;  %17486 = vst [vmem:[#allocation61_spill] sm:$0xff] %v14850_v56 }
 0x3fd   : > { %v10766_v31 = vpop.eup %10765  ;;  %v14855_v33 = vmul.f32 %v10764_v1, %v14669_v44  ;;  %10783 = vpow2.f32 %v3808_v47  ;;  %v2870_v48 = vsub.f32 0.0, %v14839_v42  ;;  %v14863_v35 = vadd.f32 %v14303_v26, %v13334_v40  ;;  %v17488_v44 = vld [vmem:[#allocation3_spill] sm:$0xff] }
 0x3fe   : > { %v10768_v27 = vpop.eup %10767  ;;  %v14859_v22 = vmul.f32 %v10766_v31, %v14676_v14  ;;  %10785 = vrcp.f32 %v4123_v46  ;;  %v3810_v7 = vmul.f32 1.442695, %v3183_v50  ;;  %v4865_v1 = vpack.c.bf16 %v17488_v44, %v17487_v36  ;;  %v14879_v36 = vpop.f32.mrb[172].mxu1 }
 0x3ff   : > { %v10770_v29 = vpop.eup %10769  ;;  %v4130_v11 = vadd.f32 1.0, %v10768_v27  ;;  %10787 = vpow2.f32 %v3806_v0  ;;  %v3190_v58 = vmin.f32 %v2870_v48, 80.0  ;;  %v2872_v37 = vsub.f32 0.0, %v14863_v35  ;;  %v17490_v27 = vld [vmem:[#allocation86_spill] sm:$0xff] }
 0x400   : > { %v10772_v47 = vpop.eup %10771  ;;  %v4132_v56 = vadd.f32 1.0, %v10770_v29  ;;  %10789 = vpow2.f32 %v3810_v7  ;;  %v14870_v14 = vadd.f32 %v14332_v51, %v13355_v19  ;;  %5093 = vmatprep.subr.bf16.mxu0 %v4865_v1  ;;  %v14877_v0 = vadd.f32 %v14334_v2, %v13362_v30  ;;  %v17489_v51 = vld [vmem:[#allocation10_spill] sm:$0xff]  ;;  %v14888_v29 = vpop.f32.mrb[173].mxu1 }
 0x401   : > { %v10774_v46 = vpop.eup %10773  ;;  %v14873_v40 = vmul.f32 %v10772_v47, %v14690_v57  ;;  %10791 = vrcp.f32 %v4130_v11  ;;  %v3824_v26 = vmul.f32 1.442695, %v3190_v58  ;;  %v3192_v48 = vmin.f32 %v2872_v37, 80.0  ;;  %v1138_v57 = vld [vmem:[%s16701_s4 + $0x8] sm:$0x3]  ;;  %17492 = vst [vmem:[#allocation55_spill] sm:$0xff] %v14888_v29 }
 0x402   : > { %v10776_v50 = vpop.eup %10775  ;;  %10793 = vrcp.f32 %v4132_v56  ;;  %v4131_v31 = vadd.f32 1.0, %v10774_v46  ;;  %v2871_v19 = vsub.f32 0.0, %v14870_v14  ;;  %v17491_v7 = vpack.c.bf16 %v17489_v51, %v17490_v27  ;;  %v17493_v37 = vld [vmem:[#allocation94_spill] sm:$0xff]  ;;  %v14896_v58 = vpop.f32.mrb[174].mxu1 }
 0x403   : > { %v10778_v30 = vpop.eup %10777  ;;  %v14891_v2 = vmul.f32 %v10776_v50, %v14703_v38  ;;  %10795 = vpow2.f32 %v3824_v26  ;;  %v2873_v56 = vsub.f32 0.0, %v14877_v0  ;;  %v4875_v11 = vpack.c.bf16 %v14277_v3, %v17493_v37  ;;  %17494 = vst [vmem:[#allocation32_spill] sm:$0xff] %v14896_v58  ;;  %v14898_v46 = vpop.f32.mrb[175].mxu1  ;;  %v17497_v50 = vld [vmem:[#allocation19_spill] sm:$0xff] }
 0x404   : > { %5094 = vmatpush1.bf16.msra.mxu0 %v17491_v7  ;;  %10797 = vrcp.f32 %v4131_v31  ;;  %v4133_v44 = vadd.f32 1.0, %v10778_v30  ;;  %v3828_v1 = vmul.f32 1.442695, %v3192_v48  ;;  %v3191_v47 = vmin.f32 %v2871_v19, 80.0  ;;  %17495 = vst [vmem:[#allocation5_spill] sm:$0xff] %v14898_v46  ;;  %v17496_v7 = vld [vmem:[#allocation17_spill] sm:$0xff] }
 0x405   : > { %v10780_v51 = vpop.eup %10779  ;;  %v3193_v27 = vmin.f32 %v2873_v56, 80.0  ;;  %5095 = vmatprep.subr.bf16.mxu0 %v4875_v11  ;;  %v14901_v38 = vrot.slane %v1138_v57, %v17496_v7  ;;  %v4913_v26 = vpack.c.bf16 %v14672_v12, %v14596_v60  ;;  %v14906_v29 = vrot.slane %v1138_v57, %v17497_v50  ;;  %v17498_v48 = vld [vmem:[#allocation57_spill] sm:$0xff]  ;;  %v17499_v19 = vld [vmem:[#allocation67_spill] sm:$0xff] }
 0x406   : > { %v10782_v3 = vpop.eup %10781  ;;  %10799 = vrcp.f32 %v4133_v44  ;;  %v4140_v31 = vadd.f32 1.0, %v10780_v51  ;;  %v3826_v30 = vmul.f32 1.442695, %v3191_v47  ;;  %v17500_v37 = vpack.c.bf16 %v17498_v48, %v17499_v19  ;;  %v17501_v46 = vld [vmem:[#allocation99_spill] sm:$0xff]  ;;  %v17502_v12 = vld [vmem:[#allocation69_spill] sm:$0xff]  ;;  %v14939_v19 = vpop.f32.mrb[176].mxu1 }
 0x407   : > { %v4885_v56 = vpack.c.bf16 %v14381_v23, %v17501_v46  ;;  %v10784_v11 = vpop.eup %10783  ;;  %v14914_v7 = vmul.f32 %v10782_v3, %v14722_v20  ;;  %10801 = vpow2.f32 %v3828_v1  ;;  %v3830_v60 = vmul.f32 1.442695, %v3193_v27  ;;  %5062 = vmatprep.subr.bf16.mxu1 %v4913_v26  ;;  %v17503_v51 = vld [vmem:[#allocation97_spill] sm:$0xff]  ;;  %v17505_v20 = vld [vmem:[#allocation35_spill] sm:$0xff]  ;;  %17507 = vst [vmem:[#allocation53_spill] sm:$0xff] %v14939_v19 }
 0x408   : > { %5096 = vmatpush1.bf16.msra.mxu0 %v17500_v37  ;;  %v14918_v57 = vadd.f32 %v17502_v12, %v14901_v38  ;;  %v10786_v44 = vpop.eup %10785  ;;  %10803 = vrcp.f32 %v4140_v31  ;;  %v4142_v47 = vadd.f32 1.0, %v10784_v11  ;;  %v14922_v48 = vadd.f32 %v17503_v51, %v14906_v29  ;;  %v17506_v3 = vld [vmem:[#allocation111_spill] sm:$0xff]  ;;  %v17508_v11 = vld [vmem:[#allocation64_spill] sm:$0xff]  ;;  %v17509_v12 = vld [vmem:[#allocation109_spill] sm:$0xff] }
 0x409   : > { %v17504_v23 = vpack.c.bf16 %v14644_v5, %v14572_v15  ;;  %v14929_v1 = vadd.f32 %v17505_v20, %v14901_v38  ;;  %5097 = vmatprep.subr.bf16.mxu0 %v4885_v56  ;;  %v10788_v46 = vpop.eup %10787  ;;  %v14932_v27 = vmul.f32 %v10786_v44, %v14726_v4  ;;  %10805 = vpow2.f32 %v3826_v30  ;;  %v14946_v30 = vpop.f32.mrb[177].mxu1 }
 0x40a   : > { %v2564_v26 = vsub.f32 0.0, %v14918_v57  ;;  %v14937_v31 = vadd.f32 %v17506_v3, %v14906_v29  ;;  %v10790_v15 = vpop.eup %10789  ;;  %10807 = vrcp.f32 %v4142_v47  ;;  %v4141_v5 = vadd.f32 1.0, %v10788_v46  ;;  %17511 = vst [vmem:[#allocation56_spill] sm:$0xff] %v14946_v30  ;;  %v14949_v3 = vpop.f32.mrb[178].mxu1 }
 0x40b   : > { %5063 = vmatpush1.bf16.msra.mxu1 %v17504_v23  ;;  %v2565_v37 = vsub.f32 0.0, %v14922_v48  ;;  %v2574_v56 = vsub.f32 0.0, %v14929_v1  ;;  %v17510_v4 = vpack.c.bf16 %v17508_v11, %v17509_v12  ;;  %v10792_v44 = vpop.eup %10791  ;;  %v4143_v51 = vadd.f32 1.0, %v10790_v15  ;;  %17512 = vst [vmem:[#allocation107_spill] sm:$0xff] %v14949_v3  ;;  %v14954_v58 = vpop.f32.mrb[179].mxu1 }
 0x40c   : > { %10809 = vpow2.f32 %v3830_v60  ;;  %v2884_v23 = vmin.f32 %v2564_v26, 80.0  ;;  %v2575_v20 = vsub.f32 0.0, %v14937_v31  ;;  %v10794_v47 = vpop.eup %10793  ;;  %v14952_v46 = vmul.f32 %v10792_v44, %v14738_v41  ;;  %v17513_v44 = vld [vmem:[#allocation63_spill] sm:$0xff] }
 0x40d   : > { %5098 = vmatpush1.bf16.msra.mxu0 %v17510_v4  ;;  %10811 = vrcp.f32 %v4141_v5  ;;  %v2885_v50 = vmin.f32 %v2565_v37, 80.0  ;;  %v2894_v19 = vmin.f32 %v2574_v56, 80.0  ;;  %v10796_v11 = vpop.eup %10795  ;;  %v14957_v12 = vmul.f32 %v10794_v47, %v14758_v24 }
 0x40e   : > { %10813 = vrcp.f32 %v4143_v51  ;;  %v3212_v60 = vmul.f32 1.442695, %v2884_v23  ;;  %v2895_v26 = vmin.f32 %v2575_v20, 80.0  ;;  %v10798_v15 = vpop.eup %10797  ;;  %v4150_v3 = vadd.f32 1.0, %v10796_v11  ;;  %v17514_v51 = vld [vmem:[#allocation114_spill] sm:$0xff]  ;;  %v17515_v20 = vld [vmem:[#allocation71_spill] sm:$0xff] }
 0x40f   : > { %v3214_v30 = vmul.f32 1.442695, %v2885_v50  ;;  %v3232_v41 = vmul.f32 1.442695, %v2894_v19  ;;  %v14964_v37 = vmul.f32 %v10798_v15, %v14764_v49  ;;  %v4895_v23 = vpack.c.bf16 %v17514_v51, %v17513_v44  ;;  %v17516_v49 = vld [vmem:[#allocation65_spill] sm:$0xff]  ;;  %v14985_v15 = vpop.f32.mrb[180].mxu1 }
 0x410   : > { %10815 = vpow2.f32 %v3212_v60  ;;  %v3234_v56 = vmul.f32 1.442695, %v2895_v26  ;;  %v10800_v24 = vpop.eup %10799  ;;  %v14970_v47 = vadd.f32 %v17515_v20, %v14901_v38  ;;  %v4923_v50 = vpack.c.bf16 %v14771_v9, %v14708_v16  ;;  %v14990_v9 = vpop.f32.mrb[181].mxu1 }
 0x411   : > { %10817 = vrcp.f32 %v4150_v3  ;;  %v10802_v19 = vpop.eup %10801  ;;  %v14975_v11 = vmul.f32 %v10800_v24, %v14768_v8  ;;  %v14979_v60 = vadd.f32 %v17516_v49, %v14906_v29  ;;  %v17517_v3 = vld [vmem:[#allocation7_spill] sm:$0xff]  ;;  %5099 = vmatprep.subr.bf16.mxu0 %v4895_v23  ;;  %v4905_v8 = vpack.c.bf16 %v14562_v6, %v14533_v61  ;;  %17518 = vst [vmem:[#allocation110_spill] sm:$0xff] %v14990_v9  ;;  %v17521_v23 = vld [vmem:[#allocation100_spill] sm:$0xff]  ;;  %v15003_v61 = vpop.f32.mrb[182].mxu1  ;;  %v17527_v9 = vld [vmem:[#allocation77_spill] sm:$0xff] }
 0x412   : > { %10819 = vpow2.f32 %v3214_v30  ;;  %v14983_v26 = vadd.f32 %v17517_v3, %v14901_v38  ;;  %v10804_v44 = vpop.eup %10803  ;;  %v4152_v51 = vadd.f32 1.0, %v10802_v19  ;;  %v2584_v16 = vsub.f32 0.0, %v14970_v47  ;;  %5064 = vmatprep.subr.bf16.mxu1 %v4923_v50  ;;  %17523 = vst [vmem:[#allocation73_spill] sm:$0xff] %v15003_v61  ;;  %v15009_v5 = vpop.f32.mrb[183].mxu1 }
 0x413   : > { %10821 = vpow2.f32 %v3232_v41  ;;  %v10806_v30 = vpop.eup %10805  ;;  %v14993_v24 = vmul.f32 %v10804_v44, %v14793_v43  ;;  %v2585_v20 = vsub.f32 0.0, %v14979_v60  ;;  %v17519_v19 = vpack.c.bf16 %v14732_v21, %v14685_v59  ;;  %v17520_v41 = vld [vmem:[#allocation72_spill] sm:$0xff]  ;;  %17525 = vst [vmem:[#allocation113_spill] sm:$0xff] %v15009_v5 }
 0x414   : > { %10823 = vpow2.f32 %v3234_v56  ;;  %v17522_v49 = vpack.c.bf16 %v17520_v41, %v17521_v23  ;;  %v2594_v50 = vsub.f32 0.0, %v14983_v26  ;;  %v10808_v6 = vpop.eup %10807  ;;  %v4151_v3 = vadd.f32 1.0, %v10806_v30  ;;  %v17524_v56 = vld [vmem:[#allocation101_spill] sm:$0xff]  ;;  %v17526_v23 = vld [vmem:[#allocation87_spill] sm:$0xff] }
 0x415   : > { %5065 = vmatpush1.bf16.msra.mxu1 %v17519_v19  ;;  %10825 = vrcp.f32 %v4152_v51  ;;  %v2904_v43 = vmin.f32 %v2584_v16, 80.0  ;;  %v15007_v44 = vadd.f32 %v17524_v56, %v14906_v29  ;;  %v15012_v21 = vmul.f32 %v10808_v6, %v14808_v63  ;;  %v17528_v63 = vld [vmem:[#allocation75_spill] sm:$0xff] }
 0x416   : > { %5100 = vmatpush1.bf16.msra.mxu0 %v17522_v49  ;;  %v10810_v59 = vpop.eup %10809  ;;  %v2905_v19 = vmin.f32 %v2585_v20, 80.0  ;;  %v2914_v41 = vmin.f32 %v2594_v50, 80.0  ;;  %v4915_v49 = vpack.c.bf16 %v14681_v28, %v17526_v23  ;;  %10827 = vrcp.f32 %v4151_v3  ;;  %v17530_v20 = vld [vmem:[#allocation34_spill] sm:$0xff] }
 0x417   : > { %5101 = vmatprep.subr.bf16.mxu0 %v4905_v8  ;;  %v10812_v4 = vpop.eup %10811  ;;  %v4153_v51 = vadd.f32 1.0, %v10810_v59  ;;  %v3252_v16 = vmul.f32 1.442695, %v2904_v43  ;;  %v2595_v8 = vsub.f32 0.0, %v15007_v44  ;;  %v17529_v6 = vpack.c.bf16 %v17527_v9, %v17528_v63  ;;  %v17531_v9 = vld [vmem:[#allocation39_spill] sm:$0xff] }
 0x418   : > { %v10814_v30 = vpop.eup %10813  ;;  %v15018_v56 = vmul.f32 %v10812_v4, %v14814_v25  ;;  %v3254_v5 = vmul.f32 1.442695, %v2905_v19  ;;  %v3272_v61 = vmul.f32 1.442695, %v2914_v41  ;;  %v15025_v50 = vadd.f32 %v17530_v20, %v14901_v38  ;;  %v17532_v19 = vld [vmem:[#allocation74_spill] sm:$0xff] }
 0x419   : > { %v15028_v28 = vmul.f32 %v10814_v30, %v14826_v34  ;;  %10829 = vrcp.f32 %v4153_v51  ;;  %v2915_v3 = vmin.f32 %v2595_v8, 80.0  ;;  %v4933_v25 = vpack.c.bf16 %v14855_v33, %v14817_v18  ;;  %v15041_v34 = vpop.f32.mrb[184].mxu1  ;;  %v17535_v20 = vld [vmem:[#allocation82_spill] sm:$0xff] }
 0x41a   : > { %5102 = vmatpush1.bf16.msra.mxu0 %v17529_v6  ;;  %v10816_v4 = vpop.eup %10815  ;;  %10831 = vpow2.f32 %v3252_v16  ;;  %v2604_v43 = vsub.f32 0.0, %v15025_v50  ;;  %v15035_v59 = vadd.f32 %v17531_v9, %v14906_v29  ;;  %v15039_v41 = vadd.f32 %v17532_v19, %v14901_v38  ;;  %v15045_v33 = vpop.f32.mrb[185].mxu1 }
 0x41b   : > { %5103 = vmatprep.subr.bf16.mxu0 %v4915_v49  ;;  %v10818_v23 = vpop.eup %10817  ;;  %v3844_v51 = vadd.f32 1.0, %v10816_v4  ;;  %10833 = vpow2.f32 %v3254_v5  ;;  %v3274_v49 = vmul.f32 1.442695, %v2915_v3  ;;  %5066 = vmatprep.subr.bf16.mxu1 %v4933_v25  ;;  %v4925_v18 = vpack.c.bf16 %v14784_v32, %v14715_v13  ;;  %v17534_v5 = vld [vmem:[#allocation47_spill] sm:$0xff]  ;;  %v15057_v25 = vpop.f32.mrb[186].mxu1 }
 0x41c   : > { %v10820_v16 = vpop.eup %10819  ;;  %v15048_v8 = vmul.f32 %v10818_v23, %v14839_v42  ;;  %10835 = vpow2.f32 %v3272_v61  ;;  %v2924_v30 = vmin.f32 %v2604_v43, 80.0  ;;  %v2605_v63 = vsub.f32 0.0, %v15035_v59  ;;  %v17537_v61 = vld [vmem:[#allocation103_spill] sm:$0xff]  ;;  %v15064_v43 = vpop.f32.mrb[187].mxu1 }
 0x41d   : > { %v17533_v6 = vpack.c.bf16 %v14829_v53, %v14789_v62  ;;  %v17536_v3 = vpack.c.bf16 %v17534_v5, %v17535_v20  ;;  %v10822_v13 = vpop.eup %10821  ;;  %10837 = vrcp.f32 %v3844_v51  ;;  %v3845_v32 = vadd.f32 1.0, %v10820_v16  ;;  %v17538_v20 = vld [vmem:[#allocation49_spill] sm:$0xff] }
 0x41e   : > { %v2614_v42 = vsub.f32 0.0, %v15039_v41  ;;  %v15062_v4 = vadd.f32 %v17537_v61, %v14906_v29  ;;  %v10824_v62 = vpop.eup %10823  ;;  %v3854_v9 = vadd.f32 1.0, %v10822_v13  ;;  %10839 = vpow2.f32 %v3274_v49 }
 0x41f   : > { %5067 = vmatpush1.bf16.msra.mxu1 %v17533_v6  ;;  %5104 = vmatpush1.bf16.msra.mxu0 %v17536_v3  ;;  %v3292_v19 = vmul.f32 1.442695, %v2924_v30  ;;  %v10826_v23 = vpop.eup %10825  ;;  %10841 = vrcp.f32 %v3845_v32  ;;  %v3855_v51 = vadd.f32 1.0, %v10824_v62  ;;  %v2925_v16 = vmin.f32 %v2605_v63, 80.0  ;;  %v17539_v3 = vld [vmem:[#allocation23_spill] sm:$0xff]  ;;  %v17541_v63 = vld [vmem:[#allocation6_spill] sm:$0xff] }
 0x420   : > { %5105 = vmatprep.subr.bf16.mxu0 %v4925_v18  ;;  %v2934_v6 = vmin.f32 %v2614_v42, 80.0  ;;  %v15069_v18 = vmul.f32 %v10826_v23, %v14863_v35  ;;  %10843 = vrcp.f32 %v3854_v9  ;;  %v2615_v5 = vsub.f32 0.0, %v15062_v4  ;;  %v10828_v49 = vpop.eup %10827  ;;  %v15081_v35 = vpop.f32.mrb[160].mxu0 }
 0x421   : > { %v17540_v61 = vpack.c.bf16 %v17538_v20, %v17539_v3  ;;  %v4935_v13 = vpack.c.bf16 %v14859_v22, %v14821_v55  ;;  %10845 = vrcp.f32 %v3855_v51  ;;  %v3294_v30 = vmul.f32 1.442695, %v2925_v16  ;;  %v15088_v55 = vpop.f32.mrb[188].mxu1  ;;  %v15090_v22 = vpop.f32.mrb[161].mxu0  ;;  %v17542_v20 = vld [vmem:[#allocation38_spill] sm:$0xff] }
 0x422   : > { %v3312_v32 = vmul.f32 1.442695, %v2934_v6  ;;  %v15079_v42 = vadd.f32 %v17541_v63, %v14901_v38  ;;  %v15086_v9 = vmul.f32 %v10828_v49, %v14870_v14  ;;  %10847 = vpow2.f32 %v3292_v19  ;;  %v15099_v14 = vpop.f32.mrb[189].mxu1  ;;  %v4996_v19 = vpop.f32.mrb[162].mxu0 }
 0x423   : > { %5106 = vmatpush1.bf16.msra.mxu0 %v17540_v61  ;;  %v2935_v23 = vmin.f32 %v2615_v5, 80.0  ;;  %v10830_v51 = vpop.eup %10829  ;;  %10849 = vpow2.f32 %v3294_v30  ;;  %v4943_v6 = vpack.c.bf16 %v14964_v37, %v14914_v7  ;;  %v15097_v3 = vadd.f32 %v17542_v20, %v14906_v29  ;;  %v17544_v30 = vld [vmem:[#allocation102_spill] sm:$0xff]  ;;  %v15109_v7 = vpop.f32.mrb[190].mxu1 }
 0x424   : > { %5107 = vmatprep.subr.bf16.mxu0 %v4935_v13  ;;  %v2624_v16 = vsub.f32 0.0, %v15079_v42  ;;  %v10832_v5 = vpop.eup %10831  ;;  %v4793_v61 = vmul.f32 %v10830_v51, %v14877_v0  ;;  %10851 = vpow2.f32 %v3312_v32  ;;  %v17543_v49 = vpack.c.bf16 %v14846_v10, %v14803_v52  ;;  %v4997_v37 = vpop.f32.mrb[163].mxu0 }
 0x425   : > { %v3314_v13 = vmul.f32 1.442695, %v2935_v23  ;;  %v15107_v63 = vadd.f32 %v17544_v30, %v14901_v38  ;;  %v10834_v20 = vpop.eup %10833  ;;  %v3864_v62 = vadd.f32 1.0, %v10832_v5  ;;  %5068 = vmatprep.subr.bf16.mxu1 %v4943_v6  ;;  %v2625_v19 = vsub.f32 0.0, %v15097_v3  ;;  %v15114_v32 = vpop.f32.mrb[191].mxu1  ;;  %v17546_v5 = vld [vmem:[#allocation78_spill] sm:$0xff] }
 0x426   : > { %v2944_v53 = vmin.f32 %v2624_v16, 80.0  ;;  %v4945_v0 = vpack.c.bf16 %v14975_v11, %v14932_v27  ;;  %v10836_v52 = vpop.eup %10835  ;;  %v3865_v10 = vadd.f32 1.0, %v10834_v20  ;;  %v17545_v23 = vpack.c.bf16 %v14952_v46, %v14873_v40 }
 0x427   : > { %5108 = vmatpush1.bf16.msra.mxu0 %v17543_v49  ;;  %10853 = vpow2.f32 %v3314_v13  ;;  %v2634_v51 = vsub.f32 0.0, %v15107_v63  ;;  %v15122_v16 = vadd.f32 %v17546_v5, %v14906_v29  ;;  %v10838_v6 = vpop.eup %10837  ;;  %v3874_v49 = vadd.f32 1.0, %v10836_v52 }
 0x428   : > { %5069 = vmatpush1.bf16.msra.mxu1 %v17545_v23  ;;  %10855 = vrcp.f32 %v3864_v62  ;;  %v3332_v30 = vmul.f32 1.442695, %v2944_v53  ;;  %v2945_v27 = vmin.f32 %v2625_v19, 80.0  ;;  %5109 = vmatprep.subr.bf16.mxu0 %v4945_v0  ;;  %v10840_v11 = vpop.eup %10839  ;;  %v15125_v37 = vmul.f32 %v10838_v6, %v14918_v57  ;;  %v17548_v53 = vld [vmem:[#allocation80_spill] sm:$0xff] }
 0x429   : > { %10857 = vrcp.f32 %v3865_v10  ;;  %v2954_v13 = vmin.f32 %v2634_v51, 80.0  ;;  %v2635_v40 = vsub.f32 0.0, %v15122_v16  ;;  %v17547_v46 = vpack.c.bf16 %v14957_v12, %v14891_v2  ;;  %v10842_v20 = vpop.eup %10841 }
 0x42a   : > { %10859 = vrcp.f32 %v3874_v49  ;;  %v3875_v23 = vadd.f32 1.0, %v10840_v11  ;;  %v3334_v62 = vmul.f32 1.442695, %v2945_v27  ;;  %v15133_v19 = vadd.f32 %v17548_v53, %v14901_v38  ;;  %v10844_v0 = vpop.eup %10843 }
 0x42b   : > { %5110 = vmatpush1.bf16.msra.mxu0 %v17547_v46  ;;  %v4485_v57 = vmul.f32 %v10842_v20, %v14922_v48  ;;  %10861 = vpow2.f32 %v3332_v30  ;;  %v3352_v52 = vmul.f32 1.442695, %v2954_v13  ;;  %v2955_v10 = vmin.f32 %v2635_v40, 80.0  ;;  %v10846_v51 = vpop.eup %10845 }
 0x42c   : > { %v4494_v5 = vmul.f32 %v10844_v0, %v14929_v1  ;;  %10863 = vrcp.f32 %v3875_v23  ;;  %v2644_v2 = vsub.f32 0.0, %v15133_v19  ;;  %v4953_v12 = vpack.c.bf16 %v15086_v9, %v15018_v56  ;;  %v10848_v6 = vpop.eup %10847  ;;  %v17549_v56 = vld [vmem:[#allocation79_spill] sm:$0xff] }
 0x42d   : > { %v4495_v49 = vmul.f32 %v10846_v51, %v14937_v31  ;;  %10865 = vpow2.f32 %v3334_v62  ;;  %v3354_v27 = vmul.f32 1.442695, %v2955_v10  ;;  %v4955_v11 = vpack.c.bf16 %v4793_v61, %v15028_v28  ;;  %v10850_v48 = vpop.eup %10849  ;;  %v17551_v28 = vld [vmem:[#allocation42_spill] sm:$0xff]  ;;  %v17553_v62 = vld [vmem:[#allocation45_spill] sm:$0xff] }
 0x42e   : > { %v4806_v30 = vpack.c.bf16 %v4494_v5, %v15125_v37  ;;  %v3884_v13 = vadd.f32 1.0, %v10848_v6  ;;  %10867 = vpow2.f32 %v3352_v52  ;;  %v2964_v40 = vmin.f32 %v2644_v2, 80.0  ;;  %5070 = vmatprep.subr.bf16.mxu1 %v4953_v12  ;;  %v10852_v1 = vpop.eup %10851  ;;  %v17554_v52 = vld [vmem:[#allocation48_spill] sm:$0xff] }
 0x42f   : > { %v3885_v46 = vadd.f32 1.0, %v10850_v48  ;;  %10869 = vpow2.f32 %v3354_v27  ;;  %5111 = vmatprep.subr.bf16.mxu0 %v4955_v11  ;;  %v15145_v9 = vadd.f32 %v17549_v56, %v14906_v29  ;;  %v17550_v31 = vpack.c.bf16 %v15048_v8, %v14993_v24 }
 0x430   : > { %v15152_v61 = vadd.f32 %v17551_v28, %v14901_v38  ;;  %10871 = vrcp.f32 %v3884_v13  ;;  %v3894_v37 = vadd.f32 1.0, %v10852_v1  ;;  %v3372_v20 = vmul.f32 1.442695, %v2964_v40 }
 0x431   : > { %5071 = vmatpush1.bf16.msra.mxu1 %v17550_v31  ;;  %v17552_v23 = vpack.c.bf16 %v15069_v18, %v15012_v21  ;;  %v15159_v53 = vadd.f32 %v17553_v62, %v14906_v29  ;;  %v10854_v0 = vpop.eup %10853  ;;  %10873 = vrcp.f32 %v3885_v46  ;;  %v2645_v24 = vsub.f32 0.0, %v15145_v9  ;;  %v17556_v31 = vld [vmem:[#allocation81_spill] sm:$0xff] }
 0x432   : > { %v2654_v8 = vsub.f32 0.0, %v15152_v61  ;;  %v15165_v10 = vadd.f32 %v17554_v52, %v14901_v38  ;;  %v10856_v51 = vpop.eup %10855  ;;  %10875 = vrcp.f32 %v3894_v37  ;;  %v3895_v5 = vadd.f32 1.0, %v10854_v0  ;;  %v17557_v0 = vld [vmem:[#allocation105_spill] sm:$0xff] }
 0x433   : > { %5112 = vmatpush1.bf16.msra.mxu0 %v17552_v23  ;;  %v2655_v21 = vsub.f32 0.0, %v15159_v53  ;;  %v17555_v18 = vmov 1065369472   ;;  %v4807_v2 = vpack.c.bf16 %v4495_v49, %v4485_v57  ;;  %v10858_v12 = vpop.eup %10857  ;;  %v15170_v6 = vmul.f32 %v10856_v51, %v14970_v47  ;;  %v9143_v47 = vld [vmem:[%s16702_s5] ss:$16 sps:$4 sm:$0xff]  }
 0x434   : > { %5073 = vmatmul.mubr.bf16.vlgmr.msra.gmra.mrb[192].mxu1 %v17555_v18  ;;  %10877 = vpow2.f32 %v3372_v20  ;;  %v2965_v27 = vmin.f32 %v2645_v24, 80.0  ;;  %v2974_v11 = vmin.f32 %v2654_v8, 80.0  ;;  %v10860_v48 = vpop.eup %10859  ;;  %v15175_v13 = vmul.f32 %v10858_v12, %v14979_v60  ;;  %v9145_v57 = vld [vmem:[%s16702_s5 + $0x4] ss:$16 sps:$4 sm:$0xff]   ;;  %v9149_v12 = vld [vmem:[%s16702_s5 + $0x20] ss:$16 sps:$4 sm:$0xff]  }
 0x435   : > { %5154 = vmatprep.mubr.bf16.mxu1 %v17555_v18  ;;  %10879 = vrcp.f32 %v3895_v5  ;;  %v2975_v40 = vmin.f32 %v2655_v21, 80.0  ;;  %v2664_v1 = vsub.f32 0.0, %v15165_v10  ;;  %5122 = vmatprep.subr.bf16.mxu1 %v4807_v2  ;;  %v10862_v49 = vpop.eup %10861  ;;  %v15185_v46 = vmul.f32 %v10860_v48, %v14983_v26 }
 0x436   : > { %5114 = vmatmul.mubr.bf16.vlgmr.msra.gmra.mrb[168].mxu0 %v17555_v18  ;;  %v3374_v56 = vmul.f32 1.442695, %v2965_v27  ;;  %v3392_v60 = vmul.f32 1.442695, %v2974_v11  ;;  %v15189_v28 = vadd.f32 %v17556_v31, %v14906_v29  ;;  %5123 = vmatpush1.bf16.msra.mxu1 %v4806_v30  ;;  %v10864_v37 = vpop.eup %10863  ;;  %v3904_v20 = vadd.f32 1.0, %v10862_v49  ;;  %v17559_v49 = vld [vmem:[#allocation27_spill] sm:$0xff] }
 0x437   : > { %v3394_v23 = vmul.f32 1.442695, %v2975_v40  ;;  %v2984_v62 = vmin.f32 %v2664_v1, 80.0  ;;  %v15193_v24 = vadd.f32 %v17557_v0, %v14901_v38  ;;  %7258 = vmatprep.subr.bf16.mxu0 %v9145_v57  ;;  %v10866_v8 = vpop.eup %10865  ;;  %v4816_v26 = vpack.c.bf16 %v15185_v46, %v15170_v6  ;;  %v9151_v40 = vld [vmem:[%s16702_s5 + $0x24] ss:$16 sps:$4 sm:$0xff]  }
 0x438   : > { %v4515_v52 = vmul.f32 %v10864_v37, %v15007_v44  ;;  %10881 = vpow2.f32 %v3374_v56  ;;  %v2665_v51 = vsub.f32 0.0, %v15189_v28  ;;  %7259 = vmatpush1.bf16.msra.mxu0 %v9143_v47  ;;  %v10868_v30 = vpop.eup %10867  ;;  %v3905_v5 = vadd.f32 1.0, %v10866_v8  ;;  %v17558_v44 = vld [vmem:[#allocation85_spill] sm:$0xff] }
 0x439   : > { %10883 = vrcp.f32 %v3904_v20  ;;  %v3412_v21 = vmul.f32 1.442695, %v2984_v62  ;;  %v2674_v2 = vsub.f32 0.0, %v15193_v24  ;;  %v10870_v27 = vpop.eup %10869  ;;  %v3914_v11 = vadd.f32 1.0, %v10868_v30  ;;  %7260 = vmatprep.subr.bf16.mxu0 %v9151_v40 }
 0x43a   : > { %10885 = vpow2.f32 %v3392_v60  ;;  %v2985_v6 = vmin.f32 %v2665_v51, 80.0  ;;  %v15205_v48 = vadd.f32 %v17558_v44, %v14906_v29  ;;  %v10872_v1 = vpop.eup %10871  ;;  %v3915_v47 = vadd.f32 1.0, %v10870_v27  ;;  %v9155_v51 = vld [vmem:[%s16702_s5 + $0x40] ss:$16 sps:$4 sm:$0xff]  }
 0x43b   : > { %10887 = vrcp.f32 %v3905_v5  ;;  %v2994_v57 = vmin.f32 %v2674_v2, 80.0  ;;  %v15212_v46 = vadd.f32 %v17559_v49, %v14901_v38  ;;  %v10874_v56 = vpop.eup %10873  ;;  %v4524_v60 = vmul.f32 %v10872_v1, %v15025_v50 }
 0x43c   : > { %10889 = vrcp.f32 %v3914_v11  ;;  %v3414_v31 = vmul.f32 1.442695, %v2985_v6  ;;  %v2675_v37 = vsub.f32 0.0, %v15205_v48  ;;  %v10876_v20 = vpop.eup %10875  ;;  %v4525_v62 = vmul.f32 %v10874_v56, %v15035_v59  ;;  %7261 = vmatpush1.bf16.msra.mxu0 %v9149_v12  ;;  %v9157_v59 = vld [vmem:[%s16702_s5 + $0x44] ss:$16 sps:$4 sm:$0xff]   ;;  %v17563_v56 = vld [vmem:[#allocation29_spill] sm:$0xff] }
 0x43d   : > { %10891 = vrcp.f32 %v3915_v47  ;;  %v3432_v0 = vmul.f32 1.442695, %v2994_v57  ;;  %v2684_v8 = vsub.f32 0.0, %v15212_v46  ;;  %v4534_v50 = vmul.f32 %v10876_v20, %v15039_v41  ;;  %v17560_v12 = vld [vmem:[#allocation24_spill] sm:$0xff]  ;;  %7262 = vmatprep.subr.bf16.mxu0 %v9157_v59 }
 0x43e   : > { %v10878_v30 = vpop.eup %10877  ;;  %10893 = vpow2.f32 %v3394_v23  ;;  %v2995_v5 = vmin.f32 %v2675_v37, 80.0  ;;  %v4817_v2 = vpack.c.bf16 %v4515_v52, %v15175_v13  ;;  %v15228_v44 = vadd.f32 %v17560_v12, %v14906_v29  ;;  %v17561_v52 = vld [vmem:[#allocation83_spill] sm:$0xff] }
 0x43f   : > { %v10880_v27 = vpop.eup %10879  ;;  %v3924_v11 = vadd.f32 1.0, %v10878_v30  ;;  %10895 = vpow2.f32 %v3412_v21  ;;  %v3004_v6 = vmin.f32 %v2684_v8, 80.0  ;;  %v4826_v40 = vpack.c.bf16 %v4534_v50, %v4524_v60  ;;  %v9161_v47 = vld [vmem:[%s16702_s5 + $0x60] ss:$16 sps:$4 sm:$0xff]  }
 0x440   : > { %v4535_v1 = vmul.f32 %v10880_v27, %v15062_v4  ;;  %10897 = vpow2.f32 %v3414_v31  ;;  %v3434_v41 = vmul.f32 1.442695, %v2995_v5  ;;  %5124 = vmatprep.subr.bf16.mxu1 %v4817_v2  ;;  %v2685_v23 = vsub.f32 0.0, %v15228_v44  ;;  %7263 = vmatpush1.bf16.msra.mxu0 %v9155_v51  ;;  %v17562_v4 = vld [vmem:[#allocation46_spill] sm:$0xff] }
 0x441   : > { %10899 = vrcp.f32 %v3924_v11  ;;  %v3452_v13 = vmul.f32 1.442695, %v3004_v6  ;;  %5125 = vmatpush1.bf16.msra.mxu1 %v4816_v26  ;;  %v15234_v21 = vadd.f32 %v17561_v52, %v14901_v38  ;;  %v15241_v49 = vadd.f32 %v17562_v4, %v14906_v29  ;;  %v9163_v31 = vld [vmem:[%s16702_s5 + $0x64] ss:$16 sps:$4 sm:$0xff]   ;;  %v9167_v11 = vld [vmem:[%s16702_s5 + $0x80] ss:$16 sps:$4 sm:$0xff]  }
 0x442   : > { %v10882_v57 = vpop.eup %10881  ;;  %10901 = vpow2.f32 %v3432_v0  ;;  %v15245_v60 = vadd.f32 %v17563_v56, %v14901_v38  ;;  %v4827_v26 = vpack.c.bf16 %v4535_v1, %v4525_v62  ;;  %v3005_v8 = vmin.f32 %v2685_v23, 80.0  ;;  %7264 = vmatprep.subr.bf16.mxu0 %v9163_v31  ;;  %v9169_v23 = vld [vmem:[%s16702_s5 + $0x84] ss:$16 sps:$4 sm:$0xff]  }
 0x443   : > { %v10884_v37 = vpop.eup %10883  ;;  %v3925_v20 = vadd.f32 1.0, %v10882_v57  ;;  %10903 = vpow2.f32 %v3434_v41  ;;  %v2694_v51 = vsub.f32 0.0, %v15234_v21  ;;  %v2695_v50 = vsub.f32 0.0, %v15241_v49  ;;  %v17564_v41 = vld [vmem:[#allocation22_spill] sm:$0xff]  ;;  %v17565_v57 = vld [vmem:[#allocation11_spill] sm:$0xff] }
 0x444   : > { %v10886_v0 = vpop.eup %10885  ;;  %v15252_v30 = vmul.f32 %v10884_v37, %v15079_v42  ;;  %10905 = vpow2.f32 %v3452_v13  ;;  %v2704_v5 = vsub.f32 0.0, %v15245_v60  ;;  %5126 = vmatprep.subr.bf16.mxu1 %v4827_v26  ;;  %v3454_v59 = vmul.f32 1.442695, %v3005_v8  ;;  %7265 = vmatpush1.bf16.msra.mxu0 %v9161_v47 }
 0x445   : > { %v10888_v62 = vpop.eup %10887  ;;  %10907 = vrcp.f32 %v3925_v20  ;;  %v3934_v2 = vadd.f32 1.0, %v10886_v0  ;;  %v3014_v27 = vmin.f32 %v2694_v51, 80.0  ;;  %5127 = vmatpush1.bf16.msra.mxu1 %v4826_v40  ;;  %v3015_v12 = vmin.f32 %v2695_v50, 80.0  ;;  %7266 = vmatprep.subr.bf16.mxu0 %v9169_v23  ;;  %v9173_v51 = vld [vmem:[%s16702_s5 + $0xa0] ss:$16 sps:$4 sm:$0xff]  }
 0x446   : > { %v10890_v42 = vpop.eup %10889  ;;  %v15260_v6 = vmul.f32 %v10888_v62, %v15097_v3  ;;  %v3024_v1 = vmin.f32 %v2704_v5, 80.0  ;;  %v15264_v13 = vadd.f32 %v17564_v41, %v14906_v29  ;;  %v15274_v3 = vadd.f32 %v17565_v57, %v14901_v38 }
 0x447   : > { %v10892_v40 = vpop.eup %10891  ;;  %v15270_v52 = vmul.f32 %v10890_v42, %v15107_v63  ;;  %10909 = vrcp.f32 %v3934_v2  ;;  %v3472_v47 = vmul.f32 1.442695, %v3014_v27  ;;  %v3474_v26 = vmul.f32 1.442695, %v3015_v12 }
 0x448   : > { %v10894_v4 = vpop.eup %10893  ;;  %v4555_v56 = vmul.f32 %v10892_v40, %v15122_v16  ;;  %10911 = vpow2.f32 %v3454_v59  ;;  %v3492_v31 = vmul.f32 1.442695, %v3024_v1  ;;  %v2705_v63 = vsub.f32 0.0, %v15264_v13  ;;  %7267 = vmatpush1.bf16.msra.mxu0 %v9167_v11  ;;  %v9175_v16 = vld [vmem:[%s16702_s5 + $0xa4] ss:$16 sps:$4 sm:$0xff]   ;;  %v17567_v11 = vld [vmem:[#allocation37_spill] sm:$0xff] }
 0x449   : > { %v10896_v37 = vpop.eup %10895  ;;  %v4836_v20 = vpack.c.bf16 %v15270_v52, %v15252_v30  ;;  %v3935_v8 = vadd.f32 1.0, %v10894_v4  ;;  %10913 = vpow2.f32 %v3472_v47  ;;  %v2714_v5 = vsub.f32 0.0, %v15274_v3  ;;  %v17566_v30 = vld [vmem:[#allocation52_spill] sm:$0xff]  ;;  %7268 = vmatprep.subr.bf16.mxu0 %v9175_v16 }
 0x44a   : > { %v10898_v0 = vpop.eup %10897  ;;  %v3944_v50 = vadd.f32 1.0, %v10896_v37  ;;  %10915 = vpow2.f32 %v3474_v26  ;;  %v15289_v62 = vadd.f32 %v17566_v30, %v14906_v29  ;;  %v3025_v27 = vmin.f32 %v2705_v63, 80.0  ;;  %v9179_v4 = vld [vmem:[%s16702_s5 + $0xc0] ss:$16 sps:$4 sm:$0xff]   ;;  %v9181_v63 = vld [vmem:[%s16702_s5 + $0xc4] ss:$16 sps:$4 sm:$0xff]  }
 0x44b   : > { %v10900_v2 = vpop.eup %10899  ;;  %10917 = vrcp.f32 %v3935_v8  ;;  %v3945_v59 = vadd.f32 1.0, %v10898_v0  ;;  %v15293_v42 = vadd.f32 %v17567_v11, %v14901_v38  ;;  %v3034_v41 = vmin.f32 %v2714_v5, 80.0  ;;  %v17569_v11 = vld [vmem:[#allocation91_spill] sm:$0xff] }
 0x44c   : > { %v10902_v12 = vpop.eup %10901  ;;  %v15296_v1 = vmul.f32 %v10900_v2, %v15133_v19  ;;  %10919 = vrcp.f32 %v3944_v50  ;;  %v2715_v23 = vsub.f32 0.0, %v15289_v62  ;;  %v3494_v47 = vmul.f32 1.442695, %v3025_v27  ;;  %7269 = vmatpush1.bf16.msra.mxu0 %v9173_v51  ;;  %v17568_v2 = vld [vmem:[#allocation21_spill] sm:$0xff] }
 0x44d   : > { %v10904_v40 = vpop.eup %10903  ;;  %10921 = vrcp.f32 %v3945_v59  ;;  %v3954_v52 = vadd.f32 1.0, %v10902_v12  ;;  %v2724_v57 = vsub.f32 0.0, %v15293_v42  ;;  %v3512_v19 = vmul.f32 1.442695, %v3034_v41  ;;  %7270 = vmatprep.subr.bf16.mxu0 %v9181_v63  ;;  %v9187_v41 = vld [vmem:[%s16702_s5 + $0xe4] ss:$16 sps:$4 sm:$0xff]  }
 0x44e   : > { %v10906_v26 = vpop.eup %10905  ;;  %v3955_v37 = vadd.f32 1.0, %v10904_v40  ;;  %10923 = vpow2.f32 %v3492_v31  ;;  %v3035_v8 = vmin.f32 %v2715_v23, 80.0  ;;  %v4837_v5 = vpack.c.bf16 %v4555_v56, %v15260_v6  ;;  %v17570_v6 = vld [vmem:[#allocation95_spill] sm:$0xff] }
 0x44f   : > { %v10908_v16 = vpop.eup %10907  ;;  %10925 = vrcp.f32 %v3954_v52  ;;  %v3964_v0 = vadd.f32 1.0, %v10906_v26  ;;  %v3044_v50 = vmin.f32 %v2724_v57, 80.0  ;;  %v15312_v31 = vadd.f32 %v17568_v2, %v14906_v29 }
 0x450   : > { %v15308_v51 = vmul.f32 %v10908_v16, %v15145_v9  ;;  %10927 = vrcp.f32 %v3955_v37  ;;  %v3514_v30 = vmul.f32 1.442695, %v3035_v8  ;;  %5128 = vmatprep.subr.bf16.mxu1 %v4837_v5  ;;  %v15316_v12 = vadd.f32 %v17569_v11, %v14901_v38  ;;  %7271 = vmatpush1.bf16.msra.mxu0 %v9179_v4  ;;  %v9185_v9 = vld [vmem:[%s16702_s5 + $0xe0] ss:$16 sps:$4 sm:$0xff]  }
 0x451   : > { %v10910_v59 = vpop.eup %10909  ;;  %10929 = vrcp.f32 %v3964_v0  ;;  %v3532_v27 = vmul.f32 1.442695, %v3044_v50  ;;  %v15320_v56 = vadd.f32 %v17570_v6, %v14906_v29  ;;  %v2725_v52 = vsub.f32 0.0, %v15312_v31  ;;  %5129 = vmatpush1.bf16.msra.mxu1 %v4836_v20  ;;  %7272 = vmatprep.subr.bf16.mxu0 %v9187_v41 }
 0x452   : > { %v10912_v23 = vpop.eup %10911  ;;  %v4574_v40 = vmul.f32 %v10910_v59, %v15152_v61  ;;  %10931 = vpow2.f32 %v3494_v47  ;;  %v15332_v57 = vadd.f32 %v14781_v39, %v14901_v38  ;;  %v2734_v37 = vsub.f32 0.0, %v15316_v12 }
 0x453   : > { %v10914_v4 = vpop.eup %10913  ;;  %v3965_v26 = vadd.f32 1.0, %v10912_v23  ;;  %10933 = vpow2.f32 %v3512_v19  ;;  %v2735_v8 = vsub.f32 0.0, %v15320_v56  ;;  %v3045_v47 = vmin.f32 %v2725_v52, 80.0  ;;  %v9191_v19 = vld [vmem:[%s16702_s5 + $0x100] ss:$16 sps:$4 sm:$0xff]  }
 0x454   : > { %v10916_v63 = vpop.eup %10915  ;;  %v4846_v16 = vpack.c.bf16 %v4574_v40, %v15296_v1  ;;  %v3974_v61 = vadd.f32 1.0, %v10914_v4  ;;  %10935 = vpow2.f32 %v3514_v30  ;;  %v3054_v50 = vmin.f32 %v2734_v37, 80.0  ;;  %7273 = vmatpush1.bf16.msra.mxu0 %v9185_v9  ;;  %v9193_v30 = vld [vmem:[%s16702_s5 + $0x104] ss:$16 sps:$4 sm:$0xff]  }
 0x455   : > { %v10918_v0 = vpop.eup %10917  ;;  %10937 = vrcp.f32 %v3965_v26  ;;  %v3975_v20 = vadd.f32 1.0, %v10916_v63  ;;  %v3055_v39 = vmin.f32 %v2735_v8, 80.0  ;;  %v3534_v59 = vmul.f32 1.442695, %v3045_v47  ;;  %7274 = vmatprep.subr.bf16.mxu0 %v9193_v30 }
 0x456   : > { %v10920_v5 = vpop.eup %10919  ;;  %v4575_v2 = vmul.f32 %v10918_v0, %v15159_v53  ;;  %10939 = vrcp.f32 %v3974_v61  ;;  %v2744_v1 = vsub.f32 0.0, %v15332_v57  ;;  %v3552_v9 = vmul.f32 1.442695, %v3054_v50 }
 0x457   : > { %v10922_v11 = vpop.eup %10921  ;;  %v4584_v6 = vmul.f32 %v10920_v5, %v15165_v10  ;;  %10941 = vrcp.f32 %v3975_v20  ;;  %v3554_v41 = vmul.f32 1.442695, %v3055_v39  ;;  %v15350_v37 = vadd.f32 %v14786_v17, %v14906_v29 }
 0x458   : > { %v10924_v23 = vpop.eup %10923  ;;  %v4585_v40 = vmul.f32 %v10922_v11, %v15189_v28  ;;  %10943 = vpow2.f32 %v3532_v27  ;;  %v3064_v52 = vmin.f32 %v2744_v1, 80.0  ;;  %v4847_v53 = vpack.c.bf16 %v4575_v2, %v15308_v51  ;;  %7275 = vmatpush1.bf16.msra.mxu0 %v9191_v19  ;;  %v17571_v51 = vld [vmem:[#allocation15_spill] sm:$0xff] }
 0x459   : > { %v10926_v4 = vpop.eup %10925  ;;  %v3984_v26 = vadd.f32 1.0, %v10924_v23  ;;  %10945 = vpow2.f32 %v3534_v59  ;;  %v15354_v10 = vadd.f32 %v14795_v54, %v14901_v38  ;;  %v15359_v63 = vadd.f32 %v17571_v51, %v14906_v29 }
 0x45a   : > { %v10928_v8 = vpop.eup %10927  ;;  %v4594_v28 = vmul.f32 %v10926_v4, %v15193_v24  ;;  %10947 = vpow2.f32 %v3552_v9  ;;  %v3572_v27 = vmul.f32 1.442695, %v3064_v52  ;;  %5130 = vmatprep.subr.bf16.mxu1 %v4847_v53  ;;  %v2745_v17 = vsub.f32 0.0, %v15350_v37 }
 0x45b   : > { %v10930_v61 = vpop.eup %10929  ;;  %v4595_v47 = vmul.f32 %v10928_v8, %v15205_v48  ;;  %10949 = vrcp.f32 %v3984_v26  ;;  %5131 = vmatpush1.bf16.msra.mxu1 %v4846_v16  ;;  %v2754_v54 = vsub.f32 0.0, %v15354_v10  ;;  %v2755_v50 = vsub.f32 0.0, %v15359_v63  ;;  %v17573_v8 = vld [vmem:[#allocation51_spill] sm:$0xff] }
 0x45c   : > { %v10932_v0 = vpop.eup %10931  ;;  %v4856_v20 = vpack.c.bf16 %v4594_v28, %v4584_v6  ;;  %v15365_v24 = vmul.f32 %v10930_v61, %v15212_v46  ;;  %10951 = vpow2.f32 %v3554_v41  ;;  %v3065_v5 = vmin.f32 %v2745_v17, 80.0  ;;  %v17574_v61 = vld [vmem:[#allocation61_spill] sm:$0xff] }
 0x45d   : > { %v10934_v39 = vpop.eup %10933  ;;  %v3985_v19 = vadd.f32 1.0, %v10932_v0  ;;  %10953 = vpow2.f32 %v3572_v27  ;;  %v3074_v2 = vmin.f32 %v2754_v54, 80.0  ;;  %v3075_v1 = vmin.f32 %v2755_v50, 80.0 }
 0x45e   : > { %v10936_v48 = vpop.eup %10935  ;;  %v3994_v59 = vadd.f32 1.0, %v10934_v39  ;;  %v15370_v16 = vadd.f32 %v14834_v45, %v14901_v38  ;;  %v4857_v30 = vpack.c.bf16 %v4595_v47, %v4585_v40  ;;  %v3574_v6 = vmul.f32 1.442695, %v3065_v5  ;;  %v17572_v45 = vld [vmem:[#allocation92_spill] sm:$0xff] }
 0x45f   : > { %v10938_v11 = vpop.eup %10937  ;;  %10955 = vrcp.f32 %v3985_v19  ;;  %v3995_v46 = vadd.f32 1.0, %v10936_v48  ;;  %v3592_v9 = vmul.f32 1.442695, %v3074_v2  ;;  %v3594_v52 = vmul.f32 1.442695, %v3075_v1 }
 0x460   : > { %v10940_v41 = vpop.eup %10939  ;;  %v4605_v23 = vmul.f32 %v10938_v11, %v15228_v44  ;;  %10957 = vrcp.f32 %v3994_v59  ;;  %v2764_v53 = vsub.f32 0.0, %v15370_v16  ;;  %5132 = vmatprep.subr.bf16.mxu1 %v4857_v30  ;;  %v15377_v40 = vadd.f32 %v17572_v45, %v14906_v29  ;;  %v17575_v45 = vld [vmem:[#allocation55_spill] sm:$0xff] }
 0x461   : > { %v10942_v4 = vpop.eup %10941  ;;  %v4614_v26 = vmul.f32 %v10940_v41, %v15234_v21  ;;  %10959 = vrcp.f32 %v3995_v46  ;;  %5133 = vmatpush1.bf16.msra.mxu1 %v4856_v20  ;;  %v15381_v28 = vadd.f32 %v17573_v8, %v14901_v38  ;;  %v15386_v47 = vadd.f32 %v17574_v61, %v14906_v29  ;;  %v17576_v61 = vld [vmem:[#allocation32_spill] sm:$0xff] }
 0x462   : > { %v10944_v27 = vpop.eup %10943  ;;  %v4615_v44 = vmul.f32 %v10942_v4, %v15241_v49  ;;  %10961 = vpow2.f32 %v3574_v6  ;;  %v3084_v51 = vmin.f32 %v2764_v53, 80.0  ;;  %v2765_v0 = vsub.f32 0.0, %v15377_v40 }
 0x463   : > { %v10946_v21 = vpop.eup %10945  ;;  %v4866_v17 = vpack.c.bf16 %v4614_v26, %v15365_v24  ;;  %v4004_v54 = vadd.f32 1.0, %v10944_v27  ;;  %10963 = vpow2.f32 %v3592_v9  ;;  %v2774_v19 = vsub.f32 0.0, %v15381_v28 }
 0x464   : > { %v10948_v20 = vpop.eup %10947  ;;  %v4005_v50 = vadd.f32 1.0, %v10946_v21  ;;  %10965 = vpow2.f32 %v3594_v52  ;;  %v3612_v39 = vmul.f32 1.442695, %v3084_v51  ;;  %v3085_v2 = vmin.f32 %v2765_v0, 80.0 }
 0x465   : > { %v10950_v49 = vpop.eup %10949  ;;  %10967 = vrcp.f32 %v4004_v54  ;;  %v4014_v5 = vadd.f32 1.0, %v10948_v20  ;;  %v2775_v48 = vsub.f32 0.0, %v15386_v47  ;;  %v3094_v24 = vmin.f32 %v2774_v19, 80.0 }
 0x466   : > { %v10952_v59 = vpop.eup %10951  ;;  %v15393_v1 = vmul.f32 %v10950_v49, %v15245_v60  ;;  %10969 = vrcp.f32 %v4005_v50  ;;  %v15397_v30 = vadd.f32 %v14879_v36, %v14901_v38  ;;  %v3614_v6 = vmul.f32 1.442695, %v3085_v2 }
 0x467   : > { %v10954_v11 = vpop.eup %10953  ;;  %10971 = vrcp.f32 %v4014_v5  ;;  %v4015_v46 = vadd.f32 1.0, %v10952_v59  ;;  %v3095_v9 = vmin.f32 %v2775_v48, 80.0  ;;  %v3632_v52 = vmul.f32 1.442695, %v3094_v24 }
 0x468   : > { %v4024_v41 = vadd.f32 1.0, %v10954_v11  ;;  %10973 = vpow2.f32 %v3612_v39  ;;  %v2784_v53 = vsub.f32 0.0, %v15397_v30  ;;  %v4867_v26 = vpack.c.bf16 %v4615_v44, %v4605_v23  ;;  %v17577_v44 = vld [vmem:[#allocation5_spill] sm:$0xff] }
 0x469   : > { %v10956_v4 = vpop.eup %10955  ;;  %10975 = vrcp.f32 %v4015_v46  ;;  %v3634_v60 = vmul.f32 1.442695, %v3095_v9  ;;  %v15402_v8 = vadd.f32 %v17575_v45, %v14906_v29  ;;  %v15407_v21 = vadd.f32 %v17576_v61, %v14901_v38 }
 0x46a   : > { %v10958_v36 = vpop.eup %10957  ;;  %v4625_v27 = vmul.f32 %v10956_v4, %v15264_v13  ;;  %10977 = vrcp.f32 %v4024_v41  ;;  %v3104_v51 = vmin.f32 %v2784_v53, 80.0  ;;  %5134 = vmatprep.subr.bf16.mxu1 %v4867_v26  ;;  %v15413_v20 = vadd.f32 %v17577_v44, %v14906_v29 }
 0x46b   : > { %v10960_v54 = vpop.eup %10959  ;;  %v4634_v0 = vmul.f32 %v10958_v36, %v15274_v3  ;;  %10979 = vpow2.f32 %v3614_v6  ;;  %v2785_v23 = vsub.f32 0.0, %v15402_v8  ;;  %5135 = vmatpush1.bf16.msra.mxu1 %v4866_v17  ;;  %v2794_v19 = vsub.f32 0.0, %v15407_v21  ;;  %v17578_v17 = vld [vmem:[#allocation53_spill] sm:$0xff] }
 0x46c   : > { %v10962_v50 = vpop.eup %10961  ;;  %v4635_v13 = vmul.f32 %v10960_v54, %v15289_v62  ;;  %10981 = vpow2.f32 %v3632_v52  ;;  %v3652_v39 = vmul.f32 1.442695, %v3104_v51  ;;  %v2795_v11 = vsub.f32 0.0, %v15413_v20  ;;  %v17579_v54 = vld [vmem:[#allocation56_spill] sm:$0xff] }
 0x46d   : > { %v10964_v49 = vpop.eup %10963  ;;  %v4876_v5 = vpack.c.bf16 %v4634_v0, %v15393_v1  ;;  %v4025_v3 = vadd.f32 1.0, %v10962_v50  ;;  %10983 = vpow2.f32 %v3634_v60  ;;  %v3105_v2 = vmin.f32 %v2785_v23, 80.0 }
 0x46e   : > { %v10966_v48 = vpop.eup %10965  ;;  %v4034_v59 = vadd.f32 1.0, %v10964_v49  ;;  %10985 = vpow2.f32 %v3652_v39  ;;  %v3114_v24 = vmin.f32 %v2794_v19, 80.0  ;;  %v15421_v9 = vadd.f32 %v17578_v17, %v14901_v38 }
 0x46f   : > { %v10968_v46 = vpop.eup %10967  ;;  %10987 = vrcp.f32 %v4025_v3  ;;  %v4035_v62 = vadd.f32 1.0, %v10966_v48  ;;  %v3654_v6 = vmul.f32 1.442695, %v3105_v2  ;;  %v3115_v53 = vmin.f32 %v2795_v11, 80.0 }
 0x470   : > { %v10970_v41 = vpop.eup %10969  ;;  %v4644_v1 = vmul.f32 %v10968_v46, %v15293_v42  ;;  %10989 = vrcp.f32 %v4034_v59  ;;  %v3672_v52 = vmul.f32 1.442695, %v3114_v24  ;;  %v2804_v26 = vsub.f32 0.0, %v15421_v9 }
 0x471   : > { %v10972_v4 = vpop.eup %10971  ;;  %v4645_v60 = vmul.f32 %v10970_v41, %v15312_v31  ;;  %10991 = vrcp.f32 %v4035_v62  ;;  %v4877_v45 = vpack.c.bf16 %v4635_v13, %v4625_v27  ;;  %v3674_v61 = vmul.f32 1.442695, %v3115_v53  ;;  %v17580_v31 = vld [vmem:[#allocation107_spill] sm:$0xff] }
 0x472   : > { %v10974_v36 = vpop.eup %10973  ;;  %v4654_v51 = vmul.f32 %v10972_v4, %v15316_v12  ;;  %10993 = vpow2.f32 %v3654_v6  ;;  %v15429_v0 = vadd.f32 %v17579_v54, %v14906_v29  ;;  %v3124_v44 = vmin.f32 %v2804_v26, 80.0 }
 0x473   : > { %v10976_v42 = vpop.eup %10975  ;;  %v4044_v23 = vadd.f32 1.0, %v10974_v36  ;;  %10995 = vpow2.f32 %v3672_v52  ;;  %5136 = vmatprep.subr.bf16.mxu1 %v4877_v45  ;;  %v15433_v50 = vadd.f32 %v17580_v31, %v14901_v38  ;;  %v15443_v11 = vadd.f32 %v14954_v58, %v14906_v29 }
 0x474   : > { %v10978_v39 = vpop.eup %10977  ;;  %v4886_v27 = vpack.c.bf16 %v4654_v51, %v4644_v1  ;;  %v4655_v13 = vmul.f32 %v10976_v42, %v15320_v56  ;;  %10997 = vpow2.f32 %v3674_v61  ;;  %v2805_v12 = vsub.f32 0.0, %v15429_v0  ;;  %5137 = vmatpush1.bf16.msra.mxu1 %v4876_v5  ;;  %v17582_v42 = vld [vmem:[#allocation73_spill] sm:$0xff] }
 0x475   : > { %v10980_v19 = vpop.eup %10979  ;;  %v15438_v49 = vmul.f32 %v10978_v39, %v15332_v57  ;;  %10999 = vrcp.f32 %v4044_v23  ;;  %v3692_v3 = vmul.f32 1.442695, %v3124_v44  ;;  %v2814_v2 = vsub.f32 0.0, %v15433_v50 }
 0x476   : > { %v10982_v48 = vpop.eup %10981  ;;  %v4045_v59 = vadd.f32 1.0, %v10980_v19  ;;  %v3125_v24 = vmin.f32 %v2805_v12, 80.0  ;;  %v15447_v56 = vadd.f32 %v14985_v15, %v14901_v38  ;;  %v4887_v62 = vpack.c.bf16 %v4655_v13, %v4645_v60  ;;  %v17581_v60 = vld [vmem:[#allocation110_spill] sm:$0xff] }
 0x477   : > { %v10984_v5 = vpop.eup %10983  ;;  %v4054_v46 = vadd.f32 1.0, %v10982_v48  ;;  %11001 = vpow2.f32 %v3692_v3  ;;  %v3134_v57 = vmin.f32 %v2814_v2, 80.0  ;;  %v2815_v1 = vsub.f32 0.0, %v15443_v11 }
 0x478   : > { %v10986_v6 = vpop.eup %10985  ;;  %11003 = vrcp.f32 %v4045_v59  ;;  %v4055_v17 = vadd.f32 1.0, %v10984_v5  ;;  %v3694_v41 = vmul.f32 1.442695, %v3125_v24  ;;  %v2824_v4 = vsub.f32 0.0, %v15447_v56  ;;  %5138 = vmatprep.subr.bf16.mxu1 %v4887_v62 }
 0x479   : > { %v10988_v52 = vpop.eup %10987  ;;  %11005 = vrcp.f32 %v4054_v46  ;;  %v4064_v53 = vadd.f32 1.0, %v10986_v6  ;;  %v3712_v58 = vmul.f32 1.442695, %v3134_v57  ;;  %v3135_v45 = vmin.f32 %v2815_v1, 80.0  ;;  %5139 = vmatpush1.bf16.msra.mxu1 %v4886_v27 }
 0x47a   : > { %v10990_v15 = vpop.eup %10989  ;;  %v4665_v26 = vmul.f32 %v10988_v52, %v15350_v37  ;;  %11007 = vrcp.f32 %v4055_v17  ;;  %v15454_v36 = vadd.f32 %v17581_v60, %v14906_v29  ;;  %v3144_v54 = vmin.f32 %v2824_v4, 80.0 }
 0x47b   : > { %v10992_v51 = vpop.eup %10991  ;;  %v4674_v61 = vmul.f32 %v10990_v15, %v15354_v10  ;;  %11009 = vrcp.f32 %v4064_v53  ;;  %v15459_v23 = vadd.f32 %v17582_v42, %v14901_v38  ;;  %v3714_v37 = vmul.f32 1.442695, %v3135_v45 }
 0x47c   : > { %v10994_v44 = vpop.eup %10993  ;;  %v4675_v31 = vmul.f32 %v10992_v51, %v15359_v63  ;;  %11011 = vpow2.f32 %v3694_v41  ;;  %v2825_v39 = vsub.f32 0.0, %v15454_v36  ;;  %v3732_v19 = vmul.f32 1.442695, %v3144_v54  ;;  %v17583_v63 = vld [vmem:[#allocation113_spill] sm:$0xff] }
 0x47d   : > { %v10996_v13 = vpop.eup %10995  ;;  %v4896_v12 = vpack.c.bf16 %v4674_v61, %v15438_v49  ;;  %v4065_v27 = vadd.f32 1.0, %v10994_v44  ;;  %11013 = vpow2.f32 %v3712_v58  ;;  %v2834_v48 = vsub.f32 0.0, %v15459_v23 }
 0x47e   : > { %v10998_v10 = vpop.eup %10997  ;;  %v4074_v3 = vadd.f32 1.0, %v10996_v13  ;;  %11015 = vpow2.f32 %v3714_v37  ;;  %v3145_v2 = vmin.f32 %v2825_v39, 80.0  ;;  %v15467_v5 = vadd.f32 %v17583_v63, %v14906_v29 }
 0x47f   : > { %v11000_v59 = vpop.eup %10999  ;;  %11017 = vrcp.f32 %v4065_v27  ;;  %v4075_v24 = vadd.f32 1.0, %v10998_v10  ;;  %v15471_v46 = vadd.f32 %v15041_v34, %v14901_v38  ;;  %v3154_v57 = vmin.f32 %v2834_v48, 80.0 }
 0x480   : > { %11019 = vrcp.f32 %v4074_v3  ;;  %v3734_v49 = vmul.f32 1.442695, %v3145_v2  ;;  %v2835_v6 = vsub.f32 0.0, %v15467_v5  ;;  %v4897_v41 = vpack.c.bf16 %v4675_v31, %v4665_v26 }
 0x481   : > { %v11002_v62 = vpop.eup %11001  ;;  %11021 = vrcp.f32 %v4075_v24  ;;  %v2844_v17 = vsub.f32 0.0, %v15471_v46  ;;  %v3752_v53 = vmul.f32 1.442695, %v3154_v57  ;;  %v15477_v58 = vadd.f32 %v15045_v33, %v14906_v29 }
 0x482   : > { %v11004_v1 = vpop.eup %11003  ;;  %v4084_v52 = vadd.f32 1.0, %v11002_v62  ;;  %11023 = vpow2.f32 %v3732_v19  ;;  %v4684_v4 = vmul.f32 %v11000_v59, %v15370_v16  ;;  %v3155_v15 = vmin.f32 %v2835_v6, 80.0  ;;  %5140 = vmatprep.subr.bf16.mxu1 %v4897_v41 }
 0x483   : > { %v11006_v34 = vpop.eup %11005  ;;  %11025 = vpow2.f32 %v3734_v49  ;;  %v3164_v45 = vmin.f32 %v2844_v17, 80.0  ;;  %v2845_v26 = vsub.f32 0.0, %v15477_v58  ;;  %5141 = vmatpush1.bf16.msra.mxu1 %v4896_v12  ;;  %v15484_v61 = vadd.f32 %v15057_v25, %v14901_v38  ;;  %v9197_v12 = vld [vmem:[%s16702_s5 + $0x120] ss:$16 sps:$4 sm:$0xff]  }
 0x484   : > { %v11008_v60 = vpop.eup %11007  ;;  %v4694_v51 = vmul.f32 %v11006_v34, %v15381_v28  ;;  %11027 = vrcp.f32 %v4084_v52  ;;  %v4685_v54 = vmul.f32 %v11004_v1, %v15377_v40  ;;  %v3754_v16 = vmul.f32 1.442695, %v3155_v15 }
 0x485   : > { %v11010_v33 = vpop.eup %11009  ;;  %11029 = vpow2.f32 %v3752_v53  ;;  %v3772_v42 = vmul.f32 1.442695, %v3164_v45  ;;  %v4695_v37 = vmul.f32 %v11008_v60, %v15386_v47  ;;  %v3165_v39 = vmin.f32 %v2845_v26, 80.0  ;;  %v9199_v47 = vld [vmem:[%s16702_s5 + $0x124] ss:$16 sps:$4 sm:$0xff]  }
 0x486   : > { %v11012_v44 = vpop.eup %11011  ;;  %v4906_v31 = vpack.c.bf16 %v4694_v51, %v4684_v4  ;;  %v2854_v28 = vsub.f32 0.0, %v15484_v61  ;;  %11031 = vpow2.f32 %v3754_v16  ;;  %v15491_v25 = vadd.f32 %v15064_v43, %v14906_v29  ;;  %7276 = vmatprep.subr.bf16.mxu0 %v9199_v47 }
 0x487   : > { %v11014_v13 = vpop.eup %11013  ;;  %v4085_v27 = vadd.f32 1.0, %v11012_v44  ;;  %v15495_v40 = vadd.f32 %v15088_v55, %v14901_v38  ;;  %11033 = vpow2.f32 %v3772_v42  ;;  %v3774_v3 = vmul.f32 1.442695, %v3165_v39  ;;  %7277 = vmatpush1.bf16.msra.mxu0 %v9197_v12 }
 0x488   : > { %v11016_v19 = vpop.eup %11015  ;;  %v4094_v10 = vadd.f32 1.0, %v11014_v13  ;;  %v3174_v2 = vmin.f32 %v2854_v28, 80.0  ;;  %v2855_v59 = vsub.f32 0.0, %v15491_v25  ;;  %v4704_v63 = vmul.f32 %v11010_v33, %v15397_v30 }
 0x489   : > { %v11018_v48 = vpop.eup %11017  ;;  %11035 = vrcp.f32 %v4085_v27  ;;  %v4095_v43 = vadd.f32 1.0, %v11016_v19  ;;  %v2864_v55 = vsub.f32 0.0, %v15495_v40  ;;  %v4907_v57 = vpack.c.bf16 %v4695_v37, %v4685_v54 }
 0x48a   : > { %v11020_v24 = vpop.eup %11019  ;;  %11037 = vrcp.f32 %v4094_v10  ;;  %v3792_v49 = vmul.f32 1.442695, %v3174_v2  ;;  %v3175_v17 = vmin.f32 %v2855_v59, 80.0  ;;  %v15510_v53 = vadd.f32 %v15099_v14, %v14906_v29  ;;  %v9203_v59 = vld [vmem:[%s16702_s5 + $0x140] ss:$16 sps:$4 sm:$0xff]  }
 0x48b   : > { %v11022_v62 = vpop.eup %11021  ;;  %v4714_v6 = vmul.f32 %v11020_v24, %v15407_v21  ;;  %11039 = vrcp.f32 %v4095_v43  ;;  %v3184_v41 = vmin.f32 %v2864_v55, 80.0  ;;  %5142 = vmatprep.subr.bf16.mxu1 %v4907_v57  ;;  %v15514_v30 = vadd.f32 %v15109_v7, %v14901_v38  ;;  %v9205_v55 = vld [vmem:[%s16702_s5 + $0x144] ss:$16 sps:$4 sm:$0xff]  }
 0x48c   : > { %v11024_v1 = vpop.eup %11023  ;;  %v4715_v52 = vmul.f32 %v11022_v62, %v15413_v20  ;;  %11041 = vpow2.f32 %v3774_v3  ;;  %v3794_v21 = vmul.f32 1.442695, %v3175_v17  ;;  %5143 = vmatpush1.bf16.msra.mxu1 %v4906_v31  ;;  %v4705_v60 = vmul.f32 %v11018_v48, %v15402_v8  ;;  %7278 = vmatprep.subr.bf16.mxu0 %v9205_v55  ;;  %v9233_v55 = vld [vmem:[%s16702_s5 + $0x1e0] ss:$16 sps:$4 sm:$0xff]  }
 0x48d   : > { %v11026_v34 = vpop.eup %11025  ;;  %v4916_v4 = vpack.c.bf16 %v4714_v6, %v4704_v63  ;;  %v4104_v15 = vadd.f32 1.0, %v11024_v1  ;;  %11043 = vpow2.f32 %v3792_v49  ;;  %v2865_v51 = vsub.f32 0.0, %v15510_v53  ;;  %7279 = vmatpush1.bf16.msra.mxu0 %v9203_v59 }
 0x48e   : > { %v11028_v45 = vpop.eup %11027  ;;  %v4105_v20 = vadd.f32 1.0, %v11026_v34  ;;  %v2874_v26 = vsub.f32 0.0, %v15514_v30  ;;  %v3812_v33 = vmul.f32 1.442695, %v3184_v41  ;;  %v15521_v38 = vadd.f32 %v15114_v32, %v14906_v29  ;;  %v9217_v34 = vld [vmem:[%s16702_s5 + $0x184] ss:$16 sps:$4 sm:$0xff]  }
 0x48f   : > { %v11030_v14 = vpop.eup %11029  ;;  %11045 = vrcp.f32 %v4104_v15  ;;  %v5173_v7 = vcombine.low %v15081_v35, %v15090_v22  ;;  %v3185_v16 = vmin.f32 %v2865_v51, 80.0  ;;  %v4917_v31 = vpack.c.bf16 %v4715_v52, %v4705_v60 }
 0x490   : > { %11047 = vrcp.f32 %v4105_v20  ;;  %v4114_v54 = vadd.f32 1.0, %v11030_v14  ;;  %v3194_v42 = vmin.f32 %v2874_v26, 80.0  ;;  %v11032_v8 = vpop.eup %11031  ;;  %v2875_v44 = vsub.f32 0.0, %v15521_v38  ;;  %v9215_v14 = vld [vmem:[%s16702_s5 + $0x180] ss:$16 sps:$4 sm:$0xff]  }
 0x491   : > { %11049 = vpow2.f32 %v3794_v21  ;;  %v11034_v37 = vpop.eup %11033  ;;  %v4115_v39 = vadd.f32 1.0, %v11032_v8  ;;  %v3814_v28 = vmul.f32 1.442695, %v3185_v16  ;;  %v11106_v12 = vmov 1966171168   ;;  %5144 = vmatprep.subr.bf16.mxu1 %v4917_v31 }
 0x492   : > { %11051 = vrcp.f32 %v4114_v54  ;;  %v3832_v13 = vmul.f32 1.442695, %v3194_v42  ;;  %v4124_v29 = vadd.f32 1.0, %v11034_v37  ;;  %v3195_v32 = vmin.f32 %v2875_v44, 80.0  ;;  %5145 = vmatpush1.bf16.msra.mxu1 %v4916_v4  ;;  %v9223_v44 = vld [vmem:[%s16702_s5 + $0x1a4] ss:$16 sps:$4 sm:$0xff]  }
 0x493   : > { %v11036_v27 = vpop.eup %11035  ;;  %11053 = vpow2.f32 %v3812_v33  ;;  %v5178_v47 = vunpack.c.l.s4 %v11106_v12  ;;  %v4724_v10 = vmul.f32 %v11028_v45, %v15421_v9 }
 0x494   : > { %v11038_v19 = vpop.eup %11037  ;;  %11055 = vrcp.f32 %v4115_v39  ;;  %v3834_v48 = vmul.f32 1.442695, %v3195_v32  ;;  %v4725_v63 = vmul.f32 %v11036_v27, %v15429_v0  ;;  %v9209_v0 = vld [vmem:[%s16702_s5 + $0x160] ss:$16 sps:$4 sm:$0xff]  }
 0x495   : > { %v11040_v3 = vpop.eup %11039  ;;  %v4734_v2 = vmul.f32 %v11038_v19, %v15433_v50  ;;  %11057 = vrcp.f32 %v4124_v29  ;;  %v5179_v43 = vunpack.c.0.s8 %v5178_v47  ;;  %v9211_v50 = vld [vmem:[%s16702_s5 + $0x164] ss:$16 sps:$4 sm:$0xff]   ;;  %v9227_v19 = vld [vmem:[%s16702_s5 + $0x1c0] ss:$16 sps:$4 sm:$0xff]  }
 0x496   : > { %v11042_v24 = vpop.eup %11041  ;;  %v4735_v9 = vmul.f32 %v11040_v3, %v15443_v11  ;;  %11059 = vpow2.f32 %v3814_v28  ;;  %v17584_v11 = vld [vmem:[#allocation16_spill] sm:$0xff]  ;;  %7280 = vmatprep.subr.bf16.mxu0 %v9211_v50 }
 0x497   : > { %v11044_v49 = vpop.eup %11043  ;;  %v4926_v57 = vpack.c.bf16 %v4734_v2, %v4724_v10  ;;  %11061 = vpow2.f32 %v3832_v13  ;;  %v4125_v62 = vadd.f32 1.0, %v11042_v24  ;;  %v15543_v1 = vsub.s32 %v5179_v43, %v17584_v11  ;;  %v5033_v52 = vpop.f32.mrb[164].mxu0  ;;  %7281 = vmatpush1.bf16.msra.mxu0 %v9209_v0  ;;  %v9235_v2 = vld [vmem:[%s16702_s5 + $0x1e4] ss:$16 sps:$4 sm:$0xff]  }
 0x498   : > { %v4134_v6 = vadd.f32 1.0, %v11044_v49  ;;  %11063 = vpow2.f32 %v3834_v48  ;;  %v4927_v17 = vpack.c.bf16 %v4735_v9, %v4725_v63  ;;  %v5035_v15 = vpop.f32.mrb[165].mxu0  ;;  %7282 = vmatprep.subr.bf16.mxu0 %v9217_v34  ;;  %v9164_v34 = vld [vmem:[%s16702_s5 + $0x68] ss:$16 sps:$4 sm:$0xff]  }
 0x499   : > { %v11046_v41 = vpop.eup %11045  ;;  %v5174_v45 = vcombine.low %v5033_v52, %v5035_v15  ;;  %v5037_v60 = vpop.f32.mrb[166].mxu0  ;;  %v15557_v42 = vrot.slane %v5173_v7, %v15543_v1  ;;  %v9221_v7 = vld [vmem:[%s16702_s5 + $0x1a0] ss:$16 sps:$4 sm:$0xff]   ;;  %v9146_v52 = vld [vmem:[%s16702_s5 + $0x8] ss:$16 sps:$4 sm:$0xff]  }
 0x49a   : > { %v11048_v4 = vpop.eup %11047  ;;  %11065 = vrcp.f32 %v4134_v6  ;;  %5146 = vmatprep.subr.bf16.mxu1 %v4927_v17  ;;  %v5038_v26 = vpop.f32.mrb[167].mxu0  ;;  %v4744_v54 = vmul.f32 %v11046_v41, %v15447_v56  ;;  %v9148_v41 = vld [vmem:[%s16702_s5 + $0xc] ss:$16 sps:$4 sm:$0xff]   ;;  %v9170_v15 = vld [vmem:[%s16702_s5 + $0x88] ss:$16 sps:$4 sm:$0xff]  }
 0x49b   : > { %v11050_v21 = vpop.eup %11049  ;;  %5147 = vmatpush1.bf16.msra.mxu1 %v4926_v57  ;;  %11067 = vrcp.f32 %v4125_v62  ;;  %v15560_v8 = vrot.slane %v5174_v45, %v15543_v1  ;;  %7283 = vmatpush1.bf16.msra.mxu0 %v9215_v14  ;;  %v9176_v45 = vld [vmem:[%s16702_s5 + $0xa8] ss:$16 sps:$4 sm:$0xff]   ;;  %v9184_v60 = vld [vmem:[%s16702_s5 + $0xcc] ss:$16 sps:$4 sm:$0xff]  }
 0x49c   : > { %v11052_v20 = vpop.eup %11051  ;;  %v4135_v51 = vadd.f32 1.0, %v11050_v21  ;;  %7284 = vmatprep.subr.bf16.mxu0 %v9223_v44  ;;  %v9178_v21 = vld [vmem:[%s16702_s5 + $0xac] ss:$16 sps:$4 sm:$0xff]   ;;  %v9188_v26 = vld [vmem:[%s16702_s5 + $0xe8] ss:$16 sps:$4 sm:$0xff]  }
 0x49d   : > { %v11054_v33 = vpop.eup %11053  ;;  %v4754_v16 = vmul.f32 %v11052_v20, %v15459_v23  ;;  %v4745_v23 = vmul.f32 %v11048_v4, %v15454_v36  ;;  %v5205_v35 = vcombine.low %v15557_v42, %v15560_v8  ;;  %v9229_v36 = vld [vmem:[%s16702_s5 + $0x1c4] ss:$16 sps:$4 sm:$0xff]   ;;  %v9172_v4 = vld [vmem:[%s16702_s5 + $0x8c] ss:$16 sps:$4 sm:$0xff]   ;;  %v9182_v20 = vld [vmem:[%s16702_s5 + $0xc8] ss:$16 sps:$4 sm:$0xff]  }
 0x49e   : > { %v11056_v31 = vpop.eup %11055  ;;  %11069 = vrcp.f32 %v4135_v51  ;;  %v4144_v37 = vadd.f32 1.0, %v11054_v33  ;;  %v9190_v51 = vld [vmem:[%s16702_s5 + $0xec] ss:$16 sps:$4 sm:$0xff]   ;;  %v9194_v33 = vld [vmem:[%s16702_s5 + $0x108] ss:$16 sps:$4 sm:$0xff]  }
 0x49f   : > { %v11058_v56 = vpop.eup %11057  ;;  %v4936_v39 = vpack.c.bf16 %v4754_v16, %v4744_v54  ;;  %v4755_v28 = vmul.f32 %v11056_v31, %v15467_v5  ;;  %7285 = vmatpush1.bf16.msra.mxu0 %v9221_v7  ;;  %v9196_v14 = vld [vmem:[%s16702_s5 + $0x10c] ss:$16 sps:$4 sm:$0xff]   ;;  %v9200_v16 = vld [vmem:[%s16702_s5 + $0x128] ss:$16 sps:$4 sm:$0xff]   ;;  %v9239_v42 = vld [vmem:[%s16702_s5 + $0x200] ss:$16 sps:$4 sm:$0xff]  }
 0x4a0   : > { %v11060_v22 = vpop.eup %11059  ;;  %11071 = vrcp.f32 %v4144_v37  ;;  %v4764_v10 = vmul.f32 %v11058_v56, %v15471_v46  ;;  %7286 = vmatprep.subr.bf16.mxu0 %v9229_v36  ;;  %v9202_v54 = vld [vmem:[%s16702_s5 + $0x12c] ss:$16 sps:$4 sm:$0xff]   ;;  %v9206_v31 = vld [vmem:[%s16702_s5 + $0x148] ss:$16 sps:$4 sm:$0xff]  }
 0x4a1   : > { %v11062_v13 = vpop.eup %11061  ;;  %v4145_v27 = vadd.f32 1.0, %v11060_v22  ;;  %v4937_v29 = vpack.c.bf16 %v4755_v28, %v4745_v23  ;;  %v9208_v44 = vld [vmem:[%s16702_s5 + $0x14c] ss:$16 sps:$4 sm:$0xff]   ;;  %v9212_v56 = vld [vmem:[%s16702_s5 + $0x168] ss:$16 sps:$4 sm:$0xff]  }
 0x4a2   : > { %v11064_v32 = vpop.eup %11063  ;;  %v4154_v5 = vadd.f32 1.0, %v11062_v13  ;;  %v9214_v37 = vld [vmem:[%s16702_s5 + $0x16c] ss:$16 sps:$4 sm:$0xff]   ;;  %v9224_v22 = vld [vmem:[%s16702_s5 + $0x1a8] ss:$16 sps:$4 sm:$0xff]  }
 0x4a3   : > { %11073 = vrcp.f32 %v4145_v27  ;;  %v4155_v12 = vadd.f32 1.0, %v11064_v32  ;;  %5148 = vmatprep.subr.bf16.mxu1 %v4937_v29  ;;  %7287 = vmatpush1.bf16.msra.mxu0 %v9227_v19  ;;  %v9220_v23 = vld [vmem:[%s16702_s5 + $0x18c] ss:$16 sps:$4 sm:$0xff]   ;;  %v9230_v13 = vld [vmem:[%s16702_s5 + $0x1c8] ss:$16 sps:$4 sm:$0xff]  }
 0x4a4   : > { %v11066_v47 = vpop.eup %11065  ;;  %11075 = vrcp.f32 %v4154_v5  ;;  %5149 = vmatpush1.bf16.msra.mxu1 %v4936_v39  ;;  %7288 = vmatprep.subr.bf16.mxu0 %v9235_v2  ;;  %v9218_v39 = vld [vmem:[%s16702_s5 + $0x188] ss:$16 sps:$4 sm:$0xff]   ;;  %v9226_v28 = vld [vmem:[%s16702_s5 + $0x1ac] ss:$16 sps:$4 sm:$0xff]  }
 0x4a5   : > { %v4774_v3 = vmul.f32 %v11066_v47, %v15484_v61  ;;  %11077 = vrcp.f32 %v4155_v12  ;;  %v11068_v48 = vpop.eup %11067  ;;  %v9241_v61 = vld [vmem:[%s16702_s5 + $0x204] ss:$16 sps:$4 sm:$0xff]   ;;  %v9232_v7 = vld [vmem:[%s16702_s5 + $0x1cc] ss:$16 sps:$4 sm:$0xff]   ;;  %v9236_v29 = vld [vmem:[%s16702_s5 + $0x1e8] ss:$16 sps:$4 sm:$0xff]  }
 0x4a6   : > { %v4765_v24 = vmul.f32 %v11068_v48, %v15477_v58  ;;  %v9238_v27 = vld [vmem:[%s16702_s5 + $0x1ec] ss:$16 sps:$4 sm:$0xff]   ;;  %v9242_v8 = vld [vmem:[%s16702_s5 + $0x208] ss:$16 sps:$4 sm:$0xff]  }
 0x4a7   : > { %v4946_v43 = vpack.c.bf16 %v4774_v3, %v4764_v10  ;;  %7289 = vmatpush1.bf16.msra.mxu0 %v9233_v55  ;;  %v9244_v36 = vld [vmem:[%s16702_s5 + $0x20c] ss:$16 sps:$4 sm:$0xff]  }
 0x4a8   : > { %v11070_v59 = vpop.eup %11069  ;;  %7299 = vmatprep.subr.bf16.mxu0 %v9241_v61 }
 0x4a9   : > { %v4775_v46 = vmul.f32 %v11070_v59, %v15491_v25 }
 0x4aa   : > { %v11072_v9 = vpop.eup %11071 }
 0x4ab   : > { %v4947_v63 = vpack.c.bf16 %v4775_v46, %v4765_v24  ;;  %v4784_v62 = vmul.f32 %v11072_v9, %v15495_v40  ;;  %v9154_v40 = vld [vmem:[%s16702_s5 + $0x2c] ss:$16 sps:$4 sm:$0xff]   ;;  %v5213_v46 = vrot.slane %v5205_v35, %v15543_v1 }
 0x4ad   : > { %v11074_v49 = vpop.eup %11073  ;;  %5150 = vmatprep.subr.bf16.mxu1 %v4947_v63 }
 0x4ae   : > { %v11076_v57 = vpop.eup %11075  ;;  %5151 = vmatpush1.bf16.msra.mxu1 %v4946_v43  ;;  %v4785_v25 = vmul.f32 %v11074_v49, %v15510_v53  ;;  %v9152_v53 = vld [vmem:[%s16702_s5 + $0x28] ss:$16 sps:$4 sm:$0xff]  }
 0x4af   : > { %v11078_v50 = vpop.eup %11077  ;;  %v4794_v58 = vmul.f32 %v11076_v57, %v15514_v30  ;;  %v9160_v30 = vld [vmem:[%s16702_s5 + $0x4c] ss:$16 sps:$4 sm:$0xff]  }
 0x4b0   : > { %v4795_v6 = vmul.f32 %v11078_v50, %v15521_v38  ;;  %v9158_v38 = vld [vmem:[%s16702_s5 + $0x48] ss:$16 sps:$4 sm:$0xff]  }
 0x4b1   : > { %v4956_v17 = vpack.c.bf16 %v4794_v58, %v4784_v62  ;;  %v17585_v49 = vld [vmem:[#allocation19_spill] sm:$0xff]  ;;  %v17586_v50 = vld [vmem:[#allocation17_spill] sm:$0xff]  ;;  %v17587_v58 = vld [vmem:[#allocation20_spill] sm:$0xff] }
 0x4b2   : > { %v4957_v0 = vpack.c.bf16 %v4795_v6, %v4785_v25 }
 0x4b4   : > { %5152 = vmatprep.subr.bf16.mxu1 %v4957_v0  ;;  %v9250_v0 = vld [vmem:[%s16702_s5 + $0x22c] ss:$16 sps:$4 sm:$0xff]  }
 0x4b5   : > { %5153 = vmatpush1.bf16.msra.mxu1 %v4956_v17  ;;  %v9247_v17 = vld [vmem:[%s16702_s5 + $0x224] ss:$16 sps:$4 sm:$0xff]  }
 0x4b6   : > { %7463 = vmatprep.subr.bf16.mxu1 %v9148_v41 }
 0x4b8   : > { %5155 = vmatmul.mubr.bf16.vlgmr.msra.gmra.mrb[196].mxu1 %v17555_v18  ;;  %v9166_v18 = vld [vmem:[%s16702_s5 + $0x6c] ss:$16 sps:$4 sm:$0xff]  }
 0x4b9   : > { %7464 = vmatpush1.bf16.msra.mxu1 %v9146_v52  ;;  %v9245_v52 = vld [vmem:[%s16702_s5 + $0x220] ss:$16 sps:$4 sm:$0xff]  }
 0x4ba   : > { %7465 = vmatprep.subr.bf16.mxu1 %v9154_v40  ;;  %v9248_v40 = vld [vmem:[%s16702_s5 + $0x228] ss:$16 sps:$4 sm:$0xff]  }
 0x4bd   : > { %7466 = vmatpush1.bf16.msra.mxu1 %v9152_v53  ;;  %v9253_v53 = vld [vmem:[%s16702_s5 + $0x244] ss:$16 sps:$4 sm:$0xff]  }
 0x4be   : > { %7467 = vmatprep.subr.bf16.mxu1 %v9160_v30  ;;  %v9256_v30 = vld [vmem:[%s16702_s5 + $0x24c] ss:$16 sps:$4 sm:$0xff]  }
 0x4c1   : > { %7468 = vmatpush1.bf16.msra.mxu1 %v9158_v38  ;;  %v9251_v38 = vld [vmem:[%s16702_s5 + $0x240] ss:$16 sps:$4 sm:$0xff]  }
 0x4c2   : > { %7469 = vmatprep.subr.bf16.mxu1 %v9166_v18  ;;  %v9254_v18 = vld [vmem:[%s16702_s5 + $0x248] ss:$16 sps:$4 sm:$0xff]  }
 0x4c5   : > { %7470 = vmatpush1.bf16.msra.mxu1 %v9164_v34  ;;  %v9259_v34 = vld [vmem:[%s16702_s5 + $0x264] ss:$16 sps:$4 sm:$0xff]  }
 0x4c6   : > { %7471 = vmatprep.subr.bf16.mxu1 %v9172_v4  ;;  %v9262_v4 = vld [vmem:[%s16702_s5 + $0x26c] ss:$16 sps:$4 sm:$0xff]  }
 0x4c9   : > { %7472 = vmatpush1.bf16.msra.mxu1 %v9170_v15  ;;  %v9257_v15 = vld [vmem:[%s16702_s5 + $0x260] ss:$16 sps:$4 sm:$0xff]  }
 0x4ca   : > { %7473 = vmatprep.subr.bf16.mxu1 %v9178_v21  ;;  %v9260_v21 = vld [vmem:[%s16702_s5 + $0x268] ss:$16 sps:$4 sm:$0xff]  }
 0x4cd   : > { %7474 = vmatpush1.bf16.msra.mxu1 %v9176_v45  ;;  %v9265_v45 = vld [vmem:[%s16702_s5 + $0x284] ss:$16 sps:$4 sm:$0xff]  }
 0x4ce   : > { %7475 = vmatprep.subr.bf16.mxu1 %v9184_v60  ;;  %v9268_v60 = vld [vmem:[%s16702_s5 + $0x28c] ss:$16 sps:$4 sm:$0xff]  }
 0x4d1   : > { %7476 = vmatpush1.bf16.msra.mxu1 %v9182_v20  ;;  %v9263_v20 = vld [vmem:[%s16702_s5 + $0x280] ss:$16 sps:$4 sm:$0xff]  }
 0x4d2   : > { %7477 = vmatprep.subr.bf16.mxu1 %v9190_v51  ;;  %v9266_v51 = vld [vmem:[%s16702_s5 + $0x288] ss:$16 sps:$4 sm:$0xff]  }
 0x4d5   : > { %7478 = vmatpush1.bf16.msra.mxu1 %v9188_v26  ;;  %v9271_v26 = vld [vmem:[%s16702_s5 + $0x2a4] ss:$16 sps:$4 sm:$0xff]  }
 0x4d6   : > { %7479 = vmatprep.subr.bf16.mxu1 %v9196_v14  ;;  %v9274_v14 = vld [vmem:[%s16702_s5 + $0x2ac] ss:$16 sps:$4 sm:$0xff]  }
 0x4d9   : > { %7480 = vmatpush1.bf16.msra.mxu1 %v9194_v33  ;;  %v9269_v33 = vld [vmem:[%s16702_s5 + $0x2a0] ss:$16 sps:$4 sm:$0xff]  }
 0x4da   : > { %7481 = vmatprep.subr.bf16.mxu1 %v9202_v54  ;;  %v9272_v54 = vld [vmem:[%s16702_s5 + $0x2a8] ss:$16 sps:$4 sm:$0xff]  }
 0x4dd   : > { %7482 = vmatpush1.bf16.msra.mxu1 %v9200_v16  ;;  %v9277_v16 = vld [vmem:[%s16702_s5 + $0x2c4] ss:$16 sps:$4 sm:$0xff]  }
 0x4de   : > { %7483 = vmatprep.subr.bf16.mxu1 %v9208_v44  ;;  %v9280_v44 = vld [vmem:[%s16702_s5 + $0x2cc] ss:$16 sps:$4 sm:$0xff]  }
 0x4e1   : > { %7484 = vmatpush1.bf16.msra.mxu1 %v9206_v31  ;;  %v9275_v31 = vld [vmem:[%s16702_s5 + $0x2c0] ss:$16 sps:$4 sm:$0xff]  }
 0x4e2   : > { %7485 = vmatprep.subr.bf16.mxu1 %v9214_v37  ;;  %v9278_v37 = vld [vmem:[%s16702_s5 + $0x2c8] ss:$16 sps:$4 sm:$0xff]  }
 0x4e5   : > { %7486 = vmatpush1.bf16.msra.mxu1 %v9212_v56  ;;  %v9283_v56 = vld [vmem:[%s16702_s5 + $0x2e4] ss:$16 sps:$4 sm:$0xff]  }
 0x4e6   : > { %7487 = vmatprep.subr.bf16.mxu1 %v9220_v23  ;;  %v9286_v23 = vld [vmem:[%s16702_s5 + $0x2ec] ss:$16 sps:$4 sm:$0xff]  }
 0x4e9   : > { %7488 = vmatpush1.bf16.msra.mxu1 %v9218_v39  ;;  %v17588_v39 = vlaneseq }
 0x4ea   : > { %7489 = vmatprep.subr.bf16.mxu1 %v9226_v28  ;;  %v9436_v28 = vld [vmem:[%s16702_s5 + $0x60c] ss:$16 sps:$4 sm:$0xff]  }
 0x4eb   : > { %vm15795_vm1 = vcmp.lt.s32.totalorder %v17588_v39, 256  ;;  %v9356_v39 = vld [vmem:[%s16702_s5 + $0x468] ss:$16 sps:$4 sm:$0xff]  }
 0x4ed   : > { %7490 = vmatpush1.bf16.msra.mxu1 %v9224_v22  ;;  %v11107_v22 = vmov 0.0  }
 0x4ee   : > { %7491 = vmatprep.subr.bf16.mxu1 %v9232_v7  ;;  %471 = vst.msk [vmem:[#allocation2 + $0x8] sm:$0x3] %vm15795_vm1, %v11107_v22  ;;  %v9281_v7 = vld [vmem:[%s16702_s5 + $0x2e0] ss:$16 sps:$4 sm:$0xff]  }
 0x4f1   : > { %7492 = vmatpush1.bf16.msra.mxu1 %v9230_v13  ;;  %v9284_v13 = vld [vmem:[%s16702_s5 + $0x2e8] ss:$16 sps:$4 sm:$0xff]  }
 0x4f2   : > { %7493 = vmatprep.subr.bf16.mxu1 %v9238_v27  ;;  %v9289_v27 = vld [vmem:[%s16702_s5 + $0x304] ss:$16 sps:$4 sm:$0xff]  }
 0x4f5   : > { %7494 = vmatpush1.bf16.msra.mxu1 %v9236_v29  ;;  %v9292_v29 = vld [vmem:[%s16702_s5 + $0x30c] ss:$16 sps:$4 sm:$0xff]  }
 0x4f6   : > { %7504 = vmatprep.subr.bf16.mxu1 %v9244_v36  ;;  %v9287_v36 = vld [vmem:[%s16702_s5 + $0x300] ss:$16 sps:$4 sm:$0xff]  }
 0x507   : > { %v5074_v32 = vpop.f32.mrb[192].mxu1 }
 0x508   : > { %v5076_v12 = vpop.f32.mrb[193].mxu1 }
 0x509   : > { %v5115_v5 = vpop.f32.mrb[168].mxu0  ;;  %v5175_v47 = vcombine.low %v5074_v32, %v5076_v12  ;;  %v5078_v10 = vpop.f32.mrb[194].mxu1  ;;  %v9290_v32 = vld [vmem:[%s16702_s5 + $0x308] ss:$16 sps:$4 sm:$0xff]   ;;  %v9298_v12 = vld [vmem:[%s16702_s5 + $0x32c] ss:$16 sps:$4 sm:$0xff]  }
 0x50a   : > { %v5117_v19 = vpop.f32.mrb[169].mxu0  ;;  %v5079_v48 = vpop.f32.mrb[195].mxu1  ;;  %v9301_v10 = vld [vmem:[%s16702_s5 + $0x344] ss:$16 sps:$4 sm:$0xff]  }
 0x50b   : > { %v5176_v3 = vcombine.low %v5115_v5, %v5117_v19  ;;  %v5119_v2 = vpop.f32.mrb[170].mxu0  ;;  %v5197_v43 = vrot.slane %v5175_v47, %v15543_v1  ;;  %v9295_v5 = vld [vmem:[%s16702_s5 + $0x324] ss:$16 sps:$4 sm:$0xff]   ;;  %v9293_v47 = vld [vmem:[%s16702_s5 + $0x320] ss:$16 sps:$4 sm:$0xff]  }
 0x50c   : > { %v5120_v59 = vpop.f32.mrb[171].mxu0  ;;  %v9296_v19 = vld [vmem:[%s16702_s5 + $0x328] ss:$16 sps:$4 sm:$0xff]   ;;  %v9299_v2 = vld [vmem:[%s16702_s5 + $0x340] ss:$16 sps:$4 sm:$0xff]  }
 0x50d   : > { %v5204_v55 = vrot.slane %v5176_v3, %v15543_v1  ;;  %v9304_v3 = vld [vmem:[%s16702_s5 + $0x34c] ss:$16 sps:$4 sm:$0xff]   ;;  %v9302_v48 = vld [vmem:[%s16702_s5 + $0x348] ss:$16 sps:$4 sm:$0xff]  }
 0x50e   : > { %v9310_v59 = vld [vmem:[%s16702_s5 + $0x36c] ss:$16 sps:$4 sm:$0xff]  }
 0x50f   : > { %v5206_v24 = vcombine.low %v5197_v43, %v5204_v55  ;;  %v9307_v43 = vld [vmem:[%s16702_s5 + $0x364] ss:$16 sps:$4 sm:$0xff]   ;;  %v9305_v55 = vld [vmem:[%s16702_s5 + $0x360] ss:$16 sps:$4 sm:$0xff]  }
 0x511   : > { %v5220_v61 = vrot.slane %v5206_v24, %v15543_v1  ;;  %v9308_v24 = vld [vmem:[%s16702_s5 + $0x368] ss:$16 sps:$4 sm:$0xff]  }
 0x513   : > { %v5221_v63 = vcombine.low %v5213_v46, %v5220_v61  ;;  %v9313_v46 = vld [vmem:[%s16702_s5 + $0x384] ss:$16 sps:$4 sm:$0xff]   ;;  %v9316_v61 = vld [vmem:[%s16702_s5 + $0x38c] ss:$16 sps:$4 sm:$0xff]  }
 0x515   : > { %v15702_v9 = vmul.f32 0.00390625, %v5221_v63  ;;  %v9311_v63 = vld [vmem:[%s16702_s5 + $0x380] ss:$16 sps:$4 sm:$0xff]  }
 0x517   : > { %v5263_v57 = vrot.slane %v15702_v9, %v17585_v49  ;;  %v5259_v62 = vrot.slane %v15702_v9, %v17586_v50  ;;  %v5271_v25 = vrot.slane %v15702_v9, %v17587_v58 }
 0x519   : > { %v5307_v6 = vpack.c.bf16 %v5263_v57, %v5263_v57  ;;  %v5306_v35 = vpack.c.bf16 %v5259_v62, %v5259_v62  ;;  %v5309_v41 = vpack.c.bf16 %v5271_v25, %v5271_v25  ;;  %v9314_v57 = vld [vmem:[%s16702_s5 + $0x388] ss:$16 sps:$4 sm:$0xff]   ;;  %v9319_v62 = vld [vmem:[%s16702_s5 + $0x3a4] ss:$16 sps:$4 sm:$0xff]   ;;  %v9322_v25 = vld [vmem:[%s16702_s5 + $0x3ac] ss:$16 sps:$4 sm:$0xff]  }
 0x51b   : > { %7290 = vmatprep.mubr.bf16.mxu0 %v5307_v6  ;;  %7495 = vmatprep.mubr.bf16.mxu1 %v5307_v6  ;;  %v9317_v6 = vld [vmem:[%s16702_s5 + $0x3a0] ss:$16 sps:$4 sm:$0xff]  }
 0x51c   : > { %7291 = vmatmul.mubr.bf16.vlgmr.msra.gmra.mrb[172].mxu0 %v5306_v35  ;;  %7496 = vmatmul.mubr.bf16.vlgmr.msra.gmra.mrb[200].mxu1 %v5306_v35  ;;  %v9328_v35 = vld [vmem:[%s16702_s5 + $0x3cc] ss:$16 sps:$4 sm:$0xff]  }
 0x51d   : > { %7300 = vmatpush1.bf16.msra.mxu0 %v9239_v42  ;;  %7505 = vmatpush1.bf16.msra.mxu1 %v9242_v8  ;;  %v9320_v42 = vld [vmem:[%s16702_s5 + $0x3a8] ss:$16 sps:$4 sm:$0xff]   ;;  %v9325_v8 = vld [vmem:[%s16702_s5 + $0x3c4] ss:$16 sps:$4 sm:$0xff]  }
 0x51e   : > { %7331 = vmatprep.mubr.bf16.mxu0 %v5309_v41  ;;  %7536 = vmatprep.mubr.bf16.mxu1 %v5309_v41  ;;  %v9331_v41 = vld [vmem:[%s16702_s5 + $0x3e4] ss:$16 sps:$4 sm:$0xff]  }
 0x51f   : > { %7301 = vmatprep.subr.bf16.mxu0 %v9247_v17  ;;  %7506 = vmatprep.subr.bf16.mxu1 %v9250_v0  ;;  %v9323_v17 = vld [vmem:[%s16702_s5 + $0x3c0] ss:$16 sps:$4 sm:$0xff]   ;;  %v9326_v0 = vld [vmem:[%s16702_s5 + $0x3c8] ss:$16 sps:$4 sm:$0xff]  }
 0x521   : > { %7302 = vmatpush1.bf16.msra.mxu0 %v9245_v52  ;;  %7507 = vmatpush1.bf16.msra.mxu1 %v9248_v40  ;;  %v9334_v52 = vld [vmem:[%s16702_s5 + $0x3ec] ss:$16 sps:$4 sm:$0xff]   ;;  %v9329_v40 = vld [vmem:[%s16702_s5 + $0x3e0] ss:$16 sps:$4 sm:$0xff]  }
 0x522   : > { %7303 = vmatprep.subr.bf16.mxu0 %v9253_v53  ;;  %7508 = vmatprep.subr.bf16.mxu1 %v9256_v30  ;;  %v9332_v53 = vld [vmem:[%s16702_s5 + $0x3e8] ss:$16 sps:$4 sm:$0xff]  }
 0x523   : > { %v17591_v30 = vld [vmem:[#allocation18_spill] sm:$0xff] }
 0x525   : > { %7304 = vmatpush1.bf16.msra.mxu0 %v9251_v38  ;;  %7509 = vmatpush1.bf16.msra.mxu1 %v9254_v18  ;;  %v5267_v38 = vrot.slane %v15702_v9, %v17591_v30  ;;  %v9337_v18 = vld [vmem:[%s16702_s5 + $0x404] ss:$16 sps:$4 sm:$0xff]  }
 0x526   : > { %7305 = vmatprep.subr.bf16.mxu0 %v9259_v34  ;;  %7510 = vmatprep.subr.bf16.mxu1 %v9262_v4  ;;  %v9340_v34 = vld [vmem:[%s16702_s5 + $0x40c] ss:$16 sps:$4 sm:$0xff]   ;;  %v17592_v4 = vsub.s32 5, %v17584_v11 }
 0x529   : > { %7306 = vmatpush1.bf16.msra.mxu0 %v9257_v15  ;;  %7511 = vmatpush1.bf16.msra.mxu1 %v9260_v21  ;;  %v5279_v15 = vrot.slane %v15702_v9, %v17592_v4  ;;  %v9335_v21 = vld [vmem:[%s16702_s5 + $0x400] ss:$16 sps:$4 sm:$0xff]   ;;  %v9418_v4 = vld [vmem:[%s16702_s5 + $0x5ac] ss:$16 sps:$4 sm:$0xff]  }
 0x52a   : > { %7307 = vmatprep.subr.bf16.mxu0 %v9265_v45  ;;  %7512 = vmatprep.subr.bf16.mxu1 %v9268_v60  ;;  %v5308_v45 = vpack.c.bf16 %v5267_v38, %v5267_v38  ;;  %v9338_v60 = vld [vmem:[%s16702_s5 + $0x408] ss:$16 sps:$4 sm:$0xff]   ;;  %v9407_v38 = vld [vmem:[%s16702_s5 + $0x580] ss:$16 sps:$4 sm:$0xff]  }
 0x52d   : > { %7308 = vmatpush1.bf16.msra.mxu0 %v9263_v20  ;;  %7513 = vmatpush1.bf16.msra.mxu1 %v9266_v51  ;;  %v5311_v20 = vpack.c.bf16 %v5279_v15, %v5279_v15  ;;  %v9343_v51 = vld [vmem:[%s16702_s5 + $0x424] ss:$16 sps:$4 sm:$0xff]  }
 0x52e   : > { %7309 = vmatprep.subr.bf16.mxu0 %v9271_v26  ;;  %7514 = vmatprep.subr.bf16.mxu1 %v9274_v14  ;;  %v9346_v26 = vld [vmem:[%s16702_s5 + $0x42c] ss:$16 sps:$4 sm:$0xff]   ;;  %v9341_v14 = vld [vmem:[%s16702_s5 + $0x420] ss:$16 sps:$4 sm:$0xff]  }
 0x531   : > { %7310 = vmatpush1.bf16.msra.mxu0 %v9269_v33  ;;  %7515 = vmatpush1.bf16.msra.mxu1 %v9272_v54  ;;  %v9344_v33 = vld [vmem:[%s16702_s5 + $0x428] ss:$16 sps:$4 sm:$0xff]   ;;  %v9349_v54 = vld [vmem:[%s16702_s5 + $0x444] ss:$16 sps:$4 sm:$0xff]  }
 0x532   : > { %7311 = vmatprep.subr.bf16.mxu0 %v9277_v16  ;;  %7516 = vmatprep.subr.bf16.mxu1 %v9280_v44  ;;  %v9352_v16 = vld [vmem:[%s16702_s5 + $0x44c] ss:$16 sps:$4 sm:$0xff]   ;;  %v9347_v44 = vld [vmem:[%s16702_s5 + $0x440] ss:$16 sps:$4 sm:$0xff]  }
 0x535   : > { %7312 = vmatpush1.bf16.msra.mxu0 %v9275_v31  ;;  %7517 = vmatpush1.bf16.msra.mxu1 %v9278_v37  ;;  %v9350_v31 = vld [vmem:[%s16702_s5 + $0x448] ss:$16 sps:$4 sm:$0xff]   ;;  %v9355_v37 = vld [vmem:[%s16702_s5 + $0x464] ss:$16 sps:$4 sm:$0xff]  }
 0x536   : > { %7313 = vmatprep.subr.bf16.mxu0 %v9283_v56  ;;  %7518 = vmatprep.subr.bf16.mxu1 %v9286_v23  ;;  %v9358_v56 = vld [vmem:[%s16702_s5 + $0x46c] ss:$16 sps:$4 sm:$0xff]   ;;  %v9353_v23 = vld [vmem:[%s16702_s5 + $0x460] ss:$16 sps:$4 sm:$0xff]  }
 0x539   : > { %7314 = vmatpush1.bf16.msra.mxu0 %v9281_v7  ;;  %7519 = vmatpush1.bf16.msra.mxu1 %v9284_v13  ;;  %v9361_v7 = vld [vmem:[%s16702_s5 + $0x484] ss:$16 sps:$4 sm:$0xff]   ;;  %v9364_v13 = vld [vmem:[%s16702_s5 + $0x48c] ss:$16 sps:$4 sm:$0xff]  }
 0x53a   : > { %7315 = vmatprep.subr.bf16.mxu0 %v9289_v27  ;;  %7520 = vmatprep.subr.bf16.mxu1 %v9292_v29  ;;  %v9359_v27 = vld [vmem:[%s16702_s5 + $0x480] ss:$16 sps:$4 sm:$0xff]   ;;  %v9362_v29 = vld [vmem:[%s16702_s5 + $0x488] ss:$16 sps:$4 sm:$0xff]  }
 0x53d   : > { %7316 = vmatpush1.bf16.msra.mxu0 %v9287_v36  ;;  %7521 = vmatpush1.bf16.msra.mxu1 %v9290_v32  ;;  %v9367_v36 = vld [vmem:[%s16702_s5 + $0x4a4] ss:$16 sps:$4 sm:$0xff]   ;;  %v9370_v32 = vld [vmem:[%s16702_s5 + $0x4ac] ss:$16 sps:$4 sm:$0xff]  }
 0x53e   : > { %7317 = vmatprep.subr.bf16.mxu0 %v9295_v5  ;;  %7522 = vmatprep.subr.bf16.mxu1 %v9298_v12  ;;  %v9365_v5 = vld [vmem:[%s16702_s5 + $0x4a0] ss:$16 sps:$4 sm:$0xff]   ;;  %v9368_v12 = vld [vmem:[%s16702_s5 + $0x4a8] ss:$16 sps:$4 sm:$0xff]  }
 0x541   : > { %7318 = vmatpush1.bf16.msra.mxu0 %v9293_v47  ;;  %7523 = vmatpush1.bf16.msra.mxu1 %v9296_v19  ;;  %v9373_v47 = vld [vmem:[%s16702_s5 + $0x4c4] ss:$16 sps:$4 sm:$0xff]   ;;  %v9376_v19 = vld [vmem:[%s16702_s5 + $0x4cc] ss:$16 sps:$4 sm:$0xff]  }
 0x542   : > { %7319 = vmatprep.subr.bf16.mxu0 %v9301_v10  ;;  %7524 = vmatprep.subr.bf16.mxu1 %v9304_v3  ;;  %v9371_v10 = vld [vmem:[%s16702_s5 + $0x4c0] ss:$16 sps:$4 sm:$0xff]   ;;  %v9374_v3 = vld [vmem:[%s16702_s5 + $0x4c8] ss:$16 sps:$4 sm:$0xff]  }
 0x545   : > { %7320 = vmatpush1.bf16.msra.mxu0 %v9299_v2  ;;  %7525 = vmatpush1.bf16.msra.mxu1 %v9302_v48  ;;  %v9379_v2 = vld [vmem:[%s16702_s5 + $0x4e4] ss:$16 sps:$4 sm:$0xff]   ;;  %v9382_v48 = vld [vmem:[%s16702_s5 + $0x4ec] ss:$16 sps:$4 sm:$0xff]  }
 0x546   : > { %7321 = vmatprep.subr.bf16.mxu0 %v9307_v43  ;;  %7526 = vmatprep.subr.bf16.mxu1 %v9310_v59  ;;  %v9377_v43 = vld [vmem:[%s16702_s5 + $0x4e0] ss:$16 sps:$4 sm:$0xff]   ;;  %v9380_v59 = vld [vmem:[%s16702_s5 + $0x4e8] ss:$16 sps:$4 sm:$0xff]  }
 0x549   : > { %7322 = vmatpush1.bf16.msra.mxu0 %v9305_v55  ;;  %7527 = vmatpush1.bf16.msra.mxu1 %v9308_v24  ;;  %v9385_v55 = vld [vmem:[%s16702_s5 + $0x504] ss:$16 sps:$4 sm:$0xff]   ;;  %v9388_v24 = vld [vmem:[%s16702_s5 + $0x50c] ss:$16 sps:$4 sm:$0xff]  }
 0x54a   : > { %7323 = vmatprep.subr.bf16.mxu0 %v9313_v46  ;;  %7528 = vmatprep.subr.bf16.mxu1 %v9316_v61  ;;  %v9383_v46 = vld [vmem:[%s16702_s5 + $0x500] ss:$16 sps:$4 sm:$0xff]   ;;  %v9386_v61 = vld [vmem:[%s16702_s5 + $0x508] ss:$16 sps:$4 sm:$0xff]  }
 0x54d   : > { %7324 = vmatpush1.bf16.msra.mxu0 %v9311_v63  ;;  %7529 = vmatpush1.bf16.msra.mxu1 %v9314_v57  ;;  %v9391_v63 = vld [vmem:[%s16702_s5 + $0x524] ss:$16 sps:$4 sm:$0xff]   ;;  %v9394_v57 = vld [vmem:[%s16702_s5 + $0x52c] ss:$16 sps:$4 sm:$0xff]  }
 0x54e   : > { %7325 = vmatprep.subr.bf16.mxu0 %v9319_v62  ;;  %7530 = vmatprep.subr.bf16.mxu1 %v9322_v25  ;;  %v9389_v62 = vld [vmem:[%s16702_s5 + $0x520] ss:$16 sps:$4 sm:$0xff]   ;;  %v9392_v25 = vld [vmem:[%s16702_s5 + $0x528] ss:$16 sps:$4 sm:$0xff]  }
 0x551   : > { %7326 = vmatpush1.bf16.msra.mxu0 %v9317_v6  ;;  %7531 = vmatpush1.bf16.msra.mxu1 %v9320_v42  ;;  %v9397_v6 = vld [vmem:[%s16702_s5 + $0x544] ss:$16 sps:$4 sm:$0xff]   ;;  %v9400_v42 = vld [vmem:[%s16702_s5 + $0x54c] ss:$16 sps:$4 sm:$0xff]  }
 0x552   : > { %7327 = vmatprep.subr.bf16.mxu0 %v9325_v8  ;;  %7532 = vmatprep.subr.bf16.mxu1 %v9328_v35  ;;  %v9395_v8 = vld [vmem:[%s16702_s5 + $0x540] ss:$16 sps:$4 sm:$0xff]   ;;  %v9398_v35 = vld [vmem:[%s16702_s5 + $0x548] ss:$16 sps:$4 sm:$0xff]  }
 0x555   : > { %7328 = vmatpush1.bf16.msra.mxu0 %v9323_v17  ;;  %7533 = vmatpush1.bf16.msra.mxu1 %v9326_v0  ;;  %v9403_v17 = vld [vmem:[%s16702_s5 + $0x564] ss:$16 sps:$4 sm:$0xff]   ;;  %v9406_v0 = vld [vmem:[%s16702_s5 + $0x56c] ss:$16 sps:$4 sm:$0xff]  }
 0x556   : > { %7329 = vmatprep.subr.bf16.mxu0 %v9331_v41  ;;  %7534 = vmatprep.subr.bf16.mxu1 %v9334_v52  ;;  %v9401_v41 = vld [vmem:[%s16702_s5 + $0x560] ss:$16 sps:$4 sm:$0xff]   ;;  %v9404_v52 = vld [vmem:[%s16702_s5 + $0x568] ss:$16 sps:$4 sm:$0xff]  }
 0x559   : > { %7330 = vmatpush1.bf16.msra.mxu0 %v9329_v40  ;;  %7535 = vmatpush1.bf16.msra.mxu1 %v9332_v53  ;;  %v9409_v40 = vld [vmem:[%s16702_s5 + $0x584] ss:$16 sps:$4 sm:$0xff]   ;;  %v9412_v53 = vld [vmem:[%s16702_s5 + $0x58c] ss:$16 sps:$4 sm:$0xff]  }
 0x55a   : > { %7340 = vmatprep.subr.bf16.mxu0 %v9337_v18  ;;  %7545 = vmatprep.subr.bf16.mxu1 %v9340_v34  ;;  %v9410_v18 = vld [vmem:[%s16702_s5 + $0x588] ss:$16 sps:$4 sm:$0xff]   ;;  %v9415_v34 = vld [vmem:[%s16702_s5 + $0x5a4] ss:$16 sps:$4 sm:$0xff]  }
 0x55c   : > { %7332 = vmatmul.mubr.bf16.vlgmr.msra.gmra.mrb[172].mxu0 %v5308_v45  ;;  %7537 = vmatmul.mubr.bf16.vlgmr.msra.gmra.mrb[200].mxu1 %v5308_v45  ;;  %v9413_v45 = vld [vmem:[%s16702_s5 + $0x5a0] ss:$16 sps:$4 sm:$0xff]  }
 0x55d   : > { %7341 = vmatpush1.bf16.msra.mxu0 %v9335_v21  ;;  %7372 = vmatprep.mubr.bf16.mxu0 %v5311_v20 }
 0x55e   : > { %7546 = vmatpush1.bf16.msra.mxu1 %v9338_v60  ;;  %7577 = vmatprep.mubr.bf16.mxu1 %v5311_v20 }
 0x55f   : > { %7342 = vmatprep.subr.bf16.mxu0 %v9343_v51  ;;  %7547 = vmatprep.subr.bf16.mxu1 %v9346_v26  ;;  %v9416_v51 = vld [vmem:[%s16702_s5 + $0x5a8] ss:$16 sps:$4 sm:$0xff]   ;;  %v9421_v26 = vld [vmem:[%s16702_s5 + $0x5c4] ss:$16 sps:$4 sm:$0xff]  }
 0x561   : > { %7343 = vmatpush1.bf16.msra.mxu0 %v9341_v14 }
 0x562   : > { %7548 = vmatpush1.bf16.msra.mxu1 %v9344_v33  ;;  %7344 = vmatprep.subr.bf16.mxu0 %v9349_v54  ;;  %v9424_v33 = vld [vmem:[%s16702_s5 + $0x5cc] ss:$16 sps:$4 sm:$0xff]  }
 0x563   : > { %7549 = vmatprep.subr.bf16.mxu1 %v9352_v16  ;;  %v4797_v16 = vld [vmem:[#allocation2 + $0x8] sm:$0x3] }
 0x565   : > { %7345 = vmatpush1.bf16.msra.mxu0 %v9347_v44  ;;  %v9419_v44 = vld [vmem:[%s16702_s5 + $0x5c0] ss:$16 sps:$4 sm:$0xff]  }
 0x566   : > { %7550 = vmatpush1.bf16.msra.mxu1 %v9350_v31  ;;  %7346 = vmatprep.subr.bf16.mxu0 %v9355_v37  ;;  %v9422_v37 = vld [vmem:[%s16702_s5 + $0x5c8] ss:$16 sps:$4 sm:$0xff]  }
 0x567   : > { %7551 = vmatprep.subr.bf16.mxu1 %v9358_v56  ;;  %v9427_v56 = vld [vmem:[%s16702_s5 + $0x5e4] ss:$16 sps:$4 sm:$0xff]  }
 0x569   : > { %7347 = vmatpush1.bf16.msra.mxu0 %v9353_v23  ;;  %v9430_v23 = vld [vmem:[%s16702_s5 + $0x5ec] ss:$16 sps:$4 sm:$0xff]  }
 0x56a   : > { %7552 = vmatpush1.bf16.msra.mxu1 %v9356_v39  ;;  %7348 = vmatprep.subr.bf16.mxu0 %v9361_v7  ;;  %v9428_v7 = vld [vmem:[%s16702_s5 + $0x5e8] ss:$16 sps:$4 sm:$0xff]  }
 0x56b   : > { %7553 = vmatprep.subr.bf16.mxu1 %v9364_v13  ;;  %v17593_v13 = vsub.s32 4, %v17584_v11 }
 0x56d   : > { %7349 = vmatpush1.bf16.msra.mxu0 %v9359_v27  ;;  %v5275_v27 = vrot.slane %v15702_v9, %v17593_v13  ;;  %v9506_v13 = vld [vmem:[%s16702_s5 + $0x788] ss:$16 sps:$4 sm:$0xff]  }
 0x56e   : > { %7554 = vmatpush1.bf16.msra.mxu1 %v9362_v29  ;;  %7350 = vmatprep.subr.bf16.mxu0 %v9367_v36  ;;  %v9433_v29 = vld [vmem:[%s16702_s5 + $0x604] ss:$16 sps:$4 sm:$0xff]   ;;  %v17594_v36 = vsub.s32 7, %v17584_v11 }
 0x56f   : > { %7555 = vmatprep.subr.bf16.mxu1 %v9370_v32 }
 0x570   : > { %v5287_v32 = vrot.slane %v15702_v9, %v17594_v36  ;;  %v9512_v36 = vld [vmem:[%s16702_s5 + $0x7a8] ss:$16 sps:$4 sm:$0xff]  }
 0x571   : > { %7351 = vmatpush1.bf16.msra.mxu0 %v9365_v5  ;;  %v9431_v5 = vld [vmem:[%s16702_s5 + $0x600] ss:$16 sps:$4 sm:$0xff]  }
 0x572   : > { %7556 = vmatpush1.bf16.msra.mxu1 %v9368_v12  ;;  %7352 = vmatprep.subr.bf16.mxu0 %v9373_v47  ;;  %v5310_v12 = vpack.c.bf16 %v5275_v27, %v5275_v27  ;;  %v9434_v47 = vld [vmem:[%s16702_s5 + $0x608] ss:$16 sps:$4 sm:$0xff]   ;;  %v9511_v27 = vld [vmem:[%s16702_s5 + $0x7a4] ss:$16 sps:$4 sm:$0xff]  }
 0x573   : > { %7557 = vmatprep.subr.bf16.mxu1 %v9376_v19  ;;  %v9439_v19 = vld [vmem:[%s16702_s5 + $0x624] ss:$16 sps:$4 sm:$0xff]  }
 0x575   : > { %7353 = vmatpush1.bf16.msra.mxu0 %v9371_v10  ;;  %v5313_v10 = vpack.c.bf16 %v5287_v32, %v5287_v32  ;;  %v9517_v32 = vld [vmem:[%s16702_s5 + $0x7c4] ss:$16 sps:$4 sm:$0xff]  }
 0x576   : > { %7558 = vmatpush1.bf16.msra.mxu1 %v9374_v3  ;;  %7354 = vmatprep.subr.bf16.mxu0 %v9379_v2  ;;  %v9442_v3 = vld [vmem:[%s16702_s5 + $0x62c] ss:$16 sps:$4 sm:$0xff]   ;;  %v9437_v2 = vld [vmem:[%s16702_s5 + $0x620] ss:$16 sps:$4 sm:$0xff]  }
 0x577   : > { %7559 = vmatprep.subr.bf16.mxu1 %v9382_v48  ;;  %v9440_v48 = vld [vmem:[%s16702_s5 + $0x628] ss:$16 sps:$4 sm:$0xff]  }
 0x579   : > { %7355 = vmatpush1.bf16.msra.mxu0 %v9377_v43  ;;  %v9445_v43 = vld [vmem:[%s16702_s5 + $0x644] ss:$16 sps:$4 sm:$0xff]  }
 0x57a   : > { %7560 = vmatpush1.bf16.msra.mxu1 %v9380_v59  ;;  %7356 = vmatprep.subr.bf16.mxu0 %v9385_v55  ;;  %v9448_v59 = vld [vmem:[%s16702_s5 + $0x64c] ss:$16 sps:$4 sm:$0xff]   ;;  %v9443_v55 = vld [vmem:[%s16702_s5 + $0x640] ss:$16 sps:$4 sm:$0xff]  }
 0x57b   : > { %7561 = vmatprep.subr.bf16.mxu1 %v9388_v24  ;;  %v9446_v24 = vld [vmem:[%s16702_s5 + $0x648] ss:$16 sps:$4 sm:$0xff]  }
 0x57d   : > { %7357 = vmatpush1.bf16.msra.mxu0 %v9383_v46  ;;  %v9451_v46 = vld [vmem:[%s16702_s5 + $0x664] ss:$16 sps:$4 sm:$0xff]  }
 0x57e   : > { %7562 = vmatpush1.bf16.msra.mxu1 %v9386_v61  ;;  %7358 = vmatprep.subr.bf16.mxu0 %v9391_v63  ;;  %v9454_v61 = vld [vmem:[%s16702_s5 + $0x66c] ss:$16 sps:$4 sm:$0xff]   ;;  %v9449_v63 = vld [vmem:[%s16702_s5 + $0x660] ss:$16 sps:$4 sm:$0xff]  }
 0x57f   : > { %7563 = vmatprep.subr.bf16.mxu1 %v9394_v57  ;;  %v9452_v57 = vld [vmem:[%s16702_s5 + $0x668] ss:$16 sps:$4 sm:$0xff]  }
 0x581   : > { %7359 = vmatpush1.bf16.msra.mxu0 %v9389_v62  ;;  %v9457_v62 = vld [vmem:[%s16702_s5 + $0x684] ss:$16 sps:$4 sm:$0xff]  }
 0x582   : > { %7564 = vmatpush1.bf16.msra.mxu1 %v9392_v25  ;;  %7360 = vmatprep.subr.bf16.mxu0 %v9397_v6  ;;  %v9460_v25 = vld [vmem:[%s16702_s5 + $0x68c] ss:$16 sps:$4 sm:$0xff]   ;;  %v9455_v6 = vld [vmem:[%s16702_s5 + $0x680] ss:$16 sps:$4 sm:$0xff]  }
 0x583   : > { %7565 = vmatprep.subr.bf16.mxu1 %v9400_v42  ;;  %v9458_v42 = vld [vmem:[%s16702_s5 + $0x688] ss:$16 sps:$4 sm:$0xff]  }
 0x585   : > { %7361 = vmatpush1.bf16.msra.mxu0 %v9395_v8  ;;  %v9463_v8 = vld [vmem:[%s16702_s5 + $0x6a4] ss:$16 sps:$4 sm:$0xff]  }
 0x586   : > { %7566 = vmatpush1.bf16.msra.mxu1 %v9398_v35  ;;  %7362 = vmatprep.subr.bf16.mxu0 %v9403_v17  ;;  %v9466_v35 = vld [vmem:[%s16702_s5 + $0x6ac] ss:$16 sps:$4 sm:$0xff]   ;;  %v9461_v17 = vld [vmem:[%s16702_s5 + $0x6a0] ss:$16 sps:$4 sm:$0xff]  }
 0x587   : > { %7567 = vmatprep.subr.bf16.mxu1 %v9406_v0  ;;  %v9464_v0 = vld [vmem:[%s16702_s5 + $0x6a8] ss:$16 sps:$4 sm:$0xff]  }
 0x589   : > { %7363 = vmatpush1.bf16.msra.mxu0 %v9401_v41  ;;  %v9469_v41 = vld [vmem:[%s16702_s5 + $0x6c4] ss:$16 sps:$4 sm:$0xff]  }
 0x58a   : > { %7568 = vmatpush1.bf16.msra.mxu1 %v9404_v52  ;;  %7364 = vmatprep.subr.bf16.mxu0 %v9409_v40  ;;  %v9472_v52 = vld [vmem:[%s16702_s5 + $0x6cc] ss:$16 sps:$4 sm:$0xff]   ;;  %v9467_v40 = vld [vmem:[%s16702_s5 + $0x6c0] ss:$16 sps:$4 sm:$0xff]  }
 0x58b   : > { %7569 = vmatprep.subr.bf16.mxu1 %v9412_v53  ;;  %v5156_v15 = vpop.f32.mrb[196].mxu1  ;;  %v9470_v53 = vld [vmem:[%s16702_s5 + $0x6c8] ss:$16 sps:$4 sm:$0xff]  }
 0x58c   : > { %v5158_v21 = vpop.f32.mrb[197].mxu1 }
 0x58d   : > { %7365 = vmatpush1.bf16.msra.mxu0 %v9407_v38  ;;  %v5222_v60 = vcombine.low %v5156_v15, %v5158_v21  ;;  %v5160_v20 = vpop.f32.mrb[198].mxu1  ;;  %v9475_v38 = vld [vmem:[%s16702_s5 + $0x6e4] ss:$16 sps:$4 sm:$0xff]   ;;  %v9484_v21 = vld [vmem:[%s16702_s5 + $0x70c] ss:$16 sps:$4 sm:$0xff]  }
 0x58e   : > { %7570 = vmatpush1.bf16.msra.mxu1 %v9410_v18  ;;  %7366 = vmatprep.subr.bf16.mxu0 %v9415_v34  ;;  %v5161_v14 = vpop.f32.mrb[199].mxu1  ;;  %v9478_v18 = vld [vmem:[%s16702_s5 + $0x6ec] ss:$16 sps:$4 sm:$0xff]   ;;  %v9473_v34 = vld [vmem:[%s16702_s5 + $0x6e0] ss:$16 sps:$4 sm:$0xff]  }
 0x58f   : > { %7571 = vmatprep.subr.bf16.mxu1 %v9418_v4  ;;  %v5229_v54 = vrot.slane %v5222_v60, %v15543_v1  ;;  %v9476_v4 = vld [vmem:[%s16702_s5 + $0x6e8] ss:$16 sps:$4 sm:$0xff]   ;;  %v9481_v15 = vld [vmem:[%s16702_s5 + $0x704] ss:$16 sps:$4 sm:$0xff]  }
 0x590   : > { %v9482_v60 = vld [vmem:[%s16702_s5 + $0x708] ss:$16 sps:$4 sm:$0xff]   ;;  %v9487_v20 = vld [vmem:[%s16702_s5 + $0x724] ss:$16 sps:$4 sm:$0xff]  }
 0x591   : > { %7367 = vmatpush1.bf16.msra.mxu0 %v9413_v45  ;;  %v5236_v31 = vrot.slane %v5229_v54, %v15543_v1  ;;  %v9425_v1 = vld [vmem:[%s16702_s5 + $0x5e0] ss:$16 sps:$4 sm:$0xff]   ;;  %v9488_v14 = vld [vmem:[%s16702_s5 + $0x728] ss:$16 sps:$4 sm:$0xff]   ;;  %v9496_v54 = vld [vmem:[%s16702_s5 + $0x74c] ss:$16 sps:$4 sm:$0xff]  }
 0x592   : > { %7572 = vmatpush1.bf16.msra.mxu1 %v9416_v51  ;;  %7368 = vmatprep.subr.bf16.mxu0 %v9421_v26  ;;  %v9479_v45 = vld [vmem:[%s16702_s5 + $0x700] ss:$16 sps:$4 sm:$0xff]   ;;  %v9490_v51 = vld [vmem:[%s16702_s5 + $0x72c] ss:$16 sps:$4 sm:$0xff]  }
 0x593   : > { %7573 = vmatprep.subr.bf16.mxu1 %v9424_v33  ;;  %v5240_v39 = vadd.f32 %v5236_v31, %v4797_v16  ;;  %v9485_v26 = vld [vmem:[%s16702_s5 + $0x720] ss:$16 sps:$4 sm:$0xff]   ;;  %v9493_v33 = vld [vmem:[%s16702_s5 + $0x744] ss:$16 sps:$4 sm:$0xff]  }
 0x594   : > { %v9491_v16 = vld [vmem:[%s16702_s5 + $0x740] ss:$16 sps:$4 sm:$0xff]   ;;  %v9499_v31 = vld [vmem:[%s16702_s5 + $0x764] ss:$16 sps:$4 sm:$0xff]  }
 0x595   : > { %7369 = vmatpush1.bf16.msra.mxu0 %v9419_v44  ;;  %5246 = vst.msk [vmem:[#allocation2 + $0x8] sm:$0x3] %vm15795_vm1, %v5240_v39  ;;  %v9494_v44 = vld [vmem:[%s16702_s5 + $0x748] ss:$16 sps:$4 sm:$0xff]   ;;  %v9505_v39 = vld [vmem:[%s16702_s5 + $0x784] ss:$16 sps:$4 sm:$0xff]  }
 0x596   : > { %7574 = vmatpush1.bf16.msra.mxu1 %v9422_v37  ;;  %7370 = vmatprep.subr.bf16.mxu0 %v9427_v56  ;;  %v9502_v37 = vld [vmem:[%s16702_s5 + $0x76c] ss:$16 sps:$4 sm:$0xff]   ;;  %v9497_v56 = vld [vmem:[%s16702_s5 + $0x760] ss:$16 sps:$4 sm:$0xff]  }
 0x597   : > { %7575 = vmatprep.subr.bf16.mxu1 %v9430_v23  ;;  %v9500_v23 = vld [vmem:[%s16702_s5 + $0x768] ss:$16 sps:$4 sm:$0xff]  }
 0x599   : > { %7371 = vmatpush1.bf16.msra.mxu0 %v9425_v1  ;;  %v9508_v1 = vld [vmem:[%s16702_s5 + $0x78c] ss:$16 sps:$4 sm:$0xff]  }
 0x59a   : > { %7576 = vmatpush1.bf16.msra.mxu1 %v9428_v7  ;;  %7381 = vmatprep.subr.bf16.mxu0 %v9433_v29  ;;  %v9503_v7 = vld [vmem:[%s16702_s5 + $0x780] ss:$16 sps:$4 sm:$0xff]   ;;  %v9514_v29 = vld [vmem:[%s16702_s5 + $0x7ac] ss:$16 sps:$4 sm:$0xff]  }
 0x59b   : > { %7586 = vmatprep.subr.bf16.mxu1 %v9436_v28  ;;  %v9509_v28 = vld [vmem:[%s16702_s5 + $0x7a0] ss:$16 sps:$4 sm:$0xff]  }
 0x59c   : > { %7373 = vmatmul.mubr.bf16.vlgmr.msra.gmra.mrb[172].mxu0 %v5310_v12 }
 0x59d   : > { %7578 = vmatmul.mubr.bf16.vlgmr.msra.gmra.mrb[200].mxu1 %v5310_v12  ;;  %7382 = vmatpush1.bf16.msra.mxu0 %v9431_v5  ;;  %v9520_v5 = vld [vmem:[%s16702_s5 + $0x7cc] ss:$16 sps:$4 sm:$0xff]   ;;  %v9515_v12 = vld [vmem:[%s16702_s5 + $0x7c0] ss:$16 sps:$4 sm:$0xff]  }
 0x59e   : > { %7413 = vmatprep.mubr.bf16.mxu0 %v5313_v10  ;;  %7587 = vmatpush1.bf16.msra.mxu1 %v9434_v47  ;;  %v5251_v47 = vld [vmem:[#allocation2 + $0x8] sm:$0x3] }
 0x59f   : > { %7618 = vmatprep.mubr.bf16.mxu1 %v5313_v10  ;;  %7383 = vmatprep.subr.bf16.mxu0 %v9439_v19  ;;  %v9518_v19 = vld [vmem:[%s16702_s5 + $0x7c8] ss:$16 sps:$4 sm:$0xff]   ;;  %v9523_v10 = vld [vmem:[%s16702_s5 + $0x7e4] ss:$16 sps:$4 sm:$0xff]  }
 0x5a0   : > { %7588 = vmatprep.subr.bf16.mxu1 %v9442_v3  ;;  %v9526_v3 = vld [vmem:[%s16702_s5 + $0x7ec] ss:$16 sps:$4 sm:$0xff]  }
 0x5a1   : > { %7384 = vmatpush1.bf16.msra.mxu0 %v9437_v2  ;;  %v16297_v2 = vmul.f32 0.00390625, %v5251_v47  ;;  %v9596_v47 = vld [vmem:[%s16702_s5 + $0x968] ss:$16 sps:$4 sm:$0xff]  }
 0x5a2   : > { %7589 = vmatpush1.bf16.msra.mxu1 %v9440_v48  ;;  %7385 = vmatprep.subr.bf16.mxu0 %v9445_v43  ;;  %v9521_v48 = vld [vmem:[%s16702_s5 + $0x7e0] ss:$16 sps:$4 sm:$0xff]   ;;  %v9524_v43 = vld [vmem:[%s16702_s5 + $0x7e8] ss:$16 sps:$4 sm:$0xff]  }
 0x5a3   : > { %7590 = vmatprep.subr.bf16.mxu1 %v9448_v59  ;;  %v17595_v59 = vsub.s32 6, %v17584_v11 }
 0x5a5   : > { %7386 = vmatpush1.bf16.msra.mxu0 %v9443_v55  ;;  %v5283_v55 = vrot.slane %v15702_v9, %v17595_v59  ;;  %v9530_v9 = vld [vmem:[%s16702_s5 + $0x808] ss:$16 sps:$4 sm:$0xff]   ;;  %v9610_v59 = vld [vmem:[%s16702_s5 + $0x9ac] ss:$16 sps:$4 sm:$0xff]  }
 0x5a6   : > { %7591 = vmatpush1.bf16.msra.mxu1 %v9446_v24  ;;  %7387 = vmatprep.subr.bf16.mxu0 %v9451_v46  ;;  %v9529_v24 = vld [vmem:[%s16702_s5 + $0x804] ss:$16 sps:$4 sm:$0xff]   ;;  %v9532_v46 = vld [vmem:[%s16702_s5 + $0x80c] ss:$16 sps:$4 sm:$0xff]  }
 0x5a7   : > { %7592 = vmatprep.subr.bf16.mxu1 %v9454_v61  ;;  %v5295_v61 = vrot.slane %v16297_v2, %v17585_v49  ;;  %v5312_v11 = vpack.c.bf16 %v5283_v55, %v5283_v55  ;;  %v9605_v55 = vld [vmem:[%s16702_s5 + $0x9a0] ss:$16 sps:$4 sm:$0xff]  }
 0x5a9   : > { %7388 = vmatpush1.bf16.msra.mxu0 %v9449_v63  ;;  %v9527_v63 = vld [vmem:[%s16702_s5 + $0x800] ss:$16 sps:$4 sm:$0xff]  }
 0x5aa   : > { %7593 = vmatpush1.bf16.msra.mxu1 %v9452_v57  ;;  %7389 = vmatprep.subr.bf16.mxu0 %v9457_v62  ;;  %v9535_v57 = vld [vmem:[%s16702_s5 + $0x824] ss:$16 sps:$4 sm:$0xff]   ;;  %v5315_v62 = vpack.c.bf16 %v5295_v61, %v5295_v61  ;;  %v9616_v61 = vld [vmem:[%s16702_s5 + $0x9cc] ss:$16 sps:$4 sm:$0xff]  }
 0x5ab   : > { %7594 = vmatprep.subr.bf16.mxu1 %v9460_v25  ;;  %v9538_v25 = vld [vmem:[%s16702_s5 + $0x82c] ss:$16 sps:$4 sm:$0xff]  }
 0x5ad   : > { %7390 = vmatpush1.bf16.msra.mxu0 %v9455_v6  ;;  %v9533_v6 = vld [vmem:[%s16702_s5 + $0x820] ss:$16 sps:$4 sm:$0xff]  }
 0x5ae   : > { %7595 = vmatpush1.bf16.msra.mxu1 %v9458_v42  ;;  %7391 = vmatprep.subr.bf16.mxu0 %v9463_v8  ;;  %v9536_v42 = vld [vmem:[%s16702_s5 + $0x828] ss:$16 sps:$4 sm:$0xff]   ;;  %v9541_v8 = vld [vmem:[%s16702_s5 + $0x844] ss:$16 sps:$4 sm:$0xff]  }
 0x5af   : > { %7596 = vmatprep.subr.bf16.mxu1 %v9466_v35  ;;  %v9544_v35 = vld [vmem:[%s16702_s5 + $0x84c] ss:$16 sps:$4 sm:$0xff]  }
 0x5b1   : > { %7392 = vmatpush1.bf16.msra.mxu0 %v9461_v17  ;;  %v9539_v17 = vld [vmem:[%s16702_s5 + $0x840] ss:$16 sps:$4 sm:$0xff]  }
 0x5b2   : > { %7597 = vmatpush1.bf16.msra.mxu1 %v9464_v0  ;;  %7393 = vmatprep.subr.bf16.mxu0 %v9469_v41  ;;  %v9542_v0 = vld [vmem:[%s16702_s5 + $0x848] ss:$16 sps:$4 sm:$0xff]   ;;  %v9547_v41 = vld [vmem:[%s16702_s5 + $0x864] ss:$16 sps:$4 sm:$0xff]  }
 0x5b3   : > { %7598 = vmatprep.subr.bf16.mxu1 %v9472_v52  ;;  %v9550_v52 = vld [vmem:[%s16702_s5 + $0x86c] ss:$16 sps:$4 sm:$0xff]  }
 0x5b5   : > { %7394 = vmatpush1.bf16.msra.mxu0 %v9467_v40  ;;  %v9545_v40 = vld [vmem:[%s16702_s5 + $0x860] ss:$16 sps:$4 sm:$0xff]  }
 0x5b6   : > { %7599 = vmatpush1.bf16.msra.mxu1 %v9470_v53  ;;  %7395 = vmatprep.subr.bf16.mxu0 %v9475_v38  ;;  %v9548_v53 = vld [vmem:[%s16702_s5 + $0x868] ss:$16 sps:$4 sm:$0xff]   ;;  %v9553_v38 = vld [vmem:[%s16702_s5 + $0x884] ss:$16 sps:$4 sm:$0xff]  }
 0x5b7   : > { %7600 = vmatprep.subr.bf16.mxu1 %v9478_v18  ;;  %v9556_v18 = vld [vmem:[%s16702_s5 + $0x88c] ss:$16 sps:$4 sm:$0xff]  }
 0x5b9   : > { %7396 = vmatpush1.bf16.msra.mxu0 %v9473_v34  ;;  %v9551_v34 = vld [vmem:[%s16702_s5 + $0x880] ss:$16 sps:$4 sm:$0xff]  }
 0x5ba   : > { %7601 = vmatpush1.bf16.msra.mxu1 %v9476_v4  ;;  %7397 = vmatprep.subr.bf16.mxu0 %v9481_v15  ;;  %v9554_v4 = vld [vmem:[%s16702_s5 + $0x888] ss:$16 sps:$4 sm:$0xff]   ;;  %v9559_v15 = vld [vmem:[%s16702_s5 + $0x8a4] ss:$16 sps:$4 sm:$0xff]  }
 0x5bb   : > { %7602 = vmatprep.subr.bf16.mxu1 %v9484_v21  ;;  %v9562_v21 = vld [vmem:[%s16702_s5 + $0x8ac] ss:$16 sps:$4 sm:$0xff]  }
 0x5bd   : > { %7398 = vmatpush1.bf16.msra.mxu0 %v9479_v45  ;;  %v9557_v45 = vld [vmem:[%s16702_s5 + $0x8a0] ss:$16 sps:$4 sm:$0xff]  }
 0x5be   : > { %7603 = vmatpush1.bf16.msra.mxu1 %v9482_v60  ;;  %7399 = vmatprep.subr.bf16.mxu0 %v9487_v20  ;;  %v9560_v60 = vld [vmem:[%s16702_s5 + $0x8a8] ss:$16 sps:$4 sm:$0xff]   ;;  %v9565_v20 = vld [vmem:[%s16702_s5 + $0x8c4] ss:$16 sps:$4 sm:$0xff]  }
 0x5bf   : > { %7604 = vmatprep.subr.bf16.mxu1 %v9490_v51  ;;  %v9568_v51 = vld [vmem:[%s16702_s5 + $0x8cc] ss:$16 sps:$4 sm:$0xff]  }
 0x5c1   : > { %7400 = vmatpush1.bf16.msra.mxu0 %v9485_v26  ;;  %v9563_v26 = vld [vmem:[%s16702_s5 + $0x8c0] ss:$16 sps:$4 sm:$0xff]  }
 0x5c2   : > { %7605 = vmatpush1.bf16.msra.mxu1 %v9488_v14  ;;  %7401 = vmatprep.subr.bf16.mxu0 %v9493_v33  ;;  %v9566_v14 = vld [vmem:[%s16702_s5 + $0x8c8] ss:$16 sps:$4 sm:$0xff]   ;;  %v9571_v33 = vld [vmem:[%s16702_s5 + $0x8e4] ss:$16 sps:$4 sm:$0xff]  }
 0x5c3   : > { %7606 = vmatprep.subr.bf16.mxu1 %v9496_v54  ;;  %v9574_v54 = vld [vmem:[%s16702_s5 + $0x8ec] ss:$16 sps:$4 sm:$0xff]  }
 0x5c5   : > { %7402 = vmatpush1.bf16.msra.mxu0 %v9491_v16  ;;  %v9569_v16 = vld [vmem:[%s16702_s5 + $0x8e0] ss:$16 sps:$4 sm:$0xff]  }
 0x5c6   : > { %7607 = vmatpush1.bf16.msra.mxu1 %v9494_v44  ;;  %7403 = vmatprep.subr.bf16.mxu0 %v9499_v31  ;;  %v9572_v44 = vld [vmem:[%s16702_s5 + $0x8e8] ss:$16 sps:$4 sm:$0xff]   ;;  %v9577_v31 = vld [vmem:[%s16702_s5 + $0x904] ss:$16 sps:$4 sm:$0xff]  }
 0x5c7   : > { %7608 = vmatprep.subr.bf16.mxu1 %v9502_v37  ;;  %v9580_v37 = vld [vmem:[%s16702_s5 + $0x90c] ss:$16 sps:$4 sm:$0xff]  }
 0x5c9   : > { %7404 = vmatpush1.bf16.msra.mxu0 %v9497_v56  ;;  %v9575_v56 = vld [vmem:[%s16702_s5 + $0x900] ss:$16 sps:$4 sm:$0xff]  }
 0x5ca   : > { %7609 = vmatpush1.bf16.msra.mxu1 %v9500_v23  ;;  %7405 = vmatprep.subr.bf16.mxu0 %v9505_v39  ;;  %v9578_v23 = vld [vmem:[%s16702_s5 + $0x908] ss:$16 sps:$4 sm:$0xff]   ;;  %v9583_v39 = vld [vmem:[%s16702_s5 + $0x924] ss:$16 sps:$4 sm:$0xff]  }
 0x5cb   : > { %7610 = vmatprep.subr.bf16.mxu1 %v9508_v1  ;;  %v9586_v1 = vld [vmem:[%s16702_s5 + $0x92c] ss:$16 sps:$4 sm:$0xff]  }
 0x5cd   : > { %7406 = vmatpush1.bf16.msra.mxu0 %v9503_v7  ;;  %v9581_v7 = vld [vmem:[%s16702_s5 + $0x920] ss:$16 sps:$4 sm:$0xff]  }
 0x5ce   : > { %7611 = vmatpush1.bf16.msra.mxu1 %v9506_v13  ;;  %7407 = vmatprep.subr.bf16.mxu0 %v9511_v27  ;;  %v9584_v13 = vld [vmem:[%s16702_s5 + $0x928] ss:$16 sps:$4 sm:$0xff]   ;;  %v9589_v27 = vld [vmem:[%s16702_s5 + $0x944] ss:$16 sps:$4 sm:$0xff]  }
 0x5cf   : > { %7612 = vmatprep.subr.bf16.mxu1 %v9514_v29  ;;  %v9592_v29 = vld [vmem:[%s16702_s5 + $0x94c] ss:$16 sps:$4 sm:$0xff]  }
 0x5d1   : > { %7408 = vmatpush1.bf16.msra.mxu0 %v9509_v28  ;;  %v9587_v28 = vld [vmem:[%s16702_s5 + $0x940] ss:$16 sps:$4 sm:$0xff]  }
 0x5d2   : > { %7613 = vmatpush1.bf16.msra.mxu1 %v9512_v36  ;;  %7409 = vmatprep.subr.bf16.mxu0 %v9517_v32  ;;  %v9590_v36 = vld [vmem:[%s16702_s5 + $0x948] ss:$16 sps:$4 sm:$0xff]   ;;  %v9595_v32 = vld [vmem:[%s16702_s5 + $0x964] ss:$16 sps:$4 sm:$0xff]  }
 0x5d3   : > { %7614 = vmatprep.subr.bf16.mxu1 %v9520_v5  ;;  %v9598_v5 = vld [vmem:[%s16702_s5 + $0x96c] ss:$16 sps:$4 sm:$0xff]  }
 0x5d5   : > { %7410 = vmatpush1.bf16.msra.mxu0 %v9515_v12  ;;  %v9593_v12 = vld [vmem:[%s16702_s5 + $0x960] ss:$16 sps:$4 sm:$0xff]  }
 0x5d6   : > { %7615 = vmatpush1.bf16.msra.mxu1 %v9518_v19  ;;  %7411 = vmatprep.subr.bf16.mxu0 %v9523_v10  ;;  %v9601_v19 = vld [vmem:[%s16702_s5 + $0x984] ss:$16 sps:$4 sm:$0xff]   ;;  %v9604_v10 = vld [vmem:[%s16702_s5 + $0x98c] ss:$16 sps:$4 sm:$0xff]  }
 0x5d7   : > { %7616 = vmatprep.subr.bf16.mxu1 %v9526_v3  ;;  %v9599_v3 = vld [vmem:[%s16702_s5 + $0x980] ss:$16 sps:$4 sm:$0xff]  }
 0x5d9   : > { %7412 = vmatpush1.bf16.msra.mxu0 %v9521_v48  ;;  %v9602_v48 = vld [vmem:[%s16702_s5 + $0x988] ss:$16 sps:$4 sm:$0xff]  }
 0x5da   : > { %7617 = vmatpush1.bf16.msra.mxu1 %v9524_v43  ;;  %7422 = vmatprep.subr.bf16.mxu0 %v9529_v24  ;;  %v9607_v43 = vld [vmem:[%s16702_s5 + $0x9a4] ss:$16 sps:$4 sm:$0xff]   ;;  %v9608_v24 = vld [vmem:[%s16702_s5 + $0x9a8] ss:$16 sps:$4 sm:$0xff]  }
 0x5db   : > { %7627 = vmatprep.subr.bf16.mxu1 %v9532_v46  ;;  %v9613_v46 = vld [vmem:[%s16702_s5 + $0x9c4] ss:$16 sps:$4 sm:$0xff]  }
 0x5dc   : > { %7414 = vmatmul.mubr.bf16.vlgmr.msra.gmra.mrb[172].mxu0 %v5312_v11 }
 0x5dd   : > { %7619 = vmatmul.mubr.bf16.vlgmr.msra.gmra.mrb[200].mxu1 %v5312_v11  ;;  %7423 = vmatpush1.bf16.msra.mxu0 %v9527_v63  ;;  %v9611_v63 = vld [vmem:[%s16702_s5 + $0x9c0] ss:$16 sps:$4 sm:$0xff]   ;;  %v9614_v11 = vld [vmem:[%s16702_s5 + $0x9c8] ss:$16 sps:$4 sm:$0xff]  }
 0x5de   : > { %7454 = vmatprep.mubr.bf16.mxu0 %v5315_v62  ;;  %7628 = vmatpush1.bf16.msra.mxu1 %v9530_v9  ;;  %v9619_v9 = vld [vmem:[%s16702_s5 + $0x9e4] ss:$16 sps:$4 sm:$0xff]  }
 0x5df   : > { %7659 = vmatprep.mubr.bf16.mxu1 %v5315_v62  ;;  %7424 = vmatprep.subr.bf16.mxu0 %v9535_v57  ;;  %v9622_v57 = vld [vmem:[%s16702_s5 + $0x9ec] ss:$16 sps:$4 sm:$0xff]   ;;  %v9617_v62 = vld [vmem:[%s16702_s5 + $0x9e0] ss:$16 sps:$4 sm:$0xff]  }
 0x5e0   : > { %7629 = vmatprep.subr.bf16.mxu1 %v9538_v25  ;;  %v9620_v25 = vld [vmem:[%s16702_s5 + $0x9e8] ss:$16 sps:$4 sm:$0xff]  }
 0x5e1   : > { %7425 = vmatpush1.bf16.msra.mxu0 %v9533_v6  ;;  %v5291_v6 = vrot.slane %v16297_v2, %v17586_v50  ;;  %v9626_v2 = vld [vmem:[%s16704_s7 + $0x80] sm:$0xff]  }
 0x5e2   : > { %7630 = vmatpush1.bf16.msra.mxu1 %v9536_v42  ;;  %7426 = vmatprep.subr.bf16.mxu0 %v9541_v8  ;;  %v9623_v42 = vld [vmem:[%s16704_s7 + $0x40] sm:$0xff]  }
 0x5e3   : > { %7631 = vmatprep.subr.bf16.mxu1 %v9544_v35  ;;  %v9624_v8 = vld [vmem:[%s16704_s7 + $0xc0] sm:$0xff]  }
 0x5e4   : > { %v9625_v35 = vld [vmem:[%s16704_s7] sm:$0xff]  }
 0x5e5   : > { %7427 = vmatpush1.bf16.msra.mxu0 %v9539_v17  ;;  %v5314_v17 = vpack.c.bf16 %v5291_v6, %v5291_v6  ;;  %v9658_v6 = vld [vmem:[%s16706_s9 + $0x18] sm:$0xff]  }
 0x5e6   : > { %7632 = vmatpush1.bf16.msra.mxu1 %v9542_v0  ;;  %7428 = vmatprep.subr.bf16.mxu0 %v9547_v41  ;;  %v9627_v0 = vld [vmem:[%s16704_s7 + $0x48] sm:$0xff]  }
 0x5e7   : > { %7633 = vmatprep.subr.bf16.mxu1 %v9550_v52  ;;  %v9628_v41 = vld [vmem:[%s16704_s7 + $0xc8] sm:$0xff]  }
 0x5e8   : > { %v9629_v52 = vld [vmem:[%s16704_s7 + $0x8] sm:$0xff]  }
 0x5e9   : > { %7429 = vmatpush1.bf16.msra.mxu0 %v9545_v40  ;;  %v9630_v40 = vld [vmem:[%s16704_s7 + $0x88] sm:$0xff]  }
 0x5ea   : > { %7634 = vmatpush1.bf16.msra.mxu1 %v9548_v53  ;;  %7430 = vmatprep.subr.bf16.mxu0 %v9553_v38  ;;  %v9631_v53 = vld [vmem:[%s16704_s7 + $0x50] sm:$0xff]  }
 0x5eb   : > { %7635 = vmatprep.subr.bf16.mxu1 %v9556_v18  ;;  %v9632_v38 = vld [vmem:[%s16704_s7 + $0xd0] sm:$0xff]  }
 0x5ec   : > { %v9633_v18 = vld [vmem:[%s16704_s7 + $0x10] sm:$0xff]  }
 0x5ed   : > { %7431 = vmatpush1.bf16.msra.mxu0 %v9551_v34  ;;  %v9634_v34 = vld [vmem:[%s16704_s7 + $0x90] sm:$0xff]  }
 0x5ee   : > { %7636 = vmatpush1.bf16.msra.mxu1 %v9554_v4  ;;  %7432 = vmatprep.subr.bf16.mxu0 %v9559_v15  ;;  %v9635_v4 = vld [vmem:[%s16704_s7 + $0x58] sm:$0xff]  }
 0x5ef   : > { %7637 = vmatprep.subr.bf16.mxu1 %v9562_v21  ;;  %v9636_v15 = vld [vmem:[%s16704_s7 + $0xd8] sm:$0xff]  }
 0x5f0   : > { %v9637_v21 = vld [vmem:[%s16704_s7 + $0x18] sm:$0xff]  }
 0x5f1   : > { %7433 = vmatpush1.bf16.msra.mxu0 %v9557_v45  ;;  %v9638_v45 = vld [vmem:[%s16704_s7 + $0x98] sm:$0xff]  }
 0x5f2   : > { %7638 = vmatpush1.bf16.msra.mxu1 %v9560_v60  ;;  %7434 = vmatprep.subr.bf16.mxu0 %v9565_v20  ;;  %v9639_v60 = vld [vmem:[%s16704_s7 + $0x60] sm:$0xff]  }
 0x5f3   : > { %7639 = vmatprep.subr.bf16.mxu1 %v9568_v51  ;;  %v9640_v20 = vld [vmem:[%s16704_s7 + $0xe0] sm:$0xff]  }
 0x5f4   : > { %v9641_v51 = vld [vmem:[%s16704_s7 + $0x20] sm:$0xff]  }
 0x5f5   : > { %7435 = vmatpush1.bf16.msra.mxu0 %v9563_v26  ;;  %v9642_v26 = vld [vmem:[%s16704_s7 + $0xa0] sm:$0xff]  }
 0x5f6   : > { %7640 = vmatpush1.bf16.msra.mxu1 %v9566_v14  ;;  %7436 = vmatprep.subr.bf16.mxu0 %v9571_v33  ;;  %v9643_v14 = vld [vmem:[%s16704_s7 + $0x68] sm:$0xff]  }
 0x5f7   : > { %7641 = vmatprep.subr.bf16.mxu1 %v9574_v54  ;;  %v9644_v33 = vld [vmem:[%s16704_s7 + $0xe8] sm:$0xff]  }
 0x5f8   : > { %v9645_v54 = vld [vmem:[%s16704_s7 + $0x28] sm:$0xff]  }
 0x5f9   : > { %7437 = vmatpush1.bf16.msra.mxu0 %v9569_v16  ;;  %v9646_v16 = vld [vmem:[%s16704_s7 + $0xa8] sm:$0xff]  }
 0x5fa   : > { %7642 = vmatpush1.bf16.msra.mxu1 %v9572_v44  ;;  %7438 = vmatprep.subr.bf16.mxu0 %v9577_v31  ;;  %v9647_v44 = vld [vmem:[%s16704_s7 + $0x70] sm:$0xff]  }
 0x5fb   : > { %7643 = vmatprep.subr.bf16.mxu1 %v9580_v37  ;;  %v9648_v31 = vld [vmem:[%s16704_s7 + $0xf0] sm:$0xff]  }
 0x5fc   : > { %v9649_v37 = vld [vmem:[%s16704_s7 + $0x30] sm:$0xff]  }
 0x5fd   : > { %7439 = vmatpush1.bf16.msra.mxu0 %v9575_v56  ;;  %v9650_v56 = vld [vmem:[%s16704_s7 + $0xb0] sm:$0xff]  }
 0x5fe   : > { %7644 = vmatpush1.bf16.msra.mxu1 %v9578_v23  ;;  %7440 = vmatprep.subr.bf16.mxu0 %v9583_v39  ;;  %v9651_v23 = vld [vmem:[%s16704_s7 + $0x78] sm:$0xff]  }
 0x5ff   : > { %7645 = vmatprep.subr.bf16.mxu1 %v9586_v1  ;;  %v9652_v39 = vld [vmem:[%s16704_s7 + $0xf8] sm:$0xff]  }
 0x600   : > { %v9653_v1 = vld [vmem:[%s16704_s7 + $0x38] sm:$0xff]  }
 0x601   : > { %7441 = vmatpush1.bf16.msra.mxu0 %v9581_v7  ;;  %v9654_v7 = vld [vmem:[%s16704_s7 + $0xb8] sm:$0xff]  }
 0x602   : > { %7646 = vmatpush1.bf16.msra.mxu1 %v9584_v13  ;;  %7442 = vmatprep.subr.bf16.mxu0 %v9589_v27  ;;  %v5636_v13 = vld [vmem:[%s16703_s6] sm:$0xf] }
 0x603   : > { %7647 = vmatprep.subr.bf16.mxu1 %v9592_v29  ;;  %v7241_v27 = vrot.slane %v5636_v13, %v17586_v50  ;;  %v7249_v29 = vrot.slane %v5636_v13, %v17591_v30 }
 0x605   : > { %7443 = vmatpush1.bf16.msra.mxu0 %v9587_v28  ;;  %v7245_v28 = vrot.slane %v5636_v13, %v17585_v49  ;;  %v9655_v49 = vld [vmem:[%s16706_s9] sm:$0xff]  }
 0x606   : > { %7648 = vmatpush1.bf16.msra.mxu1 %v9590_v36  ;;  %7444 = vmatprep.subr.bf16.mxu0 %v9595_v32  ;;  %v7253_v36 = vrot.slane %v5636_v13, %v17587_v58 }
 0x607   : > { %7649 = vmatprep.subr.bf16.mxu1 %v9598_v5 }
 0x609   : > { %7445 = vmatpush1.bf16.msra.mxu0 %v9593_v12 }
 0x60a   : > { %7650 = vmatpush1.bf16.msra.mxu1 %v9596_v47  ;;  %7446 = vmatprep.subr.bf16.mxu0 %v9601_v19 }
 0x60b   : > { %7651 = vmatprep.subr.bf16.mxu1 %v9604_v10 }
 0x60d   : > { %7447 = vmatpush1.bf16.msra.mxu0 %v9599_v3 }
 0x60e   : > { %7652 = vmatpush1.bf16.msra.mxu1 %v9602_v48  ;;  %7448 = vmatprep.subr.bf16.mxu0 %v9607_v43 }
 0x60f   : > { %7653 = vmatprep.subr.bf16.mxu1 %v9610_v59 }
 0x611   : > { %7449 = vmatpush1.bf16.msra.mxu0 %v9605_v55 }
 0x612   : > { %7654 = vmatpush1.bf16.msra.mxu1 %v9608_v24  ;;  %7450 = vmatprep.subr.bf16.mxu0 %v9613_v46 }
 0x613   : > { %7655 = vmatprep.subr.bf16.mxu1 %v9616_v61 }
 0x615   : > { %7451 = vmatpush1.bf16.msra.mxu0 %v9611_v63 }
 0x616   : > { %7656 = vmatpush1.bf16.msra.mxu1 %v9614_v11  ;;  %7452 = vmatprep.subr.bf16.mxu0 %v9619_v9 }
 0x617   : > { %7657 = vmatprep.subr.bf16.mxu1 %v9622_v57 }
 0x619   : > { %7453 = vmatpush1.bf16.msra.mxu0 %v9617_v62  ;;  %v9656_v62 = vld [vmem:[%s16706_s9 + $0x8] sm:$0xff]  }
 0x61a   : > { %7658 = vmatpush1.bf16.msra.mxu1 %v9620_v25  ;;  %8802 = vmatprep.subr.bf16.mxu0 %v9623_v42  ;;  %v9657_v25 = vld [vmem:[%s16706_s9 + $0x10] sm:$0xff]   ;;  %v9659_v42 = vld [vmem:[%s16706_s9 + $0x20] sm:$0xff]  }
 0x61b   : > { %8824 = vmatprep.subr.bf16.mxu1 %v9624_v8  ;;  %v9660_v8 = vld [vmem:[%s16706_s9 + $0x28] sm:$0xff]  }
 0x61c   : > { %7455 = vmatmul.mubr.bf16.vlgmr.msra.gmra.mrb[172].mxu0 %v5314_v17 }
 0x61d   : > { %7660 = vmatmul.mubr.bf16.vlgmr.msra.gmra.mrb[200].mxu1 %v5314_v17  ;;  %8803 = vmatpush3.bf16.msra.mxu0 %v9625_v35  ;;  %v9661_v35 = vld [vmem:[%s16706_s9 + $0x30] sm:$0xff]   ;;  %v9662_v17 = vld [vmem:[%s16706_s9 + $0x38] sm:$0xff]  }
 0x61e   : > { %8825 = vmatpush3.bf16.msra.mxu1 %v9626_v2  ;;  %8804 = vmatprep.subr.bf16.mxu0 %v9627_v0  ;;  %v9663_v2 = vld [vmem:[%s16708_s11] sm:$0xff]   ;;  %v9664_v0 = vld [vmem:[%s16708_s11 + $0x8] sm:$0xff]  }
 0x61f   : > { %8826 = vmatprep.subr.bf16.mxu1 %v9628_v41  ;;  %v9665_v41 = vld [vmem:[%s16708_s11 + $0x10] sm:$0xff]  }
 0x621   : > { %8805 = vmatpush3.bf16.msra.mxu0 %v9629_v52  ;;  %v9666_v52 = vld [vmem:[%s16708_s11 + $0x18] sm:$0xff]  }
 0x622   : > { %8827 = vmatpush3.bf16.msra.mxu1 %v9630_v40  ;;  %8806 = vmatprep.subr.bf16.mxu0 %v9631_v53  ;;  %v9667_v40 = vld [vmem:[%s16708_s11 + $0x20] sm:$0xff]   ;;  %v9668_v53 = vld [vmem:[%s16708_s11 + $0x28] sm:$0xff]  }
 0x623   : > { %8828 = vmatprep.subr.bf16.mxu1 %v9632_v38  ;;  %v9669_v38 = vld [vmem:[%s16708_s11 + $0x30] sm:$0xff]  }
 0x625   : > { %8807 = vmatpush3.bf16.msra.mxu0 %v9633_v18 }
 0x626   : > { %8829 = vmatpush3.bf16.msra.mxu1 %v9634_v34  ;;  %8808 = vmatprep.subr.bf16.mxu0 %v9635_v4  ;;  %v7740_v4 = vld [vmem:[%s16705_s8] sm:$0x1] }
 0x627   : > { %8830 = vmatprep.subr.bf16.mxu1 %v9636_v15 }
 0x629   : > { %8809 = vmatpush3.bf16.msra.mxu0 %v9637_v21 }
 0x62a   : > { %8831 = vmatpush3.bf16.msra.mxu1 %v9638_v45  ;;  %8810 = vmatprep.subr.bf16.mxu0 %v9639_v60 }
 0x62b   : > { %8832 = vmatprep.subr.bf16.mxu1 %v9640_v20 }
 0x62d   : > { %8811 = vmatpush3.bf16.msra.mxu0 %v9641_v51 }
 0x62e   : > { %8833 = vmatpush3.bf16.msra.mxu1 %v9642_v26  ;;  %8812 = vmatprep.subr.bf16.mxu0 %v9643_v14 }
 0x62f   : > { %8834 = vmatprep.subr.bf16.mxu1 %v9644_v33 }
 0x631   : > { %8813 = vmatpush3.bf16.msra.mxu0 %v9645_v54 }
 0x632   : > { %8835 = vmatpush3.bf16.msra.mxu1 %v9646_v16  ;;  %8814 = vmatprep.subr.bf16.mxu0 %v9647_v44  ;;  %v8030_v44 = vld [vmem:[%s16707_s10] sm:$0x1] }
 0x633   : > { %8836 = vmatprep.subr.bf16.mxu1 %v9648_v31 }
 0x635   : > { %8815 = vmatpush3.bf16.msra.mxu0 %v9649_v37 }
 0x636   : > { %8837 = vmatpush3.bf16.msra.mxu1 %v9650_v56  ;;  %8816 = vmatprep.subr.bf16.mxu0 %v9651_v23 }
 0x637   : > { %8838 = vmatprep.subr.bf16.mxu1 %v9652_v39 }
 0x639   : > { %8817 = vmatpush3.bf16.msra.mxu0 %v9653_v1 }
 0x63a   : > { %8839 = vmatpush3.bf16.msra.mxu1 %v9654_v7  ;;  %8900 = vmatprep.subr.bf16.mxu0 %v11107_v22  ;;  %v8136_v7 = vld [vmem:[%s16709_s12] sm:$0x1] }
 0x63b   : > { %8920 = vmatprep.subr.bf16.mxu1 %v11107_v22 }
 0x6ef   : > { %v7456_v32 = vpop.f32.mrb[172].mxu0 }
 0x6f0   : > { %v8940_v5 = vadd.f32 %v7456_v32, %v7241_v27  ;;  %v7661_v12 = vpop.f32.mrb[200].mxu1  ;;  %v7458_v47 = vpop.f32.mrb[173].mxu0 }
 0x6f1   : > { %v8942_v19 = vadd.f32 %v7661_v12, %v7249_v29  ;;  %v8941_v10 = vadd.f32 %v7458_v47, %v7245_v28  ;;  %v7663_v3 = vpop.f32.mrb[201].mxu1  ;;  %v7460_v48 = vpop.f32.mrb[174].mxu0 }
 0x6f2   : > { %v7668_v43 = vmax.f32 %v8940_v5, 0.0  ;;  %v8943_v59 = vadd.f32 %v7663_v3, %v7253_v36  ;;  %v7665_v55 = vpop.f32.mrb[202].mxu1  ;;  %v7461_v24 = vpop.f32.mrb[175].mxu0 }
 0x6f3   : > { %v7670_v46 = vmax.f32 %v8942_v19, 0.0  ;;  %v7669_v61 = vmax.f32 %v8941_v10, 0.0  ;;  %v7666_v63 = vpop.f32.mrb[203].mxu1 }
 0x6f4   : > { %v7671_v30 = vmax.f32 %v8943_v59, 0.0  ;;  %v7672_v58 = vpack.c.bf16 %v7668_v43, %v7668_v43 }
 0x6f5   : > { %v7673_v11 = vpack.c.bf16 %v7669_v61, %v7669_v61  ;;  %v7674_v57 = vpack.c.bf16 %v7670_v46, %v7670_v46 }
 0x6f6   : > { %v7675_v9 = vpack.c.bf16 %v7671_v30, %v7671_v30 }
 0x6f7   : > { %7965 = vmatprep.mubr.bf16.mxu0 %v7673_v11 }
 0x6f8   : > { %8005 = vmatprep.mubr.bf16.mxu1 %v7675_v9  ;;  %7966 = vmatmul.mubr.bf16.vlgmr.msra.gmra.mrb[176].mxu0 %v7672_v58 }
 0x6f9   : > { %8006 = vmatmul.mubr.bf16.vlgmr.msra.gmra.mrb[204].mxu1 %v7674_v57  ;;  %8901 = vmatpush3.bf16.msra.mxu0 %v9655_v49 }
 0x6fa   : > { %8902 = vmatprep.subr.bf16.mxu0 %v11107_v22  ;;  %8916 = vmatprep.mubr.msk.bf16.mxu0 %vm11108_vm2, %v11107_v22 }
 0x6fb   : > { %8936 = vmatprep.mubr.msk.bf16.mxu1 %vm11108_vm2, %v11107_v22  ;;  %8921 = vmatpush3.bf16.msra.mxu1 %v9663_v2 }
 0x6fc   : > { %8922 = vmatprep.subr.bf16.mxu1 %v11107_v22 }
 0x6fd   : > { %8903 = vmatpush3.bf16.msra.mxu0 %v9656_v62 }
 0x6fe   : > { %8904 = vmatprep.subr.bf16.mxu0 %v11107_v22 }
 0x6ff   : > { %8923 = vmatpush3.bf16.msra.mxu1 %v9664_v0 }
 0x700   : > { %8924 = vmatprep.subr.bf16.mxu1 %v11107_v22 }
 0x701   : > { %8905 = vmatpush3.bf16.msra.mxu0 %v9657_v25 }
 0x702   : > { %8906 = vmatprep.subr.bf16.mxu0 %v11107_v22 }
 0x703   : > { %8925 = vmatpush3.bf16.msra.mxu1 %v9665_v41 }
 0x704   : > { %8926 = vmatprep.subr.bf16.mxu1 %v11107_v22 }
 0x705   : > { %8907 = vmatpush3.bf16.msra.mxu0 %v9658_v6 }
 0x706   : > { %8908 = vmatprep.subr.bf16.mxu0 %v11107_v22 }
 0x707   : > { %8927 = vmatpush3.bf16.msra.mxu1 %v9666_v52 }
 0x708   : > { %8928 = vmatprep.subr.bf16.mxu1 %v11107_v22 }
 0x709   : > { %8909 = vmatpush3.bf16.msra.mxu0 %v9659_v42 }
 0x70a   : > { %8910 = vmatprep.subr.bf16.mxu0 %v11107_v22 }
 0x70b   : > { %8929 = vmatpush3.bf16.msra.mxu1 %v9667_v40 }
 0x70c   : > { %8930 = vmatprep.subr.bf16.mxu1 %v11107_v22 }
 0x70d   : > { %8911 = vmatpush3.bf16.msra.mxu0 %v9660_v8 }
 0x70e   : > { %8912 = vmatprep.subr.bf16.mxu0 %v11107_v22 }
 0x70f   : > { %8931 = vmatpush3.bf16.msra.mxu1 %v9668_v53 }
 0x710   : > { %8932 = vmatprep.subr.bf16.mxu1 %v11107_v22 }
 0x711   : > { %8913 = vmatpush3.bf16.msra.mxu0 %v9661_v35 }
 0x712   : > { %8914 = vmatprep.subr.bf16.mxu0 %v11107_v22 }
 0x713   : > { %8933 = vmatpush3.bf16.msra.mxu1 %v9669_v38 }
 0x714   : > { %8934 = vmatprep.subr.bf16.mxu1 %v11107_v22  ;;  %v9670_v22 = vld [vmem:[%s16708_s11 + $0x38] sm:$0xff]  }
 0x715   : > { %8915 = vmatpush3.bf16.msra.mxu0 %v9662_v17 }
 0x717   : > { %8935 = vmatpush3.bf16.msra.mxu1 %v9670_v22 }
 0x7cb   : > { %v8818_v18 = vpop.f32.mrb[176].mxu0 }
 0x7cc   : > { %v8840_v34 = vpop.f32.mrb[204].mxu1  ;;  %v8819_v15 = vpop.f32.mrb[177].mxu0 }
 0x7cd   : > { %v8820_v21 = vadd.f32 %v8819_v15, %v8818_v18  ;;  %v8841_v45 = vpop.f32.mrb[205].mxu1  ;;  %v8821_v60 = vpop.f32.mrb[178].mxu0 }
 0x7ce   : > { %v8842_v20 = vadd.f32 %v8841_v45, %v8840_v34  ;;  %v8843_v51 = vpop.f32.mrb[206].mxu1  ;;  %v8822_v26 = vpop.f32.mrb[179].mxu0 }
 0x7cf   : > { %v7968_v14 = vadd.f32 %v8820_v21, %v7740_v4  ;;  %v8844_v33 = vpop.f32.mrb[207].mxu1 }
 0x7d1   : > { %v8008_v54 = vadd.f32 %v8842_v20, %v7968_v14 }
 0x7d3   : > { %v8013_v16 = vpack.c.bf16 %v8008_v54, %v8008_v54 }
 0x7d5   : > { %8917 = vmatmul.mubr.bf16.vlgmr.msra.gmra.mrb[180].mxu0 %v8013_v16 }
 0x8a8   : > { %v8113_v31 = vpop.f32.mrb[180].mxu0 }
 0x8a9   : > { %v8114_v37 = vadd.f32 %v8113_v31, %v8030_v44  ;;  %v8918_v56 = vpop.f32.mrb[181].mxu0 }
 0x8aa   : > { %v8116_v23 = vpop.f32.mrb[182].mxu0 }
 0x8ab   : > { %v8119_v39 = vpack.c.bf16 %v8114_v37, %v8114_v37  ;;  %v8919_v1 = vpop.f32.mrb[183].mxu0 }
 0x8ad   : > { %8937 = vmatmul.mubr.bf16.vlgmr.msra.gmra.mrb[208].mxu1 %v8119_v39 }
 0x980   : > { %v8219_v13 = vpop.f32.mrb[208].mxu1 }
 0x981   : > { %v8220_v27 = vadd.f32 %v8219_v13, %v8136_v7  ;;  %v8938_v29 = vpop.f32.mrb[209].mxu1 }
 0x982   : > { %v8222_v28 = vpop.f32.mrb[210].mxu1 }
 0x983   : > { %v8228_v36 = vrot.slane %v8220_v27, %v17586_v50  ;;  %v8939_v32 = vpop.f32.mrb[211].mxu1 }
 0x985   : > { %8229 = vst [vmem:[%s459_s14] sm:$0xff] %v8228_v36 }
 0x986 PF: > { %s23_s27 = sadd.s32 1, %s11102_s27   ;;  %s17596_s25 = smov %s11098_s26 }
 0x987   : > { %p20_p6 = scmp.ge.s32.totalorder %s23_s27, 4   ;;  %s17597_s26 = smov %s17599_s28 }
 0x989   :  { %22 = sbr.rel (!%p20_p6) target bundleno = 2 (0x2), region = 110 }

</bundles_post_ra>
